<compile_context>
chip_gen: v5e
topology: v5e:2x2
jax: 0.10.0
libtpu: 0.0.40
codegen_flags: <defaults>
</compile_context>

<pallas_src>
import functools

import numpy as np
import jax
import jax.numpy as jnp
from jax.experimental import pallas as pl
from jax.experimental.pallas import tpu as pltpu


def _pad_to(n, m):
    return ((n + m - 1) // m) * m


def _crf_loose_kernel(unary_ref, w_ref, uw_ref, pw_ref, out_ref, *,
                      num_steps, C, H, W, Hp, Wp, nb):
    """One grid step == `nb` batch elements.

    unary_ref : [nb, C, Hp, Wp]  f32 (VMEM)  spatially zero-padded NCHW
    w_ref     : [S*C*C*9]        f32 (SMEM)  conv weights, PyTorch [S,Co,Ci,3,3] order
    uw_ref    : [S]              f32 (SMEM)  per-step unary weights
    pw_ref    : [S]              f32 (SMEM)  per-step pairwise weights
    out_ref   : [nb, C, Hp, Wp]  f32 (VMEM)  final logQ (padding region is garbage)
    """
    # ---- hoisted 0/1 border masks: depend only on row / column index ----
    riota = jax.lax.broadcasted_iota(jnp.int32, (Hp, 1), 0)
    ciota = jax.lax.broadcasted_iota(jnp.int32, (1, Wp), 1)
    ym = {-1: (riota >= 1).astype(jnp.float32),
          0: None,
          1: (riota <= H - 2).astype(jnp.float32)}
    xm = {-1: (ciota >= 1).astype(jnp.float32),
          0: None,
          1: (ciota <= W - 2).astype(jnp.float32)}

    for n in range(nb):                       # static unroll over the batch block
        unary = [unary_ref[n, c] for c in range(C)]       # C x [Hp, Wp] tiles
        logq = list(unary)

        for s in range(num_steps):            # static unroll (S is small)
            # -- channel softmax: channels are separate tiles -> pure VPU/EUP --
            mx = logq[0]
            for c in range(1, C):
                mx = jnp.maximum(mx, logq[c])
            e = [jnp.exp(logq[c] - mx) for c in range(C)]
            den = e[0]
            for c in range(1, C):
                den = den + e[c]
            inv = pl.reciprocal(den, approx=True)          # EUP slot
            q = [e[c] * inv for c in range(C)]

            # -- 3x3 'na' messenger: +/-1 sublane/lane rolls + scalar FMAs --
            msg = [jnp.zeros((Hp, Wp), jnp.float32) for _ in range(C)]
            for ky in range(3):
                dy = ky - 1
                if dy == 0:
                    q_dy = q
                else:
                    q_dy = [pltpu.roll(q[i], shift=(-dy) % Hp, axis=0) * ym[dy]
                            for i in range(C)]
                for kx in range(3):
                    dx = kx - 1
                    for i in range(C):
                        if dx == 0:
                            r = q_dy[i]
                        else:
                            r = pltpu.roll(q_dy[i], shift=(-dx) % Wp, axis=1) * xm[dx]
                        for o in range(C):
                            widx = (((s * C + o) * C + i) * 3 + ky) * 3 + kx
                            msg[o] = msg[o] + w_ref[widx] * r

            # -- mean-field update --
            uw = uw_ref[s]
            pw = pw_ref[s]
            logq = [unary[c] * uw - msg[c] * pw for c in range(C)]

        for c in range(C):
            out_ref[n, c] = logq[c]


def pac_crf_loose_forward(unary_nchw, edge_feat, conv_weights, unary_weights,
                          pairwise_weights, *, nb=1):
    """unary_nchw: [N, C, H, W]; conv_weights: [S, Cout, Cin, 3, 3] (PyTorch).

    `nb` = batch elements per grid step.  Keep N // nb >= 2 where possible so
    both v7x TensorCores get a "parallel" grid iteration; raise nb when images
    are tiny and N is large to amortize per-grid-step overhead.
    """
    del edge_feat  # unused by the 'na' messenger configuration
    N, C, H, W = unary_nchw.shape
    S = conv_weights.shape[0]
    if C > 8:
        # TODO(synk): per-dy stacked K=3*C bf16 MXU matmul path for large C.
        raise NotImplementedError("only the small-C (<=8) VPU messenger is implemented")
    if N % nb != 0:
        nb = 1
    Hp = _pad_to(H, 8)
    Wp = _pad_to(W, 128)       # 128-aligned row stride -> only +/-1-lane rolls

    unary = jnp.pad(unary_nchw.astype(jnp.float32),
                    ((0, 0), (0, 0), (0, Hp - H), (0, Wp - W)))
    w_flat = conv_weights.astype(jnp.float32).reshape(-1)   # [S*C*C*9] for SMEM

    kernel = functools.partial(_crf_loose_kernel, num_steps=S, C=C, H=H, W=W,
                               Hp=Hp, Wp=Wp, nb=nb)

    out = pl.pallas_call(
        kernel,
        out_shape=jax.ShapeDtypeStruct((N, C, Hp, Wp), jnp.float32),
        grid_spec=pltpu.PrefetchScalarGridSpec(
            num_scalar_prefetch=0,
            grid=(N // nb,),
            in_specs=[
                pl.BlockSpec((nb, C, Hp, Wp), lambda n: (n, 0, 0, 0)),
                # tiny weights / per-step scalars live in SMEM (scalar reads)
                pl.BlockSpec(memory_space=pltpu.MemorySpace.SMEM),
                pl.BlockSpec(memory_space=pltpu.MemorySpace.SMEM),
                pl.BlockSpec(memory_space=pltpu.MemorySpace.SMEM),
            ],
            out_specs=pl.BlockSpec((nb, C, Hp, Wp), lambda n: (n, 0, 0, 0)),
        ),
        compiler_params=pltpu.CompilerParams(
            dimension_semantics=("parallel",)),
    )(unary, w_flat,
      unary_weights.astype(jnp.float32),
      pairwise_weights.astype(jnp.float32))

    return out[:, :, :H, :W]


def _reference_forward(unary, conv_w, uw, pw):
    """Pure-JAX reference of the same PacCRFLoose configuration (NCHW)."""
    logQ = unary
    for s in range(conv_w.shape[0]):
        q = jax.nn.softmax(logQ, axis=1)
        msg = jax.lax.conv_general_dilated(
            q, conv_w[s], window_strides=(1, 1), padding=((1, 1), (1, 1)),
            dimension_numbers=('NCHW', 'OIHW', 'NCHW'),
            precision=jax.lax.Precision.HIGHEST)
        logQ = unary * uw[s] - msg * pw[s]
    return logQ


if __name__ == "__main__":
    N, C, H, W = 2, 4, 16, 16   # batch, categories, spatial
    S = 3                       # num_steps

    key = jax.random.PRNGKey(0)
    k_unary, k_edge, k_w = jax.random.split(key, 3)

    unary = jax.random.normal(k_unary, (N, C, H, W), jnp.float32)
    edge_feat = jax.random.normal(k_edge, (N, 3, H, W), jnp.float32)  # unused

    # Deterministic stand-in for nn.Conv2d's default (kaiming-uniform) init.
    bound = 1.0 / np.sqrt(C * 3 * 3)
    conv_w = jax.random.uniform(k_w, (S, C, C, 3, 3), jnp.float32,
                                minval=-bound, maxval=bound)
    unary_weights = jnp.ones((S,), jnp.float32)      # nn.Parameter(1.0) / step
    pairwise_weights = jnp.ones((S,), jnp.float32)   # init_pairwise_weight=1.0

    out = pac_crf_loose_forward(unary, edge_feat, conv_w, unary_weights,
                                pairwise_weights, nb=1)
    out = jax.block_until_ready(out)

    ref = _reference_forward(unary, conv_w, unary_weights, pairwise_weights)
    # tolerance accounts for the EUP approximate reciprocal in the softmax
    np.testing.assert_allclose(np.asarray(out), np.asarray(ref),
                               rtol=1e-2, atol=1e-2)
    print("KERNEL_OK")
</pallas_src>

<mosaic_0001>
module attributes {stable_mosaic.version = 11 : i64} {
  func.func @_crf_loose_kernel(%arg0: i32, %arg1: memref<1x4x16x128xf32, #tpu.memory_space<vmem>>, %arg2: memref<432xf32, #tpu.memory_space<smem>>, %arg3: memref<3xf32, #tpu.memory_space<smem>>, %arg4: memref<3xf32, #tpu.memory_space<smem>>, %arg5: memref<1x4x16x128xf32, #tpu.memory_space<vmem>>) attributes {dimension_semantics = [#tpu.dimension_semantics<parallel>], iteration_bounds = array<i64: 2>, scalar_prefetch = 0 : i64, scratch_operands = 0 : i64, tpu.core_type = #tpu.core_type<tc>, window_params = [{transform_indices = @transform_0, window_bounds = array<i64: 1, 4, 16, 128>}, {transform_indices = @transform_1, window_bounds = array<i64: 432>}, {transform_indices = @transform_2, window_bounds = array<i64: 3>}, {transform_indices = @transform_3, window_bounds = array<i64: 3>}, {transform_indices = @transform_4, window_bounds = array<i64: 1, 4, 16, 128>}]} {
    %0 = tpu.iota {dimensions = array<i32: 0>} : vector<16x1xi32>
    %1 = tpu.iota {dimensions = array<i32: 1>} : vector<1x128xi32>
    %c1_i32 = arith.constant 1 : i32
    %2 = vector.broadcast %c1_i32 : i32 to vector<16x1xi32>
    %3 = arith.cmpi sge, %0, %2 : vector<16x1xi32>
    %4 = arith.extui %3 : vector<16x1xi1> to vector<16x1xi32>
    %5 = arith.sitofp %4 : vector<16x1xi32> to vector<16x1xf32>
    %c14_i32 = arith.constant 14 : i32
    %6 = vector.broadcast %c14_i32 : i32 to vector<16x1xi32>
    %7 = arith.cmpi sle, %0, %6 : vector<16x1xi32>
    %8 = arith.extui %7 : vector<16x1xi1> to vector<16x1xi32>
    %9 = arith.sitofp %8 : vector<16x1xi32> to vector<16x1xf32>
    %c1_i32_0 = arith.constant 1 : i32
    %10 = vector.broadcast %c1_i32_0 : i32 to vector<1x128xi32>
    %11 = arith.cmpi sge, %1, %10 : vector<1x128xi32>
    %12 = arith.extui %11 : vector<1x128xi1> to vector<1x128xi32>
    %13 = arith.sitofp %12 : vector<1x128xi32> to vector<1x128xf32>
    %c14_i32_1 = arith.constant 14 : i32
    %14 = vector.broadcast %c14_i32_1 : i32 to vector<1x128xi32>
    %15 = arith.cmpi sle, %1, %14 : vector<1x128xi32>
    %16 = arith.extui %15 : vector<1x128xi1> to vector<1x128xi32>
    %17 = arith.sitofp %16 : vector<1x128xi32> to vector<1x128xf32>
    %c0 = arith.constant 0 : index
    %c0_2 = arith.constant 0 : index
    %c0_3 = arith.constant 0 : index
    %c0_4 = arith.constant 0 : index
    %18 = vector.load %arg1[%c0, %c0_2, %c0_3, %c0_4] : memref<1x4x16x128xf32, #tpu.memory_space<vmem>>, vector<1x1x16x128xf32>
    %19 = vector.shape_cast %18 : vector<1x1x16x128xf32> to vector<16x128xf32>
    %c0_5 = arith.constant 0 : index
    %c1 = arith.constant 1 : index
    %c0_6 = arith.constant 0 : index
    %c0_7 = arith.constant 0 : index
    %20 = vector.load %arg1[%c0_5, %c1, %c0_6, %c0_7] : memref<1x4x16x128xf32, #tpu.memory_space<vmem>>, vector<1x1x16x128xf32>
    %21 = vector.shape_cast %20 : vector<1x1x16x128xf32> to vector<16x128xf32>
    %c0_8 = arith.constant 0 : index
    %c2 = arith.constant 2 : index
    %c0_9 = arith.constant 0 : index
    %c0_10 = arith.constant 0 : index
    %22 = vector.load %arg1[%c0_8, %c2, %c0_9, %c0_10] : memref<1x4x16x128xf32, #tpu.memory_space<vmem>>, vector<1x1x16x128xf32>
    %23 = vector.shape_cast %22 : vector<1x1x16x128xf32> to vector<16x128xf32>
    %c0_11 = arith.constant 0 : index
    %c3 = arith.constant 3 : index
    %c0_12 = arith.constant 0 : index
    %c0_13 = arith.constant 0 : index
    %24 = vector.load %arg1[%c0_11, %c3, %c0_12, %c0_13] : memref<1x4x16x128xf32, #tpu.memory_space<vmem>>, vector<1x1x16x128xf32>
    %25 = vector.shape_cast %24 : vector<1x1x16x128xf32> to vector<16x128xf32>
    %26 = arith.maximumf %19, %21 : vector<16x128xf32>
    %27 = arith.maximumf %26, %23 : vector<16x128xf32>
    %28 = arith.maximumf %27, %25 : vector<16x128xf32>
    %29 = arith.subf %19, %28 : vector<16x128xf32>
    %30 = math.exp %29 : vector<16x128xf32>
    %31 = arith.subf %21, %28 : vector<16x128xf32>
    %32 = math.exp %31 : vector<16x128xf32>
    %33 = arith.subf %23, %28 : vector<16x128xf32>
    %34 = math.exp %33 : vector<16x128xf32>
    %35 = arith.subf %25, %28 : vector<16x128xf32>
    %36 = math.exp %35 : vector<16x128xf32>
    %37 = arith.addf %30, %32 : vector<16x128xf32>
    %38 = arith.addf %37, %34 : vector<16x128xf32>
    %39 = arith.addf %38, %36 : vector<16x128xf32>
    %40 = tpu.reciprocal %39 {approx = true} : vector<16x128xf32> -> vector<16x128xf32>
    %41 = arith.mulf %30, %40 : vector<16x128xf32>
    %42 = arith.mulf %32, %40 : vector<16x128xf32>
    %43 = arith.mulf %34, %40 : vector<16x128xf32>
    %44 = arith.mulf %36, %40 : vector<16x128xf32>
    %cst = arith.constant 0.000000e+00 : f32
    %45 = vector.broadcast %cst : f32 to vector<16x128xf32>
    %cst_14 = arith.constant 0.000000e+00 : f32
    %46 = vector.broadcast %cst_14 : f32 to vector<16x128xf32>
    %cst_15 = arith.constant 0.000000e+00 : f32
    %47 = vector.broadcast %cst_15 : f32 to vector<16x128xf32>
    %cst_16 = arith.constant 0.000000e+00 : f32
    %48 = vector.broadcast %cst_16 : f32 to vector<16x128xf32>
    %c1_i32_17 = arith.constant 1 : i32
    %49 = tpu.dynamic_rotate %41 by %c1_i32_17 dim 0 : vector<16x128xf32>, i32 -> vector<16x128xf32>
    %50 = vector.broadcast %5 : vector<16x1xf32> to vector<16x128xf32>
    %51 = arith.mulf %49, %50 : vector<16x128xf32>
    %c1_i32_18 = arith.constant 1 : i32
    %52 = tpu.dynamic_rotate %42 by %c1_i32_18 dim 0 : vector<16x128xf32>, i32 -> vector<16x128xf32>
    %53 = vector.broadcast %5 : vector<16x1xf32> to vector<16x128xf32>
    %54 = arith.mulf %52, %53 : vector<16x128xf32>
    %c1_i32_19 = arith.constant 1 : i32
    %55 = tpu.dynamic_rotate %43 by %c1_i32_19 dim 0 : vector<16x128xf32>, i32 -> vector<16x128xf32>
    %56 = vector.broadcast %5 : vector<16x1xf32> to vector<16x128xf32>
    %57 = arith.mulf %55, %56 : vector<16x128xf32>
    %c1_i32_20 = arith.constant 1 : i32
    %58 = tpu.dynamic_rotate %44 by %c1_i32_20 dim 0 : vector<16x128xf32>, i32 -> vector<16x128xf32>
    %59 = vector.broadcast %5 : vector<16x1xf32> to vector<16x128xf32>
    %60 = arith.mulf %58, %59 : vector<16x128xf32>
    %c1_i32_21 = arith.constant 1 : i32
    %61 = tpu.dynamic_rotate %51 by %c1_i32_21 dim 1 : vector<16x128xf32>, i32 -> vector<16x128xf32>
    %62 = vector.broadcast %13 : vector<1x128xf32> to vector<16x128xf32>
    %63 = arith.mulf %61, %62 : vector<16x128xf32>
    %c0_22 = arith.constant 0 : index
    %64 = memref.load %arg2[%c0_22] : memref<432xf32, #tpu.memory_space<smem>>
    %65 = vector.broadcast %64 : f32 to vector<16x128xf32>
    %66 = arith.mulf %65, %63 : vector<16x128xf32>
    %67 = arith.addf %45, %66 : vector<16x128xf32>
    %c36 = arith.constant 36 : index
    %68 = memref.load %arg2[%c36] : memref<432xf32, #tpu.memory_space<smem>>
    %69 = vector.broadcast %68 : f32 to vector<16x128xf32>
    %70 = arith.mulf %69, %63 : vector<16x128xf32>
    %71 = arith.addf %46, %70 : vector<16x128xf32>
    %c72 = arith.constant 72 : index
    %72 = memref.load %arg2[%c72] : memref<432xf32, #tpu.memory_space<smem>>
    %73 = vector.broadcast %72 : f32 to vector<16x128xf32>
    %74 = arith.mulf %73, %63 : vector<16x128xf32>
    %75 = arith.addf %47, %74 : vector<16x128xf32>
    %c108 = arith.constant 108 : index
    %76 = memref.load %arg2[%c108] : memref<432xf32, #tpu.memory_space<smem>>
    %77 = vector.broadcast %76 : f32 to vector<16x128xf32>
    %78 = arith.mulf %77, %63 : vector<16x128xf32>
    %79 = arith.addf %48, %78 : vector<16x128xf32>
    %c1_i32_23 = arith.constant 1 : i32
    %80 = tpu.dynamic_rotate %54 by %c1_i32_23 dim 1 : vector<16x128xf32>, i32 -> vector<16x128xf32>
    %81 = vector.broadcast %13 : vector<1x128xf32> to vector<16x128xf32>
    %82 = arith.mulf %80, %81 : vector<16x128xf32>
    %c9 = arith.constant 9 : index
    %83 = memref.load %arg2[%c9] : memref<432xf32, #tpu.memory_space<smem>>
    %84 = vector.broadcast %83 : f32 to vector<16x128xf32>
    %85 = arith.mulf %84, %82 : vector<16x128xf32>
    %86 = arith.addf %67, %85 : vector<16x128xf32>
    %c45 = arith.constant 45 : index
    %87 = memref.load %arg2[%c45] : memref<432xf32, #tpu.memory_space<smem>>
    %88 = vector.broadcast %87 : f32 to vector<16x128xf32>
    %89 = arith.mulf %88, %82 : vector<16x128xf32>
    %90 = arith.addf %71, %89 : vector<16x128xf32>
    %c81 = arith.constant 81 : index
    %91 = memref.load %arg2[%c81] : memref<432xf32, #tpu.memory_space<smem>>
    %92 = vector.broadcast %91 : f32 to vector<16x128xf32>
    %93 = arith.mulf %92, %82 : vector<16x128xf32>
    %94 = arith.addf %75, %93 : vector<16x128xf32>
    %c117 = arith.constant 117 : index
    %95 = memref.load %arg2[%c117] : memref<432xf32, #tpu.memory_space<smem>>
    %96 = vector.broadcast %95 : f32 to vector<16x128xf32>
    %97 = arith.mulf %96, %82 : vector<16x128xf32>
    %98 = arith.addf %79, %97 : vector<16x128xf32>
    %c1_i32_24 = arith.constant 1 : i32
    %99 = tpu.dynamic_rotate %57 by %c1_i32_24 dim 1 : vector<16x128xf32>, i32 -> vector<16x128xf32>
    %100 = vector.broadcast %13 : vector<1x128xf32> to vector<16x128xf32>
    %101 = arith.mulf %99, %100 : vector<16x128xf32>
    %c18 = arith.constant 18 : index
    %102 = memref.load %arg2[%c18] : memref<432xf32, #tpu.memory_space<smem>>
    %103 = vector.broadcast %102 : f32 to vector<16x128xf32>
    %104 = arith.mulf %103, %101 : vector<16x128xf32>
    %105 = arith.addf %86, %104 : vector<16x128xf32>
    %c54 = arith.constant 54 : index
    %106 = memref.load %arg2[%c54] : memref<432xf32, #tpu.memory_space<smem>>
    %107 = vector.broadcast %106 : f32 to vector<16x128xf32>
    %108 = arith.mulf %107, %101 : vector<16x128xf32>
    %109 = arith.addf %90, %108 : vector<16x128xf32>
    %c90 = arith.constant 90 : index
    %110 = memref.load %arg2[%c90] : memref<432xf32, #tpu.memory_space<smem>>
    %111 = vector.broadcast %110 : f32 to vector<16x128xf32>
    %112 = arith.mulf %111, %101 : vector<16x128xf32>
    %113 = arith.addf %94, %112 : vector<16x128xf32>
    %c126 = arith.constant 126 : index
    %114 = memref.load %arg2[%c126] : memref<432xf32, #tpu.memory_space<smem>>
    %115 = vector.broadcast %114 : f32 to vector<16x128xf32>
    %116 = arith.mulf %115, %101 : vector<16x128xf32>
    %117 = arith.addf %98, %116 : vector<16x128xf32>
    %c1_i32_25 = arith.constant 1 : i32
    %118 = tpu.dynamic_rotate %60 by %c1_i32_25 dim 1 : vector<16x128xf32>, i32 -> vector<16x128xf32>
    %119 = vector.broadcast %13 : vector<1x128xf32> to vector<16x128xf32>
    %120 = arith.mulf %118, %119 : vector<16x128xf32>
    %c27 = arith.constant 27 : index
    %121 = memref.load %arg2[%c27] : memref<432xf32, #tpu.memory_space<smem>>
    %122 = vector.broadcast %121 : f32 to vector<16x128xf32>
    %123 = arith.mulf %122, %120 : vector<16x128xf32>
    %124 = arith.addf %105, %123 : vector<16x128xf32>
    %c63 = arith.constant 63 : index
    %125 = memref.load %arg2[%c63] : memref<432xf32, #tpu.memory_space<smem>>
    %126 = vector.broadcast %125 : f32 to vector<16x128xf32>
    %127 = arith.mulf %126, %120 : vector<16x128xf32>
    %128 = arith.addf %109, %127 : vector<16x128xf32>
    %c99 = arith.constant 99 : index
    %129 = memref.load %arg2[%c99] : memref<432xf32, #tpu.memory_space<smem>>
    %130 = vector.broadcast %129 : f32 to vector<16x128xf32>
    %131 = arith.mulf %130, %120 : vector<16x128xf32>
    %132 = arith.addf %113, %131 : vector<16x128xf32>
    %c135 = arith.constant 135 : index
    %133 = memref.load %arg2[%c135] : memref<432xf32, #tpu.memory_space<smem>>
    %134 = vector.broadcast %133 : f32 to vector<16x128xf32>
    %135 = arith.mulf %134, %120 : vector<16x128xf32>
    %136 = arith.addf %117, %135 : vector<16x128xf32>
    %c1_26 = arith.constant 1 : index
    %137 = memref.load %arg2[%c1_26] : memref<432xf32, #tpu.memory_space<smem>>
    %138 = vector.broadcast %137 : f32 to vector<16x128xf32>
    %139 = arith.mulf %138, %51 : vector<16x128xf32>
    %140 = arith.addf %124, %139 : vector<16x128xf32>
    %c37 = arith.constant 37 : index
    %141 = memref.load %arg2[%c37] : memref<432xf32, #tpu.memory_space<smem>>
    %142 = vector.broadcast %141 : f32 to vector<16x128xf32>
    %143 = arith.mulf %142, %51 : vector<16x128xf32>
    %144 = arith.addf %128, %143 : vector<16x128xf32>
    %c73 = arith.constant 73 : index
    %145 = memref.load %arg2[%c73] : memref<432xf32, #tpu.memory_space<smem>>
    %146 = vector.broadcast %145 : f32 to vector<16x128xf32>
    %147 = arith.mulf %146, %51 : vector<16x128xf32>
    %148 = arith.addf %132, %147 : vector<16x128xf32>
    %c109 = arith.constant 109 : index
    %149 = memref.load %arg2[%c109] : memref<432xf32, #tpu.memory_space<smem>>
    %150 = vector.broadcast %149 : f32 to vector<16x128xf32>
    %151 = arith.mulf %150, %51 : vector<16x128xf32>
    %152 = arith.addf %136, %151 : vector<16x128xf32>
    %c10 = arith.constant 10 : index
    %153 = memref.load %arg2[%c10] : memref<432xf32, #tpu.memory_space<smem>>
    %154 = vector.broadcast %153 : f32 to vector<16x128xf32>
    %155 = arith.mulf %154, %54 : vector<16x128xf32>
    %156 = arith.addf %140, %155 : vector<16x128xf32>
    %c46 = arith.constant 46 : index
    %157 = memref.load %arg2[%c46] : memref<432xf32, #tpu.memory_space<smem>>
    %158 = vector.broadcast %157 : f32 to vector<16x128xf32>
    %159 = arith.mulf %158, %54 : vector<16x128xf32>
    %160 = arith.addf %144, %159 : vector<16x128xf32>
    %c82 = arith.constant 82 : index
    %161 = memref.load %arg2[%c82] : memref<432xf32, #tpu.memory_space<smem>>
    %162 = vector.broadcast %161 : f32 to vector<16x128xf32>
    %163 = arith.mulf %162, %54 : vector<16x128xf32>
    %164 = arith.addf %148, %163 : vector<16x128xf32>
    %c118 = arith.constant 118 : index
    %165 = memref.load %arg2[%c118] : memref<432xf32, #tpu.memory_space<smem>>
    %166 = vector.broadcast %165 : f32 to vector<16x128xf32>
    %167 = arith.mulf %166, %54 : vector<16x128xf32>
    %168 = arith.addf %152, %167 : vector<16x128xf32>
    %c19 = arith.constant 19 : index
    %169 = memref.load %arg2[%c19] : memref<432xf32, #tpu.memory_space<smem>>
    %170 = vector.broadcast %169 : f32 to vector<16x128xf32>
    %171 = arith.mulf %170, %57 : vector<16x128xf32>
    %172 = arith.addf %156, %171 : vector<16x128xf32>
    %c55 = arith.constant 55 : index
    %173 = memref.load %arg2[%c55] : memref<432xf32, #tpu.memory_space<smem>>
    %174 = vector.broadcast %173 : f32 to vector<16x128xf32>
    %175 = arith.mulf %174, %57 : vector<16x128xf32>
    %176 = arith.addf %160, %175 : vector<16x128xf32>
    %c91 = arith.constant 91 : index
    %177 = memref.load %arg2[%c91] : memref<432xf32, #tpu.memory_space<smem>>
    %178 = vector.broadcast %177 : f32 to vector<16x128xf32>
    %179 = arith.mulf %178, %57 : vector<16x128xf32>
    %180 = arith.addf %164, %179 : vector<16x128xf32>
    %c127 = arith.constant 127 : index
    %181 = memref.load %arg2[%c127] : memref<432xf32, #tpu.memory_space<smem>>
    %182 = vector.broadcast %181 : f32 to vector<16x128xf32>
    %183 = arith.mulf %182, %57 : vector<16x128xf32>
    %184 = arith.addf %168, %183 : vector<16x128xf32>
    %c28 = arith.constant 28 : index
    %185 = memref.load %arg2[%c28] : memref<432xf32, #tpu.memory_space<smem>>
    %186 = vector.broadcast %185 : f32 to vector<16x128xf32>
    %187 = arith.mulf %186, %60 : vector<16x128xf32>
    %188 = arith.addf %172, %187 : vector<16x128xf32>
    %c64 = arith.constant 64 : index
    %189 = memref.load %arg2[%c64] : memref<432xf32, #tpu.memory_space<smem>>
    %190 = vector.broadcast %189 : f32 to vector<16x128xf32>
    %191 = arith.mulf %190, %60 : vector<16x128xf32>
    %192 = arith.addf %176, %191 : vector<16x128xf32>
    %c100 = arith.constant 100 : index
    %193 = memref.load %arg2[%c100] : memref<432xf32, #tpu.memory_space<smem>>
    %194 = vector.broadcast %193 : f32 to vector<16x128xf32>
    %195 = arith.mulf %194, %60 : vector<16x128xf32>
    %196 = arith.addf %180, %195 : vector<16x128xf32>
    %c136 = arith.constant 136 : index
    %197 = memref.load %arg2[%c136] : memref<432xf32, #tpu.memory_space<smem>>
    %198 = vector.broadcast %197 : f32 to vector<16x128xf32>
    %199 = arith.mulf %198, %60 : vector<16x128xf32>
    %200 = arith.addf %184, %199 : vector<16x128xf32>
    %c127_i32 = arith.constant 127 : i32
    %201 = tpu.dynamic_rotate %51 by %c127_i32 dim 1 : vector<16x128xf32>, i32 -> vector<16x128xf32>
    %202 = vector.broadcast %17 : vector<1x128xf32> to vector<16x128xf32>
    %203 = arith.mulf %201, %202 : vector<16x128xf32>
    %c2_27 = arith.constant 2 : index
    %204 = memref.load %arg2[%c2_27] : memref<432xf32, #tpu.memory_space<smem>>
    %205 = vector.broadcast %204 : f32 to vector<16x128xf32>
    %206 = arith.mulf %205, %203 : vector<16x128xf32>
    %207 = arith.addf %188, %206 : vector<16x128xf32>
    %c38 = arith.constant 38 : index
    %208 = memref.load %arg2[%c38] : memref<432xf32, #tpu.memory_space<smem>>
    %209 = vector.broadcast %208 : f32 to vector<16x128xf32>
    %210 = arith.mulf %209, %203 : vector<16x128xf32>
    %211 = arith.addf %192, %210 : vector<16x128xf32>
    %c74 = arith.constant 74 : index
    %212 = memref.load %arg2[%c74] : memref<432xf32, #tpu.memory_space<smem>>
    %213 = vector.broadcast %212 : f32 to vector<16x128xf32>
    %214 = arith.mulf %213, %203 : vector<16x128xf32>
    %215 = arith.addf %196, %214 : vector<16x128xf32>
    %c110 = arith.constant 110 : index
    %216 = memref.load %arg2[%c110] : memref<432xf32, #tpu.memory_space<smem>>
    %217 = vector.broadcast %216 : f32 to vector<16x128xf32>
    %218 = arith.mulf %217, %203 : vector<16x128xf32>
    %219 = arith.addf %200, %218 : vector<16x128xf32>
    %c127_i32_28 = arith.constant 127 : i32
    %220 = tpu.dynamic_rotate %54 by %c127_i32_28 dim 1 : vector<16x128xf32>, i32 -> vector<16x128xf32>
    %221 = vector.broadcast %17 : vector<1x128xf32> to vector<16x128xf32>
    %222 = arith.mulf %220, %221 : vector<16x128xf32>
    %c11 = arith.constant 11 : index
    %223 = memref.load %arg2[%c11] : memref<432xf32, #tpu.memory_space<smem>>
    %224 = vector.broadcast %223 : f32 to vector<16x128xf32>
    %225 = arith.mulf %224, %222 : vector<16x128xf32>
    %226 = arith.addf %207, %225 : vector<16x128xf32>
    %c47 = arith.constant 47 : index
    %227 = memref.load %arg2[%c47] : memref<432xf32, #tpu.memory_space<smem>>
    %228 = vector.broadcast %227 : f32 to vector<16x128xf32>
    %229 = arith.mulf %228, %222 : vector<16x128xf32>
    %230 = arith.addf %211, %229 : vector<16x128xf32>
    %c83 = arith.constant 83 : index
    %231 = memref.load %arg2[%c83] : memref<432xf32, #tpu.memory_space<smem>>
    %232 = vector.broadcast %231 : f32 to vector<16x128xf32>
    %233 = arith.mulf %232, %222 : vector<16x128xf32>
    %234 = arith.addf %215, %233 : vector<16x128xf32>
    %c119 = arith.constant 119 : index
    %235 = memref.load %arg2[%c119] : memref<432xf32, #tpu.memory_space<smem>>
    %236 = vector.broadcast %235 : f32 to vector<16x128xf32>
    %237 = arith.mulf %236, %222 : vector<16x128xf32>
    %238 = arith.addf %219, %237 : vector<16x128xf32>
    %c127_i32_29 = arith.constant 127 : i32
    %239 = tpu.dynamic_rotate %57 by %c127_i32_29 dim 1 : vector<16x128xf32>, i32 -> vector<16x128xf32>
    %240 = vector.broadcast %17 : vector<1x128xf32> to vector<16x128xf32>
    %241 = arith.mulf %239, %240 : vector<16x128xf32>
    %c20 = arith.constant 20 : index
    %242 = memref.load %arg2[%c20] : memref<432xf32, #tpu.memory_space<smem>>
    %243 = vector.broadcast %242 : f32 to vector<16x128xf32>
    %244 = arith.mulf %243, %241 : vector<16x128xf32>
    %245 = arith.addf %226, %244 : vector<16x128xf32>
    %c56 = arith.constant 56 : index
    %246 = memref.load %arg2[%c56] : memref<432xf32, #tpu.memory_space<smem>>
    %247 = vector.broadcast %246 : f32 to vector<16x128xf32>
    %248 = arith.mulf %247, %241 : vector<16x128xf32>
    %249 = arith.addf %230, %248 : vector<16x128xf32>
    %c92 = arith.constant 92 : index
    %250 = memref.load %arg2[%c92] : memref<432xf32, #tpu.memory_space<smem>>
    %251 = vector.broadcast %250 : f32 to vector<16x128xf32>
    %252 = arith.mulf %251, %241 : vector<16x128xf32>
    %253 = arith.addf %234, %252 : vector<16x128xf32>
    %c128 = arith.constant 128 : index
    %254 = memref.load %arg2[%c128] : memref<432xf32, #tpu.memory_space<smem>>
    %255 = vector.broadcast %254 : f32 to vector<16x128xf32>
    %256 = arith.mulf %255, %241 : vector<16x128xf32>
    %257 = arith.addf %238, %256 : vector<16x128xf32>
    %c127_i32_30 = arith.constant 127 : i32
    %258 = tpu.dynamic_rotate %60 by %c127_i32_30 dim 1 : vector<16x128xf32>, i32 -> vector<16x128xf32>
    %259 = vector.broadcast %17 : vector<1x128xf32> to vector<16x128xf32>
    %260 = arith.mulf %258, %259 : vector<16x128xf32>
    %c29 = arith.constant 29 : index
    %261 = memref.load %arg2[%c29] : memref<432xf32, #tpu.memory_space<smem>>
    %262 = vector.broadcast %261 : f32 to vector<16x128xf32>
    %263 = arith.mulf %262, %260 : vector<16x128xf32>
    %264 = arith.addf %245, %263 : vector<16x128xf32>
    %c65 = arith.constant 65 : index
    %265 = memref.load %arg2[%c65] : memref<432xf32, #tpu.memory_space<smem>>
    %266 = vector.broadcast %265 : f32 to vector<16x128xf32>
    %267 = arith.mulf %266, %260 : vector<16x128xf32>
    %268 = arith.addf %249, %267 : vector<16x128xf32>
    %c101 = arith.constant 101 : index
    %269 = memref.load %arg2[%c101] : memref<432xf32, #tpu.memory_space<smem>>
    %270 = vector.broadcast %269 : f32 to vector<16x128xf32>
    %271 = arith.mulf %270, %260 : vector<16x128xf32>
    %272 = arith.addf %253, %271 : vector<16x128xf32>
    %c137 = arith.constant 137 : index
    %273 = memref.load %arg2[%c137] : memref<432xf32, #tpu.memory_space<smem>>
    %274 = vector.broadcast %273 : f32 to vector<16x128xf32>
    %275 = arith.mulf %274, %260 : vector<16x128xf32>
    %276 = arith.addf %257, %275 : vector<16x128xf32>
    %c1_i32_31 = arith.constant 1 : i32
    %277 = tpu.dynamic_rotate %41 by %c1_i32_31 dim 1 : vector<16x128xf32>, i32 -> vector<16x128xf32>
    %278 = vector.broadcast %13 : vector<1x128xf32> to vector<16x128xf32>
    %279 = arith.mulf %277, %278 : vector<16x128xf32>
    %c3_32 = arith.constant 3 : index
    %280 = memref.load %arg2[%c3_32] : memref<432xf32, #tpu.memory_space<smem>>
    %281 = vector.broadcast %280 : f32 to vector<16x128xf32>
    %282 = arith.mulf %281, %279 : vector<16x128xf32>
    %283 = arith.addf %264, %282 : vector<16x128xf32>
    %c39 = arith.constant 39 : index
    %284 = memref.load %arg2[%c39] : memref<432xf32, #tpu.memory_space<smem>>
    %285 = vector.broadcast %284 : f32 to vector<16x128xf32>
    %286 = arith.mulf %285, %279 : vector<16x128xf32>
    %287 = arith.addf %268, %286 : vector<16x128xf32>
    %c75 = arith.constant 75 : index
    %288 = memref.load %arg2[%c75] : memref<432xf32, #tpu.memory_space<smem>>
    %289 = vector.broadcast %288 : f32 to vector<16x128xf32>
    %290 = arith.mulf %289, %279 : vector<16x128xf32>
    %291 = arith.addf %272, %290 : vector<16x128xf32>
    %c111 = arith.constant 111 : index
    %292 = memref.load %arg2[%c111] : memref<432xf32, #tpu.memory_space<smem>>
    %293 = vector.broadcast %292 : f32 to vector<16x128xf32>
    %294 = arith.mulf %293, %279 : vector<16x128xf32>
    %295 = arith.addf %276, %294 : vector<16x128xf32>
    %c1_i32_33 = arith.constant 1 : i32
    %296 = tpu.dynamic_rotate %42 by %c1_i32_33 dim 1 : vector<16x128xf32>, i32 -> vector<16x128xf32>
    %297 = vector.broadcast %13 : vector<1x128xf32> to vector<16x128xf32>
    %298 = arith.mulf %296, %297 : vector<16x128xf32>
    %c12 = arith.constant 12 : index
    %299 = memref.load %arg2[%c12] : memref<432xf32, #tpu.memory_space<smem>>
    %300 = vector.broadcast %299 : f32 to vector<16x128xf32>
    %301 = arith.mulf %300, %298 : vector<16x128xf32>
    %302 = arith.addf %283, %301 : vector<16x128xf32>
    %c48 = arith.constant 48 : index
    %303 = memref.load %arg2[%c48] : memref<432xf32, #tpu.memory_space<smem>>
    %304 = vector.broadcast %303 : f32 to vector<16x128xf32>
    %305 = arith.mulf %304, %298 : vector<16x128xf32>
    %306 = arith.addf %287, %305 : vector<16x128xf32>
    %c84 = arith.constant 84 : index
    %307 = memref.load %arg2[%c84] : memref<432xf32, #tpu.memory_space<smem>>
    %308 = vector.broadcast %307 : f32 to vector<16x128xf32>
    %309 = arith.mulf %308, %298 : vector<16x128xf32>
    %310 = arith.addf %291, %309 : vector<16x128xf32>
    %c120 = arith.constant 120 : index
    %311 = memref.load %arg2[%c120] : memref<432xf32, #tpu.memory_space<smem>>
    %312 = vector.broadcast %311 : f32 to vector<16x128xf32>
    %313 = arith.mulf %312, %298 : vector<16x128xf32>
    %314 = arith.addf %295, %313 : vector<16x128xf32>
    %c1_i32_34 = arith.constant 1 : i32
    %315 = tpu.dynamic_rotate %43 by %c1_i32_34 dim 1 : vector<16x128xf32>, i32 -> vector<16x128xf32>
    %316 = vector.broadcast %13 : vector<1x128xf32> to vector<16x128xf32>
    %317 = arith.mulf %315, %316 : vector<16x128xf32>
    %c21 = arith.constant 21 : index
    %318 = memref.load %arg2[%c21] : memref<432xf32, #tpu.memory_space<smem>>
    %319 = vector.broadcast %318 : f32 to vector<16x128xf32>
    %320 = arith.mulf %319, %317 : vector<16x128xf32>
    %321 = arith.addf %302, %320 : vector<16x128xf32>
    %c57 = arith.constant 57 : index
    %322 = memref.load %arg2[%c57] : memref<432xf32, #tpu.memory_space<smem>>
    %323 = vector.broadcast %322 : f32 to vector<16x128xf32>
    %324 = arith.mulf %323, %317 : vector<16x128xf32>
    %325 = arith.addf %306, %324 : vector<16x128xf32>
    %c93 = arith.constant 93 : index
    %326 = memref.load %arg2[%c93] : memref<432xf32, #tpu.memory_space<smem>>
    %327 = vector.broadcast %326 : f32 to vector<16x128xf32>
    %328 = arith.mulf %327, %317 : vector<16x128xf32>
    %329 = arith.addf %310, %328 : vector<16x128xf32>
    %c129 = arith.constant 129 : index
    %330 = memref.load %arg2[%c129] : memref<432xf32, #tpu.memory_space<smem>>
    %331 = vector.broadcast %330 : f32 to vector<16x128xf32>
    %332 = arith.mulf %331, %317 : vector<16x128xf32>
    %333 = arith.addf %314, %332 : vector<16x128xf32>
    %c1_i32_35 = arith.constant 1 : i32
    %334 = tpu.dynamic_rotate %44 by %c1_i32_35 dim 1 : vector<16x128xf32>, i32 -> vector<16x128xf32>
    %335 = vector.broadcast %13 : vector<1x128xf32> to vector<16x128xf32>
    %336 = arith.mulf %334, %335 : vector<16x128xf32>
    %c30 = arith.constant 30 : index
    %337 = memref.load %arg2[%c30] : memref<432xf32, #tpu.memory_space<smem>>
    %338 = vector.broadcast %337 : f32 to vector<16x128xf32>
    %339 = arith.mulf %338, %336 : vector<16x128xf32>
    %340 = arith.addf %321, %339 : vector<16x128xf32>
    %c66 = arith.constant 66 : index
    %341 = memref.load %arg2[%c66] : memref<432xf32, #tpu.memory_space<smem>>
    %342 = vector.broadcast %341 : f32 to vector<16x128xf32>
    %343 = arith.mulf %342, %336 : vector<16x128xf32>
    %344 = arith.addf %325, %343 : vector<16x128xf32>
    %c102 = arith.constant 102 : index
    %345 = memref.load %arg2[%c102] : memref<432xf32, #tpu.memory_space<smem>>
    %346 = vector.broadcast %345 : f32 to vector<16x128xf32>
    %347 = arith.mulf %346, %336 : vector<16x128xf32>
    %348 = arith.addf %329, %347 : vector<16x128xf32>
    %c138 = arith.constant 138 : index
    %349 = memref.load %arg2[%c138] : memref<432xf32, #tpu.memory_space<smem>>
    %350 = vector.broadcast %349 : f32 to vector<16x128xf32>
    %351 = arith.mulf %350, %336 : vector<16x128xf32>
    %352 = arith.addf %333, %351 : vector<16x128xf32>
    %c4 = arith.constant 4 : index
    %353 = memref.load %arg2[%c4] : memref<432xf32, #tpu.memory_space<smem>>
    %354 = vector.broadcast %353 : f32 to vector<16x128xf32>
    %355 = arith.mulf %354, %41 : vector<16x128xf32>
    %356 = arith.addf %340, %355 : vector<16x128xf32>
    %c40 = arith.constant 40 : index
    %357 = memref.load %arg2[%c40] : memref<432xf32, #tpu.memory_space<smem>>
    %358 = vector.broadcast %357 : f32 to vector<16x128xf32>
    %359 = arith.mulf %358, %41 : vector<16x128xf32>
    %360 = arith.addf %344, %359 : vector<16x128xf32>
    %c76 = arith.constant 76 : index
    %361 = memref.load %arg2[%c76] : memref<432xf32, #tpu.memory_space<smem>>
    %362 = vector.broadcast %361 : f32 to vector<16x128xf32>
    %363 = arith.mulf %362, %41 : vector<16x128xf32>
    %364 = arith.addf %348, %363 : vector<16x128xf32>
    %c112 = arith.constant 112 : index
    %365 = memref.load %arg2[%c112] : memref<432xf32, #tpu.memory_space<smem>>
    %366 = vector.broadcast %365 : f32 to vector<16x128xf32>
    %367 = arith.mulf %366, %41 : vector<16x128xf32>
    %368 = arith.addf %352, %367 : vector<16x128xf32>
    %c13 = arith.constant 13 : index
    %369 = memref.load %arg2[%c13] : memref<432xf32, #tpu.memory_space<smem>>
    %370 = vector.broadcast %369 : f32 to vector<16x128xf32>
    %371 = arith.mulf %370, %42 : vector<16x128xf32>
    %372 = arith.addf %356, %371 : vector<16x128xf32>
    %c49 = arith.constant 49 : index
    %373 = memref.load %arg2[%c49] : memref<432xf32, #tpu.memory_space<smem>>
    %374 = vector.broadcast %373 : f32 to vector<16x128xf32>
    %375 = arith.mulf %374, %42 : vector<16x128xf32>
    %376 = arith.addf %360, %375 : vector<16x128xf32>
    %c85 = arith.constant 85 : index
    %377 = memref.load %arg2[%c85] : memref<432xf32, #tpu.memory_space<smem>>
    %378 = vector.broadcast %377 : f32 to vector<16x128xf32>
    %379 = arith.mulf %378, %42 : vector<16x128xf32>
    %380 = arith.addf %364, %379 : vector<16x128xf32>
    %c121 = arith.constant 121 : index
    %381 = memref.load %arg2[%c121] : memref<432xf32, #tpu.memory_space<smem>>
    %382 = vector.broadcast %381 : f32 to vector<16x128xf32>
    %383 = arith.mulf %382, %42 : vector<16x128xf32>
    %384 = arith.addf %368, %383 : vector<16x128xf32>
    %c22 = arith.constant 22 : index
    %385 = memref.load %arg2[%c22] : memref<432xf32, #tpu.memory_space<smem>>
    %386 = vector.broadcast %385 : f32 to vector<16x128xf32>
    %387 = arith.mulf %386, %43 : vector<16x128xf32>
    %388 = arith.addf %372, %387 : vector<16x128xf32>
    %c58 = arith.constant 58 : index
    %389 = memref.load %arg2[%c58] : memref<432xf32, #tpu.memory_space<smem>>
    %390 = vector.broadcast %389 : f32 to vector<16x128xf32>
    %391 = arith.mulf %390, %43 : vector<16x128xf32>
    %392 = arith.addf %376, %391 : vector<16x128xf32>
    %c94 = arith.constant 94 : index
    %393 = memref.load %arg2[%c94] : memref<432xf32, #tpu.memory_space<smem>>
    %394 = vector.broadcast %393 : f32 to vector<16x128xf32>
    %395 = arith.mulf %394, %43 : vector<16x128xf32>
    %396 = arith.addf %380, %395 : vector<16x128xf32>
    %c130 = arith.constant 130 : index
    %397 = memref.load %arg2[%c130] : memref<432xf32, #tpu.memory_space<smem>>
    %398 = vector.broadcast %397 : f32 to vector<16x128xf32>
    %399 = arith.mulf %398, %43 : vector<16x128xf32>
    %400 = arith.addf %384, %399 : vector<16x128xf32>
    %c31 = arith.constant 31 : index
    %401 = memref.load %arg2[%c31] : memref<432xf32, #tpu.memory_space<smem>>
    %402 = vector.broadcast %401 : f32 to vector<16x128xf32>
    %403 = arith.mulf %402, %44 : vector<16x128xf32>
    %404 = arith.addf %388, %403 : vector<16x128xf32>
    %c67 = arith.constant 67 : index
    %405 = memref.load %arg2[%c67] : memref<432xf32, #tpu.memory_space<smem>>
    %406 = vector.broadcast %405 : f32 to vector<16x128xf32>
    %407 = arith.mulf %406, %44 : vector<16x128xf32>
    %408 = arith.addf %392, %407 : vector<16x128xf32>
    %c103 = arith.constant 103 : index
    %409 = memref.load %arg2[%c103] : memref<432xf32, #tpu.memory_space<smem>>
    %410 = vector.broadcast %409 : f32 to vector<16x128xf32>
    %411 = arith.mulf %410, %44 : vector<16x128xf32>
    %412 = arith.addf %396, %411 : vector<16x128xf32>
    %c139 = arith.constant 139 : index
    %413 = memref.load %arg2[%c139] : memref<432xf32, #tpu.memory_space<smem>>
    %414 = vector.broadcast %413 : f32 to vector<16x128xf32>
    %415 = arith.mulf %414, %44 : vector<16x128xf32>
    %416 = arith.addf %400, %415 : vector<16x128xf32>
    %c127_i32_36 = arith.constant 127 : i32
    %417 = tpu.dynamic_rotate %41 by %c127_i32_36 dim 1 : vector<16x128xf32>, i32 -> vector<16x128xf32>
    %418 = vector.broadcast %17 : vector<1x128xf32> to vector<16x128xf32>
    %419 = arith.mulf %417, %418 : vector<16x128xf32>
    %c5 = arith.constant 5 : index
    %420 = memref.load %arg2[%c5] : memref<432xf32, #tpu.memory_space<smem>>
    %421 = vector.broadcast %420 : f32 to vector<16x128xf32>
    %422 = arith.mulf %421, %419 : vector<16x128xf32>
    %423 = arith.addf %404, %422 : vector<16x128xf32>
    %c41 = arith.constant 41 : index
    %424 = memref.load %arg2[%c41] : memref<432xf32, #tpu.memory_space<smem>>
    %425 = vector.broadcast %424 : f32 to vector<16x128xf32>
    %426 = arith.mulf %425, %419 : vector<16x128xf32>
    %427 = arith.addf %408, %426 : vector<16x128xf32>
    %c77 = arith.constant 77 : index
    %428 = memref.load %arg2[%c77] : memref<432xf32, #tpu.memory_space<smem>>
    %429 = vector.broadcast %428 : f32 to vector<16x128xf32>
    %430 = arith.mulf %429, %419 : vector<16x128xf32>
    %431 = arith.addf %412, %430 : vector<16x128xf32>
    %c113 = arith.constant 113 : index
    %432 = memref.load %arg2[%c113] : memref<432xf32, #tpu.memory_space<smem>>
    %433 = vector.broadcast %432 : f32 to vector<16x128xf32>
    %434 = arith.mulf %433, %419 : vector<16x128xf32>
    %435 = arith.addf %416, %434 : vector<16x128xf32>
    %c127_i32_37 = arith.constant 127 : i32
    %436 = tpu.dynamic_rotate %42 by %c127_i32_37 dim 1 : vector<16x128xf32>, i32 -> vector<16x128xf32>
    %437 = vector.broadcast %17 : vector<1x128xf32> to vector<16x128xf32>
    %438 = arith.mulf %436, %437 : vector<16x128xf32>
    %c14 = arith.constant 14 : index
    %439 = memref.load %arg2[%c14] : memref<432xf32, #tpu.memory_space<smem>>
    %440 = vector.broadcast %439 : f32 to vector<16x128xf32>
    %441 = arith.mulf %440, %438 : vector<16x128xf32>
    %442 = arith.addf %423, %441 : vector<16x128xf32>
    %c50 = arith.constant 50 : index
    %443 = memref.load %arg2[%c50] : memref<432xf32, #tpu.memory_space<smem>>
    %444 = vector.broadcast %443 : f32 to vector<16x128xf32>
    %445 = arith.mulf %444, %438 : vector<16x128xf32>
    %446 = arith.addf %427, %445 : vector<16x128xf32>
    %c86 = arith.constant 86 : index
    %447 = memref.load %arg2[%c86] : memref<432xf32, #tpu.memory_space<smem>>
    %448 = vector.broadcast %447 : f32 to vector<16x128xf32>
    %449 = arith.mulf %448, %438 : vector<16x128xf32>
    %450 = arith.addf %431, %449 : vector<16x128xf32>
    %c122 = arith.constant 122 : index
    %451 = memref.load %arg2[%c122] : memref<432xf32, #tpu.memory_space<smem>>
    %452 = vector.broadcast %451 : f32 to vector<16x128xf32>
    %453 = arith.mulf %452, %438 : vector<16x128xf32>
    %454 = arith.addf %435, %453 : vector<16x128xf32>
    %c127_i32_38 = arith.constant 127 : i32
    %455 = tpu.dynamic_rotate %43 by %c127_i32_38 dim 1 : vector<16x128xf32>, i32 -> vector<16x128xf32>
    %456 = vector.broadcast %17 : vector<1x128xf32> to vector<16x128xf32>
    %457 = arith.mulf %455, %456 : vector<16x128xf32>
    %c23 = arith.constant 23 : index
    %458 = memref.load %arg2[%c23] : memref<432xf32, #tpu.memory_space<smem>>
    %459 = vector.broadcast %458 : f32 to vector<16x128xf32>
    %460 = arith.mulf %459, %457 : vector<16x128xf32>
    %461 = arith.addf %442, %460 : vector<16x128xf32>
    %c59 = arith.constant 59 : index
    %462 = memref.load %arg2[%c59] : memref<432xf32, #tpu.memory_space<smem>>
    %463 = vector.broadcast %462 : f32 to vector<16x128xf32>
    %464 = arith.mulf %463, %457 : vector<16x128xf32>
    %465 = arith.addf %446, %464 : vector<16x128xf32>
    %c95 = arith.constant 95 : index
    %466 = memref.load %arg2[%c95] : memref<432xf32, #tpu.memory_space<smem>>
    %467 = vector.broadcast %466 : f32 to vector<16x128xf32>
    %468 = arith.mulf %467, %457 : vector<16x128xf32>
    %469 = arith.addf %450, %468 : vector<16x128xf32>
    %c131 = arith.constant 131 : index
    %470 = memref.load %arg2[%c131] : memref<432xf32, #tpu.memory_space<smem>>
    %471 = vector.broadcast %470 : f32 to vector<16x128xf32>
    %472 = arith.mulf %471, %457 : vector<16x128xf32>
    %473 = arith.addf %454, %472 : vector<16x128xf32>
    %c127_i32_39 = arith.constant 127 : i32
    %474 = tpu.dynamic_rotate %44 by %c127_i32_39 dim 1 : vector<16x128xf32>, i32 -> vector<16x128xf32>
    %475 = vector.broadcast %17 : vector<1x128xf32> to vector<16x128xf32>
    %476 = arith.mulf %474, %475 : vector<16x128xf32>
    %c32 = arith.constant 32 : index
    %477 = memref.load %arg2[%c32] : memref<432xf32, #tpu.memory_space<smem>>
    %478 = vector.broadcast %477 : f32 to vector<16x128xf32>
    %479 = arith.mulf %478, %476 : vector<16x128xf32>
    %480 = arith.addf %461, %479 : vector<16x128xf32>
    %c68 = arith.constant 68 : index
    %481 = memref.load %arg2[%c68] : memref<432xf32, #tpu.memory_space<smem>>
    %482 = vector.broadcast %481 : f32 to vector<16x128xf32>
    %483 = arith.mulf %482, %476 : vector<16x128xf32>
    %484 = arith.addf %465, %483 : vector<16x128xf32>
    %c104 = arith.constant 104 : index
    %485 = memref.load %arg2[%c104] : memref<432xf32, #tpu.memory_space<smem>>
    %486 = vector.broadcast %485 : f32 to vector<16x128xf32>
    %487 = arith.mulf %486, %476 : vector<16x128xf32>
    %488 = arith.addf %469, %487 : vector<16x128xf32>
    %c140 = arith.constant 140 : index
    %489 = memref.load %arg2[%c140] : memref<432xf32, #tpu.memory_space<smem>>
    %490 = vector.broadcast %489 : f32 to vector<16x128xf32>
    %491 = arith.mulf %490, %476 : vector<16x128xf32>
    %492 = arith.addf %473, %491 : vector<16x128xf32>
    %c15_i32 = arith.constant 15 : i32
    %493 = tpu.dynamic_rotate %41 by %c15_i32 dim 0 : vector<16x128xf32>, i32 -> vector<16x128xf32>
    %494 = vector.broadcast %9 : vector<16x1xf32> to vector<16x128xf32>
    %495 = arith.mulf %493, %494 : vector<16x128xf32>
    %c15_i32_40 = arith.constant 15 : i32
    %496 = tpu.dynamic_rotate %42 by %c15_i32_40 dim 0 : vector<16x128xf32>, i32 -> vector<16x128xf32>
    %497 = vector.broadcast %9 : vector<16x1xf32> to vector<16x128xf32>
    %498 = arith.mulf %496, %497 : vector<16x128xf32>
    %c15_i32_41 = arith.constant 15 : i32
    %499 = tpu.dynamic_rotate %43 by %c15_i32_41 dim 0 : vector<16x128xf32>, i32 -> vector<16x128xf32>
    %500 = vector.broadcast %9 : vector<16x1xf32> to vector<16x128xf32>
    %501 = arith.mulf %499, %500 : vector<16x128xf32>
    %c15_i32_42 = arith.constant 15 : i32
    %502 = tpu.dynamic_rotate %44 by %c15_i32_42 dim 0 : vector<16x128xf32>, i32 -> vector<16x128xf32>
    %503 = vector.broadcast %9 : vector<16x1xf32> to vector<16x128xf32>
    %504 = arith.mulf %502, %503 : vector<16x128xf32>
    %c1_i32_43 = arith.constant 1 : i32
    %505 = tpu.dynamic_rotate %495 by %c1_i32_43 dim 1 : vector<16x128xf32>, i32 -> vector<16x128xf32>
    %506 = vector.broadcast %13 : vector<1x128xf32> to vector<16x128xf32>
    %507 = arith.mulf %505, %506 : vector<16x128xf32>
    %c6 = arith.constant 6 : index
    %508 = memref.load %arg2[%c6] : memref<432xf32, #tpu.memory_space<smem>>
    %509 = vector.broadcast %508 : f32 to vector<16x128xf32>
    %510 = arith.mulf %509, %507 : vector<16x128xf32>
    %511 = arith.addf %480, %510 : vector<16x128xf32>
    %c42 = arith.constant 42 : index
    %512 = memref.load %arg2[%c42] : memref<432xf32, #tpu.memory_space<smem>>
    %513 = vector.broadcast %512 : f32 to vector<16x128xf32>
    %514 = arith.mulf %513, %507 : vector<16x128xf32>
    %515 = arith.addf %484, %514 : vector<16x128xf32>
    %c78 = arith.constant 78 : index
    %516 = memref.load %arg2[%c78] : memref<432xf32, #tpu.memory_space<smem>>
    %517 = vector.broadcast %516 : f32 to vector<16x128xf32>
    %518 = arith.mulf %517, %507 : vector<16x128xf32>
    %519 = arith.addf %488, %518 : vector<16x128xf32>
    %c114 = arith.constant 114 : index
    %520 = memref.load %arg2[%c114] : memref<432xf32, #tpu.memory_space<smem>>
    %521 = vector.broadcast %520 : f32 to vector<16x128xf32>
    %522 = arith.mulf %521, %507 : vector<16x128xf32>
    %523 = arith.addf %492, %522 : vector<16x128xf32>
    %c1_i32_44 = arith.constant 1 : i32
    %524 = tpu.dynamic_rotate %498 by %c1_i32_44 dim 1 : vector<16x128xf32>, i32 -> vector<16x128xf32>
    %525 = vector.broadcast %13 : vector<1x128xf32> to vector<16x128xf32>
    %526 = arith.mulf %524, %525 : vector<16x128xf32>
    %c15 = arith.constant 15 : index
    %527 = memref.load %arg2[%c15] : memref<432xf32, #tpu.memory_space<smem>>
    %528 = vector.broadcast %527 : f32 to vector<16x128xf32>
    %529 = arith.mulf %528, %526 : vector<16x128xf32>
    %530 = arith.addf %511, %529 : vector<16x128xf32>
    %c51 = arith.constant 51 : index
    %531 = memref.load %arg2[%c51] : memref<432xf32, #tpu.memory_space<smem>>
    %532 = vector.broadcast %531 : f32 to vector<16x128xf32>
    %533 = arith.mulf %532, %526 : vector<16x128xf32>
    %534 = arith.addf %515, %533 : vector<16x128xf32>
    %c87 = arith.constant 87 : index
    %535 = memref.load %arg2[%c87] : memref<432xf32, #tpu.memory_space<smem>>
    %536 = vector.broadcast %535 : f32 to vector<16x128xf32>
    %537 = arith.mulf %536, %526 : vector<16x128xf32>
    %538 = arith.addf %519, %537 : vector<16x128xf32>
    %c123 = arith.constant 123 : index
    %539 = memref.load %arg2[%c123] : memref<432xf32, #tpu.memory_space<smem>>
    %540 = vector.broadcast %539 : f32 to vector<16x128xf32>
    %541 = arith.mulf %540, %526 : vector<16x128xf32>
    %542 = arith.addf %523, %541 : vector<16x128xf32>
    %c1_i32_45 = arith.constant 1 : i32
    %543 = tpu.dynamic_rotate %501 by %c1_i32_45 dim 1 : vector<16x128xf32>, i32 -> vector<16x128xf32>
    %544 = vector.broadcast %13 : vector<1x128xf32> to vector<16x128xf32>
    %545 = arith.mulf %543, %544 : vector<16x128xf32>
    %c24 = arith.constant 24 : index
    %546 = memref.load %arg2[%c24] : memref<432xf32, #tpu.memory_space<smem>>
    %547 = vector.broadcast %546 : f32 to vector<16x128xf32>
    %548 = arith.mulf %547, %545 : vector<16x128xf32>
    %549 = arith.addf %530, %548 : vector<16x128xf32>
    %c60 = arith.constant 60 : index
    %550 = memref.load %arg2[%c60] : memref<432xf32, #tpu.memory_space<smem>>
    %551 = vector.broadcast %550 : f32 to vector<16x128xf32>
    %552 = arith.mulf %551, %545 : vector<16x128xf32>
    %553 = arith.addf %534, %552 : vector<16x128xf32>
    %c96 = arith.constant 96 : index
    %554 = memref.load %arg2[%c96] : memref<432xf32, #tpu.memory_space<smem>>
    %555 = vector.broadcast %554 : f32 to vector<16x128xf32>
    %556 = arith.mulf %555, %545 : vector<16x128xf32>
    %557 = arith.addf %538, %556 : vector<16x128xf32>
    %c132 = arith.constant 132 : index
    %558 = memref.load %arg2[%c132] : memref<432xf32, #tpu.memory_space<smem>>
    %559 = vector.broadcast %558 : f32 to vector<16x128xf32>
    %560 = arith.mulf %559, %545 : vector<16x128xf32>
    %561 = arith.addf %542, %560 : vector<16x128xf32>
    %c1_i32_46 = arith.constant 1 : i32
    %562 = tpu.dynamic_rotate %504 by %c1_i32_46 dim 1 : vector<16x128xf32>, i32 -> vector<16x128xf32>
    %563 = vector.broadcast %13 : vector<1x128xf32> to vector<16x128xf32>
    %564 = arith.mulf %562, %563 : vector<16x128xf32>
    %c33 = arith.constant 33 : index
    %565 = memref.load %arg2[%c33] : memref<432xf32, #tpu.memory_space<smem>>
    %566 = vector.broadcast %565 : f32 to vector<16x128xf32>
    %567 = arith.mulf %566, %564 : vector<16x128xf32>
    %568 = arith.addf %549, %567 : vector<16x128xf32>
    %c69 = arith.constant 69 : index
    %569 = memref.load %arg2[%c69] : memref<432xf32, #tpu.memory_space<smem>>
    %570 = vector.broadcast %569 : f32 to vector<16x128xf32>
    %571 = arith.mulf %570, %564 : vector<16x128xf32>
    %572 = arith.addf %553, %571 : vector<16x128xf32>
    %c105 = arith.constant 105 : index
    %573 = memref.load %arg2[%c105] : memref<432xf32, #tpu.memory_space<smem>>
    %574 = vector.broadcast %573 : f32 to vector<16x128xf32>
    %575 = arith.mulf %574, %564 : vector<16x128xf32>
    %576 = arith.addf %557, %575 : vector<16x128xf32>
    %c141 = arith.constant 141 : index
    %577 = memref.load %arg2[%c141] : memref<432xf32, #tpu.memory_space<smem>>
    %578 = vector.broadcast %577 : f32 to vector<16x128xf32>
    %579 = arith.mulf %578, %564 : vector<16x128xf32>
    %580 = arith.addf %561, %579 : vector<16x128xf32>
    %c7 = arith.constant 7 : index
    %581 = memref.load %arg2[%c7] : memref<432xf32, #tpu.memory_space<smem>>
    %582 = vector.broadcast %581 : f32 to vector<16x128xf32>
    %583 = arith.mulf %582, %495 : vector<16x128xf32>
    %584 = arith.addf %568, %583 : vector<16x128xf32>
    %c43 = arith.constant 43 : index
    %585 = memref.load %arg2[%c43] : memref<432xf32, #tpu.memory_space<smem>>
    %586 = vector.broadcast %585 : f32 to vector<16x128xf32>
    %587 = arith.mulf %586, %495 : vector<16x128xf32>
    %588 = arith.addf %572, %587 : vector<16x128xf32>
    %c79 = arith.constant 79 : index
    %589 = memref.load %arg2[%c79] : memref<432xf32, #tpu.memory_space<smem>>
    %590 = vector.broadcast %589 : f32 to vector<16x128xf32>
    %591 = arith.mulf %590, %495 : vector<16x128xf32>
    %592 = arith.addf %576, %591 : vector<16x128xf32>
    %c115 = arith.constant 115 : index
    %593 = memref.load %arg2[%c115] : memref<432xf32, #tpu.memory_space<smem>>
    %594 = vector.broadcast %593 : f32 to vector<16x128xf32>
    %595 = arith.mulf %594, %495 : vector<16x128xf32>
    %596 = arith.addf %580, %595 : vector<16x128xf32>
    %c16 = arith.constant 16 : index
    %597 = memref.load %arg2[%c16] : memref<432xf32, #tpu.memory_space<smem>>
    %598 = vector.broadcast %597 : f32 to vector<16x128xf32>
    %599 = arith.mulf %598, %498 : vector<16x128xf32>
    %600 = arith.addf %584, %599 : vector<16x128xf32>
    %c52 = arith.constant 52 : index
    %601 = memref.load %arg2[%c52] : memref<432xf32, #tpu.memory_space<smem>>
    %602 = vector.broadcast %601 : f32 to vector<16x128xf32>
    %603 = arith.mulf %602, %498 : vector<16x128xf32>
    %604 = arith.addf %588, %603 : vector<16x128xf32>
    %c88 = arith.constant 88 : index
    %605 = memref.load %arg2[%c88] : memref<432xf32, #tpu.memory_space<smem>>
    %606 = vector.broadcast %605 : f32 to vector<16x128xf32>
    %607 = arith.mulf %606, %498 : vector<16x128xf32>
    %608 = arith.addf %592, %607 : vector<16x128xf32>
    %c124 = arith.constant 124 : index
    %609 = memref.load %arg2[%c124] : memref<432xf32, #tpu.memory_space<smem>>
    %610 = vector.broadcast %609 : f32 to vector<16x128xf32>
    %611 = arith.mulf %610, %498 : vector<16x128xf32>
    %612 = arith.addf %596, %611 : vector<16x128xf32>
    %c25 = arith.constant 25 : index
    %613 = memref.load %arg2[%c25] : memref<432xf32, #tpu.memory_space<smem>>
    %614 = vector.broadcast %613 : f32 to vector<16x128xf32>
    %615 = arith.mulf %614, %501 : vector<16x128xf32>
    %616 = arith.addf %600, %615 : vector<16x128xf32>
    %c61 = arith.constant 61 : index
    %617 = memref.load %arg2[%c61] : memref<432xf32, #tpu.memory_space<smem>>
    %618 = vector.broadcast %617 : f32 to vector<16x128xf32>
    %619 = arith.mulf %618, %501 : vector<16x128xf32>
    %620 = arith.addf %604, %619 : vector<16x128xf32>
    %c97 = arith.constant 97 : index
    %621 = memref.load %arg2[%c97] : memref<432xf32, #tpu.memory_space<smem>>
    %622 = vector.broadcast %621 : f32 to vector<16x128xf32>
    %623 = arith.mulf %622, %501 : vector<16x128xf32>
    %624 = arith.addf %608, %623 : vector<16x128xf32>
    %c133 = arith.constant 133 : index
    %625 = memref.load %arg2[%c133] : memref<432xf32, #tpu.memory_space<smem>>
    %626 = vector.broadcast %625 : f32 to vector<16x128xf32>
    %627 = arith.mulf %626, %501 : vector<16x128xf32>
    %628 = arith.addf %612, %627 : vector<16x128xf32>
    %c34 = arith.constant 34 : index
    %629 = memref.load %arg2[%c34] : memref<432xf32, #tpu.memory_space<smem>>
    %630 = vector.broadcast %629 : f32 to vector<16x128xf32>
    %631 = arith.mulf %630, %504 : vector<16x128xf32>
    %632 = arith.addf %616, %631 : vector<16x128xf32>
    %c70 = arith.constant 70 : index
    %633 = memref.load %arg2[%c70] : memref<432xf32, #tpu.memory_space<smem>>
    %634 = vector.broadcast %633 : f32 to vector<16x128xf32>
    %635 = arith.mulf %634, %504 : vector<16x128xf32>
    %636 = arith.addf %620, %635 : vector<16x128xf32>
    %c106 = arith.constant 106 : index
    %637 = memref.load %arg2[%c106] : memref<432xf32, #tpu.memory_space<smem>>
    %638 = vector.broadcast %637 : f32 to vector<16x128xf32>
    %639 = arith.mulf %638, %504 : vector<16x128xf32>
    %640 = arith.addf %624, %639 : vector<16x128xf32>
    %c142 = arith.constant 142 : index
    %641 = memref.load %arg2[%c142] : memref<432xf32, #tpu.memory_space<smem>>
    %642 = vector.broadcast %641 : f32 to vector<16x128xf32>
    %643 = arith.mulf %642, %504 : vector<16x128xf32>
    %644 = arith.addf %628, %643 : vector<16x128xf32>
    %c127_i32_47 = arith.constant 127 : i32
    %645 = tpu.dynamic_rotate %495 by %c127_i32_47 dim 1 : vector<16x128xf32>, i32 -> vector<16x128xf32>
    %646 = vector.broadcast %17 : vector<1x128xf32> to vector<16x128xf32>
    %647 = arith.mulf %645, %646 : vector<16x128xf32>
    %c8 = arith.constant 8 : index
    %648 = memref.load %arg2[%c8] : memref<432xf32, #tpu.memory_space<smem>>
    %649 = vector.broadcast %648 : f32 to vector<16x128xf32>
    %650 = arith.mulf %649, %647 : vector<16x128xf32>
    %651 = arith.addf %632, %650 : vector<16x128xf32>
    %c44 = arith.constant 44 : index
    %652 = memref.load %arg2[%c44] : memref<432xf32, #tpu.memory_space<smem>>
    %653 = vector.broadcast %652 : f32 to vector<16x128xf32>
    %654 = arith.mulf %653, %647 : vector<16x128xf32>
    %655 = arith.addf %636, %654 : vector<16x128xf32>
    %c80 = arith.constant 80 : index
    %656 = memref.load %arg2[%c80] : memref<432xf32, #tpu.memory_space<smem>>
    %657 = vector.broadcast %656 : f32 to vector<16x128xf32>
    %658 = arith.mulf %657, %647 : vector<16x128xf32>
    %659 = arith.addf %640, %658 : vector<16x128xf32>
    %c116 = arith.constant 116 : index
    %660 = memref.load %arg2[%c116] : memref<432xf32, #tpu.memory_space<smem>>
    %661 = vector.broadcast %660 : f32 to vector<16x128xf32>
    %662 = arith.mulf %661, %647 : vector<16x128xf32>
    %663 = arith.addf %644, %662 : vector<16x128xf32>
    %c127_i32_48 = arith.constant 127 : i32
    %664 = tpu.dynamic_rotate %498 by %c127_i32_48 dim 1 : vector<16x128xf32>, i32 -> vector<16x128xf32>
    %665 = vector.broadcast %17 : vector<1x128xf32> to vector<16x128xf32>
    %666 = arith.mulf %664, %665 : vector<16x128xf32>
    %c17 = arith.constant 17 : index
    %667 = memref.load %arg2[%c17] : memref<432xf32, #tpu.memory_space<smem>>
    %668 = vector.broadcast %667 : f32 to vector<16x128xf32>
    %669 = arith.mulf %668, %666 : vector<16x128xf32>
    %670 = arith.addf %651, %669 : vector<16x128xf32>
    %c53 = arith.constant 53 : index
    %671 = memref.load %arg2[%c53] : memref<432xf32, #tpu.memory_space<smem>>
    %672 = vector.broadcast %671 : f32 to vector<16x128xf32>
    %673 = arith.mulf %672, %666 : vector<16x128xf32>
    %674 = arith.addf %655, %673 : vector<16x128xf32>
    %c89 = arith.constant 89 : index
    %675 = memref.load %arg2[%c89] : memref<432xf32, #tpu.memory_space<smem>>
    %676 = vector.broadcast %675 : f32 to vector<16x128xf32>
    %677 = arith.mulf %676, %666 : vector<16x128xf32>
    %678 = arith.addf %659, %677 : vector<16x128xf32>
    %c125 = arith.constant 125 : index
    %679 = memref.load %arg2[%c125] : memref<432xf32, #tpu.memory_space<smem>>
    %680 = vector.broadcast %679 : f32 to vector<16x128xf32>
    %681 = arith.mulf %680, %666 : vector<16x128xf32>
    %682 = arith.addf %663, %681 : vector<16x128xf32>
    %c127_i32_49 = arith.constant 127 : i32
    %683 = tpu.dynamic_rotate %501 by %c127_i32_49 dim 1 : vector<16x128xf32>, i32 -> vector<16x128xf32>
    %684 = vector.broadcast %17 : vector<1x128xf32> to vector<16x128xf32>
    %685 = arith.mulf %683, %684 : vector<16x128xf32>
    %c26 = arith.constant 26 : index
    %686 = memref.load %arg2[%c26] : memref<432xf32, #tpu.memory_space<smem>>
    %687 = vector.broadcast %686 : f32 to vector<16x128xf32>
    %688 = arith.mulf %687, %685 : vector<16x128xf32>
    %689 = arith.addf %670, %688 : vector<16x128xf32>
    %c62 = arith.constant 62 : index
    %690 = memref.load %arg2[%c62] : memref<432xf32, #tpu.memory_space<smem>>
    %691 = vector.broadcast %690 : f32 to vector<16x128xf32>
    %692 = arith.mulf %691, %685 : vector<16x128xf32>
    %693 = arith.addf %674, %692 : vector<16x128xf32>
    %c98 = arith.constant 98 : index
    %694 = memref.load %arg2[%c98] : memref<432xf32, #tpu.memory_space<smem>>
    %695 = vector.broadcast %694 : f32 to vector<16x128xf32>
    %696 = arith.mulf %695, %685 : vector<16x128xf32>
    %697 = arith.addf %678, %696 : vector<16x128xf32>
    %c134 = arith.constant 134 : index
    %698 = memref.load %arg2[%c134] : memref<432xf32, #tpu.memory_space<smem>>
    %699 = vector.broadcast %698 : f32 to vector<16x128xf32>
    %700 = arith.mulf %699, %685 : vector<16x128xf32>
    %701 = arith.addf %682, %700 : vector<16x128xf32>
    %c127_i32_50 = arith.constant 127 : i32
    %702 = tpu.dynamic_rotate %504 by %c127_i32_50 dim 1 : vector<16x128xf32>, i32 -> vector<16x128xf32>
    %703 = vector.broadcast %17 : vector<1x128xf32> to vector<16x128xf32>
    %704 = arith.mulf %702, %703 : vector<16x128xf32>
    %c35 = arith.constant 35 : index
    %705 = memref.load %arg2[%c35] : memref<432xf32, #tpu.memory_space<smem>>
    %706 = vector.broadcast %705 : f32 to vector<16x128xf32>
    %707 = arith.mulf %706, %704 : vector<16x128xf32>
    %708 = arith.addf %689, %707 : vector<16x128xf32>
    %c71 = arith.constant 71 : index
    %709 = memref.load %arg2[%c71] : memref<432xf32, #tpu.memory_space<smem>>
    %710 = vector.broadcast %709 : f32 to vector<16x128xf32>
    %711 = arith.mulf %710, %704 : vector<16x128xf32>
    %712 = arith.addf %693, %711 : vector<16x128xf32>
    %c107 = arith.constant 107 : index
    %713 = memref.load %arg2[%c107] : memref<432xf32, #tpu.memory_space<smem>>
    %714 = vector.broadcast %713 : f32 to vector<16x128xf32>
    %715 = arith.mulf %714, %704 : vector<16x128xf32>
    %716 = arith.addf %697, %715 : vector<16x128xf32>
    %c143 = arith.constant 143 : index
    %717 = memref.load %arg2[%c143] : memref<432xf32, #tpu.memory_space<smem>>
    %718 = vector.broadcast %717 : f32 to vector<16x128xf32>
    %719 = arith.mulf %718, %704 : vector<16x128xf32>
    %720 = arith.addf %701, %719 : vector<16x128xf32>
    %c0_51 = arith.constant 0 : index
    %721 = memref.load %arg3[%c0_51] : memref<3xf32, #tpu.memory_space<smem>>
    %c0_52 = arith.constant 0 : index
    %722 = memref.load %arg4[%c0_52] : memref<3xf32, #tpu.memory_space<smem>>
    %723 = vector.broadcast %721 : f32 to vector<16x128xf32>
    %724 = arith.mulf %19, %723 : vector<16x128xf32>
    %725 = vector.broadcast %722 : f32 to vector<16x128xf32>
    %726 = arith.mulf %708, %725 : vector<16x128xf32>
    %727 = arith.subf %724, %726 : vector<16x128xf32>
    %728 = vector.broadcast %721 : f32 to vector<16x128xf32>
    %729 = arith.mulf %21, %728 : vector<16x128xf32>
    %730 = vector.broadcast %722 : f32 to vector<16x128xf32>
    %731 = arith.mulf %712, %730 : vector<16x128xf32>
    %732 = arith.subf %729, %731 : vector<16x128xf32>
    %733 = vector.broadcast %721 : f32 to vector<16x128xf32>
    %734 = arith.mulf %23, %733 : vector<16x128xf32>
    %735 = vector.broadcast %722 : f32 to vector<16x128xf32>
    %736 = arith.mulf %716, %735 : vector<16x128xf32>
    %737 = arith.subf %734, %736 : vector<16x128xf32>
    %738 = vector.broadcast %721 : f32 to vector<16x128xf32>
    %739 = arith.mulf %25, %738 : vector<16x128xf32>
    %740 = vector.broadcast %722 : f32 to vector<16x128xf32>
    %741 = arith.mulf %720, %740 : vector<16x128xf32>
    %742 = arith.subf %739, %741 : vector<16x128xf32>
    %743 = arith.maximumf %727, %732 : vector<16x128xf32>
    %744 = arith.maximumf %743, %737 : vector<16x128xf32>
    %745 = arith.maximumf %744, %742 : vector<16x128xf32>
    %746 = arith.subf %727, %745 : vector<16x128xf32>
    %747 = math.exp %746 : vector<16x128xf32>
    %748 = arith.subf %732, %745 : vector<16x128xf32>
    %749 = math.exp %748 : vector<16x128xf32>
    %750 = arith.subf %737, %745 : vector<16x128xf32>
    %751 = math.exp %750 : vector<16x128xf32>
    %752 = arith.subf %742, %745 : vector<16x128xf32>
    %753 = math.exp %752 : vector<16x128xf32>
    %754 = arith.addf %747, %749 : vector<16x128xf32>
    %755 = arith.addf %754, %751 : vector<16x128xf32>
    %756 = arith.addf %755, %753 : vector<16x128xf32>
    %757 = tpu.reciprocal %756 {approx = true} : vector<16x128xf32> -> vector<16x128xf32>
    %758 = arith.mulf %747, %757 : vector<16x128xf32>
    %759 = arith.mulf %749, %757 : vector<16x128xf32>
    %760 = arith.mulf %751, %757 : vector<16x128xf32>
    %761 = arith.mulf %753, %757 : vector<16x128xf32>
    %cst_53 = arith.constant 0.000000e+00 : f32
    %762 = vector.broadcast %cst_53 : f32 to vector<16x128xf32>
    %cst_54 = arith.constant 0.000000e+00 : f32
    %763 = vector.broadcast %cst_54 : f32 to vector<16x128xf32>
    %cst_55 = arith.constant 0.000000e+00 : f32
    %764 = vector.broadcast %cst_55 : f32 to vector<16x128xf32>
    %cst_56 = arith.constant 0.000000e+00 : f32
    %765 = vector.broadcast %cst_56 : f32 to vector<16x128xf32>
    %c1_i32_57 = arith.constant 1 : i32
    %766 = tpu.dynamic_rotate %758 by %c1_i32_57 dim 0 : vector<16x128xf32>, i32 -> vector<16x128xf32>
    %767 = vector.broadcast %5 : vector<16x1xf32> to vector<16x128xf32>
    %768 = arith.mulf %766, %767 : vector<16x128xf32>
    %c1_i32_58 = arith.constant 1 : i32
    %769 = tpu.dynamic_rotate %759 by %c1_i32_58 dim 0 : vector<16x128xf32>, i32 -> vector<16x128xf32>
    %770 = vector.broadcast %5 : vector<16x1xf32> to vector<16x128xf32>
    %771 = arith.mulf %769, %770 : vector<16x128xf32>
    %c1_i32_59 = arith.constant 1 : i32
    %772 = tpu.dynamic_rotate %760 by %c1_i32_59 dim 0 : vector<16x128xf32>, i32 -> vector<16x128xf32>
    %773 = vector.broadcast %5 : vector<16x1xf32> to vector<16x128xf32>
    %774 = arith.mulf %772, %773 : vector<16x128xf32>
    %c1_i32_60 = arith.constant 1 : i32
    %775 = tpu.dynamic_rotate %761 by %c1_i32_60 dim 0 : vector<16x128xf32>, i32 -> vector<16x128xf32>
    %776 = vector.broadcast %5 : vector<16x1xf32> to vector<16x128xf32>
    %777 = arith.mulf %775, %776 : vector<16x128xf32>
    %c1_i32_61 = arith.constant 1 : i32
    %778 = tpu.dynamic_rotate %768 by %c1_i32_61 dim 1 : vector<16x128xf32>, i32 -> vector<16x128xf32>
    %779 = vector.broadcast %13 : vector<1x128xf32> to vector<16x128xf32>
    %780 = arith.mulf %778, %779 : vector<16x128xf32>
    %c144 = arith.constant 144 : index
    %781 = memref.load %arg2[%c144] : memref<432xf32, #tpu.memory_space<smem>>
    %782 = vector.broadcast %781 : f32 to vector<16x128xf32>
    %783 = arith.mulf %782, %780 : vector<16x128xf32>
    %784 = arith.addf %762, %783 : vector<16x128xf32>
    %c180 = arith.constant 180 : index
    %785 = memref.load %arg2[%c180] : memref<432xf32, #tpu.memory_space<smem>>
    %786 = vector.broadcast %785 : f32 to vector<16x128xf32>
    %787 = arith.mulf %786, %780 : vector<16x128xf32>
    %788 = arith.addf %763, %787 : vector<16x128xf32>
    %c216 = arith.constant 216 : index
    %789 = memref.load %arg2[%c216] : memref<432xf32, #tpu.memory_space<smem>>
    %790 = vector.broadcast %789 : f32 to vector<16x128xf32>
    %791 = arith.mulf %790, %780 : vector<16x128xf32>
    %792 = arith.addf %764, %791 : vector<16x128xf32>
    %c252 = arith.constant 252 : index
    %793 = memref.load %arg2[%c252] : memref<432xf32, #tpu.memory_space<smem>>
    %794 = vector.broadcast %793 : f32 to vector<16x128xf32>
    %795 = arith.mulf %794, %780 : vector<16x128xf32>
    %796 = arith.addf %765, %795 : vector<16x128xf32>
    %c1_i32_62 = arith.constant 1 : i32
    %797 = tpu.dynamic_rotate %771 by %c1_i32_62 dim 1 : vector<16x128xf32>, i32 -> vector<16x128xf32>
    %798 = vector.broadcast %13 : vector<1x128xf32> to vector<16x128xf32>
    %799 = arith.mulf %797, %798 : vector<16x128xf32>
    %c153 = arith.constant 153 : index
    %800 = memref.load %arg2[%c153] : memref<432xf32, #tpu.memory_space<smem>>
    %801 = vector.broadcast %800 : f32 to vector<16x128xf32>
    %802 = arith.mulf %801, %799 : vector<16x128xf32>
    %803 = arith.addf %784, %802 : vector<16x128xf32>
    %c189 = arith.constant 189 : index
    %804 = memref.load %arg2[%c189] : memref<432xf32, #tpu.memory_space<smem>>
    %805 = vector.broadcast %804 : f32 to vector<16x128xf32>
    %806 = arith.mulf %805, %799 : vector<16x128xf32>
    %807 = arith.addf %788, %806 : vector<16x128xf32>
    %c225 = arith.constant 225 : index
    %808 = memref.load %arg2[%c225] : memref<432xf32, #tpu.memory_space<smem>>
    %809 = vector.broadcast %808 : f32 to vector<16x128xf32>
    %810 = arith.mulf %809, %799 : vector<16x128xf32>
    %811 = arith.addf %792, %810 : vector<16x128xf32>
    %c261 = arith.constant 261 : index
    %812 = memref.load %arg2[%c261] : memref<432xf32, #tpu.memory_space<smem>>
    %813 = vector.broadcast %812 : f32 to vector<16x128xf32>
    %814 = arith.mulf %813, %799 : vector<16x128xf32>
    %815 = arith.addf %796, %814 : vector<16x128xf32>
    %c1_i32_63 = arith.constant 1 : i32
    %816 = tpu.dynamic_rotate %774 by %c1_i32_63 dim 1 : vector<16x128xf32>, i32 -> vector<16x128xf32>
    %817 = vector.broadcast %13 : vector<1x128xf32> to vector<16x128xf32>
    %818 = arith.mulf %816, %817 : vector<16x128xf32>
    %c162 = arith.constant 162 : index
    %819 = memref.load %arg2[%c162] : memref<432xf32, #tpu.memory_space<smem>>
    %820 = vector.broadcast %819 : f32 to vector<16x128xf32>
    %821 = arith.mulf %820, %818 : vector<16x128xf32>
    %822 = arith.addf %803, %821 : vector<16x128xf32>
    %c198 = arith.constant 198 : index
    %823 = memref.load %arg2[%c198] : memref<432xf32, #tpu.memory_space<smem>>
    %824 = vector.broadcast %823 : f32 to vector<16x128xf32>
    %825 = arith.mulf %824, %818 : vector<16x128xf32>
    %826 = arith.addf %807, %825 : vector<16x128xf32>
    %c234 = arith.constant 234 : index
    %827 = memref.load %arg2[%c234] : memref<432xf32, #tpu.memory_space<smem>>
    %828 = vector.broadcast %827 : f32 to vector<16x128xf32>
    %829 = arith.mulf %828, %818 : vector<16x128xf32>
    %830 = arith.addf %811, %829 : vector<16x128xf32>
    %c270 = arith.constant 270 : index
    %831 = memref.load %arg2[%c270] : memref<432xf32, #tpu.memory_space<smem>>
    %832 = vector.broadcast %831 : f32 to vector<16x128xf32>
    %833 = arith.mulf %832, %818 : vector<16x128xf32>
    %834 = arith.addf %815, %833 : vector<16x128xf32>
    %c1_i32_64 = arith.constant 1 : i32
    %835 = tpu.dynamic_rotate %777 by %c1_i32_64 dim 1 : vector<16x128xf32>, i32 -> vector<16x128xf32>
    %836 = vector.broadcast %13 : vector<1x128xf32> to vector<16x128xf32>
    %837 = arith.mulf %835, %836 : vector<16x128xf32>
    %c171 = arith.constant 171 : index
    %838 = memref.load %arg2[%c171] : memref<432xf32, #tpu.memory_space<smem>>
    %839 = vector.broadcast %838 : f32 to vector<16x128xf32>
    %840 = arith.mulf %839, %837 : vector<16x128xf32>
    %841 = arith.addf %822, %840 : vector<16x128xf32>
    %c207 = arith.constant 207 : index
    %842 = memref.load %arg2[%c207] : memref<432xf32, #tpu.memory_space<smem>>
    %843 = vector.broadcast %842 : f32 to vector<16x128xf32>
    %844 = arith.mulf %843, %837 : vector<16x128xf32>
    %845 = arith.addf %826, %844 : vector<16x128xf32>
    %c243 = arith.constant 243 : index
    %846 = memref.load %arg2[%c243] : memref<432xf32, #tpu.memory_space<smem>>
    %847 = vector.broadcast %846 : f32 to vector<16x128xf32>
    %848 = arith.mulf %847, %837 : vector<16x128xf32>
    %849 = arith.addf %830, %848 : vector<16x128xf32>
    %c279 = arith.constant 279 : index
    %850 = memref.load %arg2[%c279] : memref<432xf32, #tpu.memory_space<smem>>
    %851 = vector.broadcast %850 : f32 to vector<16x128xf32>
    %852 = arith.mulf %851, %837 : vector<16x128xf32>
    %853 = arith.addf %834, %852 : vector<16x128xf32>
    %c145 = arith.constant 145 : index
    %854 = memref.load %arg2[%c145] : memref<432xf32, #tpu.memory_space<smem>>
    %855 = vector.broadcast %854 : f32 to vector<16x128xf32>
    %856 = arith.mulf %855, %768 : vector<16x128xf32>
    %857 = arith.addf %841, %856 : vector<16x128xf32>
    %c181 = arith.constant 181 : index
    %858 = memref.load %arg2[%c181] : memref<432xf32, #tpu.memory_space<smem>>
    %859 = vector.broadcast %858 : f32 to vector<16x128xf32>
    %860 = arith.mulf %859, %768 : vector<16x128xf32>
    %861 = arith.addf %845, %860 : vector<16x128xf32>
    %c217 = arith.constant 217 : index
    %862 = memref.load %arg2[%c217] : memref<432xf32, #tpu.memory_space<smem>>
    %863 = vector.broadcast %862 : f32 to vector<16x128xf32>
    %864 = arith.mulf %863, %768 : vector<16x128xf32>
    %865 = arith.addf %849, %864 : vector<16x128xf32>
    %c253 = arith.constant 253 : index
    %866 = memref.load %arg2[%c253] : memref<432xf32, #tpu.memory_space<smem>>
    %867 = vector.broadcast %866 : f32 to vector<16x128xf32>
    %868 = arith.mulf %867, %768 : vector<16x128xf32>
    %869 = arith.addf %853, %868 : vector<16x128xf32>
    %c154 = arith.constant 154 : index
    %870 = memref.load %arg2[%c154] : memref<432xf32, #tpu.memory_space<smem>>
    %871 = vector.broadcast %870 : f32 to vector<16x128xf32>
    %872 = arith.mulf %871, %771 : vector<16x128xf32>
    %873 = arith.addf %857, %872 : vector<16x128xf32>
    %c190 = arith.constant 190 : index
    %874 = memref.load %arg2[%c190] : memref<432xf32, #tpu.memory_space<smem>>
    %875 = vector.broadcast %874 : f32 to vector<16x128xf32>
    %876 = arith.mulf %875, %771 : vector<16x128xf32>
    %877 = arith.addf %861, %876 : vector<16x128xf32>
    %c226 = arith.constant 226 : index
    %878 = memref.load %arg2[%c226] : memref<432xf32, #tpu.memory_space<smem>>
    %879 = vector.broadcast %878 : f32 to vector<16x128xf32>
    %880 = arith.mulf %879, %771 : vector<16x128xf32>
    %881 = arith.addf %865, %880 : vector<16x128xf32>
    %c262 = arith.constant 262 : index
    %882 = memref.load %arg2[%c262] : memref<432xf32, #tpu.memory_space<smem>>
    %883 = vector.broadcast %882 : f32 to vector<16x128xf32>
    %884 = arith.mulf %883, %771 : vector<16x128xf32>
    %885 = arith.addf %869, %884 : vector<16x128xf32>
    %c163 = arith.constant 163 : index
    %886 = memref.load %arg2[%c163] : memref<432xf32, #tpu.memory_space<smem>>
    %887 = vector.broadcast %886 : f32 to vector<16x128xf32>
    %888 = arith.mulf %887, %774 : vector<16x128xf32>
    %889 = arith.addf %873, %888 : vector<16x128xf32>
    %c199 = arith.constant 199 : index
    %890 = memref.load %arg2[%c199] : memref<432xf32, #tpu.memory_space<smem>>
    %891 = vector.broadcast %890 : f32 to vector<16x128xf32>
    %892 = arith.mulf %891, %774 : vector<16x128xf32>
    %893 = arith.addf %877, %892 : vector<16x128xf32>
    %c235 = arith.constant 235 : index
    %894 = memref.load %arg2[%c235] : memref<432xf32, #tpu.memory_space<smem>>
    %895 = vector.broadcast %894 : f32 to vector<16x128xf32>
    %896 = arith.mulf %895, %774 : vector<16x128xf32>
    %897 = arith.addf %881, %896 : vector<16x128xf32>
    %c271 = arith.constant 271 : index
    %898 = memref.load %arg2[%c271] : memref<432xf32, #tpu.memory_space<smem>>
    %899 = vector.broadcast %898 : f32 to vector<16x128xf32>
    %900 = arith.mulf %899, %774 : vector<16x128xf32>
    %901 = arith.addf %885, %900 : vector<16x128xf32>
    %c172 = arith.constant 172 : index
    %902 = memref.load %arg2[%c172] : memref<432xf32, #tpu.memory_space<smem>>
    %903 = vector.broadcast %902 : f32 to vector<16x128xf32>
    %904 = arith.mulf %903, %777 : vector<16x128xf32>
    %905 = arith.addf %889, %904 : vector<16x128xf32>
    %c208 = arith.constant 208 : index
    %906 = memref.load %arg2[%c208] : memref<432xf32, #tpu.memory_space<smem>>
    %907 = vector.broadcast %906 : f32 to vector<16x128xf32>
    %908 = arith.mulf %907, %777 : vector<16x128xf32>
    %909 = arith.addf %893, %908 : vector<16x128xf32>
    %c244 = arith.constant 244 : index
    %910 = memref.load %arg2[%c244] : memref<432xf32, #tpu.memory_space<smem>>
    %911 = vector.broadcast %910 : f32 to vector<16x128xf32>
    %912 = arith.mulf %911, %777 : vector<16x128xf32>
    %913 = arith.addf %897, %912 : vector<16x128xf32>
    %c280 = arith.constant 280 : index
    %914 = memref.load %arg2[%c280] : memref<432xf32, #tpu.memory_space<smem>>
    %915 = vector.broadcast %914 : f32 to vector<16x128xf32>
    %916 = arith.mulf %915, %777 : vector<16x128xf32>
    %917 = arith.addf %901, %916 : vector<16x128xf32>
    %c127_i32_65 = arith.constant 127 : i32
    %918 = tpu.dynamic_rotate %768 by %c127_i32_65 dim 1 : vector<16x128xf32>, i32 -> vector<16x128xf32>
    %919 = vector.broadcast %17 : vector<1x128xf32> to vector<16x128xf32>
    %920 = arith.mulf %918, %919 : vector<16x128xf32>
    %c146 = arith.constant 146 : index
    %921 = memref.load %arg2[%c146] : memref<432xf32, #tpu.memory_space<smem>>
    %922 = vector.broadcast %921 : f32 to vector<16x128xf32>
    %923 = arith.mulf %922, %920 : vector<16x128xf32>
    %924 = arith.addf %905, %923 : vector<16x128xf32>
    %c182 = arith.constant 182 : index
    %925 = memref.load %arg2[%c182] : memref<432xf32, #tpu.memory_space<smem>>
    %926 = vector.broadcast %925 : f32 to vector<16x128xf32>
    %927 = arith.mulf %926, %920 : vector<16x128xf32>
    %928 = arith.addf %909, %927 : vector<16x128xf32>
    %c218 = arith.constant 218 : index
    %929 = memref.load %arg2[%c218] : memref<432xf32, #tpu.memory_space<smem>>
    %930 = vector.broadcast %929 : f32 to vector<16x128xf32>
    %931 = arith.mulf %930, %920 : vector<16x128xf32>
    %932 = arith.addf %913, %931 : vector<16x128xf32>
    %c254 = arith.constant 254 : index
    %933 = memref.load %arg2[%c254] : memref<432xf32, #tpu.memory_space<smem>>
    %934 = vector.broadcast %933 : f32 to vector<16x128xf32>
    %935 = arith.mulf %934, %920 : vector<16x128xf32>
    %936 = arith.addf %917, %935 : vector<16x128xf32>
    %c127_i32_66 = arith.constant 127 : i32
    %937 = tpu.dynamic_rotate %771 by %c127_i32_66 dim 1 : vector<16x128xf32>, i32 -> vector<16x128xf32>
    %938 = vector.broadcast %17 : vector<1x128xf32> to vector<16x128xf32>
    %939 = arith.mulf %937, %938 : vector<16x128xf32>
    %c155 = arith.constant 155 : index
    %940 = memref.load %arg2[%c155] : memref<432xf32, #tpu.memory_space<smem>>
    %941 = vector.broadcast %940 : f32 to vector<16x128xf32>
    %942 = arith.mulf %941, %939 : vector<16x128xf32>
    %943 = arith.addf %924, %942 : vector<16x128xf32>
    %c191 = arith.constant 191 : index
    %944 = memref.load %arg2[%c191] : memref<432xf32, #tpu.memory_space<smem>>
    %945 = vector.broadcast %944 : f32 to vector<16x128xf32>
    %946 = arith.mulf %945, %939 : vector<16x128xf32>
    %947 = arith.addf %928, %946 : vector<16x128xf32>
    %c227 = arith.constant 227 : index
    %948 = memref.load %arg2[%c227] : memref<432xf32, #tpu.memory_space<smem>>
    %949 = vector.broadcast %948 : f32 to vector<16x128xf32>
    %950 = arith.mulf %949, %939 : vector<16x128xf32>
    %951 = arith.addf %932, %950 : vector<16x128xf32>
    %c263 = arith.constant 263 : index
    %952 = memref.load %arg2[%c263] : memref<432xf32, #tpu.memory_space<smem>>
    %953 = vector.broadcast %952 : f32 to vector<16x128xf32>
    %954 = arith.mulf %953, %939 : vector<16x128xf32>
    %955 = arith.addf %936, %954 : vector<16x128xf32>
    %c127_i32_67 = arith.constant 127 : i32
    %956 = tpu.dynamic_rotate %774 by %c127_i32_67 dim 1 : vector<16x128xf32>, i32 -> vector<16x128xf32>
    %957 = vector.broadcast %17 : vector<1x128xf32> to vector<16x128xf32>
    %958 = arith.mulf %956, %957 : vector<16x128xf32>
    %c164 = arith.constant 164 : index
    %959 = memref.load %arg2[%c164] : memref<432xf32, #tpu.memory_space<smem>>
    %960 = vector.broadcast %959 : f32 to vector<16x128xf32>
    %961 = arith.mulf %960, %958 : vector<16x128xf32>
    %962 = arith.addf %943, %961 : vector<16x128xf32>
    %c200 = arith.constant 200 : index
    %963 = memref.load %arg2[%c200] : memref<432xf32, #tpu.memory_space<smem>>
    %964 = vector.broadcast %963 : f32 to vector<16x128xf32>
    %965 = arith.mulf %964, %958 : vector<16x128xf32>
    %966 = arith.addf %947, %965 : vector<16x128xf32>
    %c236 = arith.constant 236 : index
    %967 = memref.load %arg2[%c236] : memref<432xf32, #tpu.memory_space<smem>>
    %968 = vector.broadcast %967 : f32 to vector<16x128xf32>
    %969 = arith.mulf %968, %958 : vector<16x128xf32>
    %970 = arith.addf %951, %969 : vector<16x128xf32>
    %c272 = arith.constant 272 : index
    %971 = memref.load %arg2[%c272] : memref<432xf32, #tpu.memory_space<smem>>
    %972 = vector.broadcast %971 : f32 to vector<16x128xf32>
    %973 = arith.mulf %972, %958 : vector<16x128xf32>
    %974 = arith.addf %955, %973 : vector<16x128xf32>
    %c127_i32_68 = arith.constant 127 : i32
    %975 = tpu.dynamic_rotate %777 by %c127_i32_68 dim 1 : vector<16x128xf32>, i32 -> vector<16x128xf32>
    %976 = vector.broadcast %17 : vector<1x128xf32> to vector<16x128xf32>
    %977 = arith.mulf %975, %976 : vector<16x128xf32>
    %c173 = arith.constant 173 : index
    %978 = memref.load %arg2[%c173] : memref<432xf32, #tpu.memory_space<smem>>
    %979 = vector.broadcast %978 : f32 to vector<16x128xf32>
    %980 = arith.mulf %979, %977 : vector<16x128xf32>
    %981 = arith.addf %962, %980 : vector<16x128xf32>
    %c209 = arith.constant 209 : index
    %982 = memref.load %arg2[%c209] : memref<432xf32, #tpu.memory_space<smem>>
    %983 = vector.broadcast %982 : f32 to vector<16x128xf32>
    %984 = arith.mulf %983, %977 : vector<16x128xf32>
    %985 = arith.addf %966, %984 : vector<16x128xf32>
    %c245 = arith.constant 245 : index
    %986 = memref.load %arg2[%c245] : memref<432xf32, #tpu.memory_space<smem>>
    %987 = vector.broadcast %986 : f32 to vector<16x128xf32>
    %988 = arith.mulf %987, %977 : vector<16x128xf32>
    %989 = arith.addf %970, %988 : vector<16x128xf32>
    %c281 = arith.constant 281 : index
    %990 = memref.load %arg2[%c281] : memref<432xf32, #tpu.memory_space<smem>>
    %991 = vector.broadcast %990 : f32 to vector<16x128xf32>
    %992 = arith.mulf %991, %977 : vector<16x128xf32>
    %993 = arith.addf %974, %992 : vector<16x128xf32>
    %c1_i32_69 = arith.constant 1 : i32
    %994 = tpu.dynamic_rotate %758 by %c1_i32_69 dim 1 : vector<16x128xf32>, i32 -> vector<16x128xf32>
    %995 = vector.broadcast %13 : vector<1x128xf32> to vector<16x128xf32>
    %996 = arith.mulf %994, %995 : vector<16x128xf32>
    %c147 = arith.constant 147 : index
    %997 = memref.load %arg2[%c147] : memref<432xf32, #tpu.memory_space<smem>>
    %998 = vector.broadcast %997 : f32 to vector<16x128xf32>
    %999 = arith.mulf %998, %996 : vector<16x128xf32>
    %1000 = arith.addf %981, %999 : vector<16x128xf32>
    %c183 = arith.constant 183 : index
    %1001 = memref.load %arg2[%c183] : memref<432xf32, #tpu.memory_space<smem>>
    %1002 = vector.broadcast %1001 : f32 to vector<16x128xf32>
    %1003 = arith.mulf %1002, %996 : vector<16x128xf32>
    %1004 = arith.addf %985, %1003 : vector<16x128xf32>
    %c219 = arith.constant 219 : index
    %1005 = memref.load %arg2[%c219] : memref<432xf32, #tpu.memory_space<smem>>
    %1006 = vector.broadcast %1005 : f32 to vector<16x128xf32>
    %1007 = arith.mulf %1006, %996 : vector<16x128xf32>
    %1008 = arith.addf %989, %1007 : vector<16x128xf32>
    %c255 = arith.constant 255 : index
    %1009 = memref.load %arg2[%c255] : memref<432xf32, #tpu.memory_space<smem>>
    %1010 = vector.broadcast %1009 : f32 to vector<16x128xf32>
    %1011 = arith.mulf %1010, %996 : vector<16x128xf32>
    %1012 = arith.addf %993, %1011 : vector<16x128xf32>
    %c1_i32_70 = arith.constant 1 : i32
    %1013 = tpu.dynamic_rotate %759 by %c1_i32_70 dim 1 : vector<16x128xf32>, i32 -> vector<16x128xf32>
    %1014 = vector.broadcast %13 : vector<1x128xf32> to vector<16x128xf32>
    %1015 = arith.mulf %1013, %1014 : vector<16x128xf32>
    %c156 = arith.constant 156 : index
    %1016 = memref.load %arg2[%c156] : memref<432xf32, #tpu.memory_space<smem>>
    %1017 = vector.broadcast %1016 : f32 to vector<16x128xf32>
    %1018 = arith.mulf %1017, %1015 : vector<16x128xf32>
    %1019 = arith.addf %1000, %1018 : vector<16x128xf32>
    %c192 = arith.constant 192 : index
    %1020 = memref.load %arg2[%c192] : memref<432xf32, #tpu.memory_space<smem>>
    %1021 = vector.broadcast %1020 : f32 to vector<16x128xf32>
    %1022 = arith.mulf %1021, %1015 : vector<16x128xf32>
    %1023 = arith.addf %1004, %1022 : vector<16x128xf32>
    %c228 = arith.constant 228 : index
    %1024 = memref.load %arg2[%c228] : memref<432xf32, #tpu.memory_space<smem>>
    %1025 = vector.broadcast %1024 : f32 to vector<16x128xf32>
    %1026 = arith.mulf %1025, %1015 : vector<16x128xf32>
    %1027 = arith.addf %1008, %1026 : vector<16x128xf32>
    %c264 = arith.constant 264 : index
    %1028 = memref.load %arg2[%c264] : memref<432xf32, #tpu.memory_space<smem>>
    %1029 = vector.broadcast %1028 : f32 to vector<16x128xf32>
    %1030 = arith.mulf %1029, %1015 : vector<16x128xf32>
    %1031 = arith.addf %1012, %1030 : vector<16x128xf32>
    %c1_i32_71 = arith.constant 1 : i32
    %1032 = tpu.dynamic_rotate %760 by %c1_i32_71 dim 1 : vector<16x128xf32>, i32 -> vector<16x128xf32>
    %1033 = vector.broadcast %13 : vector<1x128xf32> to vector<16x128xf32>
    %1034 = arith.mulf %1032, %1033 : vector<16x128xf32>
    %c165 = arith.constant 165 : index
    %1035 = memref.load %arg2[%c165] : memref<432xf32, #tpu.memory_space<smem>>
    %1036 = vector.broadcast %1035 : f32 to vector<16x128xf32>
    %1037 = arith.mulf %1036, %1034 : vector<16x128xf32>
    %1038 = arith.addf %1019, %1037 : vector<16x128xf32>
    %c201 = arith.constant 201 : index
    %1039 = memref.load %arg2[%c201] : memref<432xf32, #tpu.memory_space<smem>>
    %1040 = vector.broadcast %1039 : f32 to vector<16x128xf32>
    %1041 = arith.mulf %1040, %1034 : vector<16x128xf32>
    %1042 = arith.addf %1023, %1041 : vector<16x128xf32>
    %c237 = arith.constant 237 : index
    %1043 = memref.load %arg2[%c237] : memref<432xf32, #tpu.memory_space<smem>>
    %1044 = vector.broadcast %1043 : f32 to vector<16x128xf32>
    %1045 = arith.mulf %1044, %1034 : vector<16x128xf32>
    %1046 = arith.addf %1027, %1045 : vector<16x128xf32>
    %c273 = arith.constant 273 : index
    %1047 = memref.load %arg2[%c273] : memref<432xf32, #tpu.memory_space<smem>>
    %1048 = vector.broadcast %1047 : f32 to vector<16x128xf32>
    %1049 = arith.mulf %1048, %1034 : vector<16x128xf32>
    %1050 = arith.addf %1031, %1049 : vector<16x128xf32>
    %c1_i32_72 = arith.constant 1 : i32
    %1051 = tpu.dynamic_rotate %761 by %c1_i32_72 dim 1 : vector<16x128xf32>, i32 -> vector<16x128xf32>
    %1052 = vector.broadcast %13 : vector<1x128xf32> to vector<16x128xf32>
    %1053 = arith.mulf %1051, %1052 : vector<16x128xf32>
    %c174 = arith.constant 174 : index
    %1054 = memref.load %arg2[%c174] : memref<432xf32, #tpu.memory_space<smem>>
    %1055 = vector.broadcast %1054 : f32 to vector<16x128xf32>
    %1056 = arith.mulf %1055, %1053 : vector<16x128xf32>
    %1057 = arith.addf %1038, %1056 : vector<16x128xf32>
    %c210 = arith.constant 210 : index
    %1058 = memref.load %arg2[%c210] : memref<432xf32, #tpu.memory_space<smem>>
    %1059 = vector.broadcast %1058 : f32 to vector<16x128xf32>
    %1060 = arith.mulf %1059, %1053 : vector<16x128xf32>
    %1061 = arith.addf %1042, %1060 : vector<16x128xf32>
    %c246 = arith.constant 246 : index
    %1062 = memref.load %arg2[%c246] : memref<432xf32, #tpu.memory_space<smem>>
    %1063 = vector.broadcast %1062 : f32 to vector<16x128xf32>
    %1064 = arith.mulf %1063, %1053 : vector<16x128xf32>
    %1065 = arith.addf %1046, %1064 : vector<16x128xf32>
    %c282 = arith.constant 282 : index
    %1066 = memref.load %arg2[%c282] : memref<432xf32, #tpu.memory_space<smem>>
    %1067 = vector.broadcast %1066 : f32 to vector<16x128xf32>
    %1068 = arith.mulf %1067, %1053 : vector<16x128xf32>
    %1069 = arith.addf %1050, %1068 : vector<16x128xf32>
    %c148 = arith.constant 148 : index
    %1070 = memref.load %arg2[%c148] : memref<432xf32, #tpu.memory_space<smem>>
    %1071 = vector.broadcast %1070 : f32 to vector<16x128xf32>
    %1072 = arith.mulf %1071, %758 : vector<16x128xf32>
    %1073 = arith.addf %1057, %1072 : vector<16x128xf32>
    %c184 = arith.constant 184 : index
    %1074 = memref.load %arg2[%c184] : memref<432xf32, #tpu.memory_space<smem>>
    %1075 = vector.broadcast %1074 : f32 to vector<16x128xf32>
    %1076 = arith.mulf %1075, %758 : vector<16x128xf32>
    %1077 = arith.addf %1061, %1076 : vector<16x128xf32>
    %c220 = arith.constant 220 : index
    %1078 = memref.load %arg2[%c220] : memref<432xf32, #tpu.memory_space<smem>>
    %1079 = vector.broadcast %1078 : f32 to vector<16x128xf32>
    %1080 = arith.mulf %1079, %758 : vector<16x128xf32>
    %1081 = arith.addf %1065, %1080 : vector<16x128xf32>
    %c256 = arith.constant 256 : index
    %1082 = memref.load %arg2[%c256] : memref<432xf32, #tpu.memory_space<smem>>
    %1083 = vector.broadcast %1082 : f32 to vector<16x128xf32>
    %1084 = arith.mulf %1083, %758 : vector<16x128xf32>
    %1085 = arith.addf %1069, %1084 : vector<16x128xf32>
    %c157 = arith.constant 157 : index
    %1086 = memref.load %arg2[%c157] : memref<432xf32, #tpu.memory_space<smem>>
    %1087 = vector.broadcast %1086 : f32 to vector<16x128xf32>
    %1088 = arith.mulf %1087, %759 : vector<16x128xf32>
    %1089 = arith.addf %1073, %1088 : vector<16x128xf32>
    %c193 = arith.constant 193 : index
    %1090 = memref.load %arg2[%c193] : memref<432xf32, #tpu.memory_space<smem>>
    %1091 = vector.broadcast %1090 : f32 to vector<16x128xf32>
    %1092 = arith.mulf %1091, %759 : vector<16x128xf32>
    %1093 = arith.addf %1077, %1092 : vector<16x128xf32>
    %c229 = arith.constant 229 : index
    %1094 = memref.load %arg2[%c229] : memref<432xf32, #tpu.memory_space<smem>>
    %1095 = vector.broadcast %1094 : f32 to vector<16x128xf32>
    %1096 = arith.mulf %1095, %759 : vector<16x128xf32>
    %1097 = arith.addf %1081, %1096 : vector<16x128xf32>
    %c265 = arith.constant 265 : index
    %1098 = memref.load %arg2[%c265] : memref<432xf32, #tpu.memory_space<smem>>
    %1099 = vector.broadcast %1098 : f32 to vector<16x128xf32>
    %1100 = arith.mulf %1099, %759 : vector<16x128xf32>
    %1101 = arith.addf %1085, %1100 : vector<16x128xf32>
    %c166 = arith.constant 166 : index
    %1102 = memref.load %arg2[%c166] : memref<432xf32, #tpu.memory_space<smem>>
    %1103 = vector.broadcast %1102 : f32 to vector<16x128xf32>
    %1104 = arith.mulf %1103, %760 : vector<16x128xf32>
    %1105 = arith.addf %1089, %1104 : vector<16x128xf32>
    %c202 = arith.constant 202 : index
    %1106 = memref.load %arg2[%c202] : memref<432xf32, #tpu.memory_space<smem>>
    %1107 = vector.broadcast %1106 : f32 to vector<16x128xf32>
    %1108 = arith.mulf %1107, %760 : vector<16x128xf32>
    %1109 = arith.addf %1093, %1108 : vector<16x128xf32>
    %c238 = arith.constant 238 : index
    %1110 = memref.load %arg2[%c238] : memref<432xf32, #tpu.memory_space<smem>>
    %1111 = vector.broadcast %1110 : f32 to vector<16x128xf32>
    %1112 = arith.mulf %1111, %760 : vector<16x128xf32>
    %1113 = arith.addf %1097, %1112 : vector<16x128xf32>
    %c274 = arith.constant 274 : index
    %1114 = memref.load %arg2[%c274] : memref<432xf32, #tpu.memory_space<smem>>
    %1115 = vector.broadcast %1114 : f32 to vector<16x128xf32>
    %1116 = arith.mulf %1115, %760 : vector<16x128xf32>
    %1117 = arith.addf %1101, %1116 : vector<16x128xf32>
    %c175 = arith.constant 175 : index
    %1118 = memref.load %arg2[%c175] : memref<432xf32, #tpu.memory_space<smem>>
    %1119 = vector.broadcast %1118 : f32 to vector<16x128xf32>
    %1120 = arith.mulf %1119, %761 : vector<16x128xf32>
    %1121 = arith.addf %1105, %1120 : vector<16x128xf32>
    %c211 = arith.constant 211 : index
    %1122 = memref.load %arg2[%c211] : memref<432xf32, #tpu.memory_space<smem>>
    %1123 = vector.broadcast %1122 : f32 to vector<16x128xf32>
    %1124 = arith.mulf %1123, %761 : vector<16x128xf32>
    %1125 = arith.addf %1109, %1124 : vector<16x128xf32>
    %c247 = arith.constant 247 : index
    %1126 = memref.load %arg2[%c247] : memref<432xf32, #tpu.memory_space<smem>>
    %1127 = vector.broadcast %1126 : f32 to vector<16x128xf32>
    %1128 = arith.mulf %1127, %761 : vector<16x128xf32>
    %1129 = arith.addf %1113, %1128 : vector<16x128xf32>
    %c283 = arith.constant 283 : index
    %1130 = memref.load %arg2[%c283] : memref<432xf32, #tpu.memory_space<smem>>
    %1131 = vector.broadcast %1130 : f32 to vector<16x128xf32>
    %1132 = arith.mulf %1131, %761 : vector<16x128xf32>
    %1133 = arith.addf %1117, %1132 : vector<16x128xf32>
    %c127_i32_73 = arith.constant 127 : i32
    %1134 = tpu.dynamic_rotate %758 by %c127_i32_73 dim 1 : vector<16x128xf32>, i32 -> vector<16x128xf32>
    %1135 = vector.broadcast %17 : vector<1x128xf32> to vector<16x128xf32>
    %1136 = arith.mulf %1134, %1135 : vector<16x128xf32>
    %c149 = arith.constant 149 : index
    %1137 = memref.load %arg2[%c149] : memref<432xf32, #tpu.memory_space<smem>>
    %1138 = vector.broadcast %1137 : f32 to vector<16x128xf32>
    %1139 = arith.mulf %1138, %1136 : vector<16x128xf32>
    %1140 = arith.addf %1121, %1139 : vector<16x128xf32>
    %c185 = arith.constant 185 : index
    %1141 = memref.load %arg2[%c185] : memref<432xf32, #tpu.memory_space<smem>>
    %1142 = vector.broadcast %1141 : f32 to vector<16x128xf32>
    %1143 = arith.mulf %1142, %1136 : vector<16x128xf32>
    %1144 = arith.addf %1125, %1143 : vector<16x128xf32>
    %c221 = arith.constant 221 : index
    %1145 = memref.load %arg2[%c221] : memref<432xf32, #tpu.memory_space<smem>>
    %1146 = vector.broadcast %1145 : f32 to vector<16x128xf32>
    %1147 = arith.mulf %1146, %1136 : vector<16x128xf32>
    %1148 = arith.addf %1129, %1147 : vector<16x128xf32>
    %c257 = arith.constant 257 : index
    %1149 = memref.load %arg2[%c257] : memref<432xf32, #tpu.memory_space<smem>>
    %1150 = vector.broadcast %1149 : f32 to vector<16x128xf32>
    %1151 = arith.mulf %1150, %1136 : vector<16x128xf32>
    %1152 = arith.addf %1133, %1151 : vector<16x128xf32>
    %c127_i32_74 = arith.constant 127 : i32
    %1153 = tpu.dynamic_rotate %759 by %c127_i32_74 dim 1 : vector<16x128xf32>, i32 -> vector<16x128xf32>
    %1154 = vector.broadcast %17 : vector<1x128xf32> to vector<16x128xf32>
    %1155 = arith.mulf %1153, %1154 : vector<16x128xf32>
    %c158 = arith.constant 158 : index
    %1156 = memref.load %arg2[%c158] : memref<432xf32, #tpu.memory_space<smem>>
    %1157 = vector.broadcast %1156 : f32 to vector<16x128xf32>
    %1158 = arith.mulf %1157, %1155 : vector<16x128xf32>
    %1159 = arith.addf %1140, %1158 : vector<16x128xf32>
    %c194 = arith.constant 194 : index
    %1160 = memref.load %arg2[%c194] : memref<432xf32, #tpu.memory_space<smem>>
    %1161 = vector.broadcast %1160 : f32 to vector<16x128xf32>
    %1162 = arith.mulf %1161, %1155 : vector<16x128xf32>
    %1163 = arith.addf %1144, %1162 : vector<16x128xf32>
    %c230 = arith.constant 230 : index
    %1164 = memref.load %arg2[%c230] : memref<432xf32, #tpu.memory_space<smem>>
    %1165 = vector.broadcast %1164 : f32 to vector<16x128xf32>
    %1166 = arith.mulf %1165, %1155 : vector<16x128xf32>
    %1167 = arith.addf %1148, %1166 : vector<16x128xf32>
    %c266 = arith.constant 266 : index
    %1168 = memref.load %arg2[%c266] : memref<432xf32, #tpu.memory_space<smem>>
    %1169 = vector.broadcast %1168 : f32 to vector<16x128xf32>
    %1170 = arith.mulf %1169, %1155 : vector<16x128xf32>
    %1171 = arith.addf %1152, %1170 : vector<16x128xf32>
    %c127_i32_75 = arith.constant 127 : i32
    %1172 = tpu.dynamic_rotate %760 by %c127_i32_75 dim 1 : vector<16x128xf32>, i32 -> vector<16x128xf32>
    %1173 = vector.broadcast %17 : vector<1x128xf32> to vector<16x128xf32>
    %1174 = arith.mulf %1172, %1173 : vector<16x128xf32>
    %c167 = arith.constant 167 : index
    %1175 = memref.load %arg2[%c167] : memref<432xf32, #tpu.memory_space<smem>>
    %1176 = vector.broadcast %1175 : f32 to vector<16x128xf32>
    %1177 = arith.mulf %1176, %1174 : vector<16x128xf32>
    %1178 = arith.addf %1159, %1177 : vector<16x128xf32>
    %c203 = arith.constant 203 : index
    %1179 = memref.load %arg2[%c203] : memref<432xf32, #tpu.memory_space<smem>>
    %1180 = vector.broadcast %1179 : f32 to vector<16x128xf32>
    %1181 = arith.mulf %1180, %1174 : vector<16x128xf32>
    %1182 = arith.addf %1163, %1181 : vector<16x128xf32>
    %c239 = arith.constant 239 : index
    %1183 = memref.load %arg2[%c239] : memref<432xf32, #tpu.memory_space<smem>>
    %1184 = vector.broadcast %1183 : f32 to vector<16x128xf32>
    %1185 = arith.mulf %1184, %1174 : vector<16x128xf32>
    %1186 = arith.addf %1167, %1185 : vector<16x128xf32>
    %c275 = arith.constant 275 : index
    %1187 = memref.load %arg2[%c275] : memref<432xf32, #tpu.memory_space<smem>>
    %1188 = vector.broadcast %1187 : f32 to vector<16x128xf32>
    %1189 = arith.mulf %1188, %1174 : vector<16x128xf32>
    %1190 = arith.addf %1171, %1189 : vector<16x128xf32>
    %c127_i32_76 = arith.constant 127 : i32
    %1191 = tpu.dynamic_rotate %761 by %c127_i32_76 dim 1 : vector<16x128xf32>, i32 -> vector<16x128xf32>
    %1192 = vector.broadcast %17 : vector<1x128xf32> to vector<16x128xf32>
    %1193 = arith.mulf %1191, %1192 : vector<16x128xf32>
    %c176 = arith.constant 176 : index
    %1194 = memref.load %arg2[%c176] : memref<432xf32, #tpu.memory_space<smem>>
    %1195 = vector.broadcast %1194 : f32 to vector<16x128xf32>
    %1196 = arith.mulf %1195, %1193 : vector<16x128xf32>
    %1197 = arith.addf %1178, %1196 : vector<16x128xf32>
    %c212 = arith.constant 212 : index
    %1198 = memref.load %arg2[%c212] : memref<432xf32, #tpu.memory_space<smem>>
    %1199 = vector.broadcast %1198 : f32 to vector<16x128xf32>
    %1200 = arith.mulf %1199, %1193 : vector<16x128xf32>
    %1201 = arith.addf %1182, %1200 : vector<16x128xf32>
    %c248 = arith.constant 248 : index
    %1202 = memref.load %arg2[%c248] : memref<432xf32, #tpu.memory_space<smem>>
    %1203 = vector.broadcast %1202 : f32 to vector<16x128xf32>
    %1204 = arith.mulf %1203, %1193 : vector<16x128xf32>
    %1205 = arith.addf %1186, %1204 : vector<16x128xf32>
    %c284 = arith.constant 284 : index
    %1206 = memref.load %arg2[%c284] : memref<432xf32, #tpu.memory_space<smem>>
    %1207 = vector.broadcast %1206 : f32 to vector<16x128xf32>
    %1208 = arith.mulf %1207, %1193 : vector<16x128xf32>
    %1209 = arith.addf %1190, %1208 : vector<16x128xf32>
    %c15_i32_77 = arith.constant 15 : i32
    %1210 = tpu.dynamic_rotate %758 by %c15_i32_77 dim 0 : vector<16x128xf32>, i32 -> vector<16x128xf32>
    %1211 = vector.broadcast %9 : vector<16x1xf32> to vector<16x128xf32>
    %1212 = arith.mulf %1210, %1211 : vector<16x128xf32>
    %c15_i32_78 = arith.constant 15 : i32
    %1213 = tpu.dynamic_rotate %759 by %c15_i32_78 dim 0 : vector<16x128xf32>, i32 -> vector<16x128xf32>
    %1214 = vector.broadcast %9 : vector<16x1xf32> to vector<16x128xf32>
    %1215 = arith.mulf %1213, %1214 : vector<16x128xf32>
    %c15_i32_79 = arith.constant 15 : i32
    %1216 = tpu.dynamic_rotate %760 by %c15_i32_79 dim 0 : vector<16x128xf32>, i32 -> vector<16x128xf32>
    %1217 = vector.broadcast %9 : vector<16x1xf32> to vector<16x128xf32>
    %1218 = arith.mulf %1216, %1217 : vector<16x128xf32>
    %c15_i32_80 = arith.constant 15 : i32
    %1219 = tpu.dynamic_rotate %761 by %c15_i32_80 dim 0 : vector<16x128xf32>, i32 -> vector<16x128xf32>
    %1220 = vector.broadcast %9 : vector<16x1xf32> to vector<16x128xf32>
    %1221 = arith.mulf %1219, %1220 : vector<16x128xf32>
    %c1_i32_81 = arith.constant 1 : i32
    %1222 = tpu.dynamic_rotate %1212 by %c1_i32_81 dim 1 : vector<16x128xf32>, i32 -> vector<16x128xf32>
    %1223 = vector.broadcast %13 : vector<1x128xf32> to vector<16x128xf32>
    %1224 = arith.mulf %1222, %1223 : vector<16x128xf32>
    %c150 = arith.constant 150 : index
    %1225 = memref.load %arg2[%c150] : memref<432xf32, #tpu.memory_space<smem>>
    %1226 = vector.broadcast %1225 : f32 to vector<16x128xf32>
    %1227 = arith.mulf %1226, %1224 : vector<16x128xf32>
    %1228 = arith.addf %1197, %1227 : vector<16x128xf32>
    %c186 = arith.constant 186 : index
    %1229 = memref.load %arg2[%c186] : memref<432xf32, #tpu.memory_space<smem>>
    %1230 = vector.broadcast %1229 : f32 to vector<16x128xf32>
    %1231 = arith.mulf %1230, %1224 : vector<16x128xf32>
    %1232 = arith.addf %1201, %1231 : vector<16x128xf32>
    %c222 = arith.constant 222 : index
    %1233 = memref.load %arg2[%c222] : memref<432xf32, #tpu.memory_space<smem>>
    %1234 = vector.broadcast %1233 : f32 to vector<16x128xf32>
    %1235 = arith.mulf %1234, %1224 : vector<16x128xf32>
    %1236 = arith.addf %1205, %1235 : vector<16x128xf32>
    %c258 = arith.constant 258 : index
    %1237 = memref.load %arg2[%c258] : memref<432xf32, #tpu.memory_space<smem>>
    %1238 = vector.broadcast %1237 : f32 to vector<16x128xf32>
    %1239 = arith.mulf %1238, %1224 : vector<16x128xf32>
    %1240 = arith.addf %1209, %1239 : vector<16x128xf32>
    %c1_i32_82 = arith.constant 1 : i32
    %1241 = tpu.dynamic_rotate %1215 by %c1_i32_82 dim 1 : vector<16x128xf32>, i32 -> vector<16x128xf32>
    %1242 = vector.broadcast %13 : vector<1x128xf32> to vector<16x128xf32>
    %1243 = arith.mulf %1241, %1242 : vector<16x128xf32>
    %c159 = arith.constant 159 : index
    %1244 = memref.load %arg2[%c159] : memref<432xf32, #tpu.memory_space<smem>>
    %1245 = vector.broadcast %1244 : f32 to vector<16x128xf32>
    %1246 = arith.mulf %1245, %1243 : vector<16x128xf32>
    %1247 = arith.addf %1228, %1246 : vector<16x128xf32>
    %c195 = arith.constant 195 : index
    %1248 = memref.load %arg2[%c195] : memref<432xf32, #tpu.memory_space<smem>>
    %1249 = vector.broadcast %1248 : f32 to vector<16x128xf32>
    %1250 = arith.mulf %1249, %1243 : vector<16x128xf32>
    %1251 = arith.addf %1232, %1250 : vector<16x128xf32>
    %c231 = arith.constant 231 : index
    %1252 = memref.load %arg2[%c231] : memref<432xf32, #tpu.memory_space<smem>>
    %1253 = vector.broadcast %1252 : f32 to vector<16x128xf32>
    %1254 = arith.mulf %1253, %1243 : vector<16x128xf32>
    %1255 = arith.addf %1236, %1254 : vector<16x128xf32>
    %c267 = arith.constant 267 : index
    %1256 = memref.load %arg2[%c267] : memref<432xf32, #tpu.memory_space<smem>>
    %1257 = vector.broadcast %1256 : f32 to vector<16x128xf32>
    %1258 = arith.mulf %1257, %1243 : vector<16x128xf32>
    %1259 = arith.addf %1240, %1258 : vector<16x128xf32>
    %c1_i32_83 = arith.constant 1 : i32
    %1260 = tpu.dynamic_rotate %1218 by %c1_i32_83 dim 1 : vector<16x128xf32>, i32 -> vector<16x128xf32>
    %1261 = vector.broadcast %13 : vector<1x128xf32> to vector<16x128xf32>
    %1262 = arith.mulf %1260, %1261 : vector<16x128xf32>
    %c168 = arith.constant 168 : index
    %1263 = memref.load %arg2[%c168] : memref<432xf32, #tpu.memory_space<smem>>
    %1264 = vector.broadcast %1263 : f32 to vector<16x128xf32>
    %1265 = arith.mulf %1264, %1262 : vector<16x128xf32>
    %1266 = arith.addf %1247, %1265 : vector<16x128xf32>
    %c204 = arith.constant 204 : index
    %1267 = memref.load %arg2[%c204] : memref<432xf32, #tpu.memory_space<smem>>
    %1268 = vector.broadcast %1267 : f32 to vector<16x128xf32>
    %1269 = arith.mulf %1268, %1262 : vector<16x128xf32>
    %1270 = arith.addf %1251, %1269 : vector<16x128xf32>
    %c240 = arith.constant 240 : index
    %1271 = memref.load %arg2[%c240] : memref<432xf32, #tpu.memory_space<smem>>
    %1272 = vector.broadcast %1271 : f32 to vector<16x128xf32>
    %1273 = arith.mulf %1272, %1262 : vector<16x128xf32>
    %1274 = arith.addf %1255, %1273 : vector<16x128xf32>
    %c276 = arith.constant 276 : index
    %1275 = memref.load %arg2[%c276] : memref<432xf32, #tpu.memory_space<smem>>
    %1276 = vector.broadcast %1275 : f32 to vector<16x128xf32>
    %1277 = arith.mulf %1276, %1262 : vector<16x128xf32>
    %1278 = arith.addf %1259, %1277 : vector<16x128xf32>
    %c1_i32_84 = arith.constant 1 : i32
    %1279 = tpu.dynamic_rotate %1221 by %c1_i32_84 dim 1 : vector<16x128xf32>, i32 -> vector<16x128xf32>
    %1280 = vector.broadcast %13 : vector<1x128xf32> to vector<16x128xf32>
    %1281 = arith.mulf %1279, %1280 : vector<16x128xf32>
    %c177 = arith.constant 177 : index
    %1282 = memref.load %arg2[%c177] : memref<432xf32, #tpu.memory_space<smem>>
    %1283 = vector.broadcast %1282 : f32 to vector<16x128xf32>
    %1284 = arith.mulf %1283, %1281 : vector<16x128xf32>
    %1285 = arith.addf %1266, %1284 : vector<16x128xf32>
    %c213 = arith.constant 213 : index
    %1286 = memref.load %arg2[%c213] : memref<432xf32, #tpu.memory_space<smem>>
    %1287 = vector.broadcast %1286 : f32 to vector<16x128xf32>
    %1288 = arith.mulf %1287, %1281 : vector<16x128xf32>
    %1289 = arith.addf %1270, %1288 : vector<16x128xf32>
    %c249 = arith.constant 249 : index
    %1290 = memref.load %arg2[%c249] : memref<432xf32, #tpu.memory_space<smem>>
    %1291 = vector.broadcast %1290 : f32 to vector<16x128xf32>
    %1292 = arith.mulf %1291, %1281 : vector<16x128xf32>
    %1293 = arith.addf %1274, %1292 : vector<16x128xf32>
    %c285 = arith.constant 285 : index
    %1294 = memref.load %arg2[%c285] : memref<432xf32, #tpu.memory_space<smem>>
    %1295 = vector.broadcast %1294 : f32 to vector<16x128xf32>
    %1296 = arith.mulf %1295, %1281 : vector<16x128xf32>
    %1297 = arith.addf %1278, %1296 : vector<16x128xf32>
    %c151 = arith.constant 151 : index
    %1298 = memref.load %arg2[%c151] : memref<432xf32, #tpu.memory_space<smem>>
    %1299 = vector.broadcast %1298 : f32 to vector<16x128xf32>
    %1300 = arith.mulf %1299, %1212 : vector<16x128xf32>
    %1301 = arith.addf %1285, %1300 : vector<16x128xf32>
    %c187 = arith.constant 187 : index
    %1302 = memref.load %arg2[%c187] : memref<432xf32, #tpu.memory_space<smem>>
    %1303 = vector.broadcast %1302 : f32 to vector<16x128xf32>
    %1304 = arith.mulf %1303, %1212 : vector<16x128xf32>
    %1305 = arith.addf %1289, %1304 : vector<16x128xf32>
    %c223 = arith.constant 223 : index
    %1306 = memref.load %arg2[%c223] : memref<432xf32, #tpu.memory_space<smem>>
    %1307 = vector.broadcast %1306 : f32 to vector<16x128xf32>
    %1308 = arith.mulf %1307, %1212 : vector<16x128xf32>
    %1309 = arith.addf %1293, %1308 : vector<16x128xf32>
    %c259 = arith.constant 259 : index
    %1310 = memref.load %arg2[%c259] : memref<432xf32, #tpu.memory_space<smem>>
    %1311 = vector.broadcast %1310 : f32 to vector<16x128xf32>
    %1312 = arith.mulf %1311, %1212 : vector<16x128xf32>
    %1313 = arith.addf %1297, %1312 : vector<16x128xf32>
    %c160 = arith.constant 160 : index
    %1314 = memref.load %arg2[%c160] : memref<432xf32, #tpu.memory_space<smem>>
    %1315 = vector.broadcast %1314 : f32 to vector<16x128xf32>
    %1316 = arith.mulf %1315, %1215 : vector<16x128xf32>
    %1317 = arith.addf %1301, %1316 : vector<16x128xf32>
    %c196 = arith.constant 196 : index
    %1318 = memref.load %arg2[%c196] : memref<432xf32, #tpu.memory_space<smem>>
    %1319 = vector.broadcast %1318 : f32 to vector<16x128xf32>
    %1320 = arith.mulf %1319, %1215 : vector<16x128xf32>
    %1321 = arith.addf %1305, %1320 : vector<16x128xf32>
    %c232 = arith.constant 232 : index
    %1322 = memref.load %arg2[%c232] : memref<432xf32, #tpu.memory_space<smem>>
    %1323 = vector.broadcast %1322 : f32 to vector<16x128xf32>
    %1324 = arith.mulf %1323, %1215 : vector<16x128xf32>
    %1325 = arith.addf %1309, %1324 : vector<16x128xf32>
    %c268 = arith.constant 268 : index
    %1326 = memref.load %arg2[%c268] : memref<432xf32, #tpu.memory_space<smem>>
    %1327 = vector.broadcast %1326 : f32 to vector<16x128xf32>
    %1328 = arith.mulf %1327, %1215 : vector<16x128xf32>
    %1329 = arith.addf %1313, %1328 : vector<16x128xf32>
    %c169 = arith.constant 169 : index
    %1330 = memref.load %arg2[%c169] : memref<432xf32, #tpu.memory_space<smem>>
    %1331 = vector.broadcast %1330 : f32 to vector<16x128xf32>
    %1332 = arith.mulf %1331, %1218 : vector<16x128xf32>
    %1333 = arith.addf %1317, %1332 : vector<16x128xf32>
    %c205 = arith.constant 205 : index
    %1334 = memref.load %arg2[%c205] : memref<432xf32, #tpu.memory_space<smem>>
    %1335 = vector.broadcast %1334 : f32 to vector<16x128xf32>
    %1336 = arith.mulf %1335, %1218 : vector<16x128xf32>
    %1337 = arith.addf %1321, %1336 : vector<16x128xf32>
    %c241 = arith.constant 241 : index
    %1338 = memref.load %arg2[%c241] : memref<432xf32, #tpu.memory_space<smem>>
    %1339 = vector.broadcast %1338 : f32 to vector<16x128xf32>
    %1340 = arith.mulf %1339, %1218 : vector<16x128xf32>
    %1341 = arith.addf %1325, %1340 : vector<16x128xf32>
    %c277 = arith.constant 277 : index
    %1342 = memref.load %arg2[%c277] : memref<432xf32, #tpu.memory_space<smem>>
    %1343 = vector.broadcast %1342 : f32 to vector<16x128xf32>
    %1344 = arith.mulf %1343, %1218 : vector<16x128xf32>
    %1345 = arith.addf %1329, %1344 : vector<16x128xf32>
    %c178 = arith.constant 178 : index
    %1346 = memref.load %arg2[%c178] : memref<432xf32, #tpu.memory_space<smem>>
    %1347 = vector.broadcast %1346 : f32 to vector<16x128xf32>
    %1348 = arith.mulf %1347, %1221 : vector<16x128xf32>
    %1349 = arith.addf %1333, %1348 : vector<16x128xf32>
    %c214 = arith.constant 214 : index
    %1350 = memref.load %arg2[%c214] : memref<432xf32, #tpu.memory_space<smem>>
    %1351 = vector.broadcast %1350 : f32 to vector<16x128xf32>
    %1352 = arith.mulf %1351, %1221 : vector<16x128xf32>
    %1353 = arith.addf %1337, %1352 : vector<16x128xf32>
    %c250 = arith.constant 250 : index
    %1354 = memref.load %arg2[%c250] : memref<432xf32, #tpu.memory_space<smem>>
    %1355 = vector.broadcast %1354 : f32 to vector<16x128xf32>
    %1356 = arith.mulf %1355, %1221 : vector<16x128xf32>
    %1357 = arith.addf %1341, %1356 : vector<16x128xf32>
    %c286 = arith.constant 286 : index
    %1358 = memref.load %arg2[%c286] : memref<432xf32, #tpu.memory_space<smem>>
    %1359 = vector.broadcast %1358 : f32 to vector<16x128xf32>
    %1360 = arith.mulf %1359, %1221 : vector<16x128xf32>
    %1361 = arith.addf %1345, %1360 : vector<16x128xf32>
    %c127_i32_85 = arith.constant 127 : i32
    %1362 = tpu.dynamic_rotate %1212 by %c127_i32_85 dim 1 : vector<16x128xf32>, i32 -> vector<16x128xf32>
    %1363 = vector.broadcast %17 : vector<1x128xf32> to vector<16x128xf32>
    %1364 = arith.mulf %1362, %1363 : vector<16x128xf32>
    %c152 = arith.constant 152 : index
    %1365 = memref.load %arg2[%c152] : memref<432xf32, #tpu.memory_space<smem>>
    %1366 = vector.broadcast %1365 : f32 to vector<16x128xf32>
    %1367 = arith.mulf %1366, %1364 : vector<16x128xf32>
    %1368 = arith.addf %1349, %1367 : vector<16x128xf32>
    %c188 = arith.constant 188 : index
    %1369 = memref.load %arg2[%c188] : memref<432xf32, #tpu.memory_space<smem>>
    %1370 = vector.broadcast %1369 : f32 to vector<16x128xf32>
    %1371 = arith.mulf %1370, %1364 : vector<16x128xf32>
    %1372 = arith.addf %1353, %1371 : vector<16x128xf32>
    %c224 = arith.constant 224 : index
    %1373 = memref.load %arg2[%c224] : memref<432xf32, #tpu.memory_space<smem>>
    %1374 = vector.broadcast %1373 : f32 to vector<16x128xf32>
    %1375 = arith.mulf %1374, %1364 : vector<16x128xf32>
    %1376 = arith.addf %1357, %1375 : vector<16x128xf32>
    %c260 = arith.constant 260 : index
    %1377 = memref.load %arg2[%c260] : memref<432xf32, #tpu.memory_space<smem>>
    %1378 = vector.broadcast %1377 : f32 to vector<16x128xf32>
    %1379 = arith.mulf %1378, %1364 : vector<16x128xf32>
    %1380 = arith.addf %1361, %1379 : vector<16x128xf32>
    %c127_i32_86 = arith.constant 127 : i32
    %1381 = tpu.dynamic_rotate %1215 by %c127_i32_86 dim 1 : vector<16x128xf32>, i32 -> vector<16x128xf32>
    %1382 = vector.broadcast %17 : vector<1x128xf32> to vector<16x128xf32>
    %1383 = arith.mulf %1381, %1382 : vector<16x128xf32>
    %c161 = arith.constant 161 : index
    %1384 = memref.load %arg2[%c161] : memref<432xf32, #tpu.memory_space<smem>>
    %1385 = vector.broadcast %1384 : f32 to vector<16x128xf32>
    %1386 = arith.mulf %1385, %1383 : vector<16x128xf32>
    %1387 = arith.addf %1368, %1386 : vector<16x128xf32>
    %c197 = arith.constant 197 : index
    %1388 = memref.load %arg2[%c197] : memref<432xf32, #tpu.memory_space<smem>>
    %1389 = vector.broadcast %1388 : f32 to vector<16x128xf32>
    %1390 = arith.mulf %1389, %1383 : vector<16x128xf32>
    %1391 = arith.addf %1372, %1390 : vector<16x128xf32>
    %c233 = arith.constant 233 : index
    %1392 = memref.load %arg2[%c233] : memref<432xf32, #tpu.memory_space<smem>>
    %1393 = vector.broadcast %1392 : f32 to vector<16x128xf32>
    %1394 = arith.mulf %1393, %1383 : vector<16x128xf32>
    %1395 = arith.addf %1376, %1394 : vector<16x128xf32>
    %c269 = arith.constant 269 : index
    %1396 = memref.load %arg2[%c269] : memref<432xf32, #tpu.memory_space<smem>>
    %1397 = vector.broadcast %1396 : f32 to vector<16x128xf32>
    %1398 = arith.mulf %1397, %1383 : vector<16x128xf32>
    %1399 = arith.addf %1380, %1398 : vector<16x128xf32>
    %c127_i32_87 = arith.constant 127 : i32
    %1400 = tpu.dynamic_rotate %1218 by %c127_i32_87 dim 1 : vector<16x128xf32>, i32 -> vector<16x128xf32>
    %1401 = vector.broadcast %17 : vector<1x128xf32> to vector<16x128xf32>
    %1402 = arith.mulf %1400, %1401 : vector<16x128xf32>
    %c170 = arith.constant 170 : index
    %1403 = memref.load %arg2[%c170] : memref<432xf32, #tpu.memory_space<smem>>
    %1404 = vector.broadcast %1403 : f32 to vector<16x128xf32>
    %1405 = arith.mulf %1404, %1402 : vector<16x128xf32>
    %1406 = arith.addf %1387, %1405 : vector<16x128xf32>
    %c206 = arith.constant 206 : index
    %1407 = memref.load %arg2[%c206] : memref<432xf32, #tpu.memory_space<smem>>
    %1408 = vector.broadcast %1407 : f32 to vector<16x128xf32>
    %1409 = arith.mulf %1408, %1402 : vector<16x128xf32>
    %1410 = arith.addf %1391, %1409 : vector<16x128xf32>
    %c242 = arith.constant 242 : index
    %1411 = memref.load %arg2[%c242] : memref<432xf32, #tpu.memory_space<smem>>
    %1412 = vector.broadcast %1411 : f32 to vector<16x128xf32>
    %1413 = arith.mulf %1412, %1402 : vector<16x128xf32>
    %1414 = arith.addf %1395, %1413 : vector<16x128xf32>
    %c278 = arith.constant 278 : index
    %1415 = memref.load %arg2[%c278] : memref<432xf32, #tpu.memory_space<smem>>
    %1416 = vector.broadcast %1415 : f32 to vector<16x128xf32>
    %1417 = arith.mulf %1416, %1402 : vector<16x128xf32>
    %1418 = arith.addf %1399, %1417 : vector<16x128xf32>
    %c127_i32_88 = arith.constant 127 : i32
    %1419 = tpu.dynamic_rotate %1221 by %c127_i32_88 dim 1 : vector<16x128xf32>, i32 -> vector<16x128xf32>
    %1420 = vector.broadcast %17 : vector<1x128xf32> to vector<16x128xf32>
    %1421 = arith.mulf %1419, %1420 : vector<16x128xf32>
    %c179 = arith.constant 179 : index
    %1422 = memref.load %arg2[%c179] : memref<432xf32, #tpu.memory_space<smem>>
    %1423 = vector.broadcast %1422 : f32 to vector<16x128xf32>
    %1424 = arith.mulf %1423, %1421 : vector<16x128xf32>
    %1425 = arith.addf %1406, %1424 : vector<16x128xf32>
    %c215 = arith.constant 215 : index
    %1426 = memref.load %arg2[%c215] : memref<432xf32, #tpu.memory_space<smem>>
    %1427 = vector.broadcast %1426 : f32 to vector<16x128xf32>
    %1428 = arith.mulf %1427, %1421 : vector<16x128xf32>
    %1429 = arith.addf %1410, %1428 : vector<16x128xf32>
    %c251 = arith.constant 251 : index
    %1430 = memref.load %arg2[%c251] : memref<432xf32, #tpu.memory_space<smem>>
    %1431 = vector.broadcast %1430 : f32 to vector<16x128xf32>
    %1432 = arith.mulf %1431, %1421 : vector<16x128xf32>
    %1433 = arith.addf %1414, %1432 : vector<16x128xf32>
    %c287 = arith.constant 287 : index
    %1434 = memref.load %arg2[%c287] : memref<432xf32, #tpu.memory_space<smem>>
    %1435 = vector.broadcast %1434 : f32 to vector<16x128xf32>
    %1436 = arith.mulf %1435, %1421 : vector<16x128xf32>
    %1437 = arith.addf %1418, %1436 : vector<16x128xf32>
    %c1_89 = arith.constant 1 : index
    %1438 = memref.load %arg3[%c1_89] : memref<3xf32, #tpu.memory_space<smem>>
    %c1_90 = arith.constant 1 : index
    %1439 = memref.load %arg4[%c1_90] : memref<3xf32, #tpu.memory_space<smem>>
    %1440 = vector.broadcast %1438 : f32 to vector<16x128xf32>
    %1441 = arith.mulf %19, %1440 : vector<16x128xf32>
    %1442 = vector.broadcast %1439 : f32 to vector<16x128xf32>
    %1443 = arith.mulf %1425, %1442 : vector<16x128xf32>
    %1444 = arith.subf %1441, %1443 : vector<16x128xf32>
    %1445 = vector.broadcast %1438 : f32 to vector<16x128xf32>
    %1446 = arith.mulf %21, %1445 : vector<16x128xf32>
    %1447 = vector.broadcast %1439 : f32 to vector<16x128xf32>
    %1448 = arith.mulf %1429, %1447 : vector<16x128xf32>
    %1449 = arith.subf %1446, %1448 : vector<16x128xf32>
    %1450 = vector.broadcast %1438 : f32 to vector<16x128xf32>
    %1451 = arith.mulf %23, %1450 : vector<16x128xf32>
    %1452 = vector.broadcast %1439 : f32 to vector<16x128xf32>
    %1453 = arith.mulf %1433, %1452 : vector<16x128xf32>
    %1454 = arith.subf %1451, %1453 : vector<16x128xf32>
    %1455 = vector.broadcast %1438 : f32 to vector<16x128xf32>
    %1456 = arith.mulf %25, %1455 : vector<16x128xf32>
    %1457 = vector.broadcast %1439 : f32 to vector<16x128xf32>
    %1458 = arith.mulf %1437, %1457 : vector<16x128xf32>
    %1459 = arith.subf %1456, %1458 : vector<16x128xf32>
    %1460 = arith.maximumf %1444, %1449 : vector<16x128xf32>
    %1461 = arith.maximumf %1460, %1454 : vector<16x128xf32>
    %1462 = arith.maximumf %1461, %1459 : vector<16x128xf32>
    %1463 = arith.subf %1444, %1462 : vector<16x128xf32>
    %1464 = math.exp %1463 : vector<16x128xf32>
    %1465 = arith.subf %1449, %1462 : vector<16x128xf32>
    %1466 = math.exp %1465 : vector<16x128xf32>
    %1467 = arith.subf %1454, %1462 : vector<16x128xf32>
    %1468 = math.exp %1467 : vector<16x128xf32>
    %1469 = arith.subf %1459, %1462 : vector<16x128xf32>
    %1470 = math.exp %1469 : vector<16x128xf32>
    %1471 = arith.addf %1464, %1466 : vector<16x128xf32>
    %1472 = arith.addf %1471, %1468 : vector<16x128xf32>
    %1473 = arith.addf %1472, %1470 : vector<16x128xf32>
    %1474 = tpu.reciprocal %1473 {approx = true} : vector<16x128xf32> -> vector<16x128xf32>
    %1475 = arith.mulf %1464, %1474 : vector<16x128xf32>
    %1476 = arith.mulf %1466, %1474 : vector<16x128xf32>
    %1477 = arith.mulf %1468, %1474 : vector<16x128xf32>
    %1478 = arith.mulf %1470, %1474 : vector<16x128xf32>
    %cst_91 = arith.constant 0.000000e+00 : f32
    %1479 = vector.broadcast %cst_91 : f32 to vector<16x128xf32>
    %cst_92 = arith.constant 0.000000e+00 : f32
    %1480 = vector.broadcast %cst_92 : f32 to vector<16x128xf32>
    %cst_93 = arith.constant 0.000000e+00 : f32
    %1481 = vector.broadcast %cst_93 : f32 to vector<16x128xf32>
    %cst_94 = arith.constant 0.000000e+00 : f32
    %1482 = vector.broadcast %cst_94 : f32 to vector<16x128xf32>
    %c1_i32_95 = arith.constant 1 : i32
    %1483 = tpu.dynamic_rotate %1475 by %c1_i32_95 dim 0 : vector<16x128xf32>, i32 -> vector<16x128xf32>
    %1484 = vector.broadcast %5 : vector<16x1xf32> to vector<16x128xf32>
    %1485 = arith.mulf %1483, %1484 : vector<16x128xf32>
    %c1_i32_96 = arith.constant 1 : i32
    %1486 = tpu.dynamic_rotate %1476 by %c1_i32_96 dim 0 : vector<16x128xf32>, i32 -> vector<16x128xf32>
    %1487 = vector.broadcast %5 : vector<16x1xf32> to vector<16x128xf32>
    %1488 = arith.mulf %1486, %1487 : vector<16x128xf32>
    %c1_i32_97 = arith.constant 1 : i32
    %1489 = tpu.dynamic_rotate %1477 by %c1_i32_97 dim 0 : vector<16x128xf32>, i32 -> vector<16x128xf32>
    %1490 = vector.broadcast %5 : vector<16x1xf32> to vector<16x128xf32>
    %1491 = arith.mulf %1489, %1490 : vector<16x128xf32>
    %c1_i32_98 = arith.constant 1 : i32
    %1492 = tpu.dynamic_rotate %1478 by %c1_i32_98 dim 0 : vector<16x128xf32>, i32 -> vector<16x128xf32>
    %1493 = vector.broadcast %5 : vector<16x1xf32> to vector<16x128xf32>
    %1494 = arith.mulf %1492, %1493 : vector<16x128xf32>
    %c1_i32_99 = arith.constant 1 : i32
    %1495 = tpu.dynamic_rotate %1485 by %c1_i32_99 dim 1 : vector<16x128xf32>, i32 -> vector<16x128xf32>
    %1496 = vector.broadcast %13 : vector<1x128xf32> to vector<16x128xf32>
    %1497 = arith.mulf %1495, %1496 : vector<16x128xf32>
    %c288 = arith.constant 288 : index
    %1498 = memref.load %arg2[%c288] : memref<432xf32, #tpu.memory_space<smem>>
    %1499 = vector.broadcast %1498 : f32 to vector<16x128xf32>
    %1500 = arith.mulf %1499, %1497 : vector<16x128xf32>
    %1501 = arith.addf %1479, %1500 : vector<16x128xf32>
    %c324 = arith.constant 324 : index
    %1502 = memref.load %arg2[%c324] : memref<432xf32, #tpu.memory_space<smem>>
    %1503 = vector.broadcast %1502 : f32 to vector<16x128xf32>
    %1504 = arith.mulf %1503, %1497 : vector<16x128xf32>
    %1505 = arith.addf %1480, %1504 : vector<16x128xf32>
    %c360 = arith.constant 360 : index
    %1506 = memref.load %arg2[%c360] : memref<432xf32, #tpu.memory_space<smem>>
    %1507 = vector.broadcast %1506 : f32 to vector<16x128xf32>
    %1508 = arith.mulf %1507, %1497 : vector<16x128xf32>
    %1509 = arith.addf %1481, %1508 : vector<16x128xf32>
    %c396 = arith.constant 396 : index
    %1510 = memref.load %arg2[%c396] : memref<432xf32, #tpu.memory_space<smem>>
    %1511 = vector.broadcast %1510 : f32 to vector<16x128xf32>
    %1512 = arith.mulf %1511, %1497 : vector<16x128xf32>
    %1513 = arith.addf %1482, %1512 : vector<16x128xf32>
    %c1_i32_100 = arith.constant 1 : i32
    %1514 = tpu.dynamic_rotate %1488 by %c1_i32_100 dim 1 : vector<16x128xf32>, i32 -> vector<16x128xf32>
    %1515 = vector.broadcast %13 : vector<1x128xf32> to vector<16x128xf32>
    %1516 = arith.mulf %1514, %1515 : vector<16x128xf32>
    %c297 = arith.constant 297 : index
    %1517 = memref.load %arg2[%c297] : memref<432xf32, #tpu.memory_space<smem>>
    %1518 = vector.broadcast %1517 : f32 to vector<16x128xf32>
    %1519 = arith.mulf %1518, %1516 : vector<16x128xf32>
    %1520 = arith.addf %1501, %1519 : vector<16x128xf32>
    %c333 = arith.constant 333 : index
    %1521 = memref.load %arg2[%c333] : memref<432xf32, #tpu.memory_space<smem>>
    %1522 = vector.broadcast %1521 : f32 to vector<16x128xf32>
    %1523 = arith.mulf %1522, %1516 : vector<16x128xf32>
    %1524 = arith.addf %1505, %1523 : vector<16x128xf32>
    %c369 = arith.constant 369 : index
    %1525 = memref.load %arg2[%c369] : memref<432xf32, #tpu.memory_space<smem>>
    %1526 = vector.broadcast %1525 : f32 to vector<16x128xf32>
    %1527 = arith.mulf %1526, %1516 : vector<16x128xf32>
    %1528 = arith.addf %1509, %1527 : vector<16x128xf32>
    %c405 = arith.constant 405 : index
    %1529 = memref.load %arg2[%c405] : memref<432xf32, #tpu.memory_space<smem>>
    %1530 = vector.broadcast %1529 : f32 to vector<16x128xf32>
    %1531 = arith.mulf %1530, %1516 : vector<16x128xf32>
    %1532 = arith.addf %1513, %1531 : vector<16x128xf32>
    %c1_i32_101 = arith.constant 1 : i32
    %1533 = tpu.dynamic_rotate %1491 by %c1_i32_101 dim 1 : vector<16x128xf32>, i32 -> vector<16x128xf32>
    %1534 = vector.broadcast %13 : vector<1x128xf32> to vector<16x128xf32>
    %1535 = arith.mulf %1533, %1534 : vector<16x128xf32>
    %c306 = arith.constant 306 : index
    %1536 = memref.load %arg2[%c306] : memref<432xf32, #tpu.memory_space<smem>>
    %1537 = vector.broadcast %1536 : f32 to vector<16x128xf32>
    %1538 = arith.mulf %1537, %1535 : vector<16x128xf32>
    %1539 = arith.addf %1520, %1538 : vector<16x128xf32>
    %c342 = arith.constant 342 : index
    %1540 = memref.load %arg2[%c342] : memref<432xf32, #tpu.memory_space<smem>>
    %1541 = vector.broadcast %1540 : f32 to vector<16x128xf32>
    %1542 = arith.mulf %1541, %1535 : vector<16x128xf32>
    %1543 = arith.addf %1524, %1542 : vector<16x128xf32>
    %c378 = arith.constant 378 : index
    %1544 = memref.load %arg2[%c378] : memref<432xf32, #tpu.memory_space<smem>>
    %1545 = vector.broadcast %1544 : f32 to vector<16x128xf32>
    %1546 = arith.mulf %1545, %1535 : vector<16x128xf32>
    %1547 = arith.addf %1528, %1546 : vector<16x128xf32>
    %c414 = arith.constant 414 : index
    %1548 = memref.load %arg2[%c414] : memref<432xf32, #tpu.memory_space<smem>>
    %1549 = vector.broadcast %1548 : f32 to vector<16x128xf32>
    %1550 = arith.mulf %1549, %1535 : vector<16x128xf32>
    %1551 = arith.addf %1532, %1550 : vector<16x128xf32>
    %c1_i32_102 = arith.constant 1 : i32
    %1552 = tpu.dynamic_rotate %1494 by %c1_i32_102 dim 1 : vector<16x128xf32>, i32 -> vector<16x128xf32>
    %1553 = vector.broadcast %13 : vector<1x128xf32> to vector<16x128xf32>
    %1554 = arith.mulf %1552, %1553 : vector<16x128xf32>
    %c315 = arith.constant 315 : index
    %1555 = memref.load %arg2[%c315] : memref<432xf32, #tpu.memory_space<smem>>
    %1556 = vector.broadcast %1555 : f32 to vector<16x128xf32>
    %1557 = arith.mulf %1556, %1554 : vector<16x128xf32>
    %1558 = arith.addf %1539, %1557 : vector<16x128xf32>
    %c351 = arith.constant 351 : index
    %1559 = memref.load %arg2[%c351] : memref<432xf32, #tpu.memory_space<smem>>
    %1560 = vector.broadcast %1559 : f32 to vector<16x128xf32>
    %1561 = arith.mulf %1560, %1554 : vector<16x128xf32>
    %1562 = arith.addf %1543, %1561 : vector<16x128xf32>
    %c387 = arith.constant 387 : index
    %1563 = memref.load %arg2[%c387] : memref<432xf32, #tpu.memory_space<smem>>
    %1564 = vector.broadcast %1563 : f32 to vector<16x128xf32>
    %1565 = arith.mulf %1564, %1554 : vector<16x128xf32>
    %1566 = arith.addf %1547, %1565 : vector<16x128xf32>
    %c423 = arith.constant 423 : index
    %1567 = memref.load %arg2[%c423] : memref<432xf32, #tpu.memory_space<smem>>
    %1568 = vector.broadcast %1567 : f32 to vector<16x128xf32>
    %1569 = arith.mulf %1568, %1554 : vector<16x128xf32>
    %1570 = arith.addf %1551, %1569 : vector<16x128xf32>
    %c289 = arith.constant 289 : index
    %1571 = memref.load %arg2[%c289] : memref<432xf32, #tpu.memory_space<smem>>
    %1572 = vector.broadcast %1571 : f32 to vector<16x128xf32>
    %1573 = arith.mulf %1572, %1485 : vector<16x128xf32>
    %1574 = arith.addf %1558, %1573 : vector<16x128xf32>
    %c325 = arith.constant 325 : index
    %1575 = memref.load %arg2[%c325] : memref<432xf32, #tpu.memory_space<smem>>
    %1576 = vector.broadcast %1575 : f32 to vector<16x128xf32>
    %1577 = arith.mulf %1576, %1485 : vector<16x128xf32>
    %1578 = arith.addf %1562, %1577 : vector<16x128xf32>
    %c361 = arith.constant 361 : index
    %1579 = memref.load %arg2[%c361] : memref<432xf32, #tpu.memory_space<smem>>
    %1580 = vector.broadcast %1579 : f32 to vector<16x128xf32>
    %1581 = arith.mulf %1580, %1485 : vector<16x128xf32>
    %1582 = arith.addf %1566, %1581 : vector<16x128xf32>
    %c397 = arith.constant 397 : index
    %1583 = memref.load %arg2[%c397] : memref<432xf32, #tpu.memory_space<smem>>
    %1584 = vector.broadcast %1583 : f32 to vector<16x128xf32>
    %1585 = arith.mulf %1584, %1485 : vector<16x128xf32>
    %1586 = arith.addf %1570, %1585 : vector<16x128xf32>
    %c298 = arith.constant 298 : index
    %1587 = memref.load %arg2[%c298] : memref<432xf32, #tpu.memory_space<smem>>
    %1588 = vector.broadcast %1587 : f32 to vector<16x128xf32>
    %1589 = arith.mulf %1588, %1488 : vector<16x128xf32>
    %1590 = arith.addf %1574, %1589 : vector<16x128xf32>
    %c334 = arith.constant 334 : index
    %1591 = memref.load %arg2[%c334] : memref<432xf32, #tpu.memory_space<smem>>
    %1592 = vector.broadcast %1591 : f32 to vector<16x128xf32>
    %1593 = arith.mulf %1592, %1488 : vector<16x128xf32>
    %1594 = arith.addf %1578, %1593 : vector<16x128xf32>
    %c370 = arith.constant 370 : index
    %1595 = memref.load %arg2[%c370] : memref<432xf32, #tpu.memory_space<smem>>
    %1596 = vector.broadcast %1595 : f32 to vector<16x128xf32>
    %1597 = arith.mulf %1596, %1488 : vector<16x128xf32>
    %1598 = arith.addf %1582, %1597 : vector<16x128xf32>
    %c406 = arith.constant 406 : index
    %1599 = memref.load %arg2[%c406] : memref<432xf32, #tpu.memory_space<smem>>
    %1600 = vector.broadcast %1599 : f32 to vector<16x128xf32>
    %1601 = arith.mulf %1600, %1488 : vector<16x128xf32>
    %1602 = arith.addf %1586, %1601 : vector<16x128xf32>
    %c307 = arith.constant 307 : index
    %1603 = memref.load %arg2[%c307] : memref<432xf32, #tpu.memory_space<smem>>
    %1604 = vector.broadcast %1603 : f32 to vector<16x128xf32>
    %1605 = arith.mulf %1604, %1491 : vector<16x128xf32>
    %1606 = arith.addf %1590, %1605 : vector<16x128xf32>
    %c343 = arith.constant 343 : index
    %1607 = memref.load %arg2[%c343] : memref<432xf32, #tpu.memory_space<smem>>
    %1608 = vector.broadcast %1607 : f32 to vector<16x128xf32>
    %1609 = arith.mulf %1608, %1491 : vector<16x128xf32>
    %1610 = arith.addf %1594, %1609 : vector<16x128xf32>
    %c379 = arith.constant 379 : index
    %1611 = memref.load %arg2[%c379] : memref<432xf32, #tpu.memory_space<smem>>
    %1612 = vector.broadcast %1611 : f32 to vector<16x128xf32>
    %1613 = arith.mulf %1612, %1491 : vector<16x128xf32>
    %1614 = arith.addf %1598, %1613 : vector<16x128xf32>
    %c415 = arith.constant 415 : index
    %1615 = memref.load %arg2[%c415] : memref<432xf32, #tpu.memory_space<smem>>
    %1616 = vector.broadcast %1615 : f32 to vector<16x128xf32>
    %1617 = arith.mulf %1616, %1491 : vector<16x128xf32>
    %1618 = arith.addf %1602, %1617 : vector<16x128xf32>
    %c316 = arith.constant 316 : index
    %1619 = memref.load %arg2[%c316] : memref<432xf32, #tpu.memory_space<smem>>
    %1620 = vector.broadcast %1619 : f32 to vector<16x128xf32>
    %1621 = arith.mulf %1620, %1494 : vector<16x128xf32>
    %1622 = arith.addf %1606, %1621 : vector<16x128xf32>
    %c352 = arith.constant 352 : index
    %1623 = memref.load %arg2[%c352] : memref<432xf32, #tpu.memory_space<smem>>
    %1624 = vector.broadcast %1623 : f32 to vector<16x128xf32>
    %1625 = arith.mulf %1624, %1494 : vector<16x128xf32>
    %1626 = arith.addf %1610, %1625 : vector<16x128xf32>
    %c388 = arith.constant 388 : index
    %1627 = memref.load %arg2[%c388] : memref<432xf32, #tpu.memory_space<smem>>
    %1628 = vector.broadcast %1627 : f32 to vector<16x128xf32>
    %1629 = arith.mulf %1628, %1494 : vector<16x128xf32>
    %1630 = arith.addf %1614, %1629 : vector<16x128xf32>
    %c424 = arith.constant 424 : index
    %1631 = memref.load %arg2[%c424] : memref<432xf32, #tpu.memory_space<smem>>
    %1632 = vector.broadcast %1631 : f32 to vector<16x128xf32>
    %1633 = arith.mulf %1632, %1494 : vector<16x128xf32>
    %1634 = arith.addf %1618, %1633 : vector<16x128xf32>
    %c127_i32_103 = arith.constant 127 : i32
    %1635 = tpu.dynamic_rotate %1485 by %c127_i32_103 dim 1 : vector<16x128xf32>, i32 -> vector<16x128xf32>
    %1636 = vector.broadcast %17 : vector<1x128xf32> to vector<16x128xf32>
    %1637 = arith.mulf %1635, %1636 : vector<16x128xf32>
    %c290 = arith.constant 290 : index
    %1638 = memref.load %arg2[%c290] : memref<432xf32, #tpu.memory_space<smem>>
    %1639 = vector.broadcast %1638 : f32 to vector<16x128xf32>
    %1640 = arith.mulf %1639, %1637 : vector<16x128xf32>
    %1641 = arith.addf %1622, %1640 : vector<16x128xf32>
    %c326 = arith.constant 326 : index
    %1642 = memref.load %arg2[%c326] : memref<432xf32, #tpu.memory_space<smem>>
    %1643 = vector.broadcast %1642 : f32 to vector<16x128xf32>
    %1644 = arith.mulf %1643, %1637 : vector<16x128xf32>
    %1645 = arith.addf %1626, %1644 : vector<16x128xf32>
    %c362 = arith.constant 362 : index
    %1646 = memref.load %arg2[%c362] : memref<432xf32, #tpu.memory_space<smem>>
    %1647 = vector.broadcast %1646 : f32 to vector<16x128xf32>
    %1648 = arith.mulf %1647, %1637 : vector<16x128xf32>
    %1649 = arith.addf %1630, %1648 : vector<16x128xf32>
    %c398 = arith.constant 398 : index
    %1650 = memref.load %arg2[%c398] : memref<432xf32, #tpu.memory_space<smem>>
    %1651 = vector.broadcast %1650 : f32 to vector<16x128xf32>
    %1652 = arith.mulf %1651, %1637 : vector<16x128xf32>
    %1653 = arith.addf %1634, %1652 : vector<16x128xf32>
    %c127_i32_104 = arith.constant 127 : i32
    %1654 = tpu.dynamic_rotate %1488 by %c127_i32_104 dim 1 : vector<16x128xf32>, i32 -> vector<16x128xf32>
    %1655 = vector.broadcast %17 : vector<1x128xf32> to vector<16x128xf32>
    %1656 = arith.mulf %1654, %1655 : vector<16x128xf32>
    %c299 = arith.constant 299 : index
    %1657 = memref.load %arg2[%c299] : memref<432xf32, #tpu.memory_space<smem>>
    %1658 = vector.broadcast %1657 : f32 to vector<16x128xf32>
    %1659 = arith.mulf %1658, %1656 : vector<16x128xf32>
    %1660 = arith.addf %1641, %1659 : vector<16x128xf32>
    %c335 = arith.constant 335 : index
    %1661 = memref.load %arg2[%c335] : memref<432xf32, #tpu.memory_space<smem>>
    %1662 = vector.broadcast %1661 : f32 to vector<16x128xf32>
    %1663 = arith.mulf %1662, %1656 : vector<16x128xf32>
    %1664 = arith.addf %1645, %1663 : vector<16x128xf32>
    %c371 = arith.constant 371 : index
    %1665 = memref.load %arg2[%c371] : memref<432xf32, #tpu.memory_space<smem>>
    %1666 = vector.broadcast %1665 : f32 to vector<16x128xf32>
    %1667 = arith.mulf %1666, %1656 : vector<16x128xf32>
    %1668 = arith.addf %1649, %1667 : vector<16x128xf32>
    %c407 = arith.constant 407 : index
    %1669 = memref.load %arg2[%c407] : memref<432xf32, #tpu.memory_space<smem>>
    %1670 = vector.broadcast %1669 : f32 to vector<16x128xf32>
    %1671 = arith.mulf %1670, %1656 : vector<16x128xf32>
    %1672 = arith.addf %1653, %1671 : vector<16x128xf32>
    %c127_i32_105 = arith.constant 127 : i32
    %1673 = tpu.dynamic_rotate %1491 by %c127_i32_105 dim 1 : vector<16x128xf32>, i32 -> vector<16x128xf32>
    %1674 = vector.broadcast %17 : vector<1x128xf32> to vector<16x128xf32>
    %1675 = arith.mulf %1673, %1674 : vector<16x128xf32>
    %c308 = arith.constant 308 : index
    %1676 = memref.load %arg2[%c308] : memref<432xf32, #tpu.memory_space<smem>>
    %1677 = vector.broadcast %1676 : f32 to vector<16x128xf32>
    %1678 = arith.mulf %1677, %1675 : vector<16x128xf32>
    %1679 = arith.addf %1660, %1678 : vector<16x128xf32>
    %c344 = arith.constant 344 : index
    %1680 = memref.load %arg2[%c344] : memref<432xf32, #tpu.memory_space<smem>>
    %1681 = vector.broadcast %1680 : f32 to vector<16x128xf32>
    %1682 = arith.mulf %1681, %1675 : vector<16x128xf32>
    %1683 = arith.addf %1664, %1682 : vector<16x128xf32>
    %c380 = arith.constant 380 : index
    %1684 = memref.load %arg2[%c380] : memref<432xf32, #tpu.memory_space<smem>>
    %1685 = vector.broadcast %1684 : f32 to vector<16x128xf32>
    %1686 = arith.mulf %1685, %1675 : vector<16x128xf32>
    %1687 = arith.addf %1668, %1686 : vector<16x128xf32>
    %c416 = arith.constant 416 : index
    %1688 = memref.load %arg2[%c416] : memref<432xf32, #tpu.memory_space<smem>>
    %1689 = vector.broadcast %1688 : f32 to vector<16x128xf32>
    %1690 = arith.mulf %1689, %1675 : vector<16x128xf32>
    %1691 = arith.addf %1672, %1690 : vector<16x128xf32>
    %c127_i32_106 = arith.constant 127 : i32
    %1692 = tpu.dynamic_rotate %1494 by %c127_i32_106 dim 1 : vector<16x128xf32>, i32 -> vector<16x128xf32>
    %1693 = vector.broadcast %17 : vector<1x128xf32> to vector<16x128xf32>
    %1694 = arith.mulf %1692, %1693 : vector<16x128xf32>
    %c317 = arith.constant 317 : index
    %1695 = memref.load %arg2[%c317] : memref<432xf32, #tpu.memory_space<smem>>
    %1696 = vector.broadcast %1695 : f32 to vector<16x128xf32>
    %1697 = arith.mulf %1696, %1694 : vector<16x128xf32>
    %1698 = arith.addf %1679, %1697 : vector<16x128xf32>
    %c353 = arith.constant 353 : index
    %1699 = memref.load %arg2[%c353] : memref<432xf32, #tpu.memory_space<smem>>
    %1700 = vector.broadcast %1699 : f32 to vector<16x128xf32>
    %1701 = arith.mulf %1700, %1694 : vector<16x128xf32>
    %1702 = arith.addf %1683, %1701 : vector<16x128xf32>
    %c389 = arith.constant 389 : index
    %1703 = memref.load %arg2[%c389] : memref<432xf32, #tpu.memory_space<smem>>
    %1704 = vector.broadcast %1703 : f32 to vector<16x128xf32>
    %1705 = arith.mulf %1704, %1694 : vector<16x128xf32>
    %1706 = arith.addf %1687, %1705 : vector<16x128xf32>
    %c425 = arith.constant 425 : index
    %1707 = memref.load %arg2[%c425] : memref<432xf32, #tpu.memory_space<smem>>
    %1708 = vector.broadcast %1707 : f32 to vector<16x128xf32>
    %1709 = arith.mulf %1708, %1694 : vector<16x128xf32>
    %1710 = arith.addf %1691, %1709 : vector<16x128xf32>
    %c1_i32_107 = arith.constant 1 : i32
    %1711 = tpu.dynamic_rotate %1475 by %c1_i32_107 dim 1 : vector<16x128xf32>, i32 -> vector<16x128xf32>
    %1712 = vector.broadcast %13 : vector<1x128xf32> to vector<16x128xf32>
    %1713 = arith.mulf %1711, %1712 : vector<16x128xf32>
    %c291 = arith.constant 291 : index
    %1714 = memref.load %arg2[%c291] : memref<432xf32, #tpu.memory_space<smem>>
    %1715 = vector.broadcast %1714 : f32 to vector<16x128xf32>
    %1716 = arith.mulf %1715, %1713 : vector<16x128xf32>
    %1717 = arith.addf %1698, %1716 : vector<16x128xf32>
    %c327 = arith.constant 327 : index
    %1718 = memref.load %arg2[%c327] : memref<432xf32, #tpu.memory_space<smem>>
    %1719 = vector.broadcast %1718 : f32 to vector<16x128xf32>
    %1720 = arith.mulf %1719, %1713 : vector<16x128xf32>
    %1721 = arith.addf %1702, %1720 : vector<16x128xf32>
    %c363 = arith.constant 363 : index
    %1722 = memref.load %arg2[%c363] : memref<432xf32, #tpu.memory_space<smem>>
    %1723 = vector.broadcast %1722 : f32 to vector<16x128xf32>
    %1724 = arith.mulf %1723, %1713 : vector<16x128xf32>
    %1725 = arith.addf %1706, %1724 : vector<16x128xf32>
    %c399 = arith.constant 399 : index
    %1726 = memref.load %arg2[%c399] : memref<432xf32, #tpu.memory_space<smem>>
    %1727 = vector.broadcast %1726 : f32 to vector<16x128xf32>
    %1728 = arith.mulf %1727, %1713 : vector<16x128xf32>
    %1729 = arith.addf %1710, %1728 : vector<16x128xf32>
    %c1_i32_108 = arith.constant 1 : i32
    %1730 = tpu.dynamic_rotate %1476 by %c1_i32_108 dim 1 : vector<16x128xf32>, i32 -> vector<16x128xf32>
    %1731 = vector.broadcast %13 : vector<1x128xf32> to vector<16x128xf32>
    %1732 = arith.mulf %1730, %1731 : vector<16x128xf32>
    %c300 = arith.constant 300 : index
    %1733 = memref.load %arg2[%c300] : memref<432xf32, #tpu.memory_space<smem>>
    %1734 = vector.broadcast %1733 : f32 to vector<16x128xf32>
    %1735 = arith.mulf %1734, %1732 : vector<16x128xf32>
    %1736 = arith.addf %1717, %1735 : vector<16x128xf32>
    %c336 = arith.constant 336 : index
    %1737 = memref.load %arg2[%c336] : memref<432xf32, #tpu.memory_space<smem>>
    %1738 = vector.broadcast %1737 : f32 to vector<16x128xf32>
    %1739 = arith.mulf %1738, %1732 : vector<16x128xf32>
    %1740 = arith.addf %1721, %1739 : vector<16x128xf32>
    %c372 = arith.constant 372 : index
    %1741 = memref.load %arg2[%c372] : memref<432xf32, #tpu.memory_space<smem>>
    %1742 = vector.broadcast %1741 : f32 to vector<16x128xf32>
    %1743 = arith.mulf %1742, %1732 : vector<16x128xf32>
    %1744 = arith.addf %1725, %1743 : vector<16x128xf32>
    %c408 = arith.constant 408 : index
    %1745 = memref.load %arg2[%c408] : memref<432xf32, #tpu.memory_space<smem>>
    %1746 = vector.broadcast %1745 : f32 to vector<16x128xf32>
    %1747 = arith.mulf %1746, %1732 : vector<16x128xf32>
    %1748 = arith.addf %1729, %1747 : vector<16x128xf32>
    %c1_i32_109 = arith.constant 1 : i32
    %1749 = tpu.dynamic_rotate %1477 by %c1_i32_109 dim 1 : vector<16x128xf32>, i32 -> vector<16x128xf32>
    %1750 = vector.broadcast %13 : vector<1x128xf32> to vector<16x128xf32>
    %1751 = arith.mulf %1749, %1750 : vector<16x128xf32>
    %c309 = arith.constant 309 : index
    %1752 = memref.load %arg2[%c309] : memref<432xf32, #tpu.memory_space<smem>>
    %1753 = vector.broadcast %1752 : f32 to vector<16x128xf32>
    %1754 = arith.mulf %1753, %1751 : vector<16x128xf32>
    %1755 = arith.addf %1736, %1754 : vector<16x128xf32>
    %c345 = arith.constant 345 : index
    %1756 = memref.load %arg2[%c345] : memref<432xf32, #tpu.memory_space<smem>>
    %1757 = vector.broadcast %1756 : f32 to vector<16x128xf32>
    %1758 = arith.mulf %1757, %1751 : vector<16x128xf32>
    %1759 = arith.addf %1740, %1758 : vector<16x128xf32>
    %c381 = arith.constant 381 : index
    %1760 = memref.load %arg2[%c381] : memref<432xf32, #tpu.memory_space<smem>>
    %1761 = vector.broadcast %1760 : f32 to vector<16x128xf32>
    %1762 = arith.mulf %1761, %1751 : vector<16x128xf32>
    %1763 = arith.addf %1744, %1762 : vector<16x128xf32>
    %c417 = arith.constant 417 : index
    %1764 = memref.load %arg2[%c417] : memref<432xf32, #tpu.memory_space<smem>>
    %1765 = vector.broadcast %1764 : f32 to vector<16x128xf32>
    %1766 = arith.mulf %1765, %1751 : vector<16x128xf32>
    %1767 = arith.addf %1748, %1766 : vector<16x128xf32>
    %c1_i32_110 = arith.constant 1 : i32
    %1768 = tpu.dynamic_rotate %1478 by %c1_i32_110 dim 1 : vector<16x128xf32>, i32 -> vector<16x128xf32>
    %1769 = vector.broadcast %13 : vector<1x128xf32> to vector<16x128xf32>
    %1770 = arith.mulf %1768, %1769 : vector<16x128xf32>
    %c318 = arith.constant 318 : index
    %1771 = memref.load %arg2[%c318] : memref<432xf32, #tpu.memory_space<smem>>
    %1772 = vector.broadcast %1771 : f32 to vector<16x128xf32>
    %1773 = arith.mulf %1772, %1770 : vector<16x128xf32>
    %1774 = arith.addf %1755, %1773 : vector<16x128xf32>
    %c354 = arith.constant 354 : index
    %1775 = memref.load %arg2[%c354] : memref<432xf32, #tpu.memory_space<smem>>
    %1776 = vector.broadcast %1775 : f32 to vector<16x128xf32>
    %1777 = arith.mulf %1776, %1770 : vector<16x128xf32>
    %1778 = arith.addf %1759, %1777 : vector<16x128xf32>
    %c390 = arith.constant 390 : index
    %1779 = memref.load %arg2[%c390] : memref<432xf32, #tpu.memory_space<smem>>
    %1780 = vector.broadcast %1779 : f32 to vector<16x128xf32>
    %1781 = arith.mulf %1780, %1770 : vector<16x128xf32>
    %1782 = arith.addf %1763, %1781 : vector<16x128xf32>
    %c426 = arith.constant 426 : index
    %1783 = memref.load %arg2[%c426] : memref<432xf32, #tpu.memory_space<smem>>
    %1784 = vector.broadcast %1783 : f32 to vector<16x128xf32>
    %1785 = arith.mulf %1784, %1770 : vector<16x128xf32>
    %1786 = arith.addf %1767, %1785 : vector<16x128xf32>
    %c292 = arith.constant 292 : index
    %1787 = memref.load %arg2[%c292] : memref<432xf32, #tpu.memory_space<smem>>
    %1788 = vector.broadcast %1787 : f32 to vector<16x128xf32>
    %1789 = arith.mulf %1788, %1475 : vector<16x128xf32>
    %1790 = arith.addf %1774, %1789 : vector<16x128xf32>
    %c328 = arith.constant 328 : index
    %1791 = memref.load %arg2[%c328] : memref<432xf32, #tpu.memory_space<smem>>
    %1792 = vector.broadcast %1791 : f32 to vector<16x128xf32>
    %1793 = arith.mulf %1792, %1475 : vector<16x128xf32>
    %1794 = arith.addf %1778, %1793 : vector<16x128xf32>
    %c364 = arith.constant 364 : index
    %1795 = memref.load %arg2[%c364] : memref<432xf32, #tpu.memory_space<smem>>
    %1796 = vector.broadcast %1795 : f32 to vector<16x128xf32>
    %1797 = arith.mulf %1796, %1475 : vector<16x128xf32>
    %1798 = arith.addf %1782, %1797 : vector<16x128xf32>
    %c400 = arith.constant 400 : index
    %1799 = memref.load %arg2[%c400] : memref<432xf32, #tpu.memory_space<smem>>
    %1800 = vector.broadcast %1799 : f32 to vector<16x128xf32>
    %1801 = arith.mulf %1800, %1475 : vector<16x128xf32>
    %1802 = arith.addf %1786, %1801 : vector<16x128xf32>
    %c301 = arith.constant 301 : index
    %1803 = memref.load %arg2[%c301] : memref<432xf32, #tpu.memory_space<smem>>
    %1804 = vector.broadcast %1803 : f32 to vector<16x128xf32>
    %1805 = arith.mulf %1804, %1476 : vector<16x128xf32>
    %1806 = arith.addf %1790, %1805 : vector<16x128xf32>
    %c337 = arith.constant 337 : index
    %1807 = memref.load %arg2[%c337] : memref<432xf32, #tpu.memory_space<smem>>
    %1808 = vector.broadcast %1807 : f32 to vector<16x128xf32>
    %1809 = arith.mulf %1808, %1476 : vector<16x128xf32>
    %1810 = arith.addf %1794, %1809 : vector<16x128xf32>
    %c373 = arith.constant 373 : index
    %1811 = memref.load %arg2[%c373] : memref<432xf32, #tpu.memory_space<smem>>
    %1812 = vector.broadcast %1811 : f32 to vector<16x128xf32>
    %1813 = arith.mulf %1812, %1476 : vector<16x128xf32>
    %1814 = arith.addf %1798, %1813 : vector<16x128xf32>
    %c409 = arith.constant 409 : index
    %1815 = memref.load %arg2[%c409] : memref<432xf32, #tpu.memory_space<smem>>
    %1816 = vector.broadcast %1815 : f32 to vector<16x128xf32>
    %1817 = arith.mulf %1816, %1476 : vector<16x128xf32>
    %1818 = arith.addf %1802, %1817 : vector<16x128xf32>
    %c310 = arith.constant 310 : index
    %1819 = memref.load %arg2[%c310] : memref<432xf32, #tpu.memory_space<smem>>
    %1820 = vector.broadcast %1819 : f32 to vector<16x128xf32>
    %1821 = arith.mulf %1820, %1477 : vector<16x128xf32>
    %1822 = arith.addf %1806, %1821 : vector<16x128xf32>
    %c346 = arith.constant 346 : index
    %1823 = memref.load %arg2[%c346] : memref<432xf32, #tpu.memory_space<smem>>
    %1824 = vector.broadcast %1823 : f32 to vector<16x128xf32>
    %1825 = arith.mulf %1824, %1477 : vector<16x128xf32>
    %1826 = arith.addf %1810, %1825 : vector<16x128xf32>
    %c382 = arith.constant 382 : index
    %1827 = memref.load %arg2[%c382] : memref<432xf32, #tpu.memory_space<smem>>
    %1828 = vector.broadcast %1827 : f32 to vector<16x128xf32>
    %1829 = arith.mulf %1828, %1477 : vector<16x128xf32>
    %1830 = arith.addf %1814, %1829 : vector<16x128xf32>
    %c418 = arith.constant 418 : index
    %1831 = memref.load %arg2[%c418] : memref<432xf32, #tpu.memory_space<smem>>
    %1832 = vector.broadcast %1831 : f32 to vector<16x128xf32>
    %1833 = arith.mulf %1832, %1477 : vector<16x128xf32>
    %1834 = arith.addf %1818, %1833 : vector<16x128xf32>
    %c319 = arith.constant 319 : index
    %1835 = memref.load %arg2[%c319] : memref<432xf32, #tpu.memory_space<smem>>
    %1836 = vector.broadcast %1835 : f32 to vector<16x128xf32>
    %1837 = arith.mulf %1836, %1478 : vector<16x128xf32>
    %1838 = arith.addf %1822, %1837 : vector<16x128xf32>
    %c355 = arith.constant 355 : index
    %1839 = memref.load %arg2[%c355] : memref<432xf32, #tpu.memory_space<smem>>
    %1840 = vector.broadcast %1839 : f32 to vector<16x128xf32>
    %1841 = arith.mulf %1840, %1478 : vector<16x128xf32>
    %1842 = arith.addf %1826, %1841 : vector<16x128xf32>
    %c391 = arith.constant 391 : index
    %1843 = memref.load %arg2[%c391] : memref<432xf32, #tpu.memory_space<smem>>
    %1844 = vector.broadcast %1843 : f32 to vector<16x128xf32>
    %1845 = arith.mulf %1844, %1478 : vector<16x128xf32>
    %1846 = arith.addf %1830, %1845 : vector<16x128xf32>
    %c427 = arith.constant 427 : index
    %1847 = memref.load %arg2[%c427] : memref<432xf32, #tpu.memory_space<smem>>
    %1848 = vector.broadcast %1847 : f32 to vector<16x128xf32>
    %1849 = arith.mulf %1848, %1478 : vector<16x128xf32>
    %1850 = arith.addf %1834, %1849 : vector<16x128xf32>
    %c127_i32_111 = arith.constant 127 : i32
    %1851 = tpu.dynamic_rotate %1475 by %c127_i32_111 dim 1 : vector<16x128xf32>, i32 -> vector<16x128xf32>
    %1852 = vector.broadcast %17 : vector<1x128xf32> to vector<16x128xf32>
    %1853 = arith.mulf %1851, %1852 : vector<16x128xf32>
    %c293 = arith.constant 293 : index
    %1854 = memref.load %arg2[%c293] : memref<432xf32, #tpu.memory_space<smem>>
    %1855 = vector.broadcast %1854 : f32 to vector<16x128xf32>
    %1856 = arith.mulf %1855, %1853 : vector<16x128xf32>
    %1857 = arith.addf %1838, %1856 : vector<16x128xf32>
    %c329 = arith.constant 329 : index
    %1858 = memref.load %arg2[%c329] : memref<432xf32, #tpu.memory_space<smem>>
    %1859 = vector.broadcast %1858 : f32 to vector<16x128xf32>
    %1860 = arith.mulf %1859, %1853 : vector<16x128xf32>
    %1861 = arith.addf %1842, %1860 : vector<16x128xf32>
    %c365 = arith.constant 365 : index
    %1862 = memref.load %arg2[%c365] : memref<432xf32, #tpu.memory_space<smem>>
    %1863 = vector.broadcast %1862 : f32 to vector<16x128xf32>
    %1864 = arith.mulf %1863, %1853 : vector<16x128xf32>
    %1865 = arith.addf %1846, %1864 : vector<16x128xf32>
    %c401 = arith.constant 401 : index
    %1866 = memref.load %arg2[%c401] : memref<432xf32, #tpu.memory_space<smem>>
    %1867 = vector.broadcast %1866 : f32 to vector<16x128xf32>
    %1868 = arith.mulf %1867, %1853 : vector<16x128xf32>
    %1869 = arith.addf %1850, %1868 : vector<16x128xf32>
    %c127_i32_112 = arith.constant 127 : i32
    %1870 = tpu.dynamic_rotate %1476 by %c127_i32_112 dim 1 : vector<16x128xf32>, i32 -> vector<16x128xf32>
    %1871 = vector.broadcast %17 : vector<1x128xf32> to vector<16x128xf32>
    %1872 = arith.mulf %1870, %1871 : vector<16x128xf32>
    %c302 = arith.constant 302 : index
    %1873 = memref.load %arg2[%c302] : memref<432xf32, #tpu.memory_space<smem>>
    %1874 = vector.broadcast %1873 : f32 to vector<16x128xf32>
    %1875 = arith.mulf %1874, %1872 : vector<16x128xf32>
    %1876 = arith.addf %1857, %1875 : vector<16x128xf32>
    %c338 = arith.constant 338 : index
    %1877 = memref.load %arg2[%c338] : memref<432xf32, #tpu.memory_space<smem>>
    %1878 = vector.broadcast %1877 : f32 to vector<16x128xf32>
    %1879 = arith.mulf %1878, %1872 : vector<16x128xf32>
    %1880 = arith.addf %1861, %1879 : vector<16x128xf32>
    %c374 = arith.constant 374 : index
    %1881 = memref.load %arg2[%c374] : memref<432xf32, #tpu.memory_space<smem>>
    %1882 = vector.broadcast %1881 : f32 to vector<16x128xf32>
    %1883 = arith.mulf %1882, %1872 : vector<16x128xf32>
    %1884 = arith.addf %1865, %1883 : vector<16x128xf32>
    %c410 = arith.constant 410 : index
    %1885 = memref.load %arg2[%c410] : memref<432xf32, #tpu.memory_space<smem>>
    %1886 = vector.broadcast %1885 : f32 to vector<16x128xf32>
    %1887 = arith.mulf %1886, %1872 : vector<16x128xf32>
    %1888 = arith.addf %1869, %1887 : vector<16x128xf32>
    %c127_i32_113 = arith.constant 127 : i32
    %1889 = tpu.dynamic_rotate %1477 by %c127_i32_113 dim 1 : vector<16x128xf32>, i32 -> vector<16x128xf32>
    %1890 = vector.broadcast %17 : vector<1x128xf32> to vector<16x128xf32>
    %1891 = arith.mulf %1889, %1890 : vector<16x128xf32>
    %c311 = arith.constant 311 : index
    %1892 = memref.load %arg2[%c311] : memref<432xf32, #tpu.memory_space<smem>>
    %1893 = vector.broadcast %1892 : f32 to vector<16x128xf32>
    %1894 = arith.mulf %1893, %1891 : vector<16x128xf32>
    %1895 = arith.addf %1876, %1894 : vector<16x128xf32>
    %c347 = arith.constant 347 : index
    %1896 = memref.load %arg2[%c347] : memref<432xf32, #tpu.memory_space<smem>>
    %1897 = vector.broadcast %1896 : f32 to vector<16x128xf32>
    %1898 = arith.mulf %1897, %1891 : vector<16x128xf32>
    %1899 = arith.addf %1880, %1898 : vector<16x128xf32>
    %c383 = arith.constant 383 : index
    %1900 = memref.load %arg2[%c383] : memref<432xf32, #tpu.memory_space<smem>>
    %1901 = vector.broadcast %1900 : f32 to vector<16x128xf32>
    %1902 = arith.mulf %1901, %1891 : vector<16x128xf32>
    %1903 = arith.addf %1884, %1902 : vector<16x128xf32>
    %c419 = arith.constant 419 : index
    %1904 = memref.load %arg2[%c419] : memref<432xf32, #tpu.memory_space<smem>>
    %1905 = vector.broadcast %1904 : f32 to vector<16x128xf32>
    %1906 = arith.mulf %1905, %1891 : vector<16x128xf32>
    %1907 = arith.addf %1888, %1906 : vector<16x128xf32>
    %c127_i32_114 = arith.constant 127 : i32
    %1908 = tpu.dynamic_rotate %1478 by %c127_i32_114 dim 1 : vector<16x128xf32>, i32 -> vector<16x128xf32>
    %1909 = vector.broadcast %17 : vector<1x128xf32> to vector<16x128xf32>
    %1910 = arith.mulf %1908, %1909 : vector<16x128xf32>
    %c320 = arith.constant 320 : index
    %1911 = memref.load %arg2[%c320] : memref<432xf32, #tpu.memory_space<smem>>
    %1912 = vector.broadcast %1911 : f32 to vector<16x128xf32>
    %1913 = arith.mulf %1912, %1910 : vector<16x128xf32>
    %1914 = arith.addf %1895, %1913 : vector<16x128xf32>
    %c356 = arith.constant 356 : index
    %1915 = memref.load %arg2[%c356] : memref<432xf32, #tpu.memory_space<smem>>
    %1916 = vector.broadcast %1915 : f32 to vector<16x128xf32>
    %1917 = arith.mulf %1916, %1910 : vector<16x128xf32>
    %1918 = arith.addf %1899, %1917 : vector<16x128xf32>
    %c392 = arith.constant 392 : index
    %1919 = memref.load %arg2[%c392] : memref<432xf32, #tpu.memory_space<smem>>
    %1920 = vector.broadcast %1919 : f32 to vector<16x128xf32>
    %1921 = arith.mulf %1920, %1910 : vector<16x128xf32>
    %1922 = arith.addf %1903, %1921 : vector<16x128xf32>
    %c428 = arith.constant 428 : index
    %1923 = memref.load %arg2[%c428] : memref<432xf32, #tpu.memory_space<smem>>
    %1924 = vector.broadcast %1923 : f32 to vector<16x128xf32>
    %1925 = arith.mulf %1924, %1910 : vector<16x128xf32>
    %1926 = arith.addf %1907, %1925 : vector<16x128xf32>
    %c15_i32_115 = arith.constant 15 : i32
    %1927 = tpu.dynamic_rotate %1475 by %c15_i32_115 dim 0 : vector<16x128xf32>, i32 -> vector<16x128xf32>
    %1928 = vector.broadcast %9 : vector<16x1xf32> to vector<16x128xf32>
    %1929 = arith.mulf %1927, %1928 : vector<16x128xf32>
    %c15_i32_116 = arith.constant 15 : i32
    %1930 = tpu.dynamic_rotate %1476 by %c15_i32_116 dim 0 : vector<16x128xf32>, i32 -> vector<16x128xf32>
    %1931 = vector.broadcast %9 : vector<16x1xf32> to vector<16x128xf32>
    %1932 = arith.mulf %1930, %1931 : vector<16x128xf32>
    %c15_i32_117 = arith.constant 15 : i32
    %1933 = tpu.dynamic_rotate %1477 by %c15_i32_117 dim 0 : vector<16x128xf32>, i32 -> vector<16x128xf32>
    %1934 = vector.broadcast %9 : vector<16x1xf32> to vector<16x128xf32>
    %1935 = arith.mulf %1933, %1934 : vector<16x128xf32>
    %c15_i32_118 = arith.constant 15 : i32
    %1936 = tpu.dynamic_rotate %1478 by %c15_i32_118 dim 0 : vector<16x128xf32>, i32 -> vector<16x128xf32>
    %1937 = vector.broadcast %9 : vector<16x1xf32> to vector<16x128xf32>
    %1938 = arith.mulf %1936, %1937 : vector<16x128xf32>
    %c1_i32_119 = arith.constant 1 : i32
    %1939 = tpu.dynamic_rotate %1929 by %c1_i32_119 dim 1 : vector<16x128xf32>, i32 -> vector<16x128xf32>
    %1940 = vector.broadcast %13 : vector<1x128xf32> to vector<16x128xf32>
    %1941 = arith.mulf %1939, %1940 : vector<16x128xf32>
    %c294 = arith.constant 294 : index
    %1942 = memref.load %arg2[%c294] : memref<432xf32, #tpu.memory_space<smem>>
    %1943 = vector.broadcast %1942 : f32 to vector<16x128xf32>
    %1944 = arith.mulf %1943, %1941 : vector<16x128xf32>
    %1945 = arith.addf %1914, %1944 : vector<16x128xf32>
    %c330 = arith.constant 330 : index
    %1946 = memref.load %arg2[%c330] : memref<432xf32, #tpu.memory_space<smem>>
    %1947 = vector.broadcast %1946 : f32 to vector<16x128xf32>
    %1948 = arith.mulf %1947, %1941 : vector<16x128xf32>
    %1949 = arith.addf %1918, %1948 : vector<16x128xf32>
    %c366 = arith.constant 366 : index
    %1950 = memref.load %arg2[%c366] : memref<432xf32, #tpu.memory_space<smem>>
    %1951 = vector.broadcast %1950 : f32 to vector<16x128xf32>
    %1952 = arith.mulf %1951, %1941 : vector<16x128xf32>
    %1953 = arith.addf %1922, %1952 : vector<16x128xf32>
    %c402 = arith.constant 402 : index
    %1954 = memref.load %arg2[%c402] : memref<432xf32, #tpu.memory_space<smem>>
    %1955 = vector.broadcast %1954 : f32 to vector<16x128xf32>
    %1956 = arith.mulf %1955, %1941 : vector<16x128xf32>
    %1957 = arith.addf %1926, %1956 : vector<16x128xf32>
    %c1_i32_120 = arith.constant 1 : i32
    %1958 = tpu.dynamic_rotate %1932 by %c1_i32_120 dim 1 : vector<16x128xf32>, i32 -> vector<16x128xf32>
    %1959 = vector.broadcast %13 : vector<1x128xf32> to vector<16x128xf32>
    %1960 = arith.mulf %1958, %1959 : vector<16x128xf32>
    %c303 = arith.constant 303 : index
    %1961 = memref.load %arg2[%c303] : memref<432xf32, #tpu.memory_space<smem>>
    %1962 = vector.broadcast %1961 : f32 to vector<16x128xf32>
    %1963 = arith.mulf %1962, %1960 : vector<16x128xf32>
    %1964 = arith.addf %1945, %1963 : vector<16x128xf32>
    %c339 = arith.constant 339 : index
    %1965 = memref.load %arg2[%c339] : memref<432xf32, #tpu.memory_space<smem>>
    %1966 = vector.broadcast %1965 : f32 to vector<16x128xf32>
    %1967 = arith.mulf %1966, %1960 : vector<16x128xf32>
    %1968 = arith.addf %1949, %1967 : vector<16x128xf32>
    %c375 = arith.constant 375 : index
    %1969 = memref.load %arg2[%c375] : memref<432xf32, #tpu.memory_space<smem>>
    %1970 = vector.broadcast %1969 : f32 to vector<16x128xf32>
    %1971 = arith.mulf %1970, %1960 : vector<16x128xf32>
    %1972 = arith.addf %1953, %1971 : vector<16x128xf32>
    %c411 = arith.constant 411 : index
    %1973 = memref.load %arg2[%c411] : memref<432xf32, #tpu.memory_space<smem>>
    %1974 = vector.broadcast %1973 : f32 to vector<16x128xf32>
    %1975 = arith.mulf %1974, %1960 : vector<16x128xf32>
    %1976 = arith.addf %1957, %1975 : vector<16x128xf32>
    %c1_i32_121 = arith.constant 1 : i32
    %1977 = tpu.dynamic_rotate %1935 by %c1_i32_121 dim 1 : vector<16x128xf32>, i32 -> vector<16x128xf32>
    %1978 = vector.broadcast %13 : vector<1x128xf32> to vector<16x128xf32>
    %1979 = arith.mulf %1977, %1978 : vector<16x128xf32>
    %c312 = arith.constant 312 : index
    %1980 = memref.load %arg2[%c312] : memref<432xf32, #tpu.memory_space<smem>>
    %1981 = vector.broadcast %1980 : f32 to vector<16x128xf32>
    %1982 = arith.mulf %1981, %1979 : vector<16x128xf32>
    %1983 = arith.addf %1964, %1982 : vector<16x128xf32>
    %c348 = arith.constant 348 : index
    %1984 = memref.load %arg2[%c348] : memref<432xf32, #tpu.memory_space<smem>>
    %1985 = vector.broadcast %1984 : f32 to vector<16x128xf32>
    %1986 = arith.mulf %1985, %1979 : vector<16x128xf32>
    %1987 = arith.addf %1968, %1986 : vector<16x128xf32>
    %c384 = arith.constant 384 : index
    %1988 = memref.load %arg2[%c384] : memref<432xf32, #tpu.memory_space<smem>>
    %1989 = vector.broadcast %1988 : f32 to vector<16x128xf32>
    %1990 = arith.mulf %1989, %1979 : vector<16x128xf32>
    %1991 = arith.addf %1972, %1990 : vector<16x128xf32>
    %c420 = arith.constant 420 : index
    %1992 = memref.load %arg2[%c420] : memref<432xf32, #tpu.memory_space<smem>>
    %1993 = vector.broadcast %1992 : f32 to vector<16x128xf32>
    %1994 = arith.mulf %1993, %1979 : vector<16x128xf32>
    %1995 = arith.addf %1976, %1994 : vector<16x128xf32>
    %c1_i32_122 = arith.constant 1 : i32
    %1996 = tpu.dynamic_rotate %1938 by %c1_i32_122 dim 1 : vector<16x128xf32>, i32 -> vector<16x128xf32>
    %1997 = vector.broadcast %13 : vector<1x128xf32> to vector<16x128xf32>
    %1998 = arith.mulf %1996, %1997 : vector<16x128xf32>
    %c321 = arith.constant 321 : index
    %1999 = memref.load %arg2[%c321] : memref<432xf32, #tpu.memory_space<smem>>
    %2000 = vector.broadcast %1999 : f32 to vector<16x128xf32>
    %2001 = arith.mulf %2000, %1998 : vector<16x128xf32>
    %2002 = arith.addf %1983, %2001 : vector<16x128xf32>
    %c357 = arith.constant 357 : index
    %2003 = memref.load %arg2[%c357] : memref<432xf32, #tpu.memory_space<smem>>
    %2004 = vector.broadcast %2003 : f32 to vector<16x128xf32>
    %2005 = arith.mulf %2004, %1998 : vector<16x128xf32>
    %2006 = arith.addf %1987, %2005 : vector<16x128xf32>
    %c393 = arith.constant 393 : index
    %2007 = memref.load %arg2[%c393] : memref<432xf32, #tpu.memory_space<smem>>
    %2008 = vector.broadcast %2007 : f32 to vector<16x128xf32>
    %2009 = arith.mulf %2008, %1998 : vector<16x128xf32>
    %2010 = arith.addf %1991, %2009 : vector<16x128xf32>
    %c429 = arith.constant 429 : index
    %2011 = memref.load %arg2[%c429] : memref<432xf32, #tpu.memory_space<smem>>
    %2012 = vector.broadcast %2011 : f32 to vector<16x128xf32>
    %2013 = arith.mulf %2012, %1998 : vector<16x128xf32>
    %2014 = arith.addf %1995, %2013 : vector<16x128xf32>
    %c295 = arith.constant 295 : index
    %2015 = memref.load %arg2[%c295] : memref<432xf32, #tpu.memory_space<smem>>
    %2016 = vector.broadcast %2015 : f32 to vector<16x128xf32>
    %2017 = arith.mulf %2016, %1929 : vector<16x128xf32>
    %2018 = arith.addf %2002, %2017 : vector<16x128xf32>
    %c331 = arith.constant 331 : index
    %2019 = memref.load %arg2[%c331] : memref<432xf32, #tpu.memory_space<smem>>
    %2020 = vector.broadcast %2019 : f32 to vector<16x128xf32>
    %2021 = arith.mulf %2020, %1929 : vector<16x128xf32>
    %2022 = arith.addf %2006, %2021 : vector<16x128xf32>
    %c367 = arith.constant 367 : index
    %2023 = memref.load %arg2[%c367] : memref<432xf32, #tpu.memory_space<smem>>
    %2024 = vector.broadcast %2023 : f32 to vector<16x128xf32>
    %2025 = arith.mulf %2024, %1929 : vector<16x128xf32>
    %2026 = arith.addf %2010, %2025 : vector<16x128xf32>
    %c403 = arith.constant 403 : index
    %2027 = memref.load %arg2[%c403] : memref<432xf32, #tpu.memory_space<smem>>
    %2028 = vector.broadcast %2027 : f32 to vector<16x128xf32>
    %2029 = arith.mulf %2028, %1929 : vector<16x128xf32>
    %2030 = arith.addf %2014, %2029 : vector<16x128xf32>
    %c304 = arith.constant 304 : index
    %2031 = memref.load %arg2[%c304] : memref<432xf32, #tpu.memory_space<smem>>
    %2032 = vector.broadcast %2031 : f32 to vector<16x128xf32>
    %2033 = arith.mulf %2032, %1932 : vector<16x128xf32>
    %2034 = arith.addf %2018, %2033 : vector<16x128xf32>
    %c340 = arith.constant 340 : index
    %2035 = memref.load %arg2[%c340] : memref<432xf32, #tpu.memory_space<smem>>
    %2036 = vector.broadcast %2035 : f32 to vector<16x128xf32>
    %2037 = arith.mulf %2036, %1932 : vector<16x128xf32>
    %2038 = arith.addf %2022, %2037 : vector<16x128xf32>
    %c376 = arith.constant 376 : index
    %2039 = memref.load %arg2[%c376] : memref<432xf32, #tpu.memory_space<smem>>
    %2040 = vector.broadcast %2039 : f32 to vector<16x128xf32>
    %2041 = arith.mulf %2040, %1932 : vector<16x128xf32>
    %2042 = arith.addf %2026, %2041 : vector<16x128xf32>
    %c412 = arith.constant 412 : index
    %2043 = memref.load %arg2[%c412] : memref<432xf32, #tpu.memory_space<smem>>
    %2044 = vector.broadcast %2043 : f32 to vector<16x128xf32>
    %2045 = arith.mulf %2044, %1932 : vector<16x128xf32>
    %2046 = arith.addf %2030, %2045 : vector<16x128xf32>
    %c313 = arith.constant 313 : index
    %2047 = memref.load %arg2[%c313] : memref<432xf32, #tpu.memory_space<smem>>
    %2048 = vector.broadcast %2047 : f32 to vector<16x128xf32>
    %2049 = arith.mulf %2048, %1935 : vector<16x128xf32>
    %2050 = arith.addf %2034, %2049 : vector<16x128xf32>
    %c349 = arith.constant 349 : index
    %2051 = memref.load %arg2[%c349] : memref<432xf32, #tpu.memory_space<smem>>
    %2052 = vector.broadcast %2051 : f32 to vector<16x128xf32>
    %2053 = arith.mulf %2052, %1935 : vector<16x128xf32>
    %2054 = arith.addf %2038, %2053 : vector<16x128xf32>
    %c385 = arith.constant 385 : index
    %2055 = memref.load %arg2[%c385] : memref<432xf32, #tpu.memory_space<smem>>
    %2056 = vector.broadcast %2055 : f32 to vector<16x128xf32>
    %2057 = arith.mulf %2056, %1935 : vector<16x128xf32>
    %2058 = arith.addf %2042, %2057 : vector<16x128xf32>
    %c421 = arith.constant 421 : index
    %2059 = memref.load %arg2[%c421] : memref<432xf32, #tpu.memory_space<smem>>
    %2060 = vector.broadcast %2059 : f32 to vector<16x128xf32>
    %2061 = arith.mulf %2060, %1935 : vector<16x128xf32>
    %2062 = arith.addf %2046, %2061 : vector<16x128xf32>
    %c322 = arith.constant 322 : index
    %2063 = memref.load %arg2[%c322] : memref<432xf32, #tpu.memory_space<smem>>
    %2064 = vector.broadcast %2063 : f32 to vector<16x128xf32>
    %2065 = arith.mulf %2064, %1938 : vector<16x128xf32>
    %2066 = arith.addf %2050, %2065 : vector<16x128xf32>
    %c358 = arith.constant 358 : index
    %2067 = memref.load %arg2[%c358] : memref<432xf32, #tpu.memory_space<smem>>
    %2068 = vector.broadcast %2067 : f32 to vector<16x128xf32>
    %2069 = arith.mulf %2068, %1938 : vector<16x128xf32>
    %2070 = arith.addf %2054, %2069 : vector<16x128xf32>
    %c394 = arith.constant 394 : index
    %2071 = memref.load %arg2[%c394] : memref<432xf32, #tpu.memory_space<smem>>
    %2072 = vector.broadcast %2071 : f32 to vector<16x128xf32>
    %2073 = arith.mulf %2072, %1938 : vector<16x128xf32>
    %2074 = arith.addf %2058, %2073 : vector<16x128xf32>
    %c430 = arith.constant 430 : index
    %2075 = memref.load %arg2[%c430] : memref<432xf32, #tpu.memory_space<smem>>
    %2076 = vector.broadcast %2075 : f32 to vector<16x128xf32>
    %2077 = arith.mulf %2076, %1938 : vector<16x128xf32>
    %2078 = arith.addf %2062, %2077 : vector<16x128xf32>
    %c127_i32_123 = arith.constant 127 : i32
    %2079 = tpu.dynamic_rotate %1929 by %c127_i32_123 dim 1 : vector<16x128xf32>, i32 -> vector<16x128xf32>
    %2080 = vector.broadcast %17 : vector<1x128xf32> to vector<16x128xf32>
    %2081 = arith.mulf %2079, %2080 : vector<16x128xf32>
    %c296 = arith.constant 296 : index
    %2082 = memref.load %arg2[%c296] : memref<432xf32, #tpu.memory_space<smem>>
    %2083 = vector.broadcast %2082 : f32 to vector<16x128xf32>
    %2084 = arith.mulf %2083, %2081 : vector<16x128xf32>
    %2085 = arith.addf %2066, %2084 : vector<16x128xf32>
    %c332 = arith.constant 332 : index
    %2086 = memref.load %arg2[%c332] : memref<432xf32, #tpu.memory_space<smem>>
    %2087 = vector.broadcast %2086 : f32 to vector<16x128xf32>
    %2088 = arith.mulf %2087, %2081 : vector<16x128xf32>
    %2089 = arith.addf %2070, %2088 : vector<16x128xf32>
    %c368 = arith.constant 368 : index
    %2090 = memref.load %arg2[%c368] : memref<432xf32, #tpu.memory_space<smem>>
    %2091 = vector.broadcast %2090 : f32 to vector<16x128xf32>
    %2092 = arith.mulf %2091, %2081 : vector<16x128xf32>
    %2093 = arith.addf %2074, %2092 : vector<16x128xf32>
    %c404 = arith.constant 404 : index
    %2094 = memref.load %arg2[%c404] : memref<432xf32, #tpu.memory_space<smem>>
    %2095 = vector.broadcast %2094 : f32 to vector<16x128xf32>
    %2096 = arith.mulf %2095, %2081 : vector<16x128xf32>
    %2097 = arith.addf %2078, %2096 : vector<16x128xf32>
    %c127_i32_124 = arith.constant 127 : i32
    %2098 = tpu.dynamic_rotate %1932 by %c127_i32_124 dim 1 : vector<16x128xf32>, i32 -> vector<16x128xf32>
    %2099 = vector.broadcast %17 : vector<1x128xf32> to vector<16x128xf32>
    %2100 = arith.mulf %2098, %2099 : vector<16x128xf32>
    %c305 = arith.constant 305 : index
    %2101 = memref.load %arg2[%c305] : memref<432xf32, #tpu.memory_space<smem>>
    %2102 = vector.broadcast %2101 : f32 to vector<16x128xf32>
    %2103 = arith.mulf %2102, %2100 : vector<16x128xf32>
    %2104 = arith.addf %2085, %2103 : vector<16x128xf32>
    %c341 = arith.constant 341 : index
    %2105 = memref.load %arg2[%c341] : memref<432xf32, #tpu.memory_space<smem>>
    %2106 = vector.broadcast %2105 : f32 to vector<16x128xf32>
    %2107 = arith.mulf %2106, %2100 : vector<16x128xf32>
    %2108 = arith.addf %2089, %2107 : vector<16x128xf32>
    %c377 = arith.constant 377 : index
    %2109 = memref.load %arg2[%c377] : memref<432xf32, #tpu.memory_space<smem>>
    %2110 = vector.broadcast %2109 : f32 to vector<16x128xf32>
    %2111 = arith.mulf %2110, %2100 : vector<16x128xf32>
    %2112 = arith.addf %2093, %2111 : vector<16x128xf32>
    %c413 = arith.constant 413 : index
    %2113 = memref.load %arg2[%c413] : memref<432xf32, #tpu.memory_space<smem>>
    %2114 = vector.broadcast %2113 : f32 to vector<16x128xf32>
    %2115 = arith.mulf %2114, %2100 : vector<16x128xf32>
    %2116 = arith.addf %2097, %2115 : vector<16x128xf32>
    %c127_i32_125 = arith.constant 127 : i32
    %2117 = tpu.dynamic_rotate %1935 by %c127_i32_125 dim 1 : vector<16x128xf32>, i32 -> vector<16x128xf32>
    %2118 = vector.broadcast %17 : vector<1x128xf32> to vector<16x128xf32>
    %2119 = arith.mulf %2117, %2118 : vector<16x128xf32>
    %c314 = arith.constant 314 : index
    %2120 = memref.load %arg2[%c314] : memref<432xf32, #tpu.memory_space<smem>>
    %2121 = vector.broadcast %2120 : f32 to vector<16x128xf32>
    %2122 = arith.mulf %2121, %2119 : vector<16x128xf32>
    %2123 = arith.addf %2104, %2122 : vector<16x128xf32>
    %c350 = arith.constant 350 : index
    %2124 = memref.load %arg2[%c350] : memref<432xf32, #tpu.memory_space<smem>>
    %2125 = vector.broadcast %2124 : f32 to vector<16x128xf32>
    %2126 = arith.mulf %2125, %2119 : vector<16x128xf32>
    %2127 = arith.addf %2108, %2126 : vector<16x128xf32>
    %c386 = arith.constant 386 : index
    %2128 = memref.load %arg2[%c386] : memref<432xf32, #tpu.memory_space<smem>>
    %2129 = vector.broadcast %2128 : f32 to vector<16x128xf32>
    %2130 = arith.mulf %2129, %2119 : vector<16x128xf32>
    %2131 = arith.addf %2112, %2130 : vector<16x128xf32>
    %c422 = arith.constant 422 : index
    %2132 = memref.load %arg2[%c422] : memref<432xf32, #tpu.memory_space<smem>>
    %2133 = vector.broadcast %2132 : f32 to vector<16x128xf32>
    %2134 = arith.mulf %2133, %2119 : vector<16x128xf32>
    %2135 = arith.addf %2116, %2134 : vector<16x128xf32>
    %c127_i32_126 = arith.constant 127 : i32
    %2136 = tpu.dynamic_rotate %1938 by %c127_i32_126 dim 1 : vector<16x128xf32>, i32 -> vector<16x128xf32>
    %2137 = vector.broadcast %17 : vector<1x128xf32> to vector<16x128xf32>
    %2138 = arith.mulf %2136, %2137 : vector<16x128xf32>
    %c323 = arith.constant 323 : index
    %2139 = memref.load %arg2[%c323] : memref<432xf32, #tpu.memory_space<smem>>
    %2140 = vector.broadcast %2139 : f32 to vector<16x128xf32>
    %2141 = arith.mulf %2140, %2138 : vector<16x128xf32>
    %2142 = arith.addf %2123, %2141 : vector<16x128xf32>
    %c359 = arith.constant 359 : index
    %2143 = memref.load %arg2[%c359] : memref<432xf32, #tpu.memory_space<smem>>
    %2144 = vector.broadcast %2143 : f32 to vector<16x128xf32>
    %2145 = arith.mulf %2144, %2138 : vector<16x128xf32>
    %2146 = arith.addf %2127, %2145 : vector<16x128xf32>
    %c395 = arith.constant 395 : index
    %2147 = memref.load %arg2[%c395] : memref<432xf32, #tpu.memory_space<smem>>
    %2148 = vector.broadcast %2147 : f32 to vector<16x128xf32>
    %2149 = arith.mulf %2148, %2138 : vector<16x128xf32>
    %2150 = arith.addf %2131, %2149 : vector<16x128xf32>
    %c431 = arith.constant 431 : index
    %2151 = memref.load %arg2[%c431] : memref<432xf32, #tpu.memory_space<smem>>
    %2152 = vector.broadcast %2151 : f32 to vector<16x128xf32>
    %2153 = arith.mulf %2152, %2138 : vector<16x128xf32>
    %2154 = arith.addf %2135, %2153 : vector<16x128xf32>
    %c2_127 = arith.constant 2 : index
    %2155 = memref.load %arg3[%c2_127] : memref<3xf32, #tpu.memory_space<smem>>
    %c2_128 = arith.constant 2 : index
    %2156 = memref.load %arg4[%c2_128] : memref<3xf32, #tpu.memory_space<smem>>
    %2157 = vector.broadcast %2155 : f32 to vector<16x128xf32>
    %2158 = arith.mulf %19, %2157 : vector<16x128xf32>
    %2159 = vector.broadcast %2156 : f32 to vector<16x128xf32>
    %2160 = arith.mulf %2142, %2159 : vector<16x128xf32>
    %2161 = arith.subf %2158, %2160 : vector<16x128xf32>
    %2162 = vector.broadcast %2155 : f32 to vector<16x128xf32>
    %2163 = arith.mulf %21, %2162 : vector<16x128xf32>
    %2164 = vector.broadcast %2156 : f32 to vector<16x128xf32>
    %2165 = arith.mulf %2146, %2164 : vector<16x128xf32>
    %2166 = arith.subf %2163, %2165 : vector<16x128xf32>
    %2167 = vector.broadcast %2155 : f32 to vector<16x128xf32>
    %2168 = arith.mulf %23, %2167 : vector<16x128xf32>
    %2169 = vector.broadcast %2156 : f32 to vector<16x128xf32>
    %2170 = arith.mulf %2150, %2169 : vector<16x128xf32>
    %2171 = arith.subf %2168, %2170 : vector<16x128xf32>
    %2172 = vector.broadcast %2155 : f32 to vector<16x128xf32>
    %2173 = arith.mulf %25, %2172 : vector<16x128xf32>
    %2174 = vector.broadcast %2156 : f32 to vector<16x128xf32>
    %2175 = arith.mulf %2154, %2174 : vector<16x128xf32>
    %2176 = arith.subf %2173, %2175 : vector<16x128xf32>
    %c0_129 = arith.constant 0 : index
    %c0_130 = arith.constant 0 : index
    %c0_131 = arith.constant 0 : index
    %c0_132 = arith.constant 0 : index
    %2177 = vector.load %arg5[%c0_129, %c0_130, %c0_131, %c0_132] : memref<1x4x16x128xf32, #tpu.memory_space<vmem>>, vector<1x1x16x128xf32>
    %2178 = vector.shape_cast %2177 : vector<1x1x16x128xf32> to vector<16x128xf32>
    %2179 = vector.shape_cast %2161 : vector<16x128xf32> to vector<1x1x16x128xf32>
    tpu.vector_store %arg5[%c0_129, %c0_130, %c0_131, %c0_132], %2179 {strides = array<i32>} : memref<1x4x16x128xf32, #tpu.memory_space<vmem>>, vector<1x1x16x128xf32>,
    %c0_133 = arith.constant 0 : index
    %c1_134 = arith.constant 1 : index
    %c0_135 = arith.constant 0 : index
    %c0_136 = arith.constant 0 : index
    %2180 = vector.load %arg5[%c0_133, %c1_134, %c0_135, %c0_136] : memref<1x4x16x128xf32, #tpu.memory_space<vmem>>, vector<1x1x16x128xf32>
    %2181 = vector.shape_cast %2180 : vector<1x1x16x128xf32> to vector<16x128xf32>
    %2182 = vector.shape_cast %2166 : vector<16x128xf32> to vector<1x1x16x128xf32>
    tpu.vector_store %arg5[%c0_133, %c1_134, %c0_135, %c0_136], %2182 {strides = array<i32>} : memref<1x4x16x128xf32, #tpu.memory_space<vmem>>, vector<1x1x16x128xf32>,
    %c0_137 = arith.constant 0 : index
    %c2_138 = arith.constant 2 : index
    %c0_139 = arith.constant 0 : index
    %c0_140 = arith.constant 0 : index
    %2183 = vector.load %arg5[%c0_137, %c2_138, %c0_139, %c0_140] : memref<1x4x16x128xf32, #tpu.memory_space<vmem>>, vector<1x1x16x128xf32>
    %2184 = vector.shape_cast %2183 : vector<1x1x16x128xf32> to vector<16x128xf32>
    %2185 = vector.shape_cast %2171 : vector<16x128xf32> to vector<1x1x16x128xf32>
    tpu.vector_store %arg5[%c0_137, %c2_138, %c0_139, %c0_140], %2185 {strides = array<i32>} : memref<1x4x16x128xf32, #tpu.memory_space<vmem>>, vector<1x1x16x128xf32>,
    %c0_141 = arith.constant 0 : index
    %c3_142 = arith.constant 3 : index
    %c0_143 = arith.constant 0 : index
    %c0_144 = arith.constant 0 : index
    %2186 = vector.load %arg5[%c0_141, %c3_142, %c0_143, %c0_144] : memref<1x4x16x128xf32, #tpu.memory_space<vmem>>, vector<1x1x16x128xf32>
    %2187 = vector.shape_cast %2186 : vector<1x1x16x128xf32> to vector<16x128xf32>
    %2188 = vector.shape_cast %2176 : vector<16x128xf32> to vector<1x1x16x128xf32>
    tpu.vector_store %arg5[%c0_141, %c3_142, %c0_143, %c0_144], %2188 {strides = array<i32>} : memref<1x4x16x128xf32, #tpu.memory_space<vmem>>, vector<1x1x16x128xf32>,
    return
  }
  func.func @transform_0(%arg0: i32) -> (i32, i32, i32, i32) {
    %c0_i32 = arith.constant 0 : i32
    %c0_i32_0 = arith.constant 0 : i32
    %c0_i32_1 = arith.constant 0 : i32
    %c0_i32_2 = arith.constant 0 : i32
    return %arg0, %c0_i32, %c0_i32_0, %c0_i32_1 : i32, i32, i32, i32
  }
  func.func @transform_1(%arg0: i32) -> i32 {
    %c0_i32 = arith.constant 0 : i32
    %c0_i32_0 = arith.constant 0 : i32
    return %c0_i32 : i32
  }
  func.func @transform_2(%arg0: i32) -> i32 {
    %c0_i32 = arith.constant 0 : i32
    %c0_i32_0 = arith.constant 0 : i32
    return %c0_i32 : i32
  }
  func.func @transform_3(%arg0: i32) -> i32 {
    %c0_i32 = arith.constant 0 : i32
    %c0_i32_0 = arith.constant 0 : i32
    return %c0_i32 : i32
  }
  func.func @transform_4(%arg0: i32) -> (i32, i32, i32, i32) {
    %c0_i32 = arith.constant 0 : i32
    %c0_i32_0 = arith.constant 0 : i32
    %c0_i32_1 = arith.constant 0 : i32
    %c0_i32_2 = arith.constant 0 : i32
    return %arg0, %c0_i32, %c0_i32_0, %c0_i32_1 : i32, i32, i32, i32
  }
}

</mosaic_0001>

<bundles_post_ra>
// kernel: tpu_custom_call.1
= control target key start
LH: loop header
LB: loop body
LE: loop exit
PB: predicated region body
PF: predicated region fallthrough
CT: control target
= control target key end

     0   :  { %s10036_s0 = inlined_call_operand.hbm [shape: f32[2,4,16,128], index: 0, kind: input, shape index: {}]   ;;  %s10037_s1 = inlined_call_operand.hbm [shape: f32[432], index: 1, kind: input, shape index: {}]   ;;  %s10038_s2 = inlined_call_operand.vmem [shape: f32[3], index: 2, kind: input, shape index: {}]   ;;  %s10039_s3 = inlined_call_operand.vmem [shape: f32[3], index: 3, kind: input, shape index: {}]   ;;  %s10040_s4 = inlined_call_operand.hbm [shape: f32[2,4,16,128], index: 4, kind: output, shape index: {}]  }
   0x1   :  { %10455 = sst [smem:[#allocation183_spill]] %s10036_s0 }
   0x2   :  { %10456 = sst [smem:[#allocation184_spill]] %s10037_s1 }
   0x3   :  { %10457 = sst [smem:[#allocation185_spill]] %s10038_s2 }
   0x4   :  { %10458 = sst [smem:[#allocation186_spill]] %s10039_s3 }
   0x5   :  { %10459 = sst [smem:[#allocation187_spill]] %s10040_s4 }
   0x6   :  { %9 = vsyncpa [#allocation3], 0 }
   0x7   :  { %11 = vsyncpa [#allocation3 + $0x1], 0 }
   0x8   :  { %12 = vsyncpa [#allocation5], 0 }
   0x9   :  { %13 = vsyncpa [#allocation6], 0 }
   0xa   :  { %14 = vsyncpa [#allocation10], 0 }
   0xb   :  { %15 = vsyncpa [#allocation4], 0 }
   0xc   :  { %17 = vsyncpa [#allocation4 + $0x1], 0  ;;  %s4649_s15 = smov 0   ;;  %s4651_s16 = smov 0  }
   0xd   :  { %s4653_s17 = smov 0   ;;  %s4655_s18 = smov 0  }
   0xe LB: > { %10460 = sst [smem:[#allocation17_spill]] %s4600_s15  ;;  %s4670_s19 = sadd.s32 4294967295, %s4612_s18   ;;  %s4612_s18 = sphi %s4655_s18, %s11878_s18   ;;  %s4608_s17 = sphi %s4653_s17, %s11881_s17   ;;  %s4604_s16 = sphi %s4651_s16, %s11880_s16   ;;  %s4600_s15 = sphi %s4649_s15, %s11879_s15  }
   0xf   : > { %10461 = sst [smem:[#allocation18_spill]] %s4604_s16  ;;  %s3818_s20 = sadd.s32 4294967294, %s4612_s18  }
  0x10   : > { %10462 = sst [smem:[#allocation19_spill]] %s4608_s17  ;;  %p43_p0 = scmp.ne.s32.totalorder %s4604_s16, %s4600_s15 }
  0x11   : > { %10463 = sst [smem:[#allocation20_spill]] %s4612_s18  ;;  %p44_p1 = scmp.eq.s32.totalorder %s4670_s19, 0 }
  0x12   : > { %10464 = sst [smem:[#allocation21_spill]] %s4670_s19  ;;  %p130_p2 = scmp.eq.s32.totalorder %s4670_s19, 1 }
  0x13   : > { %p136_p3 = scmp.eq.s32.totalorder %s3818_s20, 1  ;;  %p4679_p4 = por %p44_p1, %p43_p0 }
  0x14   : > { %p3819_p5 = scmp.ge.s32.totalorder %s4612_s18, 1  ;;  %p143_p7 = scmp.lt.s32.totalorder %s4612_s18, 3 }
  0x15   : > { %p4684_p6 = por %p136_p3, %p43_p0  ;;  %s10468_s1 = sld [smem:[#allocation184_spill]] }
  0x16   : > { %p4692_p8 = pnand %p3819_p5, %p143_p7  ;;  %s10470_s2 = sld [smem:[#allocation185_spill]] }
  0x17   : > { %s10466_s22 = scalar_select %p4684_p6, 1, 0 }
  0x18   : > { %p4307_p10 = pneg %p4692_p8  ;;  %s10471_s3 = sld [smem:[#allocation186_spill]] }
  0x19   : > { %10467 = sst [smem:[#allocation22_spill]] %s10466_s22  ;;  %s4614_s7 = smov [#allocation7]  }
  0x1a   : > { %p4308_p11 = pnand %p4307_p10, %p44_p1  ;;  %s4615_s8 = smov [#allocation8]  }
  0x1b   : > { %s155_s25 = sshll.u32 %s10468_s1, 4  ;;  %s4616_s9 = smov [#allocation9]   ;;  %s156_s25 = int_to_ptr.hbm [resolvable:$true] %s155_s25 }
  0x1c   : > { %s165_s29 = sshll.u32 %s10470_s2, 4  ;;  %s4708_s10 = sadd.s32 1, %s4612_s18   ;;  %s166_s29 = int_to_ptr.vmem [resolvable:$true] %s165_s29 }
  0x1d   : > { %4310 = dma.hbm_to_smem (!%p4308_p11), %s156_s25, 64, %s4614_s7, [#allocation5]  }
  0x1e   : > { %s175_s6 = sshll.u32 %s10471_s3, 4  ;;  %10472 = sst [smem:[#allocation23_spill]] %s4708_s10  ;;  %s176_s6 = int_to_ptr.vmem [resolvable:$true] %s175_s6 }
  0x1f   : > { %4313 = dma.vmem_to_smem (!%p4308_p11), %s166_s29, 16, %s4615_s8, [#allocation6]  }
  0x20   : > { %4316 = dma.vmem_to_smem (!%p4308_p11), %s176_s6, 16, %s4616_s9, [#allocation10]  }
  0x21   : > { %s27_s11 = ssub.s32 %s4612_s18, %s4708_s10  ;;  %s30_s12 = sadd.s32 1, %s4608_s17 }
  0x22   : > { %p28_p12 = scmp.eq.s32.totalorder %s27_s11, 0  ;;  %p37_p13 = scmp.ne.s32.totalorder %s4608_s17, %s4604_s16 }
  0x23   : > { %p38_p0 = scmp.eq.s32.totalorder %s4612_s18, 0  ;;  %p4328_p3 = scmp.lt.s32.totalorder %s4612_s18, 2 }
  0x24   : > { %s4718_s13 = scalar_select %p28_p12, %s4608_s17, %s30_s12  }
  0x25   : > { %p39_p5 = por %p38_p0, %p37_p13  ;;  %p4722_p7 = por %p130_p2, %p37_p13 }
  0x26   : > { %10473 = sst [smem:[#allocation24_spill]] %s4718_s13  ;;  %s186_s20 = sand.u32 1, %s4608_s17  }
  0x27   : > { %s10474_s14 = scalar_select %p4722_p7, 1, 0 }
  0x28   : > { %s4289_s23 = sshll.u32 %s4612_s18, 6  ;;  %s3824_s24 = sshll.u32 %s186_s20, 6 }
  0x29   : > { %10475 = sst [smem:[#allocation25_spill]] %s10474_s14  ;;  %s190_s30 = scalar_lea.vmem [#allocation2], %s3824_s24 }
  0x2a   : > { %s10476_s0 = sld [smem:[#allocation183_spill]]  ;;  %s198_s5 = sshll.u32 %s190_s30, 4  ;;  %s199_s5 = int_to_ptr.vmem [resolvable:$true] %s198_s5 }
  0x2b   : > { %p4733_p10 = pnand %p4328_p3, %p39_p5  ;;  %s187_s7 = scalar_lea.sflag [#allocation3], %s186_s20 }
  0x2d   : > { %p4508_p11 = pneg %p4733_p10 }
  0x30   : > { %s195_s28 = scalar_lea.hbm %s10476_s0, %s4289_s23  ;;  %s4511_s23 = scalar_lea.hbm %s10476_s0, 128 }
  0x31   : > { %s196_s29 = sshll.u32 %s195_s28, 4  ;;  %s197_s29 = int_to_ptr.hbm [resolvable:$true] %s196_s29 }
  0x32   : > { %s4504_s8 = sshra.s32 %s197_s29, 4  ;;  %s4505_s8 = int_to_ptr.hbm [resolvable:$true] %s4504_s8 }
  0x33   : > { %s4506_s9 = scalar_lea.hbm %s4505_s8, 64  ;;  %p4512_p0 = scmp.lt.s32.totalorder %s4505_s8, %s10476_s0 }
  0x34   : > { %p4507_p2 = scmp.ne.s32.totalorder %s4505_s8, %s4506_s9  ;;  %p4513_p3 = scmp.lt.s32.totalorder %s4511_s23, %s4506_s9 }
  0x36   : > { %p4509_p12 = pnand %p4508_p11, %p4507_p2  ;;  %p4514_p5 = por %p4513_p3, %p4512_p0 }
  0x38   : > { %p4510_p13 = pneg %p4509_p12 }
  0x3a   : > { %p4515_p9 = pnand %p4514_p5, %p4510_p13 }
  0x3c   : > { %4518 = shalt.err (!%p4515_p9)
}
  0x3d   : > { %s4617_s20 = smov 128   ;;  %s4618_s27 = smov 8  }
  0x3e   : > { %4320 = dma.hbm_to_vmem [thread:$0]  (!%p4733_p10), %s197_s29, 1024, %s199_s5, %s187_s7, %s4617_s20, %s4617_s20, %s4618_s27  }
  0x3f   : > { %210 = sbr.rel (%p4692_p8) target bundleno = 1225 (0x4c9), region = 36 }
  0x44   : > { %s4750_s28 = sand.u32 1, %s4604_s16  }
  0x45   : > { %10478 = sst [smem:[#allocation26_spill]] %s4750_s28  ;;  %s10041_s30 = sshll.u32 %s4750_s28, 6 }
  0x46   : > { %s213_s8 = scalar_lea.sflag [#allocation3], %s4750_s28  ;;  %s4756_s9 = scalar_lea.vmem [#allocation2], %s10041_s30 }
  0x47   : > { %10479 = sst [smem:[#allocation27_spill]] %s4756_s9 }
  0x48   : > { %4579 = dma.done.wait (%p4679_p4), %s213_s8, 1024  }
  0x49   : > { %4581 = vsyncadd (%p4679_p4), %s213_s8, 4294966272 }
  0x4a   : > { %4583 = dma.done.wait (%p44_p1), [#allocation5], 64  }
  0x4b   : > { %4585 = vsyncadd (%p44_p1), [#allocation5], 4294967232 }
  0x4c   : > { %4587 = dma.done.wait (%p44_p1), [#allocation6], 16  }
  0x4d   : > { %4589 = vsyncadd (%p44_p1), [#allocation6], 4294967280 }
  0x4e   : > { %4591 = dma.done.wait (%p44_p1), [#allocation10], 16  }
  0x4f   : > { %4593 = vsyncadd (%p44_p1), [#allocation10], 4294967280 }
  0x50   : > { %237 = sfence }
  0x51   : > { %v281_v0 = vld [vmem:[%s4756_s9] sm:$0xff]  ;;  %v282_v1 = vld [vmem:[%s4756_s9 + $0x8] sm:$0xff]  ;;  %v3837_v2 = vld [vmem:[%s4756_s9 + $0x10] sm:$0xff]  ;;  %v258_v44 = vlaneseq  ;;  %s10042_s21 = smov 1   ;;  %s10044_s26 = smov 127  }
  0x52   : > { %v3838_v3 = vld [vmem:[%s4756_s9 + $0x18] sm:$0xff]  ;;  %v3839_v4 = vld [vmem:[%s4756_s9 + $0x20] sm:$0xff]  ;;  %v3840_v5 = vld [vmem:[%s4756_s9 + $0x28] sm:$0xff]  ;;  %v292_v6 = vmax.f32 %v281_v0, %v3837_v2  ;;  %s4898_s29 = sld [smem:[#allocation7 + $0x9]]  ;;  %s10501_s2 = smov 127  }
  0x53   : > { %v3841_v7 = vld [vmem:[%s4756_s9 + $0x30] sm:$0xff]  ;;  %v293_v8 = vmax.f32 %v282_v1, %v3838_v3  ;;  %v3842_v9 = vld [vmem:[%s4756_s9 + $0x38] sm:$0xff]  ;;  %v4783_v45 = vshrl.u32 %v258_v44, 7  ;;  %s4904_s5 = sld [smem:[#allocation7 + $0x2d]]  ;;  %s10504_s13 = smov 1  }
  0x54   : > { %v294_v10 = vmax.f32 %v292_v6, %v3839_v4  ;;  %s4908_s6 = sld [smem:[#allocation7 + $0x51]] }
  0x55   : > { %v295_v11 = vmax.f32 %v293_v8, %v3840_v5  ;;  %10480 = vst [vmem:[#allocation28_spill] sm:$0xff] %v4783_v45  ;;  %vm340_vm0 = vcmp.lt.s32.totalorder %v4783_v45, 1  ;;  %vm263_vm1 = vcmp.ge.s32.totalorder %v4783_v45, 1  ;;  %s4910_s7 = sld [smem:[#allocation7 + $0x75]]  ;;  %vm1037_vm2 = vcmp.lt.s32.totalorder %v4783_v45, 7 }
  0x56   : > { %v296_v12 = vmax.f32 %v294_v10, %v3841_v7  ;;  %s4912_s11 = sld [smem:[#allocation7]] }
  0x57   : > { %v297_v13 = vmax.f32 %v295_v11, %v3842_v9  ;;  %s4914_s12 = sld [smem:[#allocation7 + $0x24]] }
  0x58   : > { %v298_v14 = vsub.f32 %v281_v0, %v296_v12  ;;  %v304_v15 = vsub.f32 %v3837_v2, %v296_v12  ;;  %v310_v16 = vsub.f32 %v3839_v4, %v296_v12  ;;  %v316_v22 = vsub.f32 %v3841_v7, %v296_v12  ;;  %s4916_s23 = sld [smem:[#allocation7 + $0x48]] }
  0x59   : > { %v299_v17 = vsub.f32 %v282_v1, %v297_v13  ;;  %v305_v18 = vsub.f32 %v3838_v3, %v297_v13  ;;  %v311_v19 = vsub.f32 %v3840_v5, %v297_v13  ;;  %v317_v25 = vsub.f32 %v3842_v9, %v297_v13  ;;  %s4918_s24 = sld [smem:[#allocation7 + $0x6c]] }
  0x5a   : > { %v300_v20 = vmul.f32 1.442695, %v298_v14  ;;  %v306_v21 = vmul.f32 1.442695, %v304_v15  ;;  %v312_v26 = vmul.f32 1.442695, %v310_v16 }
  0x5b   : > { %v302_v23 = vmul.f32 1.442695, %v299_v17  ;;  %v308_v24 = vmul.f32 1.442695, %v305_v18  ;;  %v314_v27 = vmul.f32 1.442695, %v311_v19 }
  0x5c   : > { %4375 = vpow2.f32 %v300_v20  ;;  %v318_v28 = vmul.f32 1.442695, %v316_v22  ;;  %v320_v29 = vmul.f32 1.442695, %v317_v25  ;;  %v4621_v5 = vmov 0.0   ;;  %10490 = sst [smem:[#allocation38_spill]] %s4908_s6 }
  0x5d   : > { %4377 = vpow2.f32 %v302_v23  ;;  %v4840_v6 = vsel %vm263_vm1, 1.0, %v4621_v5  ;;  %10491 = sst [smem:[#allocation39_spill]] %s4910_s7  ;;  %v260_v14 = vadd.s32 8, %v4783_v45 }
  0x5e   : > { %4379 = vpow2.f32 %v306_v21  ;;  %10489 = vst [vmem:[#allocation37_spill] sm:$0xff] %v4840_v6  ;;  %10492 = sst [smem:[#allocation40_spill]] %s4912_s11 }
  0x5f   : > { %4381 = vpow2.f32 %v308_v24  ;;  %10493 = sst [smem:[#allocation41_spill]] %s4914_s12  ;;  %vm270_vm3 = vcmp.le.s32.totalorder %v260_v14, 14 }
  0x60   : > { %4383 = vpow2.f32 %v312_v26  ;;  %10494 = sst [smem:[#allocation42_spill]] %s4916_s23  ;;  %v4961_v20 = vsel %vm270_vm3, 1.0, %v4621_v5 }
  0x61   : > { %4385 = vpow2.f32 %v314_v27  ;;  %10495 = sst [smem:[#allocation43_spill]] %s4918_s24  ;;  %10503 = vst [vmem:[#allocation50_spill] sm:$0xff] %v4961_v20 }
  0x62   : > { %v4376_v30 = vpop.eup %4375  ;;  %4387 = vpow2.f32 %v318_v28  ;;  %s4920_s25 = sld [smem:[#allocation7 + $0x12]]  ;;  %v262_v28 = vand.u32 127, %v258_v44 }
  0x63   : > { %v4378_v31 = vpop.eup %4377  ;;  %4389 = vpow2.f32 %v320_v29  ;;  %s4926_s20 = sld [smem:[#allocation7 + $0x36]] }
  0x64   : > { %v4380_v32 = vpop.eup %4379  ;;  %s4930_s27 = sld [smem:[#allocation7 + $0x5a]]  ;;  %vm275_vm4 = vcmp.ge.s32.totalorder %v262_v28, 1  ;;  %vm278_vm5 = vcmp.le.s32.totalorder %v262_v28, 14 }
  0x65   : > { %v4382_v33 = vpop.eup %4381  ;;  %v322_v34 = vadd.f32 %v4380_v32, %v4376_v30  ;;  %s4933_s8 = sld [smem:[#allocation7 + $0x7e]] }
  0x66   : > { %v4384_v35 = vpop.eup %4383  ;;  %v323_v36 = vadd.f32 %v4382_v33, %v4378_v31  ;;  %s4935_s30 = sld [smem:[#allocation7 + $0x1b]] }
  0x67   : > { %v4386_v37 = vpop.eup %4385  ;;  %v324_v38 = vadd.f32 %v4384_v35, %v322_v34  ;;  %s4941_s0 = sld [smem:[#allocation7 + $0x63]] }
  0x68   : > { %v4388_v39 = vpop.eup %4387  ;;  %v325_v40 = vadd.f32 %v4386_v37, %v323_v36  ;;  %s4946_s1 = sld [smem:[#allocation7 + $0x1]]  ;;  %v5032_v36 = vsel %vm275_vm4, 1.0, %v4621_v5 }
  0x69   : > { %v4390_v41 = vpop.eup %4389  ;;  %v326_v42 = vadd.f32 %v4388_v39, %v324_v38  ;;  %s4956_s3 = sld [smem:[#allocation7 + $0x25]] }
  0x6a   : > { %v327_v43 = vadd.f32 %v4390_v41, %v325_v40  ;;  %s4967_s17 = sld [smem:[#allocation7 + $0x49]] }
  0x6b   : > { %4391 = vrcp.f32 %v326_v42  ;;  %s4969_s16 = sld [smem:[#allocation7 + $0x6d]] }
  0x6c   : > { %4393 = vrcp.f32 %v327_v43  ;;  %10496 = sst [smem:[#allocation44_spill]] %s4935_s30 }
  0x6d   : > { %10498 = sst [smem:[#allocation46_spill]] %s4941_s0  ;;  %s10527_s0 = smov 127  }
  0x6e   : > { %10500 = sst [smem:[#allocation48_spill]] %s4946_s1 }
  0x6f   : > { %s4971_s10 = sld [smem:[#allocation7 + $0xa]] }
  0x70   : > { %s4978_s18 = sld [smem:[#allocation7 + $0x2e]]  ;;  %v10096_v14 = vstv %s4967_s17 }
  0x71   : > { %v4392_v46 = vpop.eup %4391  ;;  %s4986_s22 = sld [smem:[#allocation7 + $0x52]] }
  0x72   : > { %v4394_v47 = vpop.eup %4393  ;;  %v4785_v48 = vmul.f32 %v4392_v46, %v4380_v32  ;;  %v4787_v49 = vmul.f32 %v4392_v46, %v4376_v30  ;;  %v4789_v50 = vmul.f32 %v4392_v46, %v4384_v35  ;;  %v4800_v56 = vmul.f32 %v4392_v46, %v4388_v39  ;;  %s4988_s15 = sld [smem:[#allocation7 + $0x76]] }
  0x73   : > { %v4791_v51 = vmul.f32 %v4394_v47, %v4382_v33  ;;  %v4794_v52 = vmul.f32 %v4394_v47, %v4378_v31  ;;  %v4796_v53 = vmul.f32 %v4394_v47, %v4386_v37  ;;  %v4805_v60 = vmul.f32 %v4394_v47, %v4390_v41  ;;  %s4993_s14 = sld [smem:[#allocation7 + $0x13]] }
  0x74   : > { %10481 = vst [vmem:[#allocation29_spill] sm:$0xff] %v4785_v48  ;;  %v345_v54 = vrot.slane %v4785_v48, 7  ;;  %v338_v55 = vrot.slane %v4787_v49, 7  ;;  %v351_v57 = vrot.slane %v4789_v50, 7  ;;  %v357_v1 = vrot.slane %v4800_v56, 7  ;;  %s4999_s4 = sld [smem:[#allocation7 + $0x37]] }
  0x75   : > { %10482 = vst [vmem:[#allocation30_spill] sm:$0xff] %v4787_v49  ;;  %v346_v58 = vrot.slane %v4791_v51, 7  ;;  %v339_v59 = vrot.slane %v4794_v52, 7  ;;  %v352_v61 = vrot.slane %v4796_v53, 7  ;;  %v358_v2 = vrot.slane %v4805_v60, 7  ;;  %s5006_s28 = sld [smem:[#allocation7 + $0x5b]] }
  0x76   : > { %10483 = vst [vmem:[#allocation31_spill] sm:$0xff] %v4789_v50  ;;  %v1035_v15 = vrot.slane %v4787_v49, 1  ;;  %v1036_v16 = vrot.slane %v4794_v52, 1  ;;  %v1042_v18 = vrot.slane %v4785_v48, 1  ;;  %v1043_v19 = vrot.slane %v4791_v51, 1  ;;  %s5010_s19 = sld [smem:[#allocation7 + $0x7f]] }
  0x77   : > { %10484 = vst [vmem:[#allocation32_spill] sm:$0xff] %v4791_v51  ;;  %v4810_v62 = vsel %vm340_vm0, %v345_v54, %v346_v58  ;;  %v4814_v63 = vsel %vm340_vm0, %v338_v55, %v339_v59  ;;  %v4822_v0 = vsel %vm340_vm0, %v351_v57, %v352_v61  ;;  %v4830_v3 = vsel %vm340_vm0, %v357_v1, %v358_v2  ;;  %s5012_s9 = sld [smem:[#allocation7 + $0x1c]] }
  0x78   : > { %10485 = vst [vmem:[#allocation33_spill] sm:$0xff] %v4794_v52  ;;  %395 = vrot.lane.b32.xlu1 %v4810_v62, %s10042_s21  ;;  %365 = vrot.lane.b32.xlu0 %v4814_v63, %s10042_s21  ;;  %v342_v4 = vsel %vm340_vm0, %v339_v59, %v338_v55  ;;  %v354_v7 = vsel %vm340_vm0, %v352_v61, %v351_v57  ;;  %v1048_v25 = vrot.slane %v4789_v50, 1  ;;  %v1049_v26 = vrot.slane %v4796_v53, 1  ;;  %s5067_s6 = sld [smem:[#allocation7 + $0x77]] }
  0x79   : > { %10486 = vst [vmem:[#allocation34_spill] sm:$0xff] %v4796_v53  ;;  %425 = vrot.lane.b32.xlu2 %v4822_v0, %s10042_s21  ;;  %v4847_v8 = vmul.f32 %v4840_v6, %v342_v4  ;;  %v4850_v9 = vmul.f32 %v4840_v6, %v354_v7  ;;  %v348_v10 = vsel %vm340_vm0, %v346_v58, %v345_v54  ;;  %10508 = sst [smem:[#allocation54_spill]] %s4993_s14  ;;  %v1054_v30 = vrot.slane %v4800_v56, 1 }
  0x7a   : > { %10487 = vst [vmem:[#allocation35_spill] sm:$0xff] %v4800_v56  ;;  %v360_v11 = vsel %vm340_vm0, %v358_v2, %v357_v1  ;;  %v4863_v12 = vmul.f32 %v4840_v6, %v348_v10  ;;  %v4954_v17 = vsel %vm1037_vm2, %v1035_v15, %v1036_v16  ;;  %v1039_v21 = vsel %vm1037_vm2, %v1036_v16, %v1035_v15  ;;  %10509 = sst [smem:[#allocation55_spill]] %s4999_s4 }
  0x7b   : > { %10488 = vst [vmem:[#allocation36_spill] sm:$0xff] %v4805_v60  ;;  %v4866_v13 = vmul.f32 %v4840_v6, %v360_v11  ;;  %v1045_v22 = vsel %vm1037_vm2, %v1043_v19, %v1042_v18  ;;  %v4976_v23 = vmul.f32 %v4961_v20, %v1039_v21  ;;  %v4982_v24 = vsel %vm1037_vm2, %v1042_v18, %v1043_v19  ;;  %10510 = sst [smem:[#allocation56_spill]] %s5006_s28 }
  0x7c   : > { %10502 = vst [vmem:[#allocation49_spill] sm:$0xff] %v4954_v17  ;;  %v4991_v27 = vmul.f32 %v4961_v20, %v1045_v22  ;;  %v1051_v29 = vsel %vm1037_vm2, %v1049_v26, %v1048_v25  ;;  %v1055_v31 = vrot.slane %v4805_v60, 1  ;;  %10511 = sst [smem:[#allocation57_spill]] %s5010_s19  ;;  %v5021_v34 = vsel %vm1037_vm2, %v1048_v25, %v1049_v26 }
  0x7d   : > { %10505 = vst [vmem:[#allocation51_spill] sm:$0xff] %v4976_v23  ;;  %10512 = sst [smem:[#allocation58_spill]] %s5012_s9  ;;  %v5015_v33 = vmul.f32 %v4961_v20, %v1051_v29  ;;  %v5035_v37 = vsel %vm278_vm5, 1.0, %v4621_v5  ;;  %v430_v55 = vstv %s4920_s25  ;;  %v436_v57 = vstv %s4926_s20 }
  0x7e   : > { %10506 = vst [vmem:[#allocation52_spill] sm:$0xff] %v4982_v24  ;;  %s5017_s4 = sld [smem:[#allocation7 + $0x40]]  ;;  %v1057_v35 = vsel %vm1037_vm2, %v1055_v31, %v1054_v30  ;;  %v5043_v38 = vsel %vm1037_vm2, %v1054_v30, %v1055_v31  ;;  %v442_v58 = vstv %s4930_s27  ;;  %v448_v61 = vstv %s4933_s8 }
  0x7f   : > { %10507 = vst [vmem:[#allocation53_spill] sm:$0xff] %v4991_v27  ;;  %s5023_s28 = sld [smem:[#allocation7 + $0x2]]  ;;  %v5048_v39 = vmul.f32 %v4961_v20, %v1057_v35  ;;  %v10099_v10 = vstv %s4946_s1  ;;  %v10097_v11 = vstv %s4956_s3  ;;  %v10098_v15 = vstv %s4969_s16 }
  0x80   : > { %455 = vrot.lane.b32.xlu1 %v4830_v3, %s10042_s21  ;;  %581 = vrot.lane.b32.xlu0 %v4814_v63, %s10044_s26  ;;  %10513 = vst [vmem:[#allocation59_spill] sm:$0xff] %v5015_v33  ;;  %s5027_s9 = sld [smem:[#allocation7 + $0x26]]  ;;  %v10122_v16 = vstv %s4971_s10  ;;  %v10100_v18 = vstv %s4978_s18  ;;  %v5135_v30 = vmul.f32 %v10096_v14, %v4814_v63  ;;  %v5140_v7 = vmul.f32 %v10098_v15, %v4814_v63 }
  0x81   : > { %611 = vrot.lane.b32.xlu2 %v4810_v62, %s10044_s26  ;;  %10515 = vst [vmem:[#allocation61_spill] sm:$0xff] %v5021_v34  ;;  %s5029_s19 = sld [smem:[#allocation7 + $0x4a]]  ;;  %v10101_v19 = vstv %s4986_s22  ;;  %v10119_v21 = vstv %s4988_s15  ;;  %v5148_v4 = vmul.f32 %v10122_v16, %v4810_v62  ;;  %v10121_v14 = vstv %s5067_s6 }
  0x82   : > { %10519 = vst [vmem:[#allocation65_spill] sm:$0xff] %v5043_v38  ;;  %s5055_s14 = sld [smem:[#allocation7 + $0x2f]]  ;;  %v5168_v42 = vmul.f32 %v10101_v19, %v4810_v62 }
  0x83   : > { %10521 = vst [vmem:[#allocation67_spill] sm:$0xff] %v5048_v39  ;;  %10524 = sst [smem:[#allocation70_spill]] %s5067_s6 }
  0x84   : > { %10514 = sst [smem:[#allocation60_spill]] %s5017_s4 }
  0x85   : > { %10516 = sst [smem:[#allocation62_spill]] %s5023_s28 }
  0x86   : > { %10517 = sst [smem:[#allocation63_spill]] %s5027_s9 }
  0x87   : > { %10518 = sst [smem:[#allocation64_spill]] %s5029_s19 }
  0x88   : > { %641 = vrot.lane.b32.xlu1 %v4822_v0, %s10044_s26  ;;  %363 = vrot.lane.b32.xlu0 %v4847_v8, %s10042_s21  ;;  %s5045_s4 = sld [smem:[#allocation7 + $0xb]]  ;;  %v10112_v25 = vstv %s5055_s14 }
  0x89   : > { %423 = vrot.lane.b32.xlu2 %v4850_v9, %s10042_s21  ;;  %10522 = sst [smem:[#allocation68_spill]] %s5055_s14 }
  0x8a   : > { %s5073_s24 = sld [smem:[#allocation7 + $0x64]] }
  0x8b   : > { %s5079_s23 = sld [smem:[#allocation7 + $0x88]] }
  0x8c   : > { %s10528_s9 = sld [smem:[#allocation54_spill]] }
  0x8d   : > { %s10529_s30 = sld [smem:[#allocation55_spill]] }
  0x8e   : > { %10520 = sst [smem:[#allocation66_spill]] %s5045_s4  ;;  %v10109_v35 = vstv %s5045_s4 }
  0x8f   : > { %s5110_s28 = sld [smem:[#allocation7 + $0x38]] }
  0x90   : > { %393 = vrot.lane.b32.xlu1 %v4863_v12, %s10042_s21  ;;  %453 = vrot.lane.b32.xlu0 %v4866_v13, %s10042_s21  ;;  %s10531_s12 = sld [smem:[#allocation57_spill]]  ;;  %v10108_v46 = vstv %s5073_s24 }
  0x91   : > { %579 = vrot.lane.b32.xlu2 %v4847_v8, %s10044_s26  ;;  %10525 = sst [smem:[#allocation71_spill]] %s5079_s23  ;;  %v10115_v44 = vstv %s5079_s23 }
  0x92   : > { %s10532_s11 = sld [smem:[#allocation58_spill]]  ;;  %v10102_v2 = vstv %s10528_s9 }
  0x93   : > { %s5123_s7 = sld [smem:[#allocation7 + $0x5c]]  ;;  %v10106_v22 = vstv %s10529_s30  ;;  %v5178_v41 = vmul.f32 %v10102_v2, %v4822_v0 }
  0x94   : > { %s10534_s19 = sld [smem:[#allocation60_spill]]  ;;  %v5183_v40 = vmul.f32 %v10106_v22, %v4822_v0 }
  0x95   : > { %s5143_s1 = sld [smem:[#allocation7 + $0x80]] }
  0x96   : > { %s10535_s4 = sld [smem:[#allocation38_spill]] }
  0x97   : > { %s10536_s14 = sld [smem:[#allocation39_spill]] }
  0x98   : > { %609 = vrot.lane.b32.xlu1 %v4863_v12, %s10044_s26  ;;  %639 = vrot.lane.b32.xlu0 %v4850_v9, %s10044_s26  ;;  %v10104_v54 = vstv %s10532_s11  ;;  %s10539_s6 = sld [smem:[#allocation42_spill]] }
  0x99   : > { %669 = vrot.lane.b32.xlu2 %v4866_v13, %s10044_s26  ;;  %10533 = sst [smem:[#allocation54_spill]] %s5123_s7 }
  0x9a   : > { %v10107_v47 = vstv %s10534_s19  ;;  %s10540_s23 = sld [smem:[#allocation43_spill]] }
  0x9b   : > { %s10541_s7 = sld [smem:[#allocation48_spill]] }
  0x9c   : > { %v10545_v45 = vstv %s10535_s4  ;;  %s5375_s25 = sld [smem:[#allocation7 + $0x3]] }
  0x9d   : > { %s10593_s27 = sld [smem:[#allocation54_spill]] }
  0x9e   : > { %s5443_s8 = sld [smem:[#allocation7 + $0xc]] }
  0xa0   : > { %699 = vrot.lane.b32.xlu1 %v4787_v49, %s10042_s21  ;;  %671 = vrot.lane.b32.xlu0 %v4830_v3, %s10044_s26 }
  0xa1   : > { %701 = vrot.lane.b32.xlu2 %v4794_v52, %s10042_s21 }
  0xa8   : > { %731 = vrot.lane.b32.xlu1 %v4791_v51, %s10042_s21  ;;  %729 = vrot.lane.b32.xlu0 %v4785_v48, %s10042_s21 }
  0xa9   : > { %759 = vrot.lane.b32.xlu2 %v4789_v50, %s10042_s21 }
  0xb0   : > { %789 = vrot.lane.b32.xlu1 %v4800_v56, %s10042_s21  ;;  %761 = vrot.lane.b32.xlu0 %v4796_v53, %s10042_s21 }
  0xb1   : > { %791 = vrot.lane.b32.xlu2 %v4805_v60, %s10042_s21  ;;  %s4937_s21 = sld [smem:[#allocation7 + $0x3f]] }
  0xb7   : > { %10497 = sst [smem:[#allocation45_spill]] %s4937_s21 }
  0xb8   : > { %917 = vrot.lane.b32.xlu1 %v4794_v52, %s10044_s26  ;;  %915 = vrot.lane.b32.xlu0 %v4787_v49, %s10044_s26  ;;  %s5085_s21 = sld [smem:[#allocation7 + $0x6e]] }
  0xb9   : > { %945 = vrot.lane.b32.xlu2 %v4785_v48, %s10044_s26 }
  0xbe   : > { %10526 = sst [smem:[#allocation72_spill]] %s5085_s21 }
  0xbf   : > { %s10537_s21 = sld [smem:[#allocation40_spill]] }
  0xc0   : > { %975 = vrot.lane.b32.xlu1 %v4789_v50, %s10044_s26  ;;  %947 = vrot.lane.b32.xlu0 %v4791_v51, %s10044_s26  ;;  %s10578_s20 = sld [smem:[#allocation72_spill]] }
  0xc1   : > { %977 = vrot.lane.b32.xlu2 %v4796_v53, %s10044_s26  ;;  %s4944_s26 = sld [smem:[#allocation7 + $0x87]] }
  0xc7   : > { %10499 = sst [smem:[#allocation47_spill]] %s4944_s26 }
  0xc8   : > { %1007 = vrot.lane.b32.xlu1 %v4805_v60, %s10501_s2  ;;  %1005 = vrot.lane.b32.xlu0 %v4800_v56, %s10501_s2  ;;  %s5061_s2 = sld [smem:[#allocation7 + $0x53]]  ;;  %v10550_v56 = vstv %s10540_s23 }
  0xc9   : > { %1060 = vrot.lane.b32.xlu2 %v4954_v17, %s10504_s13  ;;  %s5091_s26 = sld [smem:[#allocation7 + $0x14]] }
  0xce   : > { %10523 = sst [smem:[#allocation69_spill]] %s5061_s2  ;;  %v10117_v5 = vstv %s5061_s2 }
  0xcf   : > { %s10538_s2 = sld [smem:[#allocation41_spill]] }
  0xd0   : > { %1090 = vrot.lane.b32.xlu1 %v4982_v24, %s10504_s13  ;;  %1062 = vrot.lane.b32.xlu0 %v4976_v23, %s10504_s13 }
  0xd1   : > { %1092 = vrot.lane.b32.xlu2 %v4991_v27, %s10504_s13 }
  0xd3   : > { %v426_v32 = vpop.permute.xlu2 %425 }
  0xd4   : > { %v428_v1 = vmul.f32 %v5032_v36, %v426_v32  ;;  %v5119_v32 = vmul.f32 %v10099_v10, %v4814_v63  ;;  %v10103_v10 = vstv %s10531_s12 }
  0xd5   : > { %v5193_v19 = vmul.f32 %v10103_v10, %v4822_v0  ;;  %v5213_v10 = vmul.f32 %v10108_v46, %v4830_v3 }
  0xd6   : > { %v5099_v26 = vmul.f32 %v430_v55, %v428_v1  ;;  %v5103_v28 = vmul.f32 %v436_v57, %v428_v1  ;;  %v5107_v29 = vmul.f32 %v442_v58, %v428_v1  ;;  %v5114_v31 = vmul.f32 %v448_v61, %v428_v1 }
  0xd7   : > { %v5130_v1 = vmul.f32 %v10097_v11, %v4814_v63  ;;  %v5156_v63 = vmul.f32 %v10100_v18, %v4810_v62  ;;  %v5173_v18 = vmul.f32 %v10119_v21, %v4810_v62  ;;  %v5198_v62 = vmul.f32 %v10104_v54, %v4830_v3 }
  0xd8   : > { %1122 = vrot.lane.b32.xlu1 %v5015_v33, %s10504_s13  ;;  %1120 = vrot.lane.b32.xlu0 %v5021_v34, %s10504_s13  ;;  %v10543_v54 = vstv %s4898_s29 }
  0xd9   : > { %1150 = vrot.lane.b32.xlu2 %v5043_v38, %s10504_s13 }
  0xdb   : > { %v612_v59 = vpop.permute.xlu2 %611 }
  0xdc   : > { %v614_v43 = vmul.f32 %v5035_v37, %v612_v59 }
  0xde   : > { %v5227_v22 = vmul.f32 %v10112_v25, %v614_v43  ;;  %v5235_v46 = vmul.f32 %v10121_v14, %v614_v43 }
  0xe0   : > { %1276 = vrot.lane.b32.xlu1 %v4954_v17, %s10527_s0  ;;  %1152 = vrot.lane.b32.xlu0 %v5048_v39, %s10504_s13  ;;  %s10530_s13 = sld [smem:[#allocation56_spill]]  ;;  %v10549_v17 = vstv %s10539_s6 }
  0xe1   : > { %1278 = vrot.lane.b32.xlu2 %v4976_v23, %s10527_s0 }
  0xe3   : > { %v424_v11 = vpop.permute.xlu2 %423 }
  0xe4   : > { %v427_v2 = vmul.f32 %v5032_v36, %v424_v11  ;;  %v5218_v11 = vmul.f32 %v10115_v44, %v4830_v3 }
  0xe6   : > { %v10105_v15 = vstv %s10530_s13  ;;  %v5247_v14 = vmul.f32 %v430_v55, %v427_v2  ;;  %v5251_v16 = vmul.f32 %v436_v57, %v427_v2  ;;  %v5255_v44 = vmul.f32 %v442_v58, %v427_v2 }
  0xe7   : > { %v5188_v59 = vmul.f32 %v10105_v15, %v4822_v0  ;;  %v5208_v0 = vmul.f32 %v10107_v47, %v4830_v3  ;;  %v5223_v15 = vmul.f32 %v10109_v35, %v614_v43  ;;  %v5231_v47 = vmul.f32 %v10117_v5, %v614_v43 }
  0xe8   : > { %1308 = vrot.lane.b32.xlu1 %v4991_v27, %s10527_s0  ;;  %1306 = vrot.lane.b32.xlu0 %v4982_v24, %s10527_s0  ;;  %v5259_v5 = vmul.f32 %v448_v61, %v427_v2  ;;  %v10544_v57 = vstv %s4904_s5  ;;  %v10546_v27 = vstv %s10536_s14 }
  0xe9   : > { %1336 = vrot.lane.b32.xlu2 %v5021_v34, %s10527_s0  ;;  %v10547_v58 = vstv %s10537_s21  ;;  %v10548_v61 = vstv %s10538_s2 }
  0xea   : > { %v396_v3 = vpop.permute.xlu1 %395  ;;  %v366_v35 = vpop.permute.xlu0 %365 }
  0xeb   : > { %v398_v21 = vmul.f32 %v5032_v36, %v396_v3  ;;  %v368_v43 = vmul.f32 %v5032_v36, %v366_v35  ;;  %v580_v25 = vpop.permute.xlu2 %579  ;;  %v10542_v3 = vstv %s4971_s10  ;;  %s10551_s10 = sld [smem:[#allocation62_spill]] }
  0xec   : > { %v5264_v35 = vmul.f32 %v10542_v3, %v4863_v12  ;;  %v5267_v55 = vmul.f32 %v5035_v37, %v580_v25 }
  0xed   : > { %v402_v20 = vmul.f32 %v10543_v54, %v398_v21  ;;  %v408_v6 = vmul.f32 %v10544_v57, %v398_v21  ;;  %v414_v23 = vmul.f32 %v10545_v45, %v398_v21  ;;  %v420_v34 = vmul.f32 %v10546_v27, %v398_v21 }
  0xee   : > { %v372_v24 = vmul.f32 %v10547_v58, %v368_v43  ;;  %v378_v2 = vmul.f32 %v10548_v61, %v368_v43  ;;  %v384_v3 = vmul.f32 %v10549_v17, %v368_v43  ;;  %v390_v25 = vmul.f32 %v10550_v56, %v368_v43 }
  0xef   : > { %v10552_v54 = vstv %s4978_s18  ;;  %v10553_v45 = vstv %s4986_s22  ;;  %v10554_v27 = vstv %s4988_s15  ;;  %v10555_v58 = vstv %s10541_s7  ;;  %s5307_s18 = sld [smem:[#allocation7 + $0x1d]] }
  0xf0   : > { %v5288_v50 = vmul.f32 %v10552_v54, %v4863_v12  ;;  %v5293_v57 = vmul.f32 %v10553_v45, %v4863_v12  ;;  %v5298_v21 = vmul.f32 %v10554_v27, %v4863_v12  ;;  %v5303_v61 = vmul.f32 %v10555_v58, %v4847_v8  ;;  %1366 = vrot.lane.b32.xlu1 %v5043_v38, %s10527_s0  ;;  %s5331_s15 = sld [smem:[#allocation7 + $0x41]] }
  0xf1   : > { %v404_v17 = vadd.f32 %v402_v20, %v372_v24  ;;  %v410_v56 = vadd.f32 %v408_v6, %v378_v2  ;;  %v416_v43 = vadd.f32 %v414_v23, %v384_v3  ;;  %v422_v54 = vadd.f32 %v420_v34, %v390_v25  ;;  %1338 = vrot.lane.b32.xlu0 %v5015_v33, %s10527_s0  ;;  %s10568_s22 = sld [smem:[#allocation47_spill]] }
  0xf2   : > { %v10556_v12 = vstv %s4956_s3  ;;  %v10557_v27 = vstv %s4967_s17  ;;  %v10558_v6 = vstv %s4969_s16  ;;  %v10559_v24 = vstv %s10551_s10  ;;  %v456_v2 = vpop.permute.xlu1 %455  ;;  %v582_v3 = vpop.permute.xlu0 %581  ;;  %s10563_s3 = sld [smem:[#allocation44_spill]] }
  0xf3   : > { %v5314_v45 = vmul.f32 %v10556_v12, %v4847_v8  ;;  %v5319_v20 = vmul.f32 %v10557_v27, %v4847_v8  ;;  %v5324_v23 = vmul.f32 %v10558_v6, %v4847_v8  ;;  %v5329_v34 = vmul.f32 %v10559_v24, %v5267_v55  ;;  %s10565_s16 = sld [smem:[#allocation45_spill]]  ;;  %1368 = vrot.lane.b32.xlu2 %v5048_v39, %s10527_s0  ;;  %v670_v49 = vpop.permute.xlu2 %669 }
  0xf4   : > { %v10561_v25 = vstv %s10528_s9  ;;  %v10562_v12 = vstv %s10529_s30  ;;  %v10564_v8 = vstv %s10530_s13  ;;  %v10566_v24 = vstv %s10531_s12  ;;  %s10567_s17 = sld [smem:[#allocation46_spill]] }
  0xf5   : > { %10560 = vst [vmem:[#allocation73_spill] sm:$0xff] %v5329_v34  ;;  %v5336_v58 = vmul.f32 %v10561_v25, %v4850_v9  ;;  %v5341_v27 = vmul.f32 %v10562_v12, %v4850_v9  ;;  %v5346_v6 = vmul.f32 %v10564_v8, %v4850_v9  ;;  %v5351_v33 = vmul.f32 %v10566_v24, %v4850_v9  ;;  %s5355_s9 = sld [smem:[#allocation7 + $0x65]] }
  0xf6   : > { %s10569_s30 = sld [smem:[#allocation71_spill]]  ;;  %v434_v25 = vadd.f32 %v5099_v26, %v404_v17  ;;  %v440_v12 = vadd.f32 %v5103_v28, %v410_v56  ;;  %v446_v8 = vadd.f32 %v5107_v29, %v416_v43  ;;  %v458_v38 = vmul.f32 %v5032_v36, %v456_v2 }
  0xf7   : > { %s10570_s13 = sld [smem:[#allocation63_spill]]  ;;  %v452_v9 = vadd.f32 %v5114_v31, %v422_v54  ;;  %v584_v24 = vmul.f32 %v5035_v37, %v582_v3  ;;  %v10572_v39 = vstv %s10532_s11  ;;  %v10573_v26 = vstv %s10534_s19 }
  0xf8   : > { %s10571_s7 = sld [smem:[#allocation64_spill]]  ;;  %v5368_v60 = vmul.f32 %v10572_v39, %v4866_v13  ;;  %v5373_v17 = vmul.f32 %v10573_v26, %v4866_v13  ;;  %v10575_v28 = vstv %s10563_s3  ;;  %v10579_v2 = vstv %s10568_s22 }
  0xf9   : > { %s5361_s12 = sld [smem:[#allocation7 + $0x89]]  ;;  %v462_v29 = vmul.f32 %v10575_v28, %v458_v38  ;;  %v10576_v56 = vstv %s10565_s16  ;;  %v480_v3 = vmul.f32 %v10579_v2, %v458_v38  ;;  %v10580_v39 = vstv %s5073_s24 }
  0xfa   : > { %10574 = vst [vmem:[#allocation74_spill] sm:$0xff] %v5373_v17  ;;  %v468_v43 = vmul.f32 %v10576_v56, %v458_v38  ;;  %v10577_v31 = vstv %s10567_s17  ;;  %v5388_v53 = vmul.f32 %v10580_v39, %v4866_v13  ;;  %s5405_s19 = sld [smem:[#allocation7 + $0x27]] }
  0xfb   : > { %v474_v54 = vmul.f32 %v10577_v31, %v458_v38  ;;  %v464_v38 = vadd.f32 %v462_v29, %v434_v25  ;;  %v482_v39 = vadd.f32 %v480_v3, %v452_v9  ;;  %v364_v9 = vpop.permute.xlu0 %363  ;;  %s5431_s11 = sld [smem:[#allocation7 + $0x4b]] }
  0xfc   : > { %10581 = vst [vmem:[#allocation75_spill] sm:$0xff] %v5388_v53  ;;  %v10582_v26 = vstv %s10569_s30  ;;  %v470_v31 = vadd.f32 %v468_v43, %v440_v12  ;;  %v10591_v53 = vstv %s10578_s20  ;;  %v676_v43 = vstv %s5307_s18  ;;  %s5437_s24 = sld [smem:[#allocation7 + $0x6f]] }
  0xfd   : > { %v5393_v51 = vmul.f32 %v10582_v26, %v4866_v13  ;;  %v10584_v52 = vstv %s10570_s13  ;;  %v476_v2 = vadd.f32 %v474_v54, %v446_v8  ;;  %v10588_v13 = vstv %s10551_s10  ;;  %v642_v8 = vpop.permute.xlu1 %641  ;;  %s5542_s10 = sld [smem:[#allocation7 + $0x39]] }
  0xfe   : > { %v5398_v48 = vmul.f32 %v10584_v52, %v5267_v55  ;;  %v10586_v28 = vstv %s10571_s7  ;;  %v588_v26 = vmul.f32 %v10588_v13, %v584_v24  ;;  %v10589_v34 = vmov %v10584_v52  ;;  %s5623_s18 = sld [smem:[#allocation7 + $0x4]] }
  0xff   : > { %10583 = vst [vmem:[#allocation76_spill] sm:$0xff] %v5393_v51  ;;  %v5403_v56 = vmul.f32 %v10586_v28, %v5267_v55  ;;  %v594_v51 = vmul.f32 %v10589_v34, %v584_v24  ;;  %v10590_v52 = vmov %v10586_v28  ;;  %v606_v17 = vmul.f32 %v10591_v53, %v584_v24  ;;  %s5643_s30 = sld [smem:[#allocation7 + $0xd]] }
 0x100   : > { %10585 = vst [vmem:[#allocation77_spill] sm:$0xff] %v5398_v48  ;;  %v600_v48 = vmul.f32 %v10590_v52, %v584_v24  ;;  %v488_v28 = vadd.f32 %v5119_v32, %v464_v38  ;;  %v500_v25 = vadd.f32 %v5135_v30, %v476_v2  ;;  %v506_v12 = vadd.f32 %v5140_v7, %v482_v39  ;;  %s5645_s13 = sld [smem:[#allocation7 + $0x31]] }
 0x101   : > { %10587 = vst [vmem:[#allocation78_spill] sm:$0xff] %v5403_v56  ;;  %v494_v56 = vadd.f32 %v5130_v1, %v470_v31  ;;  %v10592_v29 = vmov %v10591_v53  ;;  %v682_v54 = vstv %s5331_s15  ;;  %v673_v53 = vmul.f32 %v5035_v37, %v670_v49  ;;  %s5625_s15 = sld [smem:[#allocation7 + $0x28]] }
 0x102   : > { %v5422_v34 = vmul.f32 %v10592_v29, %v5267_v55  ;;  %v512_v32 = vadd.f32 %v5148_v4, %v488_v28  ;;  %v524_v30 = vadd.f32 %v5168_v42, %v500_v25  ;;  %v530_v7 = vadd.f32 %v5173_v18, %v506_v12  ;;  %s5655_s7 = sld [smem:[#allocation7 + $0x55]] }
 0x103   : > { %v518_v1 = vadd.f32 %v5156_v63, %v494_v56  ;;  %v644_v55 = vmul.f32 %v5035_v37, %v642_v8  ;;  %v688_v24 = vstv %s5355_s9  ;;  %v694_v3 = vstv %s5361_s12  ;;  %s5637_s9 = sld [smem:[#allocation7 + $0x70]] }
 0x104   : > { %v706_v38 = vstv %s5375_s25  ;;  %v536_v49 = vadd.f32 %v5178_v41, %v512_v32  ;;  %v548_v4 = vadd.f32 %v5188_v59, %v524_v30  ;;  %v554_v18 = vadd.f32 %v5193_v19, %v530_v7  ;;  %s5665_s12 = sld [smem:[#allocation7 + $0x79]] }
 0x105   : > { %v542_v42 = vadd.f32 %v5183_v40, %v518_v1  ;;  %v367_v63 = vmul.f32 %v5032_v36, %v364_v9  ;;  %v5448_v56 = vmul.f32 %v676_v43, %v673_v53  ;;  %v5452_v31 = vmul.f32 %v682_v54, %v673_v53  ;;  %s5699_s25 = sld [smem:[#allocation7 + $0x16]] }
 0x106   : > { %v712_v41 = vstv %s5405_s19  ;;  %v560_v40 = vadd.f32 %v5198_v62, %v536_v49  ;;  %v572_v19 = vadd.f32 %v5213_v10, %v548_v4  ;;  %v578_v2 = vadd.f32 %v5218_v11, %v554_v18  ;;  %s5705_s20 = sld [smem:[#allocation7 + $0x3a]] }
 0x107   : > { %v566_v59 = vadd.f32 %v5208_v0, %v542_v42  ;;  %v10594_v39 = vstv %s5091_s26  ;;  %v10595_v52 = vstv %s5110_s28  ;;  %v10596_v25 = vstv %s10593_s27  ;;  %v702_v0 = vpop.permute.xlu2 %701  ;;  %s5715_s19 = sld [smem:[#allocation7 + $0x5e]] }
 0x108   : > { %v648_v13 = vmul.f32 %v10594_v39, %v644_v55  ;;  %v654_v28 = vmul.f32 %v10595_v52, %v644_v55  ;;  %v660_v12 = vmul.f32 %v10596_v25, %v644_v55  ;;  %v10597_v8 = vstv %s5143_s1  ;;  %v394_v39 = vpop.permute.xlu1 %393 }
 0x109   : > { %v666_v9 = vmul.f32 %v10597_v8, %v644_v55  ;;  %v590_v29 = vadd.f32 %v588_v26, %v560_v40  ;;  %v596_v32 = vadd.f32 %v594_v51, %v566_v59  ;;  %v602_v62 = vadd.f32 %v600_v48, %v572_v19  ;;  %v454_v26 = vpop.permute.xlu0 %453 }
 0x10a   : > { %v608_v1 = vadd.f32 %v606_v17, %v578_v2  ;;  %v10598_v30 = vstv %s10537_s21  ;;  %v10599_v7 = vstv %s10538_s2  ;;  %v10600_v49 = vstv %s10539_s6  ;;  %s5489_s2 = sld [smem:[#allocation7 + $0x30]] }
 0x10b   : > { %v371_v10 = vmul.f32 %v10598_v30, %v367_v63  ;;  %v377_v11 = vmul.f32 %v10599_v7, %v367_v63  ;;  %v383_v42 = vmul.f32 %v10600_v49, %v367_v63  ;;  %v10601_v4 = vstv %s10540_s23  ;;  %s5495_s21 = sld [smem:[#allocation7 + $0x54]] }
 0x10c   : > { %v389_v18 = vmul.f32 %v10601_v4, %v367_v63  ;;  %v620_v51 = vadd.f32 %v5223_v15, %v590_v29  ;;  %v626_v48 = vadd.f32 %v5227_v22, %v596_v32  ;;  %v632_v17 = vadd.f32 %v5231_v47, %v602_v62  ;;  %s10612_s6 = sld [smem:[#allocation69_spill]] }
 0x10d   : > { %v638_v55 = vadd.f32 %v5235_v46, %v608_v1  ;;  %v397_v40 = vmul.f32 %v5032_v36, %v394_v39  ;;  %v5482_v59 = vmul.f32 %v688_v24, %v673_v53  ;;  %v5486_v63 = vmul.f32 %v694_v3, %v673_v53  ;;  %s10613_s23 = sld [smem:[#allocation70_spill]] }
 0x10e   : > { %v718_v19 = vstv %s5431_s11  ;;  %v457_v15 = vmul.f32 %v5032_v36, %v454_v26  ;;  %v724_v2 = vstv %s5437_s24  ;;  %v704_v22 = vmul.f32 %v5032_v36, %v702_v0  ;;  %s5725_s11 = sld [smem:[#allocation7 + $0x82]] }
 0x10f   : > { %v10602_v46 = vstv %s4898_s29  ;;  %v10603_v25 = vstv %s4904_s5  ;;  %v10604_v8 = vstv %s10535_s4  ;;  %v10605_v32 = vstv %s10536_s14  ;;  %s5525_s4 = sld [smem:[#allocation7 + $0x78]] }
 0x110   : > { %v401_v52 = vmul.f32 %v10602_v46, %v397_v40  ;;  %v407_v53 = vmul.f32 %v10603_v25, %v397_v40  ;;  %v413_v29 = vmul.f32 %v10604_v8, %v397_v40  ;;  %v419_v62 = vmul.f32 %v10605_v32, %v397_v40  ;;  %s10610_s14 = sld [smem:[#allocation66_spill]] }
 0x111   : > { %v5505_v1 = vadd.f32 %v648_v13, %v620_v51  ;;  %v5507_v30 = vadd.f32 %v654_v28, %v626_v48  ;;  %v5509_v7 = vadd.f32 %v660_v12, %v632_v17  ;;  %v5511_v0 = vadd.f32 %v666_v9, %v638_v55  ;;  %s5540_s29 = sld [smem:[#allocation7 + $0x15]] }
 0x112   : > { %v403_v49 = vadd.f32 %v401_v52, %v371_v10  ;;  %v409_v4 = vadd.f32 %v407_v53, %v377_v11  ;;  %v415_v39 = vadd.f32 %v413_v29, %v383_v42  ;;  %v421_v26 = vadd.f32 %v419_v62, %v389_v18  ;;  %v610_v42 = vpop.permute.xlu1 %609  ;;  %v640_v18 = vpop.permute.xlu0 %639  ;;  %s10611_s5 = sld [smem:[#allocation68_spill]] }
 0x113   : > { %v10606_v46 = vstv %s10563_s3  ;;  %v10607_v8 = vstv %s10565_s16  ;;  %v10608_v40 = vstv %s10567_s17  ;;  %v10609_v51 = vstv %s10568_s22  ;;  %s5551_s3 = sld [smem:[#allocation7 + $0x5d]] }
 0x114   : > { %v461_v25 = vmul.f32 %v10606_v46, %v457_v15  ;;  %v467_v47 = vmul.f32 %v10607_v8, %v457_v15  ;;  %v473_v13 = vmul.f32 %v10608_v40, %v457_v15  ;;  %v479_v28 = vmul.f32 %v10609_v51, %v457_v15  ;;  %s5613_s16 = sld [smem:[#allocation7 + $0x66]] }
 0x115   : > { %v433_v12 = vadd.f32 %v5247_v14, %v403_v49  ;;  %v439_v9 = vadd.f32 %v5251_v16, %v409_v4  ;;  %v445_v10 = vadd.f32 %v5255_v44, %v415_v39  ;;  %v451_v11 = vadd.f32 %v5259_v5, %v421_v26  ;;  %s5615_s17 = sld [smem:[#allocation7 + $0x8a]] }
 0x116   : > { %v613_v48 = vmul.f32 %v5035_v37, %v610_v42  ;;  %v5530_v17 = vmul.f32 %v706_v38, %v704_v22  ;;  %v5534_v14 = vmul.f32 %v712_v41, %v704_v22  ;;  %v5538_v16 = vmul.f32 %v718_v19, %v704_v22  ;;  %s5631_s22 = sld [smem:[#allocation7 + $0x4c]] }
 0x117   : > { %v463_v44 = vadd.f32 %v461_v25, %v433_v12  ;;  %v469_v5 = vadd.f32 %v467_v47, %v439_v9  ;;  %v475_v55 = vadd.f32 %v473_v13, %v445_v10  ;;  %v481_v15 = vadd.f32 %v479_v28, %v451_v11  ;;  %s5727_s24 = sld [smem:[#allocation7 + $0x1f]] }
 0x118   : > { %v643_v52 = vmul.f32 %v5035_v37, %v640_v18  ;;  %v5547_v53 = vmul.f32 %v724_v2, %v704_v22  ;;  %v742_v29 = vstv %s5489_s2  ;;  %v748_v32 = vstv %s5495_s21  ;;  %s5743_s2 = sld [smem:[#allocation7 + $0x8b]] }
 0x119   : > { %v487_v47 = vadd.f32 %v5303_v61, %v463_v44  ;;  %v493_v62 = vadd.f32 %v5314_v45, %v469_v5  ;;  %v499_v49 = vadd.f32 %v5319_v20, %v475_v55  ;;  %v505_v4 = vadd.f32 %v5324_v23, %v481_v15  ;;  %s5752_s21 = sld [smem:[#allocation7 + $0x5]] }
 0x11a   : > { %v10614_v39 = vstv %s10610_s14  ;;  %v10615_v22 = vstv %s10611_s5  ;;  %v10616_v25 = vstv %s10612_s6  ;;  %v10617_v40 = vstv %s10613_s23  ;;  %v672_v44 = vpop.permute.xlu0 %671  ;;  %s5769_s14 = sld [smem:[#allocation7 + $0x4d]] }
 0x11b   : > { %v617_v26 = vmul.f32 %v10614_v39, %v613_v48  ;;  %v623_v46 = vmul.f32 %v10615_v22, %v613_v48  ;;  %v629_v8 = vmul.f32 %v10616_v25, %v613_v48  ;;  %v635_v13 = vmul.f32 %v10617_v40, %v613_v48  ;;  %v10625_v40 = vld [vmem:[#allocation73_spill] sm:$0xff]  ;;  %s5789_s5 = sld [smem:[#allocation7 + $0xe]] }
 0x11c   : > { %v511_v51 = vadd.f32 %v5264_v35, %v487_v47  ;;  %v517_v28 = vadd.f32 %v5288_v50, %v493_v62  ;;  %v523_v61 = vadd.f32 %v5293_v57, %v499_v49  ;;  %v529_v45 = vadd.f32 %v5298_v21, %v505_v4  ;;  %v700_v21 = vpop.permute.xlu1 %699  ;;  %v10623_v47 = vld [vmem:[#allocation75_spill] sm:$0xff]  ;;  %v10624_v62 = vld [vmem:[#allocation76_spill] sm:$0xff]  ;;  %s5791_s6 = sld [smem:[#allocation7 + $0x32]] }
 0x11d   : > { %v10618_v20 = vstv %s5091_s26  ;;  %v10619_v12 = vstv %s5110_s28  ;;  %v10620_v10 = vstv %s10593_s27  ;;  %v10621_v42 = vstv %s5143_s1  ;;  %s5585_s1 = sld [smem:[#allocation7 + $0x81]] }
 0x11e   : > { %v647_v23 = vmul.f32 %v10618_v20, %v643_v52  ;;  %v653_v9 = vmul.f32 %v10619_v12, %v643_v52  ;;  %v659_v11 = vmul.f32 %v10620_v10, %v643_v52  ;;  %v665_v18 = vmul.f32 %v10621_v42, %v643_v52  ;;  %s5597_s28 = sld [smem:[#allocation7 + $0x1e]] }
 0x11f   : > { %v535_v48 = vadd.f32 %v5336_v58, %v511_v51  ;;  %v541_v35 = vadd.f32 %v5341_v27, %v517_v28  ;;  %v547_v50 = vadd.f32 %v5346_v6, %v523_v61  ;;  %v553_v57 = vadd.f32 %v5351_v33, %v529_v45  ;;  %v10622_v27 = vld [vmem:[#allocation74_spill] sm:$0xff]  ;;  %v10626_v28 = vld [vmem:[#allocation77_spill] sm:$0xff]  ;;  %s5603_s26 = sld [smem:[#allocation7 + $0x42]] }
 0x120   : > { %v703_v5 = vmul.f32 %v5032_v36, %v700_v21  ;;  %v674_v55 = vmul.f32 %v5035_v37, %v672_v44  ;;  %v754_v15 = vstv %s5525_s4  ;;  %v766_v52 = vstv %s5540_s29  ;;  %v10627_v61 = vld [vmem:[#allocation78_spill] sm:$0xff]  ;;  %s5733_s27 = sld [smem:[#allocation7 + $0x43]] }
 0x121   : > { %v559_v58 = vadd.f32 %v5368_v60, %v535_v48  ;;  %v565_v6 = vadd.f32 %v10622_v27, %v541_v35  ;;  %v571_v33 = vadd.f32 %v10623_v47, %v547_v50  ;;  %v577_v49 = vadd.f32 %v10624_v62, %v553_v57  ;;  %v760_v57 = vpop.permute.xlu2 %759  ;;  %s5759_s4 = sld [smem:[#allocation7 + $0x29]] }
 0x122   : > { %v707_v4 = vmul.f32 %v706_v38, %v703_v5  ;;  %v713_v39 = vmul.f32 %v712_v41, %v703_v5  ;;  %v772_v22 = vstv %s5542_s10  ;;  %v778_v25 = vstv %s5551_s3  ;;  %s5775_s29 = sld [smem:[#allocation7 + $0x71]] }
 0x123   : > { %v589_v51 = vadd.f32 %v10625_v40, %v559_v58  ;;  %v595_v60 = vadd.f32 %v10626_v28, %v565_v6  ;;  %v601_v45 = vadd.f32 %v10627_v61, %v571_v33  ;;  %v607_v20 = vadd.f32 %v5422_v34, %v577_v49  ;;  %s5797_s23 = sld [smem:[#allocation7 + $0x56]] }
 0x124   : > { %v678_v38 = vmul.f32 %v676_v43, %v674_v55  ;;  %v684_v41 = vmul.f32 %v682_v54, %v674_v55  ;;  %v690_v12 = vmul.f32 %v688_v24, %v674_v55  ;;  %v696_v10 = vmul.f32 %v694_v3, %v674_v55  ;;  %s5799_s10 = sld [smem:[#allocation7 + $0x7a]] }
 0x125   : > { %v619_v42 = vadd.f32 %v617_v26, %v589_v51  ;;  %v625_v48 = vadd.f32 %v623_v46, %v595_v60  ;;  %v631_v35 = vadd.f32 %v629_v8, %v601_v45  ;;  %v637_v50 = vadd.f32 %v635_v13, %v607_v20  ;;  %v732_v8 = vpop.permute.xlu1 %731  ;;  %v730_v13 = vpop.permute.xlu0 %729  ;;  %s5805_s3 = sld [smem:[#allocation7 + $0x17]] }
 0x126   : > { %v719_v34 = vmul.f32 %v718_v19, %v703_v5  ;;  %v725_v43 = vmul.f32 %v724_v2, %v703_v5  ;;  %v680_v54 = vadd.f32 %v678_v38, %v5505_v1  ;;  %v686_v24 = vadd.f32 %v684_v41, %v5507_v30 }
 0x127   : > { %v649_v3 = vadd.f32 %v647_v23, %v619_v42  ;;  %v655_v21 = vadd.f32 %v653_v9, %v625_v48  ;;  %v661_v26 = vadd.f32 %v659_v11, %v631_v35  ;;  %v667_v46 = vadd.f32 %v665_v18, %v637_v50 }
 0x128   : > { %v692_v44 = vadd.f32 %v690_v12, %v5509_v7  ;;  %v698_v19 = vadd.f32 %v696_v10, %v5511_v0  ;;  %v784_v55 = vstv %s5585_s1  ;;  %v763_v2 = vmul.f32 %v5032_v36, %v760_v57  ;;  %s5807_s1 = sld [smem:[#allocation7 + $0x3b]] }
 0x129   : > { %v679_v1 = vadd.f32 %v5448_v56, %v649_v3  ;;  %v685_v30 = vadd.f32 %v5452_v31, %v655_v21  ;;  %v691_v23 = vadd.f32 %v5482_v59, %v661_v26  ;;  %v697_v9 = vadd.f32 %v5486_v63, %v667_v46  ;;  %v10630_v46 = vld [vmem:[#allocation30_spill] sm:$0xff] }
 0x12a   : > { %v710_v7 = vadd.f32 %v5530_v17, %v680_v54  ;;  %v716_v0 = vadd.f32 %v5534_v14, %v686_v24  ;;  %v734_v56 = vmul.f32 %v5032_v36, %v732_v8  ;;  %v733_v31 = vmul.f32 %v5032_v36, %v730_v13 }
 0x12b   : > { %v709_v59 = vadd.f32 %v707_v4, %v679_v1  ;;  %v715_v11 = vadd.f32 %v713_v39, %v685_v30  ;;  %v721_v63 = vadd.f32 %v719_v34, %v691_v23  ;;  %v727_v18 = vadd.f32 %v725_v43, %v697_v9  ;;  %v10631_v9 = vld [vmem:[#allocation29_spill] sm:$0xff] }
 0x12c   : > { %v10628_v17 = vstv %s5443_s8  ;;  %v744_v14 = vmul.f32 %v742_v29, %v734_v56  ;;  %v750_v58 = vmul.f32 %v748_v32, %v734_v56  ;;  %v756_v27 = vmul.f32 %v754_v15, %v734_v56  ;;  %s5735_s8 = sld [smem:[#allocation7 + $0x67]] }
 0x12d   : > { %v738_v5 = vmul.f32 %v10628_v17, %v734_v56  ;;  %v10629_v6 = vmov %v10628_v17  ;;  %v743_v33 = vmul.f32 %v742_v29, %v733_v31  ;;  %v749_v62 = vmul.f32 %v748_v32, %v733_v31  ;;  %v790_v43 = vpop.permute.xlu1 %789  ;;  %v762_v54 = vpop.permute.xlu0 %761 }
 0x12e   : > { %v737_v47 = vmul.f32 %v10629_v6, %v733_v31  ;;  %v755_v49 = vmul.f32 %v754_v15, %v733_v31  ;;  %v722_v4 = vadd.f32 %v5538_v16, %v692_v44  ;;  %v728_v39 = vadd.f32 %v5547_v53, %v698_v19 }
 0x12f   : > { %v767_v40 = vmul.f32 %v766_v52, %v763_v2  ;;  %v773_v51 = vmul.f32 %v772_v22, %v763_v2  ;;  %v5673_v28 = vadd.f32 %v738_v5, %v710_v7  ;;  %v5675_v29 = vadd.f32 %v744_v14, %v716_v0 }
 0x130   : > { %v739_v32 = vadd.f32 %v737_v47, %v709_v59  ;;  %v745_v15 = vadd.f32 %v743_v33, %v715_v11  ;;  %v751_v60 = vadd.f32 %v749_v62, %v721_v63  ;;  %v757_v16 = vadd.f32 %v755_v49, %v727_v18  ;;  %v10632_v62 = vld [vmem:[#allocation33_spill] sm:$0xff] }
 0x131   : > { %v779_v53 = vmul.f32 %v778_v25, %v763_v2  ;;  %v785_v61 = vmul.f32 %v784_v55, %v763_v2  ;;  %v752_v45 = vadd.f32 %v750_v58, %v722_v4  ;;  %v758_v20 = vadd.f32 %v756_v27, %v728_v39 }
 0x132   : > { %v796_v38 = vstv %s5597_s28  ;;  %v802_v41 = vstv %s5603_s26  ;;  %v769_v12 = vadd.f32 %v767_v40, %v739_v32  ;;  %v775_v10 = vadd.f32 %v773_v51, %v745_v15  ;;  %v792_v51 = vpop.permute.xlu2 %791  ;;  %s5813_s28 = sld [smem:[#allocation7 + $0x5f]] }
 0x133   : > { %v820_v42 = vstv %s5623_s18  ;;  %v826_v48 = vstv %s5625_s15  ;;  %v808_v35 = vstv %s5613_s16  ;;  %v814_v50 = vstv %s5615_s17  ;;  %s5818_s26 = sld [smem:[#allocation7 + $0x83]] }
 0x134   : > { %v832_v57 = vstv %s5631_s22  ;;  %v838_v34 = vstv %s5637_s9  ;;  %v781_v24 = vadd.f32 %v779_v53, %v751_v60  ;;  %v787_v3 = vadd.f32 %v785_v61, %v757_v16  ;;  %v10633_v53 = vld [vmem:[#allocation32_spill] sm:$0xff]  ;;  %s5823_s16 = sld [smem:[#allocation7 + $0x20]] }
 0x135   : > { %v844_v21 = vstv %s5643_s30  ;;  %v850_v26 = vstv %s5645_s13  ;;  %v821_v8 = vmul.f32 %v820_v42, %v10630_v46  ;;  %v827_v13 = vmul.f32 %v826_v48, %v10630_v46  ;;  %s5827_s17 = sld [smem:[#allocation7 + $0x44]] }
 0x136   : > { %v856_v44 = vstv %s5655_s7  ;;  %v862_v19 = vstv %s5665_s12  ;;  %v833_v2 = vmul.f32 %v832_v57, %v10630_v46  ;;  %v839_v1 = vmul.f32 %v838_v34, %v10630_v46  ;;  %s5829_s18 = sld [smem:[#allocation7 + $0x68]] }
 0x137   : > { %v793_v30 = vmul.f32 %v5032_v36, %v790_v43  ;;  %v764_v23 = vmul.f32 %v5032_v36, %v762_v54  ;;  %v845_v7 = vmul.f32 %v844_v21, %v10631_v9  ;;  %v851_v0 = vmul.f32 %v850_v26, %v10631_v9  ;;  %s5833_s15 = sld [smem:[#allocation7 + $0x8c]] }
 0x138   : > { %v857_v56 = vmul.f32 %v856_v44, %v10631_v9  ;;  %v863_v31 = vmul.f32 %v862_v19, %v10631_v9  ;;  %v822_v49 = vmul.f32 %v820_v42, %v10632_v62  ;;  %v828_v4 = vmul.f32 %v826_v48, %v10632_v62  ;;  %s5837_s22 = sld [smem:[#allocation7 + $0x6]] }
 0x139   : > { %v797_v59 = vmul.f32 %v796_v38, %v793_v30  ;;  %v803_v11 = vmul.f32 %v802_v41, %v793_v30  ;;  %v809_v63 = vmul.f32 %v808_v35, %v793_v30  ;;  %v815_v18 = vmul.f32 %v814_v50, %v793_v30  ;;  %s5841_s9 = sld [smem:[#allocation7 + $0x2a]] }
 0x13a   : > { %v768_v17 = vmul.f32 %v766_v52, %v764_v23  ;;  %v774_v5 = vmul.f32 %v772_v22, %v764_v23  ;;  %v780_v14 = vmul.f32 %v778_v25, %v764_v23  ;;  %v786_v58 = vmul.f32 %v784_v55, %v764_v23  ;;  %s5844_s30 = sld [smem:[#allocation7 + $0x4e]] }
 0x13b   : > { %v799_v27 = vadd.f32 %v797_v59, %v769_v12  ;;  %v805_v6 = vadd.f32 %v803_v11, %v775_v10  ;;  %v811_v47 = vadd.f32 %v809_v63, %v781_v24  ;;  %v817_v33 = vadd.f32 %v815_v18, %v787_v3  ;;  %v10635_v59 = vld [vmem:[#allocation36_spill] sm:$0xff]  ;;  %s5846_s13 = sld [smem:[#allocation7 + $0x72]] }
 0x13c   : > { %v834_v52 = vmul.f32 %v832_v57, %v10632_v62  ;;  %v840_v22 = vmul.f32 %v838_v34, %v10632_v62  ;;  %v770_v32 = vadd.f32 %v768_v17, %v5673_v28  ;;  %v776_v15 = vadd.f32 %v774_v5, %v5675_v29  ;;  %s5849_s7 = sld [smem:[#allocation7 + $0xf]] }
 0x13d   : > { %v823_v25 = vadd.f32 %v821_v8, %v799_v27  ;;  %v829_v55 = vadd.f32 %v827_v13, %v805_v6  ;;  %v835_v39 = vadd.f32 %v833_v2, %v811_v47  ;;  %v841_v40 = vadd.f32 %v839_v1, %v817_v33  ;;  %s5851_s12 = sld [smem:[#allocation7 + $0x33]] }
 0x13e   : > { %v782_v60 = vadd.f32 %v780_v14, %v752_v45  ;;  %v788_v16 = vadd.f32 %v786_v58, %v758_v20  ;;  %v846_v61 = vmul.f32 %v844_v21, %v10633_v53  ;;  %v852_v12 = vmul.f32 %v850_v26, %v10633_v53  ;;  %v10634_v26 = vld [vmem:[#allocation34_spill] sm:$0xff] }
 0x13f   : > { %v858_v10 = vmul.f32 %v856_v44, %v10633_v53  ;;  %v864_v42 = vmul.f32 %v862_v19, %v10633_v53  ;;  %v5745_v28 = vadd.f32 %v845_v7, %v823_v25  ;;  %v5747_v29 = vadd.f32 %v851_v0, %v829_v55  ;;  %v946_v53 = vpop.permute.xlu2 %945 }
 0x140   : > { %v5749_v45 = vadd.f32 %v857_v56, %v835_v39  ;;  %v794_v20 = vmul.f32 %v5032_v36, %v792_v51  ;;  %v5754_v48 = vadd.f32 %v863_v31, %v841_v40  ;;  %v868_v57 = vstv %s5699_s25  ;;  %v10636_v39 = vld [vmem:[#allocation31_spill] sm:$0xff]  ;;  %s5853_s25 = sld [smem:[#allocation7 + $0x57]] }
 0x141   : > { %v874_v34 = vstv %s5705_s20  ;;  %v880_v43 = vstv %s5715_s19  ;;  %v870_v46 = vmul.f32 %v868_v57, %v10634_v26  ;;  %v886_v44 = vstv %s5725_s11  ;;  %s5858_s20 = sld [smem:[#allocation7 + $0x7b]] }
 0x142   : > { %v798_v54 = vmul.f32 %v796_v38, %v794_v20  ;;  %v804_v24 = vmul.f32 %v802_v41, %v794_v20  ;;  %v810_v3 = vmul.f32 %v808_v35, %v794_v20  ;;  %v816_v21 = vmul.f32 %v814_v50, %v794_v20  ;;  %v918_v38 = vpop.permute.xlu1 %917  ;;  %v916_v41 = vpop.permute.xlu0 %915  ;;  %s5861_s19 = sld [smem:[#allocation7 + $0x18]] }
 0x143   : > { %v876_v8 = vmul.f32 %v874_v34, %v10634_v26  ;;  %v882_v13 = vmul.f32 %v880_v43, %v10634_v26  ;;  %v888_v50 = vmul.f32 %v886_v44, %v10634_v26  ;;  %v892_v30 = vstv %s5727_s24  ;;  %s5863_s11 = sld [smem:[#allocation7 + $0x3c]] }
 0x144   : > { %v800_v19 = vadd.f32 %v798_v54, %v770_v32  ;;  %v806_v35 = vadd.f32 %v804_v24, %v776_v15  ;;  %v812_v2 = vadd.f32 %v810_v3, %v782_v60  ;;  %v818_v1 = vadd.f32 %v816_v21, %v788_v16  ;;  %s5866_s24 = sld [smem:[#allocation7 + $0x60]] }
 0x145   : > { %v898_v23 = vstv %s5733_s27  ;;  %v904_v9 = vstv %s5735_s8  ;;  %v894_v11 = vmul.f32 %v892_v30, %v10635_v59  ;;  %v910_v17 = vstv %s5743_s2  ;;  %s5871_s27 = sld [smem:[#allocation7 + $0x84]] }
 0x146   : > { %v824_v7 = vadd.f32 %v822_v49, %v800_v19  ;;  %v830_v0 = vadd.f32 %v828_v4, %v806_v35  ;;  %v836_v56 = vadd.f32 %v834_v52, %v812_v2  ;;  %v842_v31 = vadd.f32 %v840_v22, %v818_v1  ;;  %s5873_s8 = sld [smem:[#allocation7 + $0x21]] }
 0x147   : > { %v900_v63 = vmul.f32 %v898_v23, %v10635_v59  ;;  %v906_v18 = vmul.f32 %v904_v9, %v10635_v59  ;;  %v912_v6 = vmul.f32 %v910_v17, %v10635_v59  ;;  %v922_v47 = vstv %s5752_s21  ;;  %s5877_s2 = sld [smem:[#allocation7 + $0x45]] }
 0x148   : > { %v848_v5 = vadd.f32 %v846_v61, %v824_v7  ;;  %v854_v14 = vadd.f32 %v852_v12, %v830_v0  ;;  %v860_v58 = vadd.f32 %v858_v10, %v836_v56  ;;  %v866_v27 = vadd.f32 %v864_v42, %v842_v31  ;;  %v10637_v10 = vld [vmem:[#allocation35_spill] sm:$0xff]  ;;  %s5879_s21 = sld [smem:[#allocation7 + $0x69]] }
 0x149   : > { %v928_v33 = vstv %s5759_s4  ;;  %v920_v62 = vmul.f32 %v5035_v37, %v918_v38  ;;  %v934_v25 = vstv %s5769_s14  ;;  %v940_v55 = vstv %s5775_s29  ;;  %s5882_s4 = sld [smem:[#allocation7 + $0x8d]] }
 0x14a   : > { %v872_v49 = vadd.f32 %v870_v46, %v848_v5  ;;  %v878_v4 = vadd.f32 %v876_v8, %v854_v14  ;;  %v884_v52 = vadd.f32 %v882_v13, %v860_v58  ;;  %v890_v22 = vadd.f32 %v888_v50, %v866_v27  ;;  %v978_v27 = vpop.permute.xlu2 %977  ;;  %s5886_s14 = sld [smem:[#allocation7 + $0x7]] }
 0x14b   : > { %v869_v40 = vmul.f32 %v868_v57, %v10636_v39  ;;  %v875_v51 = vmul.f32 %v874_v34, %v10636_v39  ;;  %v924_v60 = vmul.f32 %v922_v47, %v920_v62  ;;  %v930_v16 = vmul.f32 %v928_v33, %v920_v62  ;;  %v976_v57 = vpop.permute.xlu1 %975  ;;  %v948_v34 = vpop.permute.xlu0 %947  ;;  %s5891_s29 = sld [smem:[#allocation7 + $0x2b]] }
 0x14c   : > { %v896_v32 = vadd.f32 %v894_v11, %v872_v49  ;;  %v902_v15 = vadd.f32 %v900_v63, %v878_v4  ;;  %v881_v61 = vmul.f32 %v880_v43, %v10636_v39  ;;  %v887_v12 = vmul.f32 %v886_v44, %v10636_v39 }
 0x14d   : > { %v893_v42 = vmul.f32 %v892_v30, %v10637_v10  ;;  %v899_v20 = vmul.f32 %v898_v23, %v10637_v10  ;;  %v908_v54 = vadd.f32 %v906_v18, %v884_v52  ;;  %v914_v24 = vadd.f32 %v912_v6, %v890_v22 }
 0x14e   : > { %v936_v3 = vmul.f32 %v934_v25, %v920_v62  ;;  %v942_v21 = vmul.f32 %v940_v55, %v920_v62  ;;  %v905_v26 = vmul.f32 %v904_v9, %v10637_v10  ;;  %v911_v43 = vmul.f32 %v910_v17, %v10637_v10 }
 0x14f   : > { %v871_v46 = vadd.f32 %v869_v40, %v5745_v28  ;;  %v877_v8 = vadd.f32 %v875_v51, %v5747_v29  ;;  %v926_v13 = vadd.f32 %v924_v60, %v896_v32  ;;  %v883_v44 = vadd.f32 %v881_v61, %v5749_v45 }
 0x150   : > { %v889_v38 = vadd.f32 %v887_v12, %v5754_v48  ;;  %v919_v19 = vmul.f32 %v5035_v37, %v916_v41  ;;  %v932_v35 = vadd.f32 %v930_v16, %v902_v15  ;;  %v952_v28 = vstv %s5789_s5  ;;  %s5893_s5 = sld [smem:[#allocation7 + $0x4f]] }
 0x151   : > { %v895_v2 = vadd.f32 %v893_v42, %v871_v46  ;;  %v901_v1 = vadd.f32 %v899_v20, %v877_v8  ;;  %v907_v50 = vadd.f32 %v905_v26, %v883_v44  ;;  %v958_v45 = vstv %s5791_s6  ;;  %s5895_s6 = sld [smem:[#allocation7 + $0x73]] }
 0x152   : > { %v913_v29 = vadd.f32 %v911_v43, %v889_v38  ;;  %v923_v30 = vmul.f32 %v922_v47, %v919_v19  ;;  %v929_v23 = vmul.f32 %v928_v33, %v919_v19  ;;  %v935_v9 = vmul.f32 %v934_v25, %v919_v19 }
 0x153   : > { %v941_v7 = vmul.f32 %v940_v55, %v919_v19  ;;  %v949_v48 = vmul.f32 %v5035_v37, %v946_v53  ;;  %v964_v56 = vstv %s5797_s23  ;;  %v970_v31 = vstv %s5799_s10  ;;  %v1008_v49 = vpop.permute.xlu1 %1007  ;;  %v1006_v4 = vpop.permute.xlu0 %1005  ;;  %s5897_s23 = sld [smem:[#allocation7 + $0x10]] }
 0x154   : > { %v925_v41 = vadd.f32 %v923_v30, %v895_v2  ;;  %v931_v0 = vadd.f32 %v929_v23, %v901_v1  ;;  %v938_v59 = vadd.f32 %v936_v3, %v908_v54  ;;  %v944_v11 = vadd.f32 %v942_v21, %v914_v24  ;;  %s5899_s10 = sld [smem:[#allocation7 + $0x34]] }
 0x155   : > { %v937_v63 = vadd.f32 %v935_v9, %v907_v50  ;;  %v943_v18 = vadd.f32 %v941_v7, %v913_v29  ;;  %v953_v17 = vmul.f32 %v952_v28, %v949_v48  ;;  %v959_v5 = vmul.f32 %v958_v45, %v949_v48  ;;  %v1061_v29 = vpop.permute.xlu2 %1060 }
 0x156   : > { %v982_v14 = vstv %s5805_s3  ;;  %v988_v58 = vstv %s5807_s1  ;;  %v965_v6 = vmul.f32 %v964_v56, %v949_v48  ;;  %v971_v47 = vmul.f32 %v970_v31, %v949_v48  ;;  %s5904_s3 = sld [smem:[#allocation7 + $0x58]] }
 0x157   : > { %v979_v33 = vmul.f32 %v5035_v37, %v976_v57  ;;  %v950_v62 = vmul.f32 %v5035_v37, %v948_v34  ;;  %v955_v52 = vadd.f32 %v953_v17, %v925_v41  ;;  %v961_v22 = vadd.f32 %v959_v5, %v931_v0  ;;  %s5910_s1 = sld [smem:[#allocation7 + $0x7c]] }
 0x158   : > { %v994_v25 = vstv %s5813_s28  ;;  %v1000_v55 = vstv %s5818_s26  ;;  %v967_v39 = vadd.f32 %v965_v6, %v937_v63  ;;  %v973_v40 = vadd.f32 %v971_v47, %v943_v18  ;;  %s5912_s28 = sld [smem:[#allocation7 + $0x19]] }
 0x159   : > { %v983_v51 = vmul.f32 %v982_v14, %v979_v33  ;;  %v980_v32 = vmul.f32 %v5035_v37, %v978_v27  ;;  %v954_v15 = vmul.f32 %v952_v28, %v950_v62  ;;  %v960_v60 = vmul.f32 %v958_v45, %v950_v62  ;;  %s5915_s26 = sld [smem:[#allocation7 + $0x3d]] }
 0x15a   : > { %v966_v16 = vmul.f32 %v964_v56, %v950_v62  ;;  %v972_v53 = vmul.f32 %v970_v31, %v950_v62  ;;  %v989_v61 = vmul.f32 %v988_v58, %v979_v33  ;;  %v995_v12 = vmul.f32 %v994_v25, %v979_v33 }
 0x15b   : > { %v1001_v10 = vmul.f32 %v1000_v55, %v979_v33  ;;  %v1012_v42 = vstv %s5823_s16  ;;  %v956_v20 = vadd.f32 %v954_v15, %v926_v13  ;;  %v962_v57 = vadd.f32 %v960_v60, %v932_v35  ;;  %v1091_v45 = vpop.permute.xlu1 %1090  ;;  %v1063_v48 = vpop.permute.xlu0 %1062  ;;  %s5925_s16 = sld [smem:[#allocation7 + $0x61]] }
 0x15c   : > { %v968_v34 = vadd.f32 %v966_v16, %v938_v59  ;;  %v974_v54 = vadd.f32 %v972_v53, %v944_v11  ;;  %v984_v24 = vmul.f32 %v982_v14, %v980_v32  ;;  %v990_v3 = vmul.f32 %v988_v58, %v980_v32 }
 0x15d   : > { %v996_v21 = vmul.f32 %v994_v25, %v980_v32  ;;  %v1002_v26 = vmul.f32 %v1000_v55, %v980_v32  ;;  %v985_v43 = vadd.f32 %v983_v51, %v955_v52  ;;  %v1018_v46 = vstv %s5827_s17  ;;  %s5927_s17 = sld [smem:[#allocation7 + $0x85]] }
 0x15e   : > { %v1024_v8 = vstv %s5829_s18  ;;  %v1010_v44 = vmul.f32 %v5035_v37, %v1008_v49  ;;  %v991_v13 = vadd.f32 %v989_v61, %v961_v22  ;;  %v997_v38 = vadd.f32 %v995_v12, %v967_v39  ;;  %s5929_s18 = sld [smem:[#allocation7 + $0x22]] }
 0x15f   : > { %v1003_v19 = vadd.f32 %v1001_v10, %v973_v40  ;;  %v1030_v35 = vstv %s5833_s15  ;;  %v986_v2 = vadd.f32 %v984_v24, %v956_v20  ;;  %v992_v1 = vadd.f32 %v990_v3, %v962_v57  ;;  %v1093_v57 = vpop.permute.xlu2 %1092  ;;  %s5931_s15 = sld [smem:[#allocation7 + $0x46]] }
 0x160   : > { %v1014_v28 = vmul.f32 %v1012_v42, %v1010_v44  ;;  %v1020_v50 = vmul.f32 %v1018_v46, %v1010_v44  ;;  %v998_v30 = vadd.f32 %v996_v21, %v968_v34  ;;  %v1004_v23 = vadd.f32 %v1002_v26, %v974_v54 }
 0x161   : > { %v1026_v9 = vmul.f32 %v1024_v8, %v1010_v44  ;;  %v1009_v7 = vmul.f32 %v5035_v37, %v1006_v4  ;;  %v1032_v41 = vmul.f32 %v1030_v35, %v1010_v44  ;;  %v1067_v0 = vstv %s5837_s22  ;;  %s5937_s22 = sld [smem:[#allocation7 + $0x6a]] }
 0x162   : > { %v1073_v56 = vstv %s5841_s9  ;;  %v1079_v31 = vstv %s5844_s30  ;;  %v1016_v17 = vadd.f32 %v1014_v28, %v986_v2  ;;  %v1022_v5 = vadd.f32 %v1020_v50, %v992_v1  ;;  %s5945_s9 = sld [smem:[#allocation7 + $0x8e]] }
 0x163   : > { %v1013_v59 = vmul.f32 %v1012_v42, %v1009_v7  ;;  %v1019_v11 = vmul.f32 %v1018_v46, %v1009_v7  ;;  %v1025_v63 = vmul.f32 %v1024_v8, %v1009_v7  ;;  %v1031_v18 = vmul.f32 %v1030_v35, %v1009_v7  ;;  %v1123_v21 = vpop.permute.xlu1 %1122  ;;  %v1121_v26 = vpop.permute.xlu0 %1120  ;;  %s5971_s30 = sld [smem:[#allocation7 + $0x8]] }
 0x164   : > { %v1085_v14 = vstv %s5846_s13  ;;  %v1064_v58 = vmul.f32 %v5032_v36, %v1061_v29  ;;  %v1028_v27 = vadd.f32 %v1026_v9, %v998_v30  ;;  %v1097_v52 = vstv %s5849_s7  ;;  %s5981_s13 = sld [smem:[#allocation7 + $0x2c]] }
 0x165   : > { %v1015_v6 = vadd.f32 %v1013_v59, %v985_v43  ;;  %v1021_v47 = vadd.f32 %v1019_v11, %v991_v13  ;;  %v1027_v33 = vadd.f32 %v1025_v63, %v997_v38  ;;  %v1033_v22 = vadd.f32 %v1031_v18, %v1003_v19  ;;  %s5995_s7 = sld [smem:[#allocation7 + $0x50]] }
 0x166   : > { %v1068_v62 = vmul.f32 %v1067_v0, %v1064_v58  ;;  %v1074_v49 = vmul.f32 %v1073_v56, %v1064_v58  ;;  %v1080_v4 = vmul.f32 %v1079_v31, %v1064_v58  ;;  %v1086_v25 = vmul.f32 %v1085_v14, %v1064_v58 }
 0x167   : > { %v1094_v55 = vmul.f32 %v5032_v36, %v1091_v45  ;;  %v1065_v39 = vmul.f32 %v5032_v36, %v1063_v48  ;;  %v1034_v40 = vadd.f32 %v1032_v41, %v1004_v23  ;;  %v1103_v51 = vstv %s5851_s12  ;;  %s5997_s12 = sld [smem:[#allocation7 + $0x74]] }
 0x168   : > { %v1109_v32 = vstv %s5853_s25  ;;  %v1115_v15 = vstv %s5858_s20  ;;  %v1070_v60 = vadd.f32 %v1068_v62, %v1015_v6  ;;  %v1076_v16 = vadd.f32 %v1074_v49, %v1021_v47  ;;  %s6045_s25 = sld [smem:[#allocation7 + $0x11]] }
 0x169   : > { %v1082_v53 = vadd.f32 %v1080_v4, %v1027_v33  ;;  %v1098_v61 = vmul.f32 %v1097_v52, %v1094_v55  ;;  %v1069_v12 = vmul.f32 %v1067_v0, %v1065_v39  ;;  %v1075_v10 = vmul.f32 %v1073_v56, %v1065_v39  ;;  %s6066_s20 = sld [smem:[#allocation7 + $0x35]] }
 0x16a   : > { %v1081_v42 = vmul.f32 %v1079_v31, %v1065_v39  ;;  %v1087_v20 = vmul.f32 %v1085_v14, %v1065_v39  ;;  %v1088_v34 = vadd.f32 %v1086_v25, %v1033_v22  ;;  %v1104_v54 = vmul.f32 %v1103_v51, %v1094_v55  ;;  %v10638_v25 = vld [vmem:[#allocation49_spill] sm:$0xff] }
 0x16b   : > { %v1110_v24 = vmul.f32 %v1109_v32, %v1094_v55  ;;  %v1116_v3 = vmul.f32 %v1115_v15, %v1094_v55  ;;  %v1100_v43 = vadd.f32 %v1098_v61, %v1070_v60  ;;  %v1071_v46 = vadd.f32 %v1069_v12, %v1016_v17  ;;  %v10639_v61 = vld [vmem:[#allocation52_spill] sm:$0xff] }
 0x16c   : > { %v1077_v8 = vadd.f32 %v1075_v10, %v1022_v5  ;;  %v1083_v44 = vadd.f32 %v1081_v42, %v1028_v27  ;;  %v1089_v13 = vadd.f32 %v1087_v20, %v1034_v40  ;;  %v1095_v38 = vmul.f32 %v5032_v36, %v1093_v57 }
 0x16d   : > { %v1127_v19 = vstv %s5861_s19  ;;  %v1133_v35 = vstv %s5863_s11  ;;  %v1139_v2 = vstv %s5866_s24  ;;  %v1145_v1 = vstv %s5871_s27  ;;  %s6068_s19 = sld [smem:[#allocation7 + $0x59]] }
 0x16e   : > { %v1125_v28 = vmul.f32 %v5032_v36, %v1123_v21  ;;  %v1124_v50 = vmul.f32 %v5032_v36, %v1121_v26  ;;  %v1099_v29 = vmul.f32 %v1097_v52, %v1095_v38  ;;  %v1105_v30 = vmul.f32 %v1103_v51, %v1095_v38  ;;  %s6082_s11 = sld [smem:[#allocation7 + $0x7d]] }
 0x16f   : > { %v1111_v23 = vmul.f32 %v1109_v32, %v1095_v38  ;;  %v1117_v9 = vmul.f32 %v1115_v15, %v1095_v38  ;;  %v1106_v7 = vadd.f32 %v1104_v54, %v1076_v16  ;;  %v1112_v45 = vadd.f32 %v1110_v24, %v1082_v53  ;;  %v1151_v32 = vpop.permute.xlu2 %1150  ;;  %v10640_v38 = vld [vmem:[#allocation61_spill] sm:$0xff]  ;;  %s6084_s24 = sld [smem:[#allocation7 + $0x1a]] }
 0x170   : > { %v1118_v48 = vadd.f32 %v1116_v3, %v1088_v34  ;;  %v1157_v41 = vstv %s5873_s8  ;;  %v5917_v0 = vmul.f32 %v1127_v19, %v1125_v28  ;;  %v5919_v56 = vmul.f32 %v1133_v35, %v1125_v28  ;;  %s6096_s27 = sld [smem:[#allocation7 + $0x3e]] }
 0x171   : > { %v5921_v31 = vmul.f32 %v1139_v2, %v1125_v28  ;;  %v5923_v59 = vmul.f32 %v1145_v1, %v1125_v28  ;;  %v1128_v11 = vmul.f32 %v1127_v19, %v1124_v50  ;;  %v1134_v63 = vmul.f32 %v1133_v35, %v1124_v50  ;;  %s6098_s8 = sld [smem:[#allocation7 + $0x62]] }
 0x172   : > { %v1140_v18 = vmul.f32 %v1139_v2, %v1124_v50  ;;  %v1146_v17 = vmul.f32 %v1145_v1, %v1124_v50  ;;  %v1101_v5 = vadd.f32 %v1099_v29, %v1071_v46  ;;  %v1107_v14 = vadd.f32 %v1105_v30, %v1077_v8 }
 0x173   : > { %v1113_v58 = vadd.f32 %v1111_v23, %v1083_v44  ;;  %v1119_v27 = vadd.f32 %v1117_v9, %v1089_v13  ;;  %v1130_v6 = vadd.f32 %v1128_v11, %v1100_v43  ;;  %v1136_v47 = vadd.f32 %v1134_v63, %v1106_v7 }
 0x174   : > { %v1142_v33 = vadd.f32 %v1140_v18, %v1112_v45  ;;  %v1148_v62 = vadd.f32 %v1146_v17, %v1118_v48  ;;  %v1163_v49 = vstv %s5877_s2  ;;  %v1169_v4 = vstv %s5879_s21  ;;  %s6101_s2 = sld [smem:[#allocation7 + $0x86]] }
 0x175   : > { %v1175_v52 = vstv %s5882_s4  ;;  %v1181_v22 = vstv %s5886_s14  ;;  %v1187_v39 = vstv %s5891_s29  ;;  %v1193_v40 = vstv %s5893_s5  ;;  %s6103_s21 = sld [smem:[#allocation7 + $0x23]] }
 0x176   : > { %v1182_v55 = vmul.f32 %v1181_v22, %v10638_v25  ;;  %v1199_v51 = vstv %s5895_s6  ;;  %v1188_v15 = vmul.f32 %v1187_v39, %v10638_v25  ;;  %v1194_v60 = vmul.f32 %v1193_v40, %v10638_v25  ;;  %s6112_s4 = sld [smem:[#allocation7 + $0x47]] }
 0x177   : > { %v1200_v16 = vmul.f32 %v1199_v51, %v10638_v25  ;;  %v1205_v53 = vstv %s5897_s23  ;;  %v1211_v10 = vstv %s5899_s10  ;;  %v1217_v42 = vstv %s5904_s3  ;;  %s6114_s14 = sld [smem:[#allocation7 + $0x6b]]  ;;  %s10647_s10 = smov 1  }
 0x178   : > { %v1206_v12 = vmul.f32 %v1205_v53, %v10639_v61  ;;  %v1223_v20 = vstv %s5910_s1  ;;  %v1212_v57 = vmul.f32 %v1211_v10, %v10639_v61  ;;  %v1218_v34 = vmul.f32 %v1217_v42, %v10639_v61  ;;  %s6121_s29 = sld [smem:[#allocation8]] }
 0x179   : > { %v1224_v54 = vmul.f32 %v1223_v20, %v10639_v61  ;;  %v1154_v24 = vmul.f32 %v5032_v36, %v1151_v32  ;;  %v1229_v3 = vstv %s5912_s28  ;;  %v1235_v21 = vstv %s5915_s26  ;;  %s6123_s5 = sld [smem:[#allocation7 + $0x8f]] }
 0x17a   : > { %v1241_v26 = vstv %s5925_s16  ;;  %v1247_v43 = vstv %s5927_s17  ;;  %v1230_v19 = vmul.f32 %v1229_v3, %v10640_v38  ;;  %v1236_v35 = vmul.f32 %v1235_v21, %v10640_v38  ;;  %s6126_s6 = sld [smem:[#allocation9]] }
 0x17b   : > { %v1158_v46 = vmul.f32 %v1157_v41, %v1154_v24  ;;  %v1164_v8 = vmul.f32 %v1163_v49, %v1154_v24  ;;  %v1170_v44 = vmul.f32 %v1169_v4, %v1154_v24  ;;  %v1176_v13 = vmul.f32 %v1175_v52, %v1154_v24  ;;  %v10642_v24 = vld [vmem:[#allocation53_spill] sm:$0xff]  ;;  %s10646_s23 = sld [smem:[#allocation27_spill]] }
 0x17c   : > { %v1242_v2 = vmul.f32 %v1241_v26, %v10640_v38  ;;  %v1248_v1 = vmul.f32 %v1247_v43, %v10640_v38  ;;  %v1253_v23 = vstv %s5929_s18  ;;  %v1259_v9 = vstv %s5931_s15  ;;  %s6240_s3 = sld [smem:[#allocation7 + $0xa3]] }
 0x17d   : > { %v1160_v28 = vadd.f32 %v1158_v46, %v1130_v6  ;;  %v1166_v50 = vadd.f32 %v1164_v8, %v1136_v47  ;;  %v1172_v29 = vadd.f32 %v1170_v44, %v1142_v33  ;;  %v1178_v30 = vadd.f32 %v1176_v13, %v1148_v62  ;;  %s6243_s1 = sld [smem:[#allocation7 + $0xc7]] }
 0x17e   : > { %v1265_v7 = vstv %s5937_s22  ;;  %v1271_v45 = vstv %s5945_s9  ;;  %v1131_v17 = vadd.f32 %v5917_v0, %v1101_v5  ;;  %v1137_v6 = vadd.f32 %v5919_v56, %v1107_v14  ;;  %v1277_v5 = vpop.permute.xlu1 %1276  ;;  %s6245_s28 = sld [smem:[#allocation7 + $0xeb]] }
 0x17f   : > { %v1184_v48 = vadd.f32 %v1182_v55, %v1160_v28  ;;  %v1190_v11 = vadd.f32 %v1188_v15, %v1166_v50  ;;  %v1196_v63 = vadd.f32 %v1194_v60, %v1172_v29  ;;  %v1202_v18 = vadd.f32 %v1200_v16, %v1178_v30  ;;  %v10641_v55 = vld [vmem:[#allocation65_spill] sm:$0xff]  ;;  %v10643_v50 = vld [vmem:[#allocation51_spill] sm:$0xff]  ;;  %s6251_s26 = sld [smem:[#allocation7 + $0x10f]] }
 0x180   : > { %v1143_v47 = vadd.f32 %v5921_v31, %v1113_v58  ;;  %v1149_v33 = vadd.f32 %v5923_v59, %v1119_v27  ;;  %v1254_v15 = vmul.f32 %v1253_v23, %v10641_v55  ;;  %v1260_v0 = vmul.f32 %v1259_v9, %v10641_v55  ;;  %s6259_s16 = sld [smem:[#allocation7 + $0xac]] }
 0x181   : > { %v1208_v62 = vadd.f32 %v1206_v12, %v1184_v48  ;;  %v1214_v25 = vadd.f32 %v1212_v57, %v1190_v11  ;;  %v1220_v32 = vadd.f32 %v1218_v34, %v1196_v63  ;;  %v1226_v61 = vadd.f32 %v1224_v54, %v1202_v18  ;;  %v1153_v34 = vpop.permute.xlu0 %1152  ;;  %v1279_v18 = vpop.permute.xlu2 %1278  ;;  %s6261_s17 = sld [smem:[#allocation7 + $0xd0]] }
 0x182   : > { %v1266_v56 = vmul.f32 %v1265_v7, %v10641_v55  ;;  %v1272_v31 = vmul.f32 %v1271_v45, %v10641_v55  ;;  %v1283_v60 = vstv %s5971_s30  ;;  %v1289_v16 = vstv %s5981_s13  ;;  %s6263_s18 = sld [smem:[#allocation7 + $0xf4]] }
 0x183   : > { %v1232_v59 = vadd.f32 %v1230_v19, %v1208_v62  ;;  %v1238_v14 = vadd.f32 %v1236_v35, %v1214_v25  ;;  %v1244_v58 = vadd.f32 %v1242_v2, %v1220_v32  ;;  %v1250_v27 = vadd.f32 %v1248_v1, %v1226_v61  ;;  %v10644_v25 = vld [vmem:[#allocation59_spill] sm:$0xff]  ;;  %v10645_v61 = vld [vmem:[#allocation67_spill] sm:$0xff]  ;;  %10649 = sst [smem:[#allocation55_spill]] %s6243_s1 }
 0x184   : > { %v1295_v12 = vstv %s5995_s7  ;;  %v1280_v57 = vmul.f32 %v5035_v37, %v1277_v5  ;;  %v1301_v54 = vstv %s5997_s12  ;;  %v1207_v46 = vmul.f32 %v1205_v53, %v10642_v24  ;;  %10650 = sst [smem:[#allocation56_spill]] %s6245_s28 }
 0x185   : > { %v1213_v8 = vmul.f32 %v1211_v10, %v10642_v24  ;;  %v1219_v44 = vmul.f32 %v1217_v42, %v10642_v24  ;;  %v1256_v13 = vadd.f32 %v1254_v15, %v1232_v59  ;;  %v1262_v38 = vadd.f32 %v1260_v0, %v1238_v14  ;;  %10651 = sst [smem:[#allocation57_spill]] %s6251_s26 }
 0x186   : > { %v1268_v19 = vadd.f32 %v1266_v56, %v1244_v58  ;;  %v1284_v35 = vmul.f32 %v1283_v60, %v1280_v57  ;;  %v1274_v2 = vadd.f32 %v1272_v31, %v1250_v27  ;;  %v1290_v1 = vmul.f32 %v1289_v16, %v1280_v57  ;;  %s6267_s15 = sld [smem:[#allocation7 + $0x118]] }
 0x187   : > { %v1296_v53 = vmul.f32 %v1295_v12, %v1280_v57  ;;  %v1155_v10 = vmul.f32 %v5032_v36, %v1153_v34  ;;  %v1302_v28 = vmul.f32 %v1301_v54, %v1280_v57  ;;  %v1225_v42 = vmul.f32 %v1223_v20, %v10642_v24  ;;  %v1309_v57 = vpop.permute.xlu1 %1308  ;;  %10652 = sst [smem:[#allocation58_spill]] %s6261_s17 }
 0x188   : > { %v1183_v29 = vmul.f32 %v1181_v22, %v10643_v50  ;;  %v1189_v30 = vmul.f32 %v1187_v39, %v10643_v50  ;;  %v6055_v62 = vadd.f32 %v1284_v35, %v1256_v13  ;;  %v1195_v22 = vmul.f32 %v1193_v40, %v10643_v50  ;;  %10653 = sst [smem:[#allocation60_spill]] %s6263_s18 }
 0x189   : > { %v1159_v48 = vmul.f32 %v1157_v41, %v1155_v10  ;;  %v1165_v11 = vmul.f32 %v1163_v49, %v1155_v10  ;;  %v1171_v63 = vmul.f32 %v1169_v4, %v1155_v10  ;;  %v1177_v20 = vmul.f32 %v1175_v52, %v1155_v10  ;;  %s6269_s22 = sld [smem:[#allocation7 + $0xa0]] }
 0x18a   : > { %v1201_v39 = vmul.f32 %v1199_v51, %v10643_v50  ;;  %v1231_v41 = vmul.f32 %v1229_v3, %v10644_v25  ;;  %v1237_v40 = vmul.f32 %v1235_v21, %v10644_v25  ;;  %v1243_v51 = vmul.f32 %v1241_v26, %v10644_v25  ;;  %s6271_s9 = sld [smem:[#allocation7 + $0xc4]] }
 0x18b   : > { %v1161_v49 = vadd.f32 %v1159_v48, %v1131_v17  ;;  %v1167_v4 = vadd.f32 %v1165_v11, %v1137_v6  ;;  %v1173_v52 = vadd.f32 %v1171_v63, %v1143_v47  ;;  %v1179_v32 = vadd.f32 %v1177_v20, %v1149_v33  ;;  %s6276_s30 = sld [smem:[#allocation7 + $0xe8]] }
 0x18c   : > { %v1249_v3 = vmul.f32 %v1247_v43, %v10644_v25  ;;  %v1255_v55 = vmul.f32 %v1253_v23, %v10645_v61  ;;  %v1261_v21 = vmul.f32 %v1259_v9, %v10645_v61  ;;  %v1267_v26 = vmul.f32 %v1265_v7, %v10645_v61  ;;  %10654 = sst [smem:[#allocation38_spill]] %s6267_s15 }
 0x18d   : > { %v1185_v17 = vadd.f32 %v1183_v29, %v1161_v49  ;;  %v1191_v6 = vadd.f32 %v1189_v30, %v1167_v4  ;;  %v1197_v47 = vadd.f32 %v1195_v22, %v1173_v52  ;;  %v1203_v33 = vadd.f32 %v1201_v39, %v1179_v32  ;;  %s6282_s13 = sld [smem:[#allocation7 + $0x10c]] }
 0x18e   : > { %v1273_v43 = vmul.f32 %v1271_v45, %v10645_v61  ;;  %v1281_v23 = vmul.f32 %v5035_v37, %v1279_v18  ;;  %v1292_v9 = vadd.f32 %v1290_v1, %v1262_v38  ;;  %v1298_v5 = vadd.f32 %v1296_v53, %v1268_v19  ;;  %s6286_s7 = sld [smem:[#allocation7 + $0x91]] }
 0x18f   : > { %v1209_v15 = vadd.f32 %v1207_v46, %v1185_v17  ;;  %v1215_v0 = vadd.f32 %v1213_v8, %v1191_v6  ;;  %v1221_v56 = vadd.f32 %v1219_v44, %v1197_v47  ;;  %v1227_v31 = vadd.f32 %v1225_v42, %v1203_v33  ;;  %v1307_v44 = vpop.permute.xlu0 %1306  ;;  %s6288_s12 = sld [smem:[#allocation7 + $0xb5]] }
 0x190   : > { %v1304_v59 = vadd.f32 %v1302_v28, %v1274_v2  ;;  %v1313_v7 = vstv %s6045_s25  ;;  %v1285_v34 = vmul.f32 %v1283_v60, %v1281_v23  ;;  %v1291_v24 = vmul.f32 %v1289_v16, %v1281_v23  ;;  %v1337_v2 = vpop.permute.xlu2 %1336  ;;  %10655 = sst [smem:[#allocation39_spill]] %s6271_s9 }
 0x191   : > { %v1233_v45 = vadd.f32 %v1231_v41, %v1209_v15  ;;  %v1239_v14 = vadd.f32 %v1237_v40, %v1215_v0  ;;  %v1245_v58 = vadd.f32 %v1243_v51, %v1221_v56  ;;  %v1251_v27 = vadd.f32 %v1249_v3, %v1227_v31  ;;  %s6294_s25 = sld [smem:[#allocation7 + $0xd9]] }
 0x192   : > { %v1297_v46 = vmul.f32 %v1295_v12, %v1281_v23  ;;  %v1311_v8 = vmul.f32 %v5035_v37, %v1309_v57  ;;  %v1303_v1 = vmul.f32 %v1301_v54, %v1281_v23  ;;  %v1319_v60 = vstv %s6066_s20  ;;  %v4436_v57 = vld [vmem:[%s10646_s23 + $0x10] sm:$0xff]  ;;  %s6296_s20 = sld [smem:[#allocation7 + $0xfd]] }
 0x193   : > { %v1257_v13 = vadd.f32 %v1255_v55, %v1233_v45  ;;  %v1263_v38 = vadd.f32 %v1261_v21, %v1239_v14  ;;  %v1269_v19 = vadd.f32 %v1267_v26, %v1245_v58  ;;  %v1275_v35 = vadd.f32 %v1273_v43, %v1251_v27  ;;  %v1367_v26 = vpop.permute.xlu1 %1366  ;;  %v4435_v45 = vld [vmem:[%s10646_s23] sm:$0xff]  ;;  %10657 = sst [smem:[#allocation40_spill]] %s6282_s13 }
 0x194   : > { %v1325_v16 = vstv %s6068_s19  ;;  %v1331_v12 = vstv %s6082_s11  ;;  %v1315_v10 = vmul.f32 %v1313_v7, %v1311_v8  ;;  %v1321_v28 = vmul.f32 %v1319_v60, %v1311_v8  ;;  %10658 = sst [smem:[#allocation41_spill]] %s6286_s7 }
 0x195   : > { %v1287_v53 = vadd.f32 %v1285_v34, %v1257_v13  ;;  %v1327_v42 = vmul.f32 %v1325_v16, %v1311_v8  ;;  %v1293_v50 = vadd.f32 %v1291_v24, %v1263_v38  ;;  %v1299_v29 = vadd.f32 %v1297_v46, %v1269_v19  ;;  %v4437_v24 = vld [vmem:[%s10646_s23 + $0x20] sm:$0xff]  ;;  %10659 = sst [smem:[#allocation42_spill]] %s6288_s12 }
 0x196   : > { %v1333_v30 = vmul.f32 %v1331_v12, %v1311_v8  ;;  %v1310_v54 = vmul.f32 %v5035_v37, %v1307_v44  ;;  %v1305_v48 = vadd.f32 %v1303_v1, %v1275_v35  ;;  %v1343_v11 = vstv %s6084_s24  ;;  %v4438_v8 = vld [vmem:[%s10646_s23 + $0x30] sm:$0xff]  ;;  %s6298_s19 = sld [smem:[#allocation7 + $0x9a]] }
 0x197   : > { %v1349_v63 = vstv %s6096_s27  ;;  %v1355_v20 = vstv %s6098_s8  ;;  %v1317_v41 = vadd.f32 %v1315_v10, %v1287_v53  ;;  %v1361_v49 = vstv %s6101_s2  ;;  %v1339_v43 = vpop.permute.xlu0 %1338  ;;  %10660 = sst [smem:[#allocation43_spill]] %s6294_s25 }
 0x198   : > { %v1314_v18 = vmul.f32 %v1313_v7, %v1310_v54  ;;  %v1320_v22 = vmul.f32 %v1319_v60, %v1310_v54  ;;  %v1326_v39 = vmul.f32 %v1325_v16, %v1310_v54  ;;  %v1332_v25 = vmul.f32 %v1331_v12, %v1310_v54  ;;  %v1369_v56 = vpop.permute.xlu2 %1368  ;;  %10661 = sst [smem:[#allocation48_spill]] %s6296_s20 }
 0x199   : > { %v1340_v4 = vmul.f32 %v5035_v37, %v1337_v2  ;;  %v1323_v6 = vadd.f32 %v1321_v28, %v1293_v50  ;;  %v1329_v47 = vadd.f32 %v1327_v42, %v1299_v29  ;;  %v1335_v33 = vadd.f32 %v1333_v30, %v1305_v48  ;;  %s6306_s11 = sld [smem:[#allocation7 + $0xbe]] }
 0x19a   : > { %v1316_v52 = vadd.f32 %v1314_v18, %v6055_v62  ;;  %v1322_v32 = vadd.f32 %v1320_v22, %v1292_v9  ;;  %v1328_v40 = vadd.f32 %v1326_v39, %v1298_v5  ;;  %v1334_v51 = vadd.f32 %v1332_v25, %v1304_v59  ;;  %v4439_v39 = vld [vmem:[%s10646_s23 + $0x8] sm:$0xff]  ;;  %s6308_s24 = sld [smem:[#allocation7 + $0xe2]] }
 0x19b   : > { %v1344_v3 = vmul.f32 %v1343_v11, %v1340_v4  ;;  %v1350_v61 = vmul.f32 %v1349_v63, %v1340_v4  ;;  %v1356_v55 = vmul.f32 %v1355_v20, %v1340_v4  ;;  %v1362_v17 = vmul.f32 %v1361_v49, %v1340_v4  ;;  %s6314_s27 = sld [smem:[#allocation7 + $0x106]] }
 0x19c   : > { %v6135_v21 = vstv %s6121_s29  ;;  %v1373_v62 = vstv %s6103_s21  ;;  %v1379_v23 = vstv %s6112_s4  ;;  %v1385_v15 = vstv %s6114_s14  ;;  %10662 = sst [smem:[#allocation62_spill]] %s6298_s19 }
 0x19d   : > { %v1391_v0 = vstv %s6123_s5  ;;  %v1346_v31 = vadd.f32 %v1344_v3, %v1316_v52  ;;  %v1352_v9 = vadd.f32 %v1350_v61, %v1322_v32  ;;  %v1358_v5 = vadd.f32 %v1356_v55, %v1328_v40  ;;  %s6318_s8 = sld [smem:[#allocation7 + $0x94]] }
 0x19e   : > { %v1401_v59 = vstv %s6126_s6  ;;  %v1364_v7 = vadd.f32 %v1362_v17, %v1334_v51  ;;  %v1399_v14 = vmul.f32 %v4435_v45, %v6135_v21  ;;  %v1370_v58 = vmul.f32 %v5035_v37, %v1367_v26  ;;  %s6320_s2 = sld [smem:[#allocation7 + $0xb8]] }
 0x19f   : > { %v1341_v27 = vmul.f32 %v5035_v37, %v1339_v43  ;;  %v1406_v34 = vmul.f32 %v4436_v57, %v6135_v21  ;;  %v1412_v46 = vmul.f32 %v4437_v24, %v6135_v21  ;;  %v1418_v44 = vmul.f32 %v4438_v8, %v6135_v21  ;;  %10663 = sst [smem:[#allocation44_spill]] %s6306_s11 }
 0x1a0   : > { %v1371_v13 = vmul.f32 %v5035_v37, %v1369_v56  ;;  %v1374_v38 = vmul.f32 %v1373_v62, %v1370_v58  ;;  %v1380_v19 = vmul.f32 %v1379_v23, %v1370_v58  ;;  %v1386_v35 = vmul.f32 %v1385_v15, %v1370_v58  ;;  %s6324_s21 = sld [smem:[#allocation7 + $0xdc]] }
 0x1a1   : > { %v1392_v2 = vmul.f32 %v1391_v0, %v1370_v58  ;;  %v1345_v1 = vmul.f32 %v1343_v11, %v1341_v27  ;;  %v1351_v60 = vmul.f32 %v1349_v63, %v1341_v27  ;;  %v1357_v16 = vmul.f32 %v1355_v20, %v1341_v27  ;;  %10664 = sst [smem:[#allocation45_spill]] %s6314_s27 }
 0x1a2   : > { %v1363_v12 = vmul.f32 %v1361_v49, %v1341_v27  ;;  %v1376_v53 = vadd.f32 %v1374_v38, %v1346_v31  ;;  %v1382_v10 = vadd.f32 %v1380_v19, %v1352_v9  ;;  %v1388_v28 = vadd.f32 %v1386_v35, %v1358_v5  ;;  %s6326_s4 = sld [smem:[#allocation7 + $0x100]] }
 0x1a3   : > { %v1394_v42 = vadd.f32 %v1392_v2, %v1364_v7  ;;  %v1347_v50 = vadd.f32 %v1345_v1, %v1317_v41  ;;  %v1353_v29 = vadd.f32 %v1351_v60, %v1323_v6  ;;  %v1359_v30 = vadd.f32 %v1357_v16, %v1329_v47  ;;  %v4440_v41 = vld [vmem:[%s10646_s23 + $0x18] sm:$0xff]  ;;  %v4441_v47 = vld [vmem:[%s10646_s23 + $0x28] sm:$0xff]  ;;  %s6328_s14 = sld [smem:[#allocation7 + $0x9d]] }
 0x1a4   : > { %v1365_v54 = vadd.f32 %v1363_v12, %v1335_v33  ;;  %v1402_v48 = vmul.f32 %v1401_v59, %v1376_v53  ;;  %v1408_v18 = vmul.f32 %v1401_v59, %v1382_v10  ;;  %v1414_v22 = vmul.f32 %v1401_v59, %v1388_v28  ;;  %s6333_s29 = sld [smem:[#allocation7 + $0xc1]] }
 0x1a5   : > { %v1400_v25 = vmul.f32 %v4439_v39, %v6135_v21  ;;  %v1375_v11 = vmul.f32 %v1373_v62, %v1371_v13  ;;  %v1381_v63 = vmul.f32 %v1379_v23, %v1371_v13  ;;  %v1387_v20 = vmul.f32 %v1385_v15, %v1371_v13  ;;  %s6335_s5 = sld [smem:[#allocation7 + $0xe5]] }
 0x1a6   : > { %v1393_v49 = vmul.f32 %v1391_v0, %v1371_v13  ;;  %v1404_v4 = vsub.f32 %v1399_v14, %v1402_v48  ;;  %v1410_v52 = vsub.f32 %v1406_v34, %v1408_v18  ;;  %v1420_v32 = vmul.f32 %v1401_v59, %v1394_v42  ;;  %v4442_v0 = vld [vmem:[%s10646_s23 + $0x38] sm:$0xff]  ;;  %10665 = sst [smem:[#allocation46_spill]] %s6324_s21 }
 0x1a7   : > { %v1407_v40 = vmul.f32 %v4440_v41, %v6135_v21  ;;  %v1377_v51 = vadd.f32 %v1375_v11, %v1347_v50  ;;  %v1383_v3 = vadd.f32 %v1381_v63, %v1353_v29  ;;  %v1389_v61 = vadd.f32 %v1387_v20, %v1359_v30  ;;  %s6341_s6 = sld [smem:[#allocation7 + $0x109]] }
 0x1a8   : > { %v1395_v55 = vadd.f32 %v1393_v49, %v1365_v54  ;;  %v1416_v17 = vsub.f32 %v1412_v46, %v1414_v22  ;;  %v1424_v6 = vmax.f32 %v1404_v4, %v1410_v52  ;;  %v1413_v33 = vmul.f32 %v4441_v47, %v6135_v21  ;;  %10666 = sst [smem:[#allocation47_spill]] %s6326_s4 }
 0x1a9   : > { %v1403_v26 = vmul.f32 %v1401_v59, %v1377_v51  ;;  %v1409_v43 = vmul.f32 %v1401_v59, %v1383_v3  ;;  %v1415_v62 = vmul.f32 %v1401_v59, %v1389_v61  ;;  %v1422_v23 = vsub.f32 %v1418_v44, %v1420_v32  ;;  %10667 = sst [smem:[#allocation71_spill]] %s6328_s14 }
 0x1aa   : > { %v1426_v15 = vmax.f32 %v1424_v6, %v1416_v17  ;;  %v1419_v56 = vmul.f32 %v4442_v0, %v6135_v21  ;;  %v1421_v5 = vmul.f32 %v1401_v59, %v1395_v55  ;;  %10668 = sst [smem:[#allocation63_spill]] %s6333_s29 }
 0x1ab   : > { %v1405_v31 = vsub.f32 %v1400_v25, %v1403_v26  ;;  %v1411_v9 = vsub.f32 %v1407_v40, %v1409_v43  ;;  %v1417_v45 = vsub.f32 %v1413_v33, %v1415_v62  ;;  %10669 = sst [smem:[#allocation64_spill]] %s6335_s5 }
 0x1ac   : > { %v1428_v7 = vmax.f32 %v1426_v15, %v1422_v23  ;;  %v1423_v34 = vsub.f32 %v1419_v56, %v1421_v5  ;;  %s6345_s23 = sld [smem:[#allocation7 + $0xa6]] }
 0x1ad   : > { %v1425_v14 = vmax.f32 %v1405_v31, %v1411_v9  ;;  %s6347_s14 = sld [smem:[#allocation7 + $0xca]] }
 0x1ae   : > { %v1430_v58 = vsub.f32 %v1404_v4, %v1428_v7  ;;  %v1436_v27 = vsub.f32 %v1410_v52, %v1428_v7  ;;  %v1442_v57 = vsub.f32 %v1416_v17, %v1428_v7  ;;  %v1448_v38 = vsub.f32 %v1422_v23, %v1428_v7  ;;  %s6349_s4 = sld [smem:[#allocation7 + $0xee]] }
 0x1af   : > { %v1427_v24 = vmax.f32 %v1425_v14, %v1417_v45  ;;  %s6351_s29 = sld [smem:[#allocation7 + $0x112]] }
 0x1b0   : > { %v1432_v46 = vmul.f32 1.442695, %v1430_v58  ;;  %v1438_v8 = vmul.f32 1.442695, %v1436_v27  ;;  %v1444_v44 = vmul.f32 1.442695, %v1442_v57 }
 0x1b1   : > { %v1429_v13 = vmax.f32 %v1427_v24, %v1423_v34  ;;  %v1450_v16 = vmul.f32 1.442695, %v1448_v38  ;;  %s6353_s5 = sld [smem:[#allocation7 + $0xaf]] }
 0x1b2   : > { %4395 = vpow2.f32 %v1432_v46  ;;  %10670 = sst [smem:[#allocation72_spill]] %s6345_s23 }
 0x1b3   : > { %4397 = vpow2.f32 %v1438_v8  ;;  %v1431_v19 = vsub.f32 %v1405_v31, %v1429_v13  ;;  %v1437_v21 = vsub.f32 %v1411_v9, %v1429_v13  ;;  %v1443_v35 = vsub.f32 %v1417_v45, %v1429_v13  ;;  %10671 = sst [smem:[#allocation54_spill]] %s6347_s14 }
 0x1b4   : > { %v1449_v2 = vsub.f32 %v1423_v34, %v1429_v13  ;;  %4399 = vpow2.f32 %v1444_v44  ;;  %v10656_v34 = vld [vmem:[#allocation37_spill] sm:$0xff]  ;;  %10672 = sst [smem:[#allocation66_spill]] %s6349_s4 }
 0x1b5   : > { %v1434_v59 = vmul.f32 1.442695, %v1431_v19  ;;  %v1440_v1 = vmul.f32 1.442695, %v1437_v21  ;;  %v1446_v60 = vmul.f32 1.442695, %v1443_v35  ;;  %v10208_v21 = vstv %s6240_s3 }
 0x1b6   : > { %v1452_v53 = vmul.f32 1.442695, %v1449_v2  ;;  %10673 = sst [smem:[#allocation68_spill]] %s6351_s29  ;;  %v10213_v35 = vstv %s6243_s1  ;;  %v10214_v2 = vstv %s6245_s28 }
 0x1b7   : > { %4401 = vpow2.f32 %v1434_v59  ;;  %10674 = sst [smem:[#allocation69_spill]] %s6353_s5  ;;  %v10216_v59 = vstv %s6251_s26 }
 0x1b8   : > { %v4396_v12 = vpop.eup %4395  ;;  %4403 = vpow2.f32 %v1440_v1  ;;  %s6355_s21 = sld [smem:[#allocation7 + $0xd3]]  ;;  %v10235_v1 = vstv %s6259_s16 }
 0x1b9   : > { %v4398_v10 = vpop.eup %4397  ;;  %4405 = vpow2.f32 %v1446_v60  ;;  %s6363_s23 = sld [smem:[#allocation7 + $0x11b]]  ;;  %v10234_v60 = vstv %s6261_s17 }
 0x1ba   : > { %v1454_v28 = vadd.f32 %v4398_v10, %v4396_v12  ;;  %4407 = vpow2.f32 %v1450_v16  ;;  %v4400_v42 = vpop.eup %4399  ;;  %s6367_s29 = sld [smem:[#allocation7 + $0x97]]  ;;  %v10220_v16 = vstv %s6263_s18 }
 0x1bb   : > { %4409 = vpow2.f32 %v1452_v53  ;;  %s6369_s5 = sld [smem:[#allocation7 + $0xbb]]  ;;  %v10225_v53 = vstv %s6269_s22 }
 0x1bc   : > { %v1456_v30 = vadd.f32 %v4400_v42, %v1454_v28  ;;  %s6375_s4 = sld [smem:[#allocation7 + $0xa9]]  ;;  %v10227_v28 = vstv %s6276_s30 }
 0x1bd   : > { %v4402_v50 = vpop.eup %4401  ;;  %s6377_s14 = sld [smem:[#allocation7 + $0xcd]] }
 0x1be   : > { %v4404_v29 = vpop.eup %4403  ;;  %10675 = sst [smem:[#allocation70_spill]] %s6355_s21 }
 0x1bf   : > { %v1455_v54 = vadd.f32 %v4404_v29, %v4402_v50  ;;  %v4406_v48 = vpop.eup %4405  ;;  %10677 = sst [smem:[#allocation80_spill]] %s6363_s23 }
 0x1c0   : > { %v4408_v18 = vpop.eup %4407  ;;  %10678 = sst [smem:[#allocation81_spill]] %s6367_s29 }
 0x1c1   : > { %v1457_v22 = vadd.f32 %v4406_v48, %v1455_v54  ;;  %v4410_v39 = vpop.eup %4409  ;;  %v1458_v25 = vadd.f32 %v4408_v18, %v1456_v30  ;;  %10679 = sst [smem:[#allocation82_spill]] %s6369_s5  ;;  %v1627_v30 = vstv %s6294_s25  ;;  %v1633_v54 = vstv %s6296_s20  ;;  %s10701_s25 = smov 1  }
 0x1c2   : > { %s6373_s21 = sld [smem:[#allocation7 + $0x103]] }
 0x1c3   : > { %v1459_v11 = vadd.f32 %v4410_v39, %v1457_v22  ;;  %10682 = sst [smem:[#allocation85_spill]] %s6375_s4  ;;  %v1651_v22 = vstv %s6308_s24 }
 0x1c4   : > { %10683 = sst [smem:[#allocation86_spill]] %s6377_s14 }
 0x1c5   : > { %4411 = vrcp.f32 %v1459_v11  ;;  %s6379_s23 = sld [smem:[#allocation7 + $0xf1]]  ;;  %v10238_v11 = vstv %s6320_s2 }
 0x1c6   : > { %4413 = vrcp.f32 %v1458_v25  ;;  %s6389_s4 = sld [smem:[#allocation7 + $0xb2]]  ;;  %v10239_v25 = vstv %s6318_s8 }
 0x1c7   : > { %s6391_s14 = sld [smem:[#allocation7 + $0xd6]] }
 0x1c8   : > { %10681 = sst [smem:[#allocation84_spill]] %s6373_s21 }
 0x1c9   : > { %s6415_s21 = sld [smem:[#allocation7 + $0xdb]] }
 0x1ca   : > { %s10695_s5 = sld [smem:[#allocation71_spill]] }
 0x1cb   : > { %v4412_v63 = vpop.eup %4411  ;;  %10684 = sst [smem:[#allocation87_spill]] %s6379_s23 }
 0x1cc   : > { %v4414_v20 = vpop.eup %4413  ;;  %v6161_v49 = vmul.f32 %v4412_v63, %v4402_v50  ;;  %v6163_v4 = vmul.f32 %v4412_v63, %v4404_v29  ;;  %v6165_v52 = vmul.f32 %v4412_v63, %v4406_v48  ;;  %v6181_v55 = vmul.f32 %v4412_v63, %v4410_v39  ;;  %10686 = sst [smem:[#allocation89_spill]] %s6389_s4 }
 0x1cd   : > { %v6171_v32 = vmul.f32 %v4414_v20, %v4396_v12  ;;  %v6175_v41 = vmul.f32 %v4414_v20, %v4398_v10  ;;  %v6205_v43 = vmul.f32 %v4414_v20, %v4408_v18  ;;  %v6207_v62 = vmul.f32 %v4414_v20, %v4400_v42  ;;  %10687 = sst [smem:[#allocation90_spill]] %s6391_s14 }
 0x1ce   : > { %1892 = vrot.lane.b32.xlu0 %v6165_v52, %s10647_s10  ;;  %1862 = vrot.lane.b32.xlu1 %v6163_v4, %s10647_s10  ;;  %v2167_v40 = vrot.slane %v6161_v49, 1  ;;  %v2173_v51 = vrot.slane %v6163_v4, 1  ;;  %v1477_v23 = vrot.slane %v6163_v4, 7  ;;  %v1471_v15 = vrot.slane %v6161_v49, 7  ;;  %s6395_s23 = sld [smem:[#allocation7 + $0xfa]] }
 0x1cf   : > { %1832 = vrot.lane.b32.xlu2 %v6161_v49, %s10647_s10  ;;  %v2166_v3 = vrot.slane %v6171_v32, 1  ;;  %v2172_v61 = vrot.slane %v6175_v41, 1  ;;  %v1483_v0 = vrot.slane %v6165_v52, 7  ;;  %v1476_v56 = vrot.slane %v6175_v41, 7  ;;  %s6407_s14 = sld [smem:[#allocation7 + $0x93]] }
 0x1d0   : > { %v1470_v31 = vrot.slane %v6171_v32, 7  ;;  %v1482_v9 = vrot.slane %v6207_v62, 7  ;;  %v1489_v14 = vrot.slane %v6181_v55, 7  ;;  %v1488_v58 = vrot.slane %v6205_v43, 7  ;;  %s10692_s4 = sld [smem:[#allocation46_spill]] }
 0x1d1   : > { %v6185_v6 = vsel %vm1037_vm2, %v2166_v3, %v2167_v40  ;;  %v6189_v47 = vsel %vm1037_vm2, %v2167_v40, %v2166_v3  ;;  %v6197_v33 = vsel %vm1037_vm2, %v2172_v61, %v2173_v51  ;;  %v6203_v26 = vsel %vm1037_vm2, %v2173_v51, %v2172_v61  ;;  %10693 = sst [smem:[#allocation46_spill]] %s6415_s21 }
 0x1d2   : > { %v6223_v5 = vsel %vm340_vm0, %v1476_v56, %v1477_v23  ;;  %v6227_v7 = vsel %vm340_vm0, %v1470_v31, %v1471_v15  ;;  %v6233_v45 = vsel %vm340_vm0, %v1482_v9, %v1483_v0  ;;  %v6249_v27 = vsel %vm340_vm0, %v1488_v58, %v1489_v14  ;;  %s10696_s29 = sld [smem:[#allocation63_spill]] }
 0x1d3   : > { %v1479_v57 = vsel %vm340_vm0, %v1477_v23, %v1476_v56  ;;  %v1485_v46 = vsel %vm340_vm0, %v1483_v0, %v1482_v9  ;;  %v1473_v8 = vsel %vm340_vm0, %v1471_v15, %v1470_v31  ;;  %v1491_v38 = vsel %vm340_vm0, %v1489_v14, %v1488_v58  ;;  %s10700_s21 = sld [smem:[#allocation54_spill]] }
 0x1d4   : > { %v6274_v24 = vmul.f32 %v10656_v34, %v1479_v57  ;;  %v6301_v13 = vmul.f32 %v10656_v34, %v1473_v8  ;;  %v6304_v44 = vmul.f32 %v10656_v34, %v1485_v46  ;;  %v6331_v19 = vmul.f32 %v10656_v34, %v1491_v38  ;;  %10688 = sst [smem:[#allocation91_spill]] %s6395_s23 }
 0x1d5   : > { %v10228_v12 = vstv %s6267_s15  ;;  %v10226_v10 = vstv %s6271_s9  ;;  %10690 = sst [smem:[#allocation93_spill]] %s6407_s14  ;;  %v10230_v42 = vstv %s6282_s13  ;;  %v1615_v50 = vstv %s6286_s7 }
 0x1d6   : > { %1860 = vrot.lane.b32.xlu0 %v6175_v41, %s10647_s10  ;;  %1830 = vrot.lane.b32.xlu1 %v6171_v32, %s10647_s10  ;;  %s6411_s23 = sld [smem:[#allocation7 + $0xb7]]  ;;  %v1621_v29 = vstv %s6288_s12  ;;  %v1639_v48 = vstv %s6298_s19  ;;  %v2179_v61 = vrot.slane %v6165_v52, 1  ;;  %v2185_v56 = vrot.slane %v6181_v55, 1 }
 0x1d7   : > { %1922 = vrot.lane.b32.xlu2 %v6181_v55, %s10647_s10  ;;  %s10697_s9 = sld [smem:[#allocation64_spill]]  ;;  %v1645_v18 = vstv %s6306_s11  ;;  %v1657_v39 = vstv %s6314_s27  ;;  %v10211_v63 = vstv %s10692_s4  ;;  %v2184_v58 = vrot.slane %v6205_v43, 1 }
 0x1d8   : > { %s10699_s14 = sld [smem:[#allocation72_spill]]  ;;  %v10210_v40 = vstv %s10695_s5  ;;  %v10209_v51 = vstv %s10696_s29  ;;  %v10237_v23 = vstv %s6341_s6  ;;  %v2178_v57 = vrot.slane %v6207_v62, 1 }
 0x1d9   : > { %s6431_s20 = sld [smem:[#allocation7 + $0xae]]  ;;  %v6465_v38 = vmul.f32 %v10239_v25, %v6171_v32  ;;  %v6470_v14 = vmul.f32 %v10238_v11, %v6171_v32  ;;  %v6475_v9 = vmul.f32 %v10211_v63, %v6171_v32  ;;  %v6491_v31 = vmul.f32 %v10210_v40, %v6175_v41 }
 0x1da   : > { %s10703_s12 = sld [smem:[#allocation66_spill]]  ;;  %v6484_v46 = vsel %vm1037_vm2, %v2178_v57, %v2179_v61  ;;  %v6496_v0 = vmul.f32 %v10209_v51, %v6175_v41  ;;  %v6506_v15 = vmul.f32 %v10208_v21, %v6233_v45  ;;  %v6527_v51 = vmul.f32 %v10213_v35, %v6233_v45 }
 0x1db   : > { %s10704_s7 = sld [smem:[#allocation68_spill]]  ;;  %10714 = vst [vmem:[#allocation74_spill] sm:$0xff] %v6465_v38  ;;  %v6532_v40 = vmul.f32 %v10214_v2, %v6233_v45  ;;  %v6537_v63 = vmul.f32 %v10216_v59, %v6233_v45  ;;  %v6548_v35 = vmul.f32 %v10235_v1, %v6249_v27  ;;  %v6553_v2 = vmul.f32 %v10234_v60, %v6249_v27 }
 0x1dc   : > { %10691 = sst [smem:[#allocation94_spill]] %s6411_s23  ;;  %10715 = vst [vmem:[#allocation75_spill] sm:$0xff] %v6470_v14  ;;  %v2187_v59 = vsel %vm1037_vm2, %v2185_v56, %v2184_v58  ;;  %v6636_v60 = vmul.f32 %v1615_v50, %v6227_v7  ;;  %v6641_v1 = vmul.f32 %v1621_v29, %v6227_v7  ;;  %v6646_v21 = vmul.f32 %v1627_v30, %v6227_v7 }
 0x1dd   : > { %s6425_s23 = sld [smem:[#allocation7 + $0xff]]  ;;  %v10207_v3 = vstv %s10697_s9  ;;  %10716 = vst [vmem:[#allocation76_spill] sm:$0xff] %v6475_v9  ;;  %v6663_v11 = vmul.f32 %v1621_v29, %v6301_v13  ;;  %v6668_v25 = vmul.f32 %v1627_v30, %v6301_v13  ;;  %v6689_v29 = vmul.f32 %v1645_v18, %v6274_v24 }
 0x1de   : > { %2046 = vrot.lane.b32.xlu0 %v6171_v32, %s10527_s0  ;;  %1920 = vrot.lane.b32.xlu1 %v6205_v43, %s10647_s10  ;;  %s10705_s11 = sld [smem:[#allocation69_spill]]  ;;  %10719 = vst [vmem:[#allocation77_spill] sm:$0xff] %v6491_v31 }
 0x1df   : > { %1890 = vrot.lane.b32.xlu2 %v6207_v62, %s10647_s10  ;;  %10702 = sst [smem:[#allocation71_spill]] %s6431_s20  ;;  %10720 = vst [vmem:[#allocation78_spill] sm:$0xff] %v6496_v0 }
 0x1e0   : > { %s6436_s19 = sld [smem:[#allocation7 + $0xd2]]  ;;  %10746 = vst [vmem:[#allocation35_spill] sm:$0xff] %v6663_v11 }
 0x1e1   : > { %s6443_s27 = sld [smem:[#allocation7 + $0xf6]]  ;;  %10747 = vst [vmem:[#allocation49_spill] sm:$0xff] %v6668_v25  ;;  %v10788_v9 = vstv %s10704_s7 }
 0x1e2   : > { %s6460_s20 = sld [smem:[#allocation7 + $0xc9]]  ;;  %10751 = vst [vmem:[#allocation65_spill] sm:$0xff] %v6689_v29 }
 0x1e3   : > { %s6562_s1 = sld [smem:[#allocation7 + $0xc0]] }
 0x1e4   : > { %s6586_s17 = sld [smem:[#allocation7 + $0xe4]]  ;;  %v10793_v14 = vstv %s10705_s11 }
 0x1e5   : > { %s6609_s13 = sld [smem:[#allocation7 + $0xa2]] }
 0x1e6   : > { %1526 = vrot.lane.b32.xlu0 %v6223_v5, %s10647_s10  ;;  %1496 = vrot.lane.b32.xlu1 %v6227_v7, %s10647_s10  ;;  %10706 = sst [smem:[#allocation63_spill]] %s6436_s19 }
 0x1e7   : > { %1556 = vrot.lane.b32.xlu2 %v6233_v45, %s10647_s10  ;;  %10709 = sst [smem:[#allocation64_spill]] %s6443_s27 }
 0x1e8   : > { %s6449_s19 = sld [smem:[#allocation7 + $0x11a]] }
 0x1e9   : > { %s6456_s27 = sld [smem:[#allocation7 + $0xa5]] }
 0x1ea   : > { %10712 = sst [smem:[#allocation66_spill]] %s6460_s20 }
 0x1eb   : > { %s6486_s20 = sld [smem:[#allocation7 + $0xed]] }
 0x1ec   : > { %10741 = sst [smem:[#allocation44_spill]] %s6609_s13 }
 0x1ed   : > { %s10743_s13 = sld [smem:[#allocation81_spill]] }
 0x1ee   : > { %1712 = vrot.lane.b32.xlu0 %v6227_v7, %s10527_s0  ;;  %1586 = vrot.lane.b32.xlu1 %v6249_v27, %s10647_s10  ;;  %10710 = sst [smem:[#allocation72_spill]] %s6449_s19 }
 0x1ef   : > { %1742 = vrot.lane.b32.xlu2 %v6223_v5, %s10527_s0  ;;  %10711 = sst [smem:[#allocation54_spill]] %s6456_s27 }
 0x1f0   : > { %s10713_s19 = sld [smem:[#allocation80_spill]] }
 0x1f1   : > { %10718 = sst [smem:[#allocation68_spill]] %s6486_s20 }
 0x1f2   : > { %s6516_s20 = sld [smem:[#allocation7 + $0x111]] }
 0x1f3   : > { %10736 = sst [smem:[#allocation80_spill]] %s6586_s17  ;;  %v2311_v30 = vstv %s10743_s13 }
 0x1f4   : > { %s6604_s17 = sld [smem:[#allocation7 + $0x108]] }
 0x1f5   : > { %s6674_s18 = sld [smem:[#allocation7 + $0x10e]] }
 0x1f6   : > { %1802 = vrot.lane.b32.xlu0 %v6249_v27, %s10527_s0  ;;  %1772 = vrot.lane.b32.xlu1 %v6233_v45, %s10527_s0  ;;  %v6558_v45 = vmul.f32 %v10220_v16, %v6249_v27  ;;  %v6577_v16 = vmul.f32 %v10226_v10, %v6197_v33  ;;  %s6694_s15 = sld [smem:[#allocation7 + $0x9b]] }
 0x1f7   : > { %1524 = vrot.lane.b32.xlu2 %v6274_v24, %s10647_s10  ;;  %s6716_s28 = sld [smem:[#allocation7 + $0xbf]] }
 0x1f8   : > { %10722 = sst [smem:[#allocation69_spill]] %s6516_s20  ;;  %10731 = vst [vmem:[#allocation32_spill] sm:$0xff] %v6577_v16 }
 0x1f9   : > { %s6543_s20 = sld [smem:[#allocation7 + $0x9c]] }
 0x1fa   : > { %10740 = sst [smem:[#allocation62_spill]] %s6604_s17 }
 0x1fb   : > { %s6626_s17 = sld [smem:[#allocation7 + $0xc6]] }
 0x1fc   : > { %10748 = sst [smem:[#allocation42_spill]] %s6674_s18 }
 0x1fd   : > { %10753 = sst [smem:[#allocation43_spill]] %s6694_s15 }
 0x1fe   : > { %1494 = vrot.lane.b32.xlu0 %v6301_v13, %s10647_s10  ;;  %1554 = vrot.lane.b32.xlu1 %v6304_v44, %s10647_s10  ;;  %10760 = sst [smem:[#allocation48_spill]] %s6716_s28 }
 0x1ff   : > { %2076 = vrot.lane.b32.xlu2 %v6175_v41, %s10527_s0  ;;  %s6740_s26 = sld [smem:[#allocation7 + $0xe3]] }
 0x200   : > { %s10791_s13 = sld [smem:[#allocation55_spill]] }
 0x201   : > { %10742 = sst [smem:[#allocation45_spill]] %s6626_s17 }
 0x202   : > { %s6648_s17 = sld [smem:[#allocation7 + $0xea]] }
 0x203   : > { %s6802_s27 = sld [smem:[#allocation7 + $0xb9]] }
 0x204   : > { %s10806_s7 = sld [smem:[#allocation57_spill]] }
 0x205   : > { %10769 = sst [smem:[#allocation81_spill]] %s6740_s26 }
 0x206   : > { %1584 = vrot.lane.b32.xlu0 %v6331_v19, %s10647_s10  ;;  %2048 = vrot.lane.b32.xlu1 %v6161_v49, %s10527_s0  ;;  %s6357_s10 = sld [smem:[#allocation7 + $0xf7]] }
 0x207   : > { %1710 = vrot.lane.b32.xlu2 %v6301_v13, %s10527_s0  ;;  %s10810_s11 = sld [smem:[#allocation58_spill]] }
 0x208   : > { %10744 = sst [smem:[#allocation41_spill]] %s6648_s17 }
 0x209   : > { %10797 = sst [smem:[#allocation55_spill]] %s6802_s27 }
 0x20a   : > { %s7089_s17 = sld [smem:[#allocation7 + $0xcf]] }
 0x20b   : > { %s7096_s15 = sld [smem:[#allocation7 + $0xf3]] }
 0x20c   : > { %10676 = sst [smem:[#allocation79_spill]] %s6357_s10 }
 0x20d   : > { %s6371_s10 = sld [smem:[#allocation7 + $0xdf]] }
 0x20e   : > { %2078 = vrot.lane.b32.xlu0 %v6163_v4, %s10527_s0  ;;  %1740 = vrot.lane.b32.xlu1 %v6274_v24, %s10527_s0  ;;  %s10951_s27 = sld [smem:[#allocation45_spill]] }
 0x20f   : > { %2108 = vrot.lane.b32.xlu2 %v6165_v52, %s10527_s0 }
 0x213   : > { %10680 = sst [smem:[#allocation83_spill]] %s6371_s10 }
 0x214   : > { %s6385_s10 = sld [smem:[#allocation7 + $0x115]] }
 0x215   : > { %s10796_s24 = sld [smem:[#allocation83_spill]] }
 0x216   : > { %1770 = vrot.lane.b32.xlu0 %v6304_v44, %s10527_s0  ;;  %2106 = vrot.lane.b32.xlu1 %v6207_v62, %s10527_s0 }
 0x217   : > { %1800 = vrot.lane.b32.xlu2 %v6331_v19, %s10527_s0 }
 0x21a   : > { %10685 = sst [smem:[#allocation88_spill]] %s6385_s10 }
 0x21b   : > { %s6401_s10 = sld [smem:[#allocation7 + $0x11e]] }
 0x21e   : > { %2136 = vrot.lane.b32.xlu0 %v6205_v43, %s10527_s0  ;;  %2138 = vrot.lane.b32.xlu1 %v6181_v55, %s10527_s0  ;;  %s10708_s0 = sld [smem:[#allocation79_spill]] }
 0x21f   : > { %2190 = vrot.lane.b32.xlu2 %v6185_v6, %s10701_s25  ;;  %10728 = sst [smem:[#allocation79_spill]] %s6562_s1 }
 0x220   : > { %s10752_s1 = sld [smem:[#allocation82_spill]] }
 0x221   : > { %10689 = sst [smem:[#allocation92_spill]] %s6401_s10 }
 0x222   : > { %s10694_s10 = sld [smem:[#allocation47_spill]] }
 0x223   : > { %10698 = sst [smem:[#allocation47_spill]] %s6425_s23 }
 0x224   : > { %s10707_s23 = sld [smem:[#allocation70_spill]] }
 0x225   : > { %10725 = sst [smem:[#allocation70_spill]] %s6543_s20 }
 0x226   : > { %2250 = vrot.lane.b32.xlu0 %v6484_v46, %s10701_s25  ;;  %2220 = vrot.lane.b32.xlu1 %v6197_v33, %s10701_s25  ;;  %s10794_s20 = sld [smem:[#allocation56_spill]] }
 0x228   : > { %v10204_v20 = vstv %s10694_s10 }
 0x229   : > { %v6480_v8 = vmul.f32 %v10204_v20, %v6171_v32  ;;  %v6501_v32 = vmul.f32 %v10207_v3, %v6175_v41  ;;  %v6510_v20 = vsel %vm1037_vm2, %v2184_v58, %v2185_v56  ;;  %v6521_v3 = vmul.f32 %v10237_v23, %v6175_v41  ;;  %v6584_v58 = vpop.permute.xlu2 %1832 }
 0x22a   : > { %2280 = vrot.lane.b32.xlu2 %v6510_v20, %s10701_s25  ;;  %v2181_v41 = vsel %vm1037_vm2, %v2179_v61, %v2178_v57  ;;  %v6567_v61 = vmul.f32 %v10228_v12, %v6249_v27  ;;  %v6572_v57 = vmul.f32 %v10225_v53, %v6197_v33  ;;  %v6582_v56 = vmul.f32 %v10227_v28, %v6197_v33  ;;  %v10738_v53 = vld [vmem:[#allocation50_spill] sm:$0xff] }
 0x22b   : > { %10717 = vst [vmem:[#allocation73_spill] sm:$0xff] %v6480_v8  ;;  %v6591_v27 = vmul.f32 %v10230_v42, %v6197_v33  ;;  %v6595_v10 = vmul.f32 %v10738_v53, %v6203_v26  ;;  %v6599_v28 = vmul.f32 %v10738_v53, %v6189_v47  ;;  %v6602_v12 = vmul.f32 %v10738_v53, %v2181_v41 }
 0x22c   : > { %10721 = vst [vmem:[#allocation30_spill] sm:$0xff] %v6501_v32  ;;  %v6607_v42 = vmul.f32 %v10738_v53, %v2187_v59  ;;  %v6614_v26 = vmul.f32 %v1639_v48, %v6223_v5  ;;  %v6619_v47 = vmul.f32 %v1645_v18, %v6223_v5  ;;  %v6624_v41 = vmul.f32 %v1651_v22, %v6223_v5 }
 0x22d   : > { %10724 = vst [vmem:[#allocation29_spill] sm:$0xff] %v6521_v3  ;;  %v6631_v59 = vmul.f32 %v1657_v39, %v6223_v5  ;;  %v6653_v5 = vmul.f32 %v1633_v54, %v6227_v7  ;;  %v6658_v23 = vmul.f32 %v1615_v50, %v6301_v13  ;;  %v6679_v7 = vmul.f32 %v1633_v54, %v6301_v13 }
 0x22e   : > { %10729 = vst [vmem:[#allocation33_spill] sm:$0xff] %v6572_v57  ;;  %2192 = vrot.lane.b32.xlu0 %v6599_v28, %s10701_s25  ;;  %2252 = vrot.lane.b32.xlu1 %v6602_v12, %s10701_s25  ;;  %v6684_v50 = vmul.f32 %v1639_v48, %v6274_v24  ;;  %v6699_v13 = vmul.f32 %v1651_v22, %v6274_v24  ;;  %v10756_v48 = vstv %s6318_s8  ;;  %v10758_v53 = vstv %s6320_s2  ;;  %s6824_s8 = sld [smem:[#allocation7 + $0xdd]] }
 0x22f   : > { %10733 = vst [vmem:[#allocation34_spill] sm:$0xff] %v6582_v56  ;;  %v6704_v54 = vmul.f32 %v1657_v39, %v6274_v24  ;;  %v6709_v18 = vmul.f32 %v10756_v48, %v6161_v49  ;;  %v6714_v34 = vmul.f32 %v10758_v53, %v6161_v49  ;;  %v10761_v22 = vstv %s10692_s4  ;;  %s10813_s2 = sld [smem:[#allocation60_spill]] }
 0x230   : > { %10737 = vst [vmem:[#allocation36_spill] sm:$0xff] %v6591_v27  ;;  %v6721_v17 = vmul.f32 %v10761_v22, %v6161_v49  ;;  %v10763_v24 = vstv %s10694_s10  ;;  %v10765_v48 = vstv %s10695_s5  ;;  %v10767_v53 = vstv %s10696_s29  ;;  %s6758_s10 = sld [smem:[#allocation7 + $0x107]] }
 0x231   : > { %10745 = vst [vmem:[#allocation31_spill] sm:$0xff] %v6658_v23  ;;  %v6726_v39 = vmul.f32 %v10763_v24, %v6161_v49  ;;  %v6731_v27 = vmul.f32 %v10765_v48, %v6163_v4  ;;  %v6736_v56 = vmul.f32 %v10767_v53, %v6163_v4  ;;  %v6738_v16 = vpop.permute.xlu2 %1922  ;;  %v10770_v22 = vstv %s10697_s9  ;;  %s6780_s9 = sld [smem:[#allocation7 + $0x95]] }
 0x232   : > { %10749 = vst [vmem:[#allocation52_spill] sm:$0xff] %v6679_v7  ;;  %2222 = vrot.lane.b32.xlu2 %v6595_v10, %s10701_s25  ;;  %v6745_v49 = vmul.f32 %v10770_v22, %v6163_v4  ;;  %v10772_v24 = vstv %s6341_s6  ;;  %v10774_v57 = vstv %s10699_s14  ;;  %v2317_v3 = vstv %s10752_s1  ;;  %s10835_s4 = sld [smem:[#allocation86_spill]] }
 0x233   : > { %10750 = vst [vmem:[#allocation61_spill] sm:$0xff] %v6684_v50  ;;  %v6750_v48 = vmul.f32 %v10772_v24, %v6163_v4  ;;  %v6755_v53 = vmul.f32 %v10774_v57, %v6207_v62  ;;  %v10777_v32 = vmov %v10774_v57  ;;  %v10779_v22 = vstv %s10700_s21  ;;  %s6850_s21 = sld [smem:[#allocation7 + $0x101]] }
 0x234   : > { %10754 = vst [vmem:[#allocation53_spill] sm:$0xff] %v6699_v13  ;;  %v6763_v0 = vmul.f32 %v10777_v32, %v6165_v52  ;;  %v6768_v31 = vmul.f32 %v10779_v22, %v6207_v62  ;;  %v10781_v4 = vmov %v10779_v22  ;;  %v10783_v57 = vstv %s10703_s12  ;;  %s10799_s12 = sld [smem:[#allocation84_spill]] }
 0x235   : > { %10755 = vst [vmem:[#allocation51_spill] sm:$0xff] %v6704_v54  ;;  %v6773_v24 = vmul.f32 %v10781_v4, %v6165_v52  ;;  %v10786_v32 = vmov %v10783_v57  ;;  %v6790_v22 = vmul.f32 %v10788_v9, %v6207_v62  ;;  %10808 = sst [smem:[#allocation56_spill]] %s6824_s8 }
 0x236   : > { %10757 = vst [vmem:[#allocation59_spill] sm:$0xff] %v6709_v18  ;;  %10776 = sst [smem:[#allocation82_spill]] %s6758_s10  ;;  %v6785_v8 = vmul.f32 %v10786_v32, %v6165_v52  ;;  %v10798_v32 = vmov %v10793_v14  ;;  %2282 = vrot.lane.b32.xlu0 %v6607_v42, %s10701_s25 }
 0x237   : > { %10759 = vst [vmem:[#allocation67_spill] sm:$0xff] %v6714_v34  ;;  %10785 = sst [smem:[#allocation106_spill]] %s6780_s9 }
 0x238   : > { %10762 = vst [vmem:[#allocation95_spill] sm:$0xff] %v6721_v17  ;;  %s10837_s14 = sld [smem:[#allocation87_spill]] }
 0x239   : > { %10764 = vst [vmem:[#allocation96_spill] sm:$0xff] %v6726_v39  ;;  %10821 = sst [smem:[#allocation83_spill]] %s6850_s21 }
 0x23a   : > { %10766 = vst [vmem:[#allocation97_spill] sm:$0xff] %v6731_v27  ;;  %s6888_s29 = sld [smem:[#allocation7 + $0xbd]] }
 0x23b   : > { %10768 = vst [vmem:[#allocation98_spill] sm:$0xff] %v6736_v56  ;;  %s10844_s5 = sld [smem:[#allocation89_spill]] }
 0x23c   : > { %10771 = vst [vmem:[#allocation99_spill] sm:$0xff] %v6745_v49  ;;  %s10846_s6 = sld [smem:[#allocation90_spill]] }
 0x23d   : > { %10773 = vst [vmem:[#allocation100_spill] sm:$0xff] %v6750_v48  ;;  %s6906_s1 = sld [smem:[#allocation7 + $0xe1]] }
 0x23e   : > { %10775 = vst [vmem:[#allocation101_spill] sm:$0xff] %v6755_v53  ;;  %v6778_v53 = vmul.f32 %v10783_v57, %v6207_v62  ;;  %v6800_v57 = vmul.f32 %v10793_v14, %v6205_v43  ;;  %v10801_v62 = vstv %s10707_s23  ;;  %s10818_s23 = sld [smem:[#allocation38_spill]] }
 0x23f   : > { %10778 = vst [vmem:[#allocation102_spill] sm:$0xff] %v6763_v0  ;;  %s10894_s25 = sld [smem:[#allocation66_spill]] }
 0x240   : > { %10780 = vst [vmem:[#allocation103_spill] sm:$0xff] %v6768_v31  ;;  %v10790_v31 = vmov %v10788_v9  ;;  %v6812_v9 = vmul.f32 %v10801_v62, %v6205_v43  ;;  %10838 = sst [smem:[#allocation57_spill]] %s6888_s29 }
 0x241   : > { %10782 = vst [vmem:[#allocation104_spill] sm:$0xff] %v6773_v24  ;;  %v6795_v4 = vmul.f32 %v10790_v31, %v6165_v52  ;;  %v10803_v52 = vmov %v10801_v62  ;;  %v10812_v62 = vstv %s10713_s19  ;;  %s10832_s19 = sld [smem:[#allocation85_spill]] }
 0x242   : > { %10784 = vst [vmem:[#allocation105_spill] sm:$0xff] %v6778_v53  ;;  %v6807_v53 = vmul.f32 %v10798_v32, %v6181_v55  ;;  %v6817_v31 = vmul.f32 %v10803_v52, %v6181_v55  ;;  %v10815_v52 = vmov %v10812_v62  ;;  %s7044_s21 = sld [smem:[#allocation7 + $0xb6]] }
 0x243   : > { %10787 = vst [vmem:[#allocation107_spill] sm:$0xff] %v6785_v8  ;;  %v6839_v38 = vmul.f32 %v10815_v52, %v6181_v55  ;;  %v2323_v52 = vstv %s10796_s24  ;;  %10847 = sst [smem:[#allocation58_spill]] %s6906_s1 }
 0x244   : > { %10789 = vst [vmem:[#allocation108_spill] sm:$0xff] %v6790_v22  ;;  %v10805_v22 = vstv %s10708_s0  ;;  %s10820_s0 = smov 127   ;;  %s10853_s24 = sld [smem:[#allocation92_spill]] }
 0x245   : > { %10792 = vst [vmem:[#allocation109_spill] sm:$0xff] %v6795_v4  ;;  %v6822_v14 = vmul.f32 %v10805_v22, %v6205_v43  ;;  %2406 = vrot.lane.b32.xlu1 %v6185_v6, %s10820_s0  ;;  %2466 = vrot.lane.b32.xlu2 %v6484_v46, %s10820_s0  ;;  %s10919_s18 = sld [smem:[#allocation57_spill]] }
 0x246   : > { %10795 = vst [vmem:[#allocation110_spill] sm:$0xff] %v6800_v57  ;;  %v10809_v57 = vmov %v10805_v22  ;;  %v10817_v22 = vstv %s6240_s3  ;;  %s6866_s3 = sld [smem:[#allocation7 + $0x99]]  ;;  %2436 = vrot.lane.b32.xlu0 %v6197_v33, %s10820_s0 }
 0x247   : > { %10800 = vst [vmem:[#allocation111_spill] sm:$0xff] %v6807_v53  ;;  %v6829_v32 = vmul.f32 %v10809_v57, %v6181_v55  ;;  %v10824_v55 = vstv %s10794_s20  ;;  %s10851_s20 = sld [smem:[#allocation91_spill]] }
 0x248   : > { %10802 = vst [vmem:[#allocation112_spill] sm:$0xff] %v6812_v9  ;;  %v6834_v9 = vmul.f32 %v10812_v62, %v6205_v43  ;;  %v10822_v43 = vstv %s10791_s13  ;;  %v6860_v62 = vmul.f32 %v10824_v55, %v6304_v44  ;;  %s10848_s13 = sld [smem:[#allocation39_spill]] }
 0x249   : > { %10804 = vst [vmem:[#allocation113_spill] sm:$0xff] %v6817_v31  ;;  %v6855_v57 = vmul.f32 %v10822_v43, %v6304_v44  ;;  %v10831_v43 = vstv %s10810_s11  ;;  %s6928_s11 = sld [smem:[#allocation7 + $0x9e]] }
 0x24a   : > { %10807 = vst [vmem:[#allocation114_spill] sm:$0xff] %v6822_v14  ;;  %v6844_v14 = vmul.f32 %v10817_v22, %v6304_v44  ;;  %v10827_v22 = vstv %s10806_s7  ;;  %v6881_v55 = vmul.f32 %v10831_v43, %v6331_v19  ;;  %v6899_v43 = vmul.f32 %v2311_v30, %v6599_v28  ;;  %s10856_s7 = sld [smem:[#allocation40_spill]] }
 0x24b   : > { %10811 = vst [vmem:[#allocation115_spill] sm:$0xff] %v6829_v32  ;;  %10908 = sst [smem:[#allocation92_spill]] %s7044_s21  ;;  %v10999_v27 = vstv %s10919_s18 }
 0x24c   : > { %10814 = vst [vmem:[#allocation116_spill] sm:$0xff] %v6834_v9  ;;  %v2329_v9 = vstv %s10799_s12  ;;  %10826 = sst [smem:[#allocation84_spill]] %s6866_s3 }
 0x24d   : > { %10816 = vst [vmem:[#allocation117_spill] sm:$0xff] %v6839_v38  ;;  %v10829_v38 = vstv %s6259_s16  ;;  %s10842_s16 = sld [smem:[#allocation88_spill]]  ;;  %2438 = vrot.lane.b32.xlu1 %v6595_v10, %s10820_s0  ;;  %2408 = vrot.lane.b32.xlu2 %v6599_v28, %s10820_s0 }
 0x24e   : > { %10819 = vst [vmem:[#allocation118_spill] sm:$0xff] %v6844_v14  ;;  %v6871_v14 = vmul.f32 %v10827_v22, %v6304_v44  ;;  %v6876_v32 = vmul.f32 %v10829_v38, %v6331_v19  ;;  %v10839_v44 = vstv %s10818_s23  ;;  %v6896_v38 = vmul.f32 %v2311_v30, %v6185_v6  ;;  %s6920_s12 = sld [smem:[#allocation7 + $0x105]]  ;;  %2468 = vrot.lane.b32.xlu0 %v6602_v12, %s10820_s0 }
 0x24f   : > { %10823 = vst [vmem:[#allocation119_spill] sm:$0xff] %v6855_v57  ;;  %v6893_v22 = vmul.f32 %v10839_v44, %v6331_v19  ;;  %v6912_v44 = vmul.f32 %v2323_v52, %v6185_v6  ;;  %v6915_v30 = vmul.f32 %v2323_v52, %v6599_v28  ;;  %10858 = sst [smem:[#allocation38_spill]] %s6928_s11 }
 0x250   : > { %10825 = vst [vmem:[#allocation120_spill] sm:$0xff] %v6860_v62  ;;  %v10834_v62 = vstv %s10813_s2  ;;  %s6938_s2 = sld [smem:[#allocation7 + $0xc2]] }
 0x251   : > { %10828 = vst [vmem:[#allocation121_spill] sm:$0xff] %v6871_v14  ;;  %v6886_v57 = vmul.f32 %v10834_v62, %v6331_v19  ;;  %v6904_v62 = vpop.permute.xlu2 %1890  ;;  %v6909_v19 = vmul.f32 %v2317_v3, %v6599_v28  ;;  %v2401_v14 = vstv %s10853_s24  ;;  %s6952_s23 = sld [smem:[#allocation7 + $0xe6]] }
 0x252   : > { %10830 = vst [vmem:[#allocation122_spill] sm:$0xff] %v6876_v32  ;;  %v2395_v32 = vstv %s10851_s20  ;;  %s7003_s20 = sld [smem:[#allocation7 + $0xb4]] }
 0x253   : > { %10833 = vst [vmem:[#allocation123_spill] sm:$0xff] %v6881_v55  ;;  %v6902_v55 = vmul.f32 %v2317_v3, %v6185_v6  ;;  %v2359_v3 = vstv %s10832_s19  ;;  %v2377_v52 = vstv %s10842_s16  ;;  %s10876_s19 = sld [smem:[#allocation94_spill]]  ;;  %v6988_v33 = vmul.f32 %v2395_v32, %v6510_v20 }
 0x254   : > { %10836 = vst [vmem:[#allocation124_spill] sm:$0xff] %v6886_v57  ;;  %10855 = sst [smem:[#allocation60_spill]] %s6920_s12  ;;  %v2389_v57 = vstv %s10846_s6  ;;  %v6960_v31 = vmul.f32 %v2359_v3, %v6484_v46 }
 0x255   : > { %10840 = vst [vmem:[#allocation125_spill] sm:$0xff] %v6893_v22  ;;  %s10882_s16 = sld [smem:[#allocation47_spill]]  ;;  %2496 = vrot.lane.b32.xlu1 %v6510_v20, %s10820_s0  ;;  %2498 = vrot.lane.b32.xlu2 %v6607_v42, %s10820_s0 }
 0x256   : > { %10841 = vst [vmem:[#allocation126_spill] sm:$0xff] %v6896_v38  ;;  %v2371_v38 = vstv %s10837_s14  ;;  %10861 = sst [smem:[#allocation85_spill]] %s6938_s2 }
 0x257   : > { %10843 = vst [vmem:[#allocation127_spill] sm:$0xff] %v6899_v43  ;;  %v6918_v43 = vmul.f32 %v2329_v9, %v6185_v6  ;;  %v10862_v6 = vstv %s10848_s13  ;;  %10866 = sst [smem:[#allocation86_spill]] %s6952_s23 }
 0x258   : > { %10845 = vst [vmem:[#allocation128_spill] sm:$0xff] %v6902_v55  ;;  %v6923_v55 = vmul.f32 %v2329_v9, %v6599_v28  ;;  %v10864_v9 = vstv %s6276_s30  ;;  %s10874_s30 = sld [smem:[#allocation93_spill]]  ;;  %v7001_v28 = vpop.permute.xlu1 %1862 }
 0x259   : > { %10849 = vst [vmem:[#allocation129_spill] sm:$0xff] %v6909_v19  ;;  %v2365_v19 = vstv %s10835_s4  ;;  %s10878_s4 = sld [smem:[#allocation46_spill]] }
 0x25a   : > { %10850 = vst [vmem:[#allocation130_spill] sm:$0xff] %v6912_v44  ;;  %v10859_v44 = vstv %s6269_s22  ;;  %v6963_v53 = vmul.f32 %v2365_v19, %v6484_v46  ;;  %s6972_s22 = sld [smem:[#allocation7 + $0x10a]] }
 0x25b   : > { %10852 = vst [vmem:[#allocation131_spill] sm:$0xff] %v6915_v30  ;;  %v6933_v22 = vmul.f32 %v10859_v44, %v6595_v10  ;;  %v2383_v30 = vstv %s10844_s5  ;;  %v10867_v44 = vstv %s10856_s7  ;;  %s6985_s14 = sld [smem:[#allocation7 + $0x90]] }
 0x25c   : > { %10854 = vst [vmem:[#allocation132_spill] sm:$0xff] %v6918_v43  ;;  %v6943_v43 = vmul.f32 %v10862_v6, %v6595_v10  ;;  %v6966_v6 = vmul.f32 %v2371_v38, %v6484_v46  ;;  %s10884_s5 = sld [smem:[#allocation71_spill]] }
 0x25d   : > { %10857 = vst [vmem:[#allocation133_spill] sm:$0xff] %v6923_v55  ;;  %v6948_v55 = vmul.f32 %v10864_v9, %v6595_v10  ;;  %v6975_v9 = vmul.f32 %v2377_v52, %v6484_v46  ;;  %v6994_v46 = vmul.f32 %v2359_v3, %v6602_v12  ;;  %s10886_s6 = sld [smem:[#allocation63_spill]]  ;;  %v7012_v3 = vmul.f32 %v2383_v30, %v6607_v42 }
 0x25e   : > { %10860 = vst [vmem:[#allocation134_spill] sm:$0xff] %v6933_v22  ;;  %v6957_v22 = vmul.f32 %v10867_v44, %v6595_v10  ;;  %v6978_v44 = vmul.f32 %v2383_v30, %v6510_v20  ;;  %v6991_v10 = vmul.f32 %v2401_v14, %v6510_v20  ;;  %s10887_s13 = sld [smem:[#allocation64_spill]] }
 0x25f   : > { %10863 = vst [vmem:[#allocation135_spill] sm:$0xff] %v6943_v43  ;;  %10888 = sst [smem:[#allocation89_spill]] %s7003_s20 }
 0x260   : > { %10865 = vst [vmem:[#allocation136_spill] sm:$0xff] %v6948_v55  ;;  %10872 = sst [smem:[#allocation87_spill]] %s6972_s22  ;;  %v1835_v55 = vmul.f32 %v5032_v36, %v6584_v58  ;;  %v10912_v58 = vstv %s10874_s30 }
 0x261   : > { %10868 = vst [vmem:[#allocation137_spill] sm:$0xff] %v6957_v22  ;;  %v6981_v22 = vmul.f32 %v2389_v57, %v6510_v20  ;;  %10879 = sst [smem:[#allocation88_spill]] %s6985_s14 }
 0x262   : > { %10869 = vst [vmem:[#allocation138_spill] sm:$0xff] %v6960_v31  ;;  %s10890_s24 = sld [smem:[#allocation72_spill]] }
 0x263   : > { %10870 = vst [vmem:[#allocation139_spill] sm:$0xff] %v6963_v53  ;;  %s10892_s7 = sld [smem:[#allocation54_spill]] }
 0x264   : > { %10871 = vst [vmem:[#allocation140_spill] sm:$0xff] %v6966_v6  ;;  %s10896_s14 = sld [smem:[#allocation68_spill]] }
 0x265   : > { %10873 = vst [vmem:[#allocation141_spill] sm:$0xff] %v6975_v9  ;;  %s10897_s22 = sld [smem:[#allocation69_spill]] }
 0x266   : > { %10875 = vst [vmem:[#allocation142_spill] sm:$0xff] %v6978_v44  ;;  %v6997_v44 = vmul.f32 %v2365_v19, %v6602_v12  ;;  %v7015_v19 = vmul.f32 %v2389_v57, %v6607_v42  ;;  %s10898_s20 = sld [smem:[#allocation70_spill]] }
 0x267   : > { %10877 = vst [vmem:[#allocation143_spill] sm:$0xff] %v6981_v22  ;;  %v6999_v22 = vpop.permute.xlu0 %1892  ;;  %s10899_s23 = sld [smem:[#allocation79_spill]] }
 0x268   : > { %10880 = vst [vmem:[#allocation144_spill] sm:$0xff] %v6988_v33  ;;  %v7006_v33 = vmul.f32 %v2371_v38, %v6602_v12  ;;  %v7020_v38 = vpop.permute.xlu2 %1556  ;;  %s7022_s2 = sld [smem:[#allocation7 + $0xd8]] }
 0x269   : > { %10881 = vst [vmem:[#allocation145_spill] sm:$0xff] %v6991_v10  ;;  %v7009_v10 = vmul.f32 %v2377_v52, %v6602_v12  ;;  %v7025_v52 = vmul.f32 %v2395_v32, %v6607_v42  ;;  %s10902_s11 = sld [smem:[#allocation80_spill]]  ;;  %v10915_v12 = vstv %s10882_s16  ;;  %v10927_v32 = vstv %s10886_s6 }
 0x26a   : > { %10883 = vst [vmem:[#allocation146_spill] sm:$0xff] %v6994_v46  ;;  %s7031_s3 = sld [smem:[#allocation7 + $0xfc]]  ;;  %v7079_v57 = vmul.f32 %v10915_v12, %v1835_v55  ;;  %v10938_v53 = vstv %s10892_s7 }
 0x26b   : > { %10885 = vst [vmem:[#allocation147_spill] sm:$0xff] %v6997_v44  ;;  %s7060_s12 = sld [smem:[#allocation7 + $0xfe]]  ;;  %v10944_v6 = vstv %s10897_s22 }
 0x26c   : > { %10889 = vst [vmem:[#allocation148_spill] sm:$0xff] %v7006_v33  ;;  %v7063_v33 = vmul.f32 %v2401_v14, %v6607_v42  ;;  %s7083_s30 = sld [smem:[#allocation7 + $0xab]]  ;;  %v1831_v14 = vpop.permute.xlu1 %1830  ;;  %v1894_v42 = vmul.f32 %v5032_v36, %v6904_v62 }
 0x26d   : > { %10891 = vst [vmem:[#allocation149_spill] sm:$0xff] %v7009_v10  ;;  %v1925_v10 = vmul.f32 %v5032_v36, %v6738_v16  ;;  %v10913_v16 = vstv %s10876_s19  ;;  %s10920_s16 = sld [smem:[#allocation58_spill]] }
 0x26e   : > { %10893 = vst [vmem:[#allocation150_spill] sm:$0xff] %v7012_v3  ;;  %10900 = sst [smem:[#allocation90_spill]] %s7022_s2  ;;  %v7071_v30 = vmul.f32 %v10913_v16, %v1835_v55  ;;  %v10914_v3 = vstv %s10878_s4  ;;  %v10925_v16 = vstv %s10884_s5  ;;  %v7130_v31 = vmul.f32 %v10938_v53, %v1894_v42 }
 0x26f   : > { %10895 = vst [vmem:[#allocation151_spill] sm:$0xff] %v7015_v19  ;;  %s7038_s2 = sld [smem:[#allocation7 + $0x92]]  ;;  %v7075_v44 = vmul.f32 %v10914_v3, %v1835_v55  ;;  %v1861_v20 = vpop.permute.xlu0 %1860  ;;  %v7100_v3 = vmul.f32 %v10925_v16, %v1925_v10  ;;  %v7104_v46 = vmul.f32 %v10927_v32, %v1925_v10  ;;  %v10932_v19 = vstv %s10890_s24 }
 0x270   : > { %10901 = vst [vmem:[#allocation152_spill] sm:$0xff] %v7025_v52  ;;  %10906 = sst [smem:[#allocation39_spill]] %s7031_s3  ;;  %v7067_v52 = vmul.f32 %v10912_v58, %v1835_v55  ;;  %v1743_v55 = vpop.permute.xlu2 %1742  ;;  %v7115_v58 = vmul.f32 %v10932_v19, %v1925_v10  ;;  %v1895_v16 = vmul.f32 %v5032_v36, %v6999_v22  ;;  %v7147_v9 = vmul.f32 %v10944_v6, %v1894_v42 }
 0x271   : > { %s7050_s3 = sld [smem:[#allocation7 + $0xda]]  ;;  %10911 = vst [vmem:[#allocation153_spill] sm:$0xff] %v7063_v33  ;;  %v10929_v33 = vstv %s10887_s13  ;;  %v1865_v53 = vmul.f32 %v5032_v36, %v7001_v28  ;;  %v1559_v22 = vmul.f32 %v5032_v36, %v7020_v38  ;;  %v10949_v38 = vstv %s10892_s7 }
 0x272   : > { %10910 = sst [smem:[#allocation54_spill]] %s7060_s12  ;;  %10926 = vst [vmem:[#allocation154_spill] sm:$0xff] %v7100_v3  ;;  %v7108_v62 = vmul.f32 %v10929_v33, %v1925_v10  ;;  %v10940_v10 = vstv %s10894_s25  ;;  %v10942_v33 = vstv %s10896_s14  ;;  %v7169_v32 = vmul.f32 %v10949_v38, %v1895_v16 }
 0x273   : > { %10916 = sst [smem:[#allocation66_spill]] %s7083_s30  ;;  %10928 = vst [vmem:[#allocation155_spill] sm:$0xff] %v7104_v46  ;;  %v7134_v19 = vmul.f32 %v10940_v10, %v1894_v42  ;;  %v7143_v43 = vmul.f32 %v10942_v33, %v1894_v42  ;;  %v10950_v12 = vmov %v10940_v10  ;;  %v1864_v28 = vmul.f32 %v5032_v36, %v1861_v20 }
 0x274   : > { %s10918_s4 = sld [smem:[#allocation84_spill]]  ;;  %10930 = vst [vmem:[#allocation156_spill] sm:$0xff] %v7108_v62  ;;  %v1921_v42 = vpop.permute.xlu1 %1920  ;;  %v7173_v33 = vmul.f32 %v10950_v12, %v1895_v16  ;;  %v10957_v38 = vstv %s10898_s20  ;;  %v10958_v12 = vstv %s10899_s23  ;;  %v10959_v20 = vstv %s10902_s11 }
 0x275   : > { %10907 = sst [smem:[#allocation91_spill]] %s7038_s2  ;;  %10933 = vst [vmem:[#allocation157_spill] sm:$0xff] %v7115_v58  ;;  %v7188_v54 = vmul.f32 %v10957_v38, %v1865_v53  ;;  %v7192_v13 = vmul.f32 %v10958_v12, %v1865_v53  ;;  %v7199_v29 = vmul.f32 %v10959_v20, %v1865_v53  ;;  %v1745_v12 = vmul.f32 %v5035_v37, %v1743_v55 }
 0x276   : > { %s7111_s9 = sld [smem:[#allocation7 + $0x117]]  ;;  %10939 = vst [vmem:[#allocation158_spill] sm:$0xff] %v7130_v31  ;;  %v10970_v55 = vstv %s10898_s20 }
 0x277   : > { %10909 = sst [smem:[#allocation40_spill]] %s7050_s3  ;;  %10941 = vst [vmem:[#allocation159_spill] sm:$0xff] %v7134_v19  ;;  %v2047_v6 = vpop.permute.xlu0 %2046  ;;  %v10952_v19 = vstv %s10896_s14 }
 0x278   : > { %s7120_s6 = sld [smem:[#allocation7 + $0xa7]]  ;;  %10943 = vst [vmem:[#allocation160_spill] sm:$0xff] %v7143_v43  ;;  %v7177_v31 = vmul.f32 %v10952_v19, %v1895_v16  ;;  %v1525_v10 = vpop.permute.xlu2 %1524  ;;  %v10956_v43 = vstv %s10897_s22  ;;  %v1834_v19 = vmul.f32 %v5032_v36, %v1831_v14  ;;  %v10963_v14 = vstv %s10951_s27 }
 0x279   : > { %s7126_s19 = sld [smem:[#allocation7 + $0xcb]]  ;;  %10945 = vst [vmem:[#allocation161_spill] sm:$0xff] %v7147_v9  ;;  %v7184_v9 = vmul.f32 %v10956_v43, %v1895_v16  ;;  %v7214_v4 = vmul.f32 %v10963_v14, %v1559_v22  ;;  %v1528_v56 = vmul.f32 %v5032_v36, %v1525_v10 }
 0x27a   : > { %s7139_s30 = sld [smem:[#allocation7 + $0xef]] }
 0x27b   : > { %s7152_s1 = sld [smem:[#allocation7 + $0x113]] }
 0x27c   : > { %s7159_s10 = sld [smem:[#allocation7 + $0xad]]  ;;  %v11043_v46 = vstv %s7111_s9 }
 0x27d   : > { %s10947_s29 = sld [smem:[#allocation62_spill]] }
 0x27e   : > { %s10948_s24 = sld [smem:[#allocation44_spill]] }
 0x27f   : > { %s7165_s5 = sld [smem:[#allocation7 + $0xd1]] }
 0x280   : > { %s10953_s13 = sld [smem:[#allocation41_spill]] }
 0x281   : > { %10946 = sst [smem:[#allocation68_spill]] %s7152_s1 }
 0x282   : > { %s10954_s2 = sld [smem:[#allocation42_spill]] }
 0x283   : > { %s10955_s21 = sld [smem:[#allocation66_spill]]  ;;  %v10960_v50 = vstv %s10947_s29 }
 0x284   : > { %s7180_s3 = sld [smem:[#allocation7 + $0xf5]]  ;;  %v7203_v43 = vmul.f32 %v10960_v50, %v1865_v53  ;;  %v10961_v16 = vstv %s10948_s24  ;;  %v10977_v53 = vstv %s10947_s29 }
 0x285   : > { %s7195_s25 = sld [smem:[#allocation7 + $0x119]]  ;;  %v7207_v38 = vmul.f32 %v10961_v16, %v1559_v22  ;;  %v7229_v16 = vmul.f32 %v10970_v55, %v1864_v28  ;;  %v7246_v11 = vmul.f32 %v10977_v53, %v1864_v28 }
 0x286   : > { %s10962_s22 = sld [smem:[#allocation93_spill]]  ;;  %v10965_v8 = vstv %s10953_s13 }
 0x287   : > { %s7210_s14 = sld [smem:[#allocation7 + $0xa4]]  ;;  %v7218_v20 = vmul.f32 %v10965_v8, %v1559_v22  ;;  %10971 = vst [vmem:[#allocation162_spill] sm:$0xff] %v7229_v16  ;;  %v10973_v8 = vstv %s10899_s23 }
 0x288   : > { %s10964_s7 = sld [smem:[#allocation94_spill]]  ;;  %v10967_v24 = vstv %s10954_s2  ;;  %v7238_v25 = vmul.f32 %v10973_v8, %v1864_v28  ;;  %10978 = vst [vmem:[#allocation165_spill] sm:$0xff] %v7246_v11 }
 0x289   : > { %s10966_s12 = sld [smem:[#allocation46_spill]]  ;;  %v7222_v50 = vmul.f32 %v10967_v24, %v1559_v22  ;;  %v10975_v24 = vstv %s10902_s11 }
 0x28a   : > { %s10968_s8 = sld [smem:[#allocation47_spill]]  ;;  %10974 = vst [vmem:[#allocation163_spill] sm:$0xff] %v7238_v25  ;;  %v7242_v22 = vmul.f32 %v10975_v24, %v1864_v28  ;;  %v10989_v25 = vstv %s6740_s26 }
 0x28b   : > { %s10969_s24 = sld [smem:[#allocation43_spill]]  ;;  %v7276_v16 = vmul.f32 %v10989_v25, %v1745_v12 }
 0x28c   : > { %s7225_s0 = sld [smem:[#allocation7 + $0xc8]]  ;;  %10976 = vst [vmem:[#allocation164_spill] sm:$0xff] %v7242_v22  ;;  %v10979_v23 = vstv %s10962_s22 }
 0x28d   : > { %s10972_s27 = sld [smem:[#allocation82_spill]]  ;;  %v7250_v55 = vmul.f32 %v10979_v23, %v1834_v19  ;;  %v10988_v23 = vstv %s6716_s28 }
 0x28e   : > { %s7234_s13 = sld [smem:[#allocation7 + $0xec]]  ;;  %v10981_v7 = vstv %s10964_s7  ;;  %v7272_v11 = vmul.f32 %v10988_v23, %v1745_v12 }
 0x28f   : > { %10980 = vst [vmem:[#allocation166_spill] sm:$0xff] %v7250_v55  ;;  %s7252_s20 = sld [smem:[#allocation7 + $0x110]]  ;;  %v7256_v0 = vmul.f32 %v10981_v7, %v1834_v19  ;;  %v10983_v14 = vstv %s10966_s12 }
 0x290   : > { %v7260_v8 = vmul.f32 %v10983_v14, %v1834_v19  ;;  %v10985_v24 = vstv %s10968_s8  ;;  %v1527_v14 = vpop.permute.xlu0 %1526  ;;  %s10991_s8 = sld [smem:[#allocation60_spill]] }
 0x291   : > { %10982 = vst [vmem:[#allocation167_spill] sm:$0xff] %v7256_v0  ;;  %v7264_v22 = vmul.f32 %v10985_v24, %v1834_v19  ;;  %v10987_v28 = vstv %s10969_s24  ;;  %v1529_v24 = vmul.f32 %v5032_v36, %v1527_v14  ;;  %s10992_s29 = sld [smem:[#allocation88_spill]]  ;;  %v2050_v19 = vmul.f32 %v5035_v37, %v2047_v6 }
 0x292   : > { %10984 = vst [vmem:[#allocation168_spill] sm:$0xff] %v7260_v8  ;;  %v7268_v53 = vmul.f32 %v10987_v28, %v1745_v12  ;;  %v1497_v8 = vpop.permute.xlu1 %1496  ;;  %v2077_v28 = vpop.permute.xlu2 %2076  ;;  %s10993_s12 = sld [smem:[#allocation89_spill]]  ;;  %v1924_v14 = vmul.f32 %v5032_v36, %v1921_v42 }
 0x293   : > { %10986 = vst [vmem:[#allocation169_spill] sm:$0xff] %v7264_v22  ;;  %v10990_v7 = vstv %s10972_s27  ;;  %v1499_v23 = vmul.f32 %v5032_v36, %v1497_v8  ;;  %s10994_s11 = sld [smem:[#allocation90_spill]]  ;;  %v10997_v8 = vstv %s10918_s4  ;;  %v1539_v22 = vmul.f32 %v10999_v27, %v1529_v24 }
 0x294   : > { %v7280_v0 = vmul.f32 %v10990_v7, %v1745_v12  ;;  %s10995_s23 = sld [smem:[#allocation39_spill]]  ;;  %v1533_v25 = vmul.f32 %v10997_v8, %v1529_v24  ;;  %v11001_v12 = vstv %s10920_s16  ;;  %v2080_v10 = vmul.f32 %v5035_v37, %v2077_v28 }
 0x295   : > { %s10996_s22 = sld [smem:[#allocation106_spill]]  ;;  %v1545_v7 = vmul.f32 %v11001_v12, %v1529_v24 }
 0x296   : > { %s10998_s7 = sld [smem:[#allocation55_spill]]  ;;  %v11002_v55 = vstv %s10991_s8 }
 0x297   : > { %s11000_s27 = sld [smem:[#allocation56_spill]]  ;;  %v1551_v39 = vmul.f32 %v11002_v55, %v1529_v24  ;;  %v11003_v48 = vstv %s10992_s29 }
 0x298   : > { %v1503_v17 = vmul.f32 %v11003_v48, %v1499_v23  ;;  %v11004_v34 = vstv %s10993_s12  ;;  %s7311_s26 = sld [smem:[#allocation7 + $0x96]] }
 0x299   : > { %v1509_v6 = vmul.f32 %v11004_v34, %v1499_v23  ;;  %v11005_v18 = vstv %s10994_s11  ;;  %s11007_s28 = sld [smem:[#allocation83_spill]] }
 0x29a   : > { %v1515_v58 = vmul.f32 %v11005_v18, %v1499_v23  ;;  %v11006_v42 = vstv %s10995_s23  ;;  %s11008_s24 = sld [smem:[#allocation71_spill]]  ;;  %v1535_v12 = vadd.f32 %v1533_v25, %v1503_v17  ;;  %v1587_v62 = vpop.permute.xlu1 %1586 }
 0x29b   : > { %v1521_v49 = vmul.f32 %v11006_v42, %v1499_v23  ;;  %s11009_s2 = sld [smem:[#allocation63_spill]]  ;;  %v11010_v55 = vstv %s10996_s22  ;;  %v1541_v42 = vadd.f32 %v1539_v22, %v1509_v6  ;;  %v11032_v6 = vstv %s10919_s18 }
 0x29c   : > { %s7317_s1 = sld [smem:[#allocation7 + $0xba]]  ;;  %v7321_v48 = vmul.f32 %v11010_v55, %v2050_v19  ;;  %v11013_v34 = vstv %s10998_s7  ;;  %v1547_v27 = vadd.f32 %v1545_v7, %v1515_v58  ;;  %v11030_v7 = vstv %s10918_s4 }
 0x29d   : > { %s11011_s29 = sld [smem:[#allocation64_spill]]  ;;  %v7325_v18 = vmul.f32 %v11013_v34, %v2050_v19  ;;  %v11015_v24 = vstv %s11000_s27  ;;  %v1553_v55 = vadd.f32 %v1551_v39, %v1521_v49  ;;  %v1713_v34 = vpop.permute.xlu0 %1712  ;;  %v1711_v39 = vpop.permute.xlu2 %1710 }
 0x29e   : > { %11012 = vst [vmem:[#allocation170_spill] sm:$0xff] %v7321_v48  ;;  %s11016_s23 = sld [smem:[#allocation72_spill]]  ;;  %v7329_v23 = vmul.f32 %v11015_v24, %v2050_v19 }
 0x29f   : > { %11014 = vst [vmem:[#allocation171_spill] sm:$0xff] %v7325_v18  ;;  %s7332_s11 = sld [smem:[#allocation7 + $0xde]]  ;;  %v11020_v24 = vstv %s11007_s28 }
 0x2a0   : > { %11017 = vst [vmem:[#allocation172_spill] sm:$0xff] %v7329_v23  ;;  %s11018_s22 = sld [smem:[#allocation38_spill]]  ;;  %v7338_v8 = vmul.f32 %v11020_v24, %v2050_v19  ;;  %v11022_v23 = vstv %s11008_s24  ;;  %v7358_v19 = vmul.f32 %v11030_v7, %v1528_v56  ;;  %v11034_v24 = vstv %s10920_s16 }
 0x2a1   : > { %s11019_s7 = sld [smem:[#allocation85_spill]]  ;;  %v7342_v28 = vmul.f32 %v11022_v23, %v1924_v14  ;;  %v11024_v18 = vstv %s11009_s2  ;;  %v7362_v23 = vmul.f32 %v11032_v6, %v1528_v56  ;;  %v1565_v7 = vadd.f32 %v7207_v38, %v1535_v12 }
 0x2a2   : > { %s7334_s27 = sld [smem:[#allocation7 + $0x102]]  ;;  %11021 = vst [vmem:[#allocation173_spill] sm:$0xff] %v7338_v8  ;;  %v7346_v17 = vmul.f32 %v11024_v18, %v1924_v14  ;;  %v1589_v18 = vmul.f32 %v5032_v36, %v1587_v62  ;;  %v11035_v8 = vstv %s10991_s8  ;;  %v1571_v6 = vadd.f32 %v7214_v4, %v1541_v42 }
 0x2a3   : > { %11023 = vst [vmem:[#allocation174_spill] sm:$0xff] %v7342_v28  ;;  %v11026_v22 = vstv %s11011_s29  ;;  %s11031_s28 = sld [smem:[#allocation86_spill]]  ;;  %v7371_v48 = vmul.f32 %v11035_v8, %v1528_v56  ;;  %v1583_v62 = vadd.f32 %v7222_v50, %v1553_v55 }
 0x2a4   : > { %11025 = vst [vmem:[#allocation175_spill] sm:$0xff] %v7346_v17  ;;  %v7350_v58 = vmul.f32 %v11026_v22, %v1924_v14  ;;  %v11028_v49 = vstv %s11016_s23  ;;  %s11033_s24 = sld [smem:[#allocation87_spill]]  ;;  %v7367_v22 = vmul.f32 %v11034_v24, %v1528_v56  ;;  %v1577_v17 = vadd.f32 %v7218_v20, %v1547_v27 }
 0x2a5   : > { %v7354_v25 = vmul.f32 %v11028_v49, %v1924_v14  ;;  %v11040_v24 = vstv %s10955_s21  ;;  %v11041_v56 = vstv %s7089_s17  ;;  %v1715_v20 = vmul.f32 %v5035_v37, %v1713_v34  ;;  %s11046_s18 = sld [smem:[#allocation91_spill]] }
 0x2a6   : > { %11027 = vst [vmem:[#allocation176_spill] sm:$0xff] %v7350_v58  ;;  %v11036_v58 = vstv %s11018_s22  ;;  %v1593_v28 = vmul.f32 %v11040_v24, %v1589_v18  ;;  %v1599_v8 = vmul.f32 %v11041_v56, %v1589_v18  ;;  %v10304_v27 = vstv %s7311_s26  ;;  %s11047_s2 = sld [smem:[#allocation92_spill]]  ;;  %v1803_v56 = vpop.permute.xlu0 %1802 }
 0x2a7   : > { %11029 = vst [vmem:[#allocation177_spill] sm:$0xff] %v7354_v25  ;;  %v7375_v14 = vmul.f32 %v11036_v58, %v2080_v10  ;;  %v11038_v49 = vstv %s11019_s7  ;;  %v11042_v58 = vstv %s7096_s15  ;;  %s11048_s4 = sld [smem:[#allocation40_spill]]  ;;  %v1714_v24 = vmul.f32 %v5035_v37, %v1711_v39 }
 0x2a8   : > { %v7379_v25 = vmul.f32 %v11038_v49, %v2080_v10  ;;  %v1611_v49 = vmul.f32 %v11043_v46, %v1589_v18  ;;  %v1595_v50 = vadd.f32 %v1593_v28, %v1565_v7  ;;  %v1601_v12 = vadd.f32 %v1599_v8, %v1571_v6  ;;  %s11049_s16 = sld [smem:[#allocation54_spill]]  ;;  %v2109_v7 = vpop.permute.xlu2 %2108  ;;  %v1773_v6 = vpop.permute.xlu1 %1772 }
 0x2a9   : > { %11037 = vst [vmem:[#allocation178_spill] sm:$0xff] %v7375_v14  ;;  %v1605_v14 = vmul.f32 %v11042_v58, %v1589_v18  ;;  %v10303_v46 = vstv %s7317_s1  ;;  %v10302_v18 = vstv %s7332_s11  ;;  %s7466_s8 = sld [smem:[#allocation7 + $0xb1]] }
 0x2aa   : > { %11039 = vst [vmem:[#allocation179_spill] sm:$0xff] %v7379_v25  ;;  %v11044_v25 = vstv %s11031_s28  ;;  %v11045_v38 = vstv %s11033_s24  ;;  %v1613_v55 = vadd.f32 %v1611_v49, %v1583_v62  ;;  %v1625_v34 = vadd.f32 %v6641_v1, %v1601_v12  ;;  %s11066_s29 = sld [smem:[#allocation68_spill]] }
 0x2ab   : > { %v7395_v3 = vmul.f32 %v11044_v25, %v2080_v10  ;;  %v7399_v4 = vmul.f32 %v11045_v38, %v2080_v10  ;;  %v1607_v42 = vadd.f32 %v1605_v14, %v1577_v17  ;;  %v10301_v25 = vstv %s7334_s27  ;;  %s11067_s23 = sld [smem:[#allocation88_spill]] }
 0x2ac   : > { %v1619_v10 = vadd.f32 %v6636_v60, %v1595_v50  ;;  %v1637_v28 = vadd.f32 %v6653_v5, %v1613_v55  ;;  %v11050_v17 = vstv %s11046_s18  ;;  %v11051_v62 = vstv %s11047_s2  ;;  %s11068_s18 = sld [smem:[#allocation90_spill]] }
 0x2ad   : > { %v1631_v58 = vadd.f32 %v6646_v21, %v1607_v42  ;;  %v1719_v14 = vmul.f32 %v11050_v17, %v1715_v20  ;;  %v1725_v39 = vmul.f32 %v11051_v62, %v1715_v20  ;;  %v11052_v8 = vstv %s11048_s4  ;;  %s11072_s2 = sld [smem:[#allocation39_spill]] }
 0x2ae   : > { %v1731_v49 = vmul.f32 %v11052_v8, %v1715_v20  ;;  %v2111_v38 = vmul.f32 %v5035_v37, %v2109_v7  ;;  %v1643_v1 = vadd.f32 %v6614_v26, %v1619_v10  ;;  %v1649_v21 = vadd.f32 %v6619_v47, %v1625_v34  ;;  %s11079_s4 = sld [smem:[#allocation44_spill]] }
 0x2af   : > { %v1655_v60 = vadd.f32 %v6624_v41, %v1631_v58  ;;  %v1661_v5 = vadd.f32 %v6631_v59, %v1637_v28  ;;  %v11053_v50 = vmov %v11050_v17  ;;  %v11054_v42 = vstv %s11049_s16  ;;  %s11081_s16 = sld [smem:[#allocation41_spill]] }
 0x2b0   : > { %v7424_v12 = vmul.f32 %v11053_v50, %v1714_v24  ;;  %v1737_v55 = vmul.f32 %v11054_v42, %v1715_v20  ;;  %v1805_v17 = vmul.f32 %v5035_v37, %v1803_v56  ;;  %v1775_v7 = vmul.f32 %v5035_v37, %v1773_v6 }
 0x2b1   : > { %v1667_v26 = vadd.f32 %v6506_v15, %v1643_v1  ;;  %v1673_v47 = vadd.f32 %v6527_v51, %v1649_v21  ;;  %v1679_v41 = vadd.f32 %v6532_v40, %v1655_v60  ;;  %v1685_v59 = vadd.f32 %v6537_v63, %v1661_v5 }
 0x2b2   : > { %v11055_v10 = vmov %v11051_v62  ;;  %v11056_v58 = vmov %v11052_v8  ;;  %v11057_v28 = vmov %v11054_v42  ;;  %v11058_v62 = vstv %s7120_s6 }
 0x2b3   : > { %v7436_v34 = vmul.f32 %v11055_v10, %v1714_v24  ;;  %v7440_v20 = vmul.f32 %v11056_v58, %v1714_v24  ;;  %v7444_v56 = vmul.f32 %v11057_v28, %v1714_v24  ;;  %v7448_v6 = vmul.f32 %v11058_v62, %v2111_v38  ;;  %v1495_v10 = vpop.permute.xlu0 %1494 }
 0x2b4   : > { %v1691_v15 = vadd.f32 %v6548_v35, %v1667_v26  ;;  %v1697_v40 = vadd.f32 %v6553_v2, %v1673_v47  ;;  %v1703_v63 = vadd.f32 %v6558_v45, %v1679_v41  ;;  %v1709_v51 = vadd.f32 %v6567_v61, %v1685_v59  ;;  %v1801_v26 = vpop.permute.xlu2 %1800 }
 0x2b5   : > { %v11059_v8 = vstv %s7126_s19  ;;  %v11060_v21 = vstv %s7139_s30  ;;  %v11061_v60 = vstv %s7159_s10  ;;  %v11062_v50 = vstv %s7210_s14 }
 0x2b6   : > { %v7456_v1 = vmul.f32 %v11059_v8, %v2111_v38  ;;  %v7460_v24 = vmul.f32 %v11060_v21, %v2111_v38  ;;  %v1809_v5 = vmul.f32 %v11061_v60, %v1805_v17  ;;  %v1779_v42 = vmul.f32 %v11062_v50, %v1775_v7 }
 0x2b7   : > { %v1721_v35 = vadd.f32 %v1719_v14, %v1691_v15  ;;  %v1727_v2 = vadd.f32 %v1725_v39, %v1697_v40  ;;  %v1733_v45 = vadd.f32 %v1731_v49, %v1703_v63  ;;  %v1739_v61 = vadd.f32 %v1737_v55, %v1709_v51  ;;  %v1555_v55 = vpop.permute.xlu1 %1554 }
 0x2b8   : > { %v11063_v47 = vstv %s7225_s0  ;;  %v11064_v59 = vstv %s7234_s13  ;;  %v11065_v28 = vstv %s7252_s20  ;;  %v1498_v8 = vmul.f32 %v5032_v36, %v1495_v10 }
 0x2b9   : > { %v1785_v41 = vmul.f32 %v11063_v47, %v1775_v7  ;;  %v1791_v58 = vmul.f32 %v11064_v59, %v1775_v7  ;;  %v1797_v62 = vmul.f32 %v11065_v28, %v1775_v7  ;;  %v1751_v21 = vadd.f32 %v7268_v53, %v1721_v35 }
 0x2ba   : > { %v1757_v14 = vadd.f32 %v7272_v11, %v1727_v2  ;;  %v1763_v39 = vadd.f32 %v7276_v16, %v1733_v45  ;;  %v1769_v49 = vadd.f32 %v7280_v0, %v1739_v61  ;;  %v11069_v15 = vstv %s7165_s5 }
 0x2bb   : > { %v1815_v40 = vmul.f32 %v11069_v15, %v1805_v17  ;;  %v11070_v63 = vstv %s7180_s3  ;;  %v11071_v7 = vstv %s7195_s25  ;;  %v7486_v50 = vmul.f32 %v5035_v37, %v1801_v26 }
 0x2bc   : > { %v1821_v51 = vmul.f32 %v11070_v63, %v1805_v17  ;;  %v1827_v60 = vmul.f32 %v11071_v7, %v1805_v17  ;;  %v1781_v53 = vadd.f32 %v1779_v42, %v1751_v21  ;;  %v1787_v10 = vadd.f32 %v1785_v41, %v1757_v14 }
 0x2bd   : > { %v1793_v11 = vadd.f32 %v1791_v58, %v1763_v39  ;;  %v1799_v35 = vadd.f32 %v1797_v62, %v1769_v49  ;;  %v11073_v16 = vstv %s11066_s29  ;;  %v11074_v0 = vstv %s11067_s23  ;;  %s11119_s23 = sld [smem:[#allocation56_spill]] }
 0x2be   : > { %v7490_v2 = vmul.f32 %v11073_v16, %v2111_v38  ;;  %v1502_v45 = vmul.f32 %v11074_v0, %v1498_v8  ;;  %v11075_v61 = vstv %s10993_s12  ;;  %v11076_v59 = vstv %s11068_s18  ;;  %s11080_s12 = sld [smem:[#allocation45_spill]] }
 0x2bf   : > { %v1508_v47 = vmul.f32 %v11075_v61, %v1498_v8  ;;  %v1514_v28 = vmul.f32 %v11076_v59, %v1498_v8  ;;  %v1811_v15 = vadd.f32 %v1809_v5, %v1781_v53  ;;  %v1817_v17 = vadd.f32 %v1815_v40, %v1787_v10  ;;  %v1585_v53 = vpop.permute.xlu0 %1584  ;;  %s11121_s18 = sld [smem:[#allocation83_spill]] }
 0x2c0   : > { %v1823_v63 = vadd.f32 %v1821_v51, %v1793_v11  ;;  %v1829_v26 = vadd.f32 %v1827_v60, %v1799_v35  ;;  %v11077_v7 = vstv %s7159_s10  ;;  %v11078_v41 = vstv %s11072_s2  ;;  %s11083_s10 = sld [smem:[#allocation42_spill]] }
 0x2c1   : > { %v7501_v42 = vmul.f32 %v11077_v7, %v7486_v50  ;;  %v1520_v58 = vmul.f32 %v11078_v41, %v1498_v8  ;;  %v1558_v38 = vmul.f32 %v5032_v36, %v1555_v55  ;;  %v10296_v62 = vstv %s7466_s8  ;;  %s7624_s2 = sld [smem:[#allocation7 + $0xe7]] }
 0x2c2   : > { %v1841_v21 = vadd.f32 %v7067_v52, %v1811_v15  ;;  %v1847_v14 = vadd.f32 %v7071_v30, %v1817_v17  ;;  %v1853_v5 = vadd.f32 %v7075_v44, %v1823_v63  ;;  %v1859_v39 = vadd.f32 %v7079_v57, %v1829_v26  ;;  %v2191_v57 = vpop.permute.xlu2 %2190 }
 0x2c3   : > { %v11082_v49 = vstv %s7165_s5  ;;  %v1534_v8 = vadd.f32 %v7358_v19, %v1502_v45  ;;  %v1540_v55 = vadd.f32 %v7362_v23, %v1508_v47  ;;  %v1546_v51 = vadd.f32 %v7367_v22, %v1514_v28  ;;  %v11088_v28 = vld [vmem:[#allocation154_spill] sm:$0xff]  ;;  %s7543_s5 = sld [smem:[#allocation7 + $0xd5]] }
 0x2c4   : > { %v7514_v40 = vmul.f32 %v11082_v49, %v7486_v50  ;;  %v1871_v52 = vadd.f32 %v7188_v54, %v1841_v21  ;;  %v1877_v60 = vadd.f32 %v7192_v13, %v1847_v14  ;;  %v1883_v30 = vadd.f32 %v7199_v29, %v1853_v5 }
 0x2c5   : > { %v1889_v44 = vadd.f32 %v7203_v43, %v1859_v39  ;;  %v1552_v10 = vadd.f32 %v7371_v48, %v1520_v58  ;;  %v11084_v11 = vstv %s11079_s4  ;;  %v11085_v19 = vstv %s11080_s12  ;;  %v2049_v43 = vpop.permute.xlu1 %2048  ;;  %s7630_s4 = sld [smem:[#allocation7 + $0x10b]] }
 0x2c6   : > { %v1562_v35 = vmul.f32 %v11084_v11, %v1558_v38  ;;  %v1568_v16 = vmul.f32 %v11085_v19, %v1558_v38  ;;  %v11086_v23 = vstv %s11081_s16  ;;  %v1901_v22 = vadd.f32 %v7169_v32, %v1871_v52  ;;  %v11089_v32 = vld [vmem:[#allocation155_spill] sm:$0xff]  ;;  %v11096_v52 = vld [vmem:[#allocation59_spill] sm:$0xff]  ;;  %s11137_s12 = sld [smem:[#allocation43_spill]] }
 0x2c7   : > { %v1574_v0 = vmul.f32 %v11086_v23, %v1558_v38  ;;  %v1907_v54 = vadd.f32 %v7173_v33, %v1877_v60  ;;  %v1913_v13 = vadd.f32 %v7177_v31, %v1883_v30  ;;  %v1919_v29 = vadd.f32 %v7184_v9, %v1889_v44  ;;  %v11090_v33 = vld [vmem:[#allocation156_spill] sm:$0xff]  ;;  %v11091_v31 = vld [vmem:[#allocation157_spill] sm:$0xff]  ;;  %v11100_v23 = vld [vmem:[#allocation97_spill] sm:$0xff]  ;;  %s11139_s16 = sld [smem:[#allocation48_spill]] }
 0x2c8   : > { %v1564_v45 = vadd.f32 %v1562_v35, %v1534_v8  ;;  %v1570_v48 = vadd.f32 %v1568_v16, %v1540_v55  ;;  %v11087_v61 = vstv %s11083_s10  ;;  %v1588_v59 = vmul.f32 %v5032_v36, %v1585_v53  ;;  %v11097_v30 = vld [vmem:[#allocation67_spill] sm:$0xff]  ;;  %s11143_s10 = sld [smem:[#allocation81_spill]] }
 0x2c9   : > { %v1580_v47 = vmul.f32 %v11087_v61, %v1558_v38  ;;  %v1931_v15 = vadd.f32 %v11088_v28, %v1901_v22  ;;  %v1937_v17 = vadd.f32 %v11089_v32, %v1907_v54  ;;  %v1943_v63 = vadd.f32 %v11090_v33, %v1913_v13  ;;  %v11101_v22 = vld [vmem:[#allocation98_spill] sm:$0xff]  ;;  %v11102_v13 = vld [vmem:[#allocation99_spill] sm:$0xff]  ;;  %v11106_v28 = vld [vmem:[#allocation49_spill] sm:$0xff] }
 0x2ca   : > { %v1949_v26 = vadd.f32 %v11091_v31, %v1919_v29  ;;  %v1576_v7 = vadd.f32 %v1574_v0, %v1546_v51  ;;  %v2194_v41 = vmul.f32 %v5032_v36, %v2191_v57  ;;  %v2051_v58 = vmul.f32 %v5035_v37, %v2049_v43  ;;  %v11098_v51 = vld [vmem:[#allocation95_spill] sm:$0xff]  ;;  %v11103_v43 = vld [vmem:[#allocation100_spill] sm:$0xff]  ;;  %v2281_v33 = vpop.permute.xlu2 %2280 }
 0x2cb   : > { %v1582_v9 = vadd.f32 %v1580_v47, %v1552_v10  ;;  %v11092_v21 = vstv %s10955_s21  ;;  %v11093_v14 = vstv %s7089_s17  ;;  %v11094_v39 = vstv %s7096_s15  ;;  %v11099_v10 = vld [vmem:[#allocation96_spill] sm:$0xff]  ;;  %s7557_s21 = sld [smem:[#allocation7 + $0xf9]]  ;;  %v11104_v47 = vld [vmem:[#allocation31_spill] sm:$0xff]  ;;  %v11107_v32 = vld [vmem:[#allocation52_spill] sm:$0xff] }
 0x2cc   : > { %v1592_v38 = vmul.f32 %v11092_v21, %v1588_v59  ;;  %v1598_v5 = vmul.f32 %v11093_v14, %v1588_v59  ;;  %v1604_v49 = vmul.f32 %v11094_v39, %v1588_v59  ;;  %v11095_v8 = vstv %s7111_s9  ;;  %s7563_s17 = sld [smem:[#allocation7 + $0x11d]] }
 0x2cd   : > { %v1610_v55 = vmul.f32 %v11095_v8, %v1588_v59  ;;  %v1955_v60 = vadd.f32 %v11096_v52, %v1931_v15  ;;  %v1961_v44 = vadd.f32 %v11097_v30, %v1937_v17  ;;  %v1967_v53 = vadd.f32 %v11098_v51, %v1943_v63  ;;  %v11108_v63 = vld [vmem:[#allocation102_spill] sm:$0xff]  ;;  %s11114_s15 = sld [smem:[#allocation106_spill]] }
 0x2ce   : > { %v1973_v57 = vadd.f32 %v11099_v10, %v1949_v26  ;;  %v1594_v11 = vadd.f32 %v1592_v38, %v1564_v45  ;;  %v1600_v35 = vadd.f32 %v1598_v5, %v1570_v48  ;;  %v1606_v19 = vadd.f32 %v1604_v49, %v1576_v7  ;;  %v11105_v45 = vld [vmem:[#allocation35_spill] sm:$0xff]  ;;  %v11109_v26 = vld [vmem:[#allocation104_spill] sm:$0xff]  ;;  %v11112_v5 = vld [vmem:[#allocation61_spill] sm:$0xff]  ;;  %s11117_s9 = sld [smem:[#allocation55_spill]] }
 0x2cf   : > { %v1612_v16 = vadd.f32 %v1610_v55, %v1582_v9  ;;  %v1979_v0 = vadd.f32 %v11100_v23, %v1955_v60  ;;  %v1985_v54 = vadd.f32 %v11101_v22, %v1961_v44  ;;  %v1991_v29 = vadd.f32 %v11102_v13, %v1967_v53  ;;  %v11110_v9 = vld [vmem:[#allocation107_spill] sm:$0xff]  ;;  %v11111_v38 = vld [vmem:[#allocation109_spill] sm:$0xff]  ;;  %v11113_v49 = vld [vmem:[#allocation65_spill] sm:$0xff]  ;;  %v2079_v44 = vpop.permute.xlu0 %2078 }
 0x2d0   : > { %v1997_v61 = vadd.f32 %v11103_v43, %v1973_v57  ;;  %v1618_v59 = vadd.f32 %v11104_v47, %v1594_v11  ;;  %v1624_v48 = vadd.f32 %v11105_v45, %v1600_v35  ;;  %v1630_v15 = vadd.f32 %v11106_v28, %v1606_v19  ;;  %v11115_v55 = vld [vmem:[#allocation53_spill] sm:$0xff]  ;;  %v11116_v60 = vld [vmem:[#allocation51_spill] sm:$0xff] }
 0x2d1   : > { %v1636_v17 = vadd.f32 %v11107_v32, %v1612_v16  ;;  %v2003_v31 = vadd.f32 %v11108_v63, %v1979_v0  ;;  %v2009_v7 = vadd.f32 %v11109_v26, %v1985_v54  ;;  %v2015_v21 = vadd.f32 %v11110_v9, %v1991_v29  ;;  %v11122_v11 = vld [vmem:[#allocation111_spill] sm:$0xff]  ;;  %v1741_v16 = vpop.permute.xlu1 %1740  ;;  %v11123_v0 = vld [vmem:[#allocation113_spill] sm:$0xff] }
 0x2d2   : > { %v2021_v14 = vadd.f32 %v11111_v38, %v1997_v61  ;;  %v1642_v39 = vadd.f32 %v11112_v5, %v1618_v59  ;;  %v1648_v8 = vadd.f32 %v11113_v49, %v1624_v48  ;;  %v1654_v52 = vadd.f32 %v11115_v55, %v1630_v15  ;;  %v11124_v54 = vld [vmem:[#allocation115_spill] sm:$0xff]  ;;  %v11125_v29 = vld [vmem:[#allocation117_spill] sm:$0xff]  ;;  %v11130_v5 = vld [vmem:[#allocation118_spill] sm:$0xff] }
 0x2d3   : > { %v1660_v30 = vadd.f32 %v11116_v60, %v1636_v17  ;;  %v11118_v51 = vstv %s7180_s3  ;;  %v11120_v10 = vstv %s7195_s25  ;;  %v2027_v35 = vadd.f32 %v11122_v11, %v2003_v31  ;;  %s7607_s3 = sld [smem:[#allocation7 + $0x9f]]  ;;  %v11131_v49 = vld [vmem:[#allocation119_spill] sm:$0xff]  ;;  %v11132_v60 = vld [vmem:[#allocation120_spill] sm:$0xff] }
 0x2d4   : > { %v7580_v53 = vmul.f32 %v11118_v51, %v7486_v50  ;;  %v7585_v57 = vmul.f32 %v11120_v10, %v7486_v50  ;;  %v10295_v19 = vstv %s7543_s5  ;;  %v7591_v23 = vmul.f32 %v10304_v27, %v2194_v41  ;;  %s7616_s25 = sld [smem:[#allocation7 + $0xc3]]  ;;  %v11133_v51 = vld [vmem:[#allocation121_spill] sm:$0xff] }
 0x2d5   : > { %v2033_v22 = vadd.f32 %v11123_v0, %v2009_v7  ;;  %v2039_v13 = vadd.f32 %v11124_v54, %v2015_v21  ;;  %v2045_v43 = vadd.f32 %v11125_v29, %v2021_v14  ;;  %v7598_v61 = vmul.f32 %v10303_v46, %v2194_v41  ;;  %v11135_v29 = vld [vmem:[#allocation122_spill] sm:$0xff]  ;;  %v11183_v46 = vld [vmem:[#allocation103_spill] sm:$0xff] }
 0x2d6   : > { %v7602_v50 = vmul.f32 %v10302_v18, %v2194_v41  ;;  %v11126_v47 = vstv %s11114_s15  ;;  %v2284_v45 = vmul.f32 %v5032_v36, %v2281_v33  ;;  %v11127_v48 = vstv %s11117_s9  ;;  %s7688_s15 = sld [smem:[#allocation7 + $0x116]] }
 0x2d7   : > { %v2055_v59 = vmul.f32 %v11126_v47, %v2051_v58  ;;  %v2061_v28 = vmul.f32 %v11127_v48, %v2051_v58  ;;  %v11128_v15 = vstv %s11119_s23  ;;  %v11129_v17 = vstv %s11121_s18  ;;  %v11140_v47 = vld [vmem:[#allocation125_spill] sm:$0xff]  ;;  %s7690_s9 = sld [smem:[#allocation7 + $0xb0]] }
 0x2d8   : > { %v2067_v32 = vmul.f32 %v11128_v15, %v2051_v58  ;;  %v2073_v63 = vmul.f32 %v11129_v17, %v2051_v58  ;;  %v2081_v31 = vmul.f32 %v5035_v37, %v2079_v44  ;;  %v7620_v26 = vmul.f32 %v10301_v25, %v2194_v41  ;;  %s7700_s23 = sld [smem:[#allocation7 + $0xd4]] }
 0x2d9   : > { %v2057_v7 = vadd.f32 %v2055_v59, %v2027_v35  ;;  %v10294_v33 = vstv %s7557_s21  ;;  %v10293_v9 = vstv %s7563_s17  ;;  %v2063_v21 = vadd.f32 %v2061_v28, %v2033_v22  ;;  %s7818_s18 = sld [smem:[#allocation7 + $0xf0]] }
 0x2da   : > { %v2069_v38 = vadd.f32 %v2067_v32, %v2039_v13  ;;  %v2075_v14 = vadd.f32 %v2073_v63, %v2045_v43  ;;  %v7628_v58 = vmul.f32 %v10296_v62, %v2284_v45  ;;  %v1666_v41 = vadd.f32 %v11130_v5, %v1642_v39  ;;  %v2223_v13 = vpop.permute.xlu2 %2222  ;;  %v11136_v43 = vld [vmem:[#allocation123_spill] sm:$0xff]  ;;  %v1771_v5 = vpop.permute.xlu0 %1770 }
 0x2db   : > { %v1672_v55 = vadd.f32 %v11131_v49, %v1648_v8  ;;  %v1678_v44 = vadd.f32 %v11132_v60, %v1654_v52  ;;  %v1684_v10 = vadd.f32 %v11133_v51, %v1660_v30  ;;  %v7638_v11 = vmul.f32 %v10295_v19, %v2284_v45  ;;  %v11138_v52 = vld [vmem:[#allocation124_spill] sm:$0xff] }
 0x2dc   : > { %v7642_v35 = vmul.f32 %v10294_v33, %v2284_v45  ;;  %v7646_v0 = vmul.f32 %v10293_v9, %v2284_v45  ;;  %v11134_v22 = vstv %s11018_s22  ;;  %v1690_v39 = vadd.f32 %v11135_v29, %v1666_v41  ;;  %s11145_s22 = sld [smem:[#allocation82_spill]]  ;;  %v11167_v9 = vld [vmem:[#allocation159_spill] sm:$0xff]  ;;  %v11168_v19 = vld [vmem:[#allocation160_spill] sm:$0xff] }
 0x2dd   : > { %v2085_v54 = vmul.f32 %v11134_v22, %v2081_v31  ;;  %v1696_v8 = vadd.f32 %v11136_v43, %v1672_v55  ;;  %v1702_v30 = vadd.f32 %v11138_v52, %v1678_v44  ;;  %v1708_v59 = vadd.f32 %v11140_v47, %v1684_v10  ;;  %v2107_v44 = vpop.permute.xlu1 %2106 }
 0x2de   : > { %v11141_v48 = vstv %s11019_s7  ;;  %v11142_v15 = vstv %s11031_s28  ;;  %v11144_v32 = vstv %s11033_s24  ;;  %v1744_v63 = vmul.f32 %v5035_v37, %v1741_v16  ;;  %s7665_s28 = sld [smem:[#allocation7 + $0xaa]] }
 0x2df   : > { %v2091_v28 = vmul.f32 %v11141_v48, %v2081_v31  ;;  %v2097_v45 = vmul.f32 %v11142_v15, %v2081_v31  ;;  %v2103_v17 = vmul.f32 %v11144_v32, %v2081_v31  ;;  %v1720_v41 = vadd.f32 %v7424_v12, %v1690_v39  ;;  %s7674_s7 = sld [smem:[#allocation7 + $0xce]] }
 0x2e0   : > { %v1726_v49 = vadd.f32 %v7436_v34, %v1696_v8  ;;  %v1732_v55 = vadd.f32 %v7440_v20, %v1702_v30  ;;  %v1738_v60 = vadd.f32 %v7444_v56, %v1708_v59  ;;  %v7667_v51 = vadd.f32 %v2085_v54, %v2057_v7  ;;  %s7682_s24 = sld [smem:[#allocation7 + $0xf2]] }
 0x2e1   : > { %v11146_v31 = vstv %s11137_s12  ;;  %v11147_v16 = vstv %s11139_s16  ;;  %v2227_v29 = vstv %s7607_s3  ;;  %v11148_v12 = vstv %s11143_s10  ;;  %s7825_s12 = sld [smem:[#allocation7 + $0x114]] }
 0x2e2   : > { %v1748_v10 = vmul.f32 %v11146_v31, %v1744_v63  ;;  %v1754_v22 = vmul.f32 %v11147_v16, %v1744_v63  ;;  %v1760_v34 = vmul.f32 %v11148_v12, %v1744_v63  ;;  %v11149_v39 = vstv %s11145_s22  ;;  %s7852_s16 = sld [smem:[#allocation7 + $0xb3]] }
 0x2e3   : > { %v1766_v20 = vmul.f32 %v11149_v39, %v1744_v63  ;;  %v2225_v56 = vmul.f32 %v5032_v36, %v2223_v13  ;;  %v1774_v7 = vmul.f32 %v5035_v37, %v1771_v5  ;;  %v2233_v54 = vstv %s7616_s25  ;;  %v2467_v39 = vpop.permute.xlu2 %2466  ;;  %s7866_s10 = sld [smem:[#allocation7 + $0xd7]] }
 0x2e4   : > { %v2239_v43 = vstv %s7624_s2  ;;  %v2245_v8 = vstv %s7630_s4  ;;  %v2110_v52 = vmul.f32 %v5035_v37, %v2107_v44  ;;  %v1750_v30 = vadd.f32 %v1748_v10, %v1720_v41  ;;  %s7912_s3 = sld [smem:[#allocation7 + $0xfb]]  ;;  %s11243_s2 = smov 127  }
 0x2e5   : > { %v1756_v47 = vadd.f32 %v1754_v22, %v1726_v49  ;;  %v1762_v59 = vadd.f32 %v1760_v34, %v1732_v55  ;;  %v1768_v48 = vadd.f32 %v1766_v20, %v1738_v60  ;;  %v11150_v13 = vstv %s7210_s14  ;;  %s7802_s14 = sld [smem:[#allocation7 + $0x104]] }
 0x2e6   : > { %v1778_v15 = vmul.f32 %v11150_v13, %v1774_v7  ;;  %v11151_v32 = vstv %s7225_s0  ;;  %v11152_v5 = vstv %s7234_s13  ;;  %v11153_v16 = vstv %s7252_s20  ;;  %s7710_s0 = sld [smem:[#allocation7 + $0xf8]] }
 0x2e7   : > { %v1784_v63 = vmul.f32 %v11151_v32, %v1774_v7  ;;  %v1790_v31 = vmul.f32 %v11152_v5, %v1774_v7  ;;  %v1796_v44 = vmul.f32 %v11153_v16, %v1774_v7  ;;  %v2093_v41 = vadd.f32 %v2091_v28, %v2063_v21  ;;  %v11158_v32 = vld [vmem:[#allocation167_spill] sm:$0xff]  ;;  %s7796_s13 = sld [smem:[#allocation7 + $0xe0]] }
 0x2e8   : > { %v7702_v49 = vadd.f32 %v2097_v45, %v2069_v38  ;;  %v7704_v55 = vadd.f32 %v2103_v17, %v2075_v14  ;;  %v7708_v60 = vmul.f32 %v2227_v29, %v2225_v56  ;;  %v1780_v10 = vadd.f32 %v1778_v15, %v1750_v30  ;;  %s7804_s20 = sld [smem:[#allocation7 + $0xa8]] }
 0x2e9   : > { %v1786_v22 = vadd.f32 %v1784_v63, %v1756_v47  ;;  %v1792_v12 = vadd.f32 %v1790_v31, %v1762_v59  ;;  %v1798_v34 = vadd.f32 %v1796_v44, %v1768_v48  ;;  %v7714_v20 = vmul.f32 %v2233_v54, %v2225_v56  ;;  %v2137_v47 = vpop.permute.xlu0 %2136  ;;  %v11159_v63 = vld [vmem:[#allocation168_spill] sm:$0xff]  ;;  %v11160_v31 = vld [vmem:[#allocation169_spill] sm:$0xff]  ;;  %s7914_s25 = sld [smem:[#allocation7 + $0x11f]] }
 0x2ea   : > { %v7718_v21 = vmul.f32 %v2239_v43, %v2225_v56  ;;  %v7722_v38 = vmul.f32 %v2245_v8, %v2225_v56  ;;  %v11154_v14 = vstv %s7120_s6  ;;  %v1810_v45 = vadd.f32 %v7501_v42, %v1780_v10  ;;  %s7742_s6 = sld [smem:[#allocation7 + $0x11c]] }
 0x2eb   : > { %v7726_v28 = vmul.f32 %v11154_v14, %v2110_v52  ;;  %v1816_v17 = vadd.f32 %v7514_v40, %v1786_v22  ;;  %v1822_v7 = vadd.f32 %v7580_v53, %v1792_v12  ;;  %v1828_v30 = vadd.f32 %v7585_v57, %v1798_v34  ;;  %v11157_v40 = vld [vmem:[#allocation166_spill] sm:$0xff]  ;;  %s8141_s4 = sld [smem:[#allocation7 + $0x133]] }
 0x2ec   : > { %v11155_v59 = vstv %s7126_s19  ;;  %v11156_v56 = vstv %s7139_s30  ;;  %v10300_v15 = vstv %s7665_s28  ;;  %v2470_v42 = vmul.f32 %v5035_v37, %v2467_v39  ;;  %v11162_v39 = vld [vmem:[#allocation162_spill] sm:$0xff]  ;;  %s7783_s30 = sld [smem:[#allocation7 + $0x98]] }
 0x2ed   : > { %v7734_v48 = vmul.f32 %v11155_v59, %v2110_v52  ;;  %v7738_v13 = vmul.f32 %v11156_v56, %v2110_v52  ;;  %v1840_v53 = vadd.f32 %v11157_v40, %v1810_v45  ;;  %v1846_v57 = vadd.f32 %v11158_v32, %v1816_v17  ;;  %v11163_v59 = vld [vmem:[#allocation163_spill] sm:$0xff]  ;;  %v11164_v45 = vld [vmem:[#allocation164_spill] sm:$0xff]  ;;  %v11165_v17 = vld [vmem:[#allocation165_spill] sm:$0xff]  ;;  %s7789_s19 = sld [smem:[#allocation7 + $0xbc]] }
 0x2ee   : > { %v1852_v5 = vadd.f32 %v11159_v63, %v1822_v7  ;;  %v1858_v16 = vadd.f32 %v11160_v31, %v1828_v30  ;;  %v11161_v44 = vstv %s11066_s29  ;;  %v10299_v22 = vstv %s7674_s7  ;;  %v11166_v31 = vld [vmem:[#allocation158_spill] sm:$0xff]  ;;  %s7812_s29 = sld [smem:[#allocation7 + $0xcc]] }
 0x2ef   : > { %v7750_v10 = vmul.f32 %v11161_v44, %v2110_v52  ;;  %v10297_v12 = vstv %s7682_s24  ;;  %v10298_v34 = vstv %s7688_s15  ;;  %v1870_v14 = vadd.f32 %v11162_v39, %v1840_v53  ;;  %v11169_v53 = vld [vmem:[#allocation161_spill] sm:$0xff]  ;;  %s8145_s22 = sld [smem:[#allocation7 + $0x157]] }
 0x2f0   : > { %v1876_v56 = vadd.f32 %v11163_v59, %v1846_v57  ;;  %v1882_v40 = vadd.f32 %v11164_v45, %v1852_v5  ;;  %v1888_v32 = vadd.f32 %v11165_v17, %v1858_v16  ;;  %v7761_v7 = vmul.f32 %v10300_v15, %v2470_v42  ;;  %v2139_v57 = vpop.permute.xlu1 %2138 }
 0x2f1   : > { %v2143_v30 = vstv %s7690_s9  ;;  %v2149_v52 = vstv %s7700_s23  ;;  %v2155_v63 = vstv %s7710_s0  ;;  %v1900_v44 = vadd.f32 %v11166_v31, %v1870_v14  ;;  %v11170_v14 = vld [vmem:[#allocation174_spill] sm:$0xff]  ;;  %s8165_s9 = sld [smem:[#allocation7 + $0x184]] }
 0x2f2   : > { %v1906_v33 = vadd.f32 %v11167_v9, %v1876_v56  ;;  %v1912_v62 = vadd.f32 %v11168_v19, %v1882_v40  ;;  %v1918_v39 = vadd.f32 %v11169_v53, %v1888_v32  ;;  %v7772_v5 = vmul.f32 %v10299_v22, %v2470_v42  ;;  %v11171_v56 = vld [vmem:[#allocation175_spill] sm:$0xff]  ;;  %v11172_v40 = vld [vmem:[#allocation176_spill] sm:$0xff]  ;;  %v11173_v32 = vld [vmem:[#allocation177_spill] sm:$0xff]  ;;  %s8167_s23 = sld [smem:[#allocation7 + $0x1a8]] }
 0x2f3   : > { %v7776_v16 = vmul.f32 %v10297_v12, %v2470_v42  ;;  %v7780_v59 = vmul.f32 %v10298_v34, %v2470_v42  ;;  %v2140_v45 = vmul.f32 %v5035_v37, %v2137_v47  ;;  %v1930_v9 = vadd.f32 %v11170_v14, %v1900_v44  ;;  %v11174_v34 = vld [vmem:[#allocation74_spill] sm:$0xff]  ;;  %v11175_v14 = vld [vmem:[#allocation75_spill] sm:$0xff]  ;;  %s8169_s0 = sld [smem:[#allocation7 + $0x130]] }
 0x2f4   : > { %v1936_v19 = vadd.f32 %v11171_v56, %v1906_v33  ;;  %v1942_v17 = vadd.f32 %v11172_v40, %v1912_v62  ;;  %v1948_v31 = vadd.f32 %v11173_v32, %v1918_v39  ;;  %v2161_v53 = vstv %s7742_s6  ;;  %v11176_v56 = vld [vmem:[#allocation76_spill] sm:$0xff]  ;;  %v11177_v40 = vld [vmem:[#allocation73_spill] sm:$0xff]  ;;  %v2251_v32 = vpop.permute.xlu0 %2250  ;;  %s8171_s6 = sld [smem:[#allocation7 + $0x154]] }
 0x2f5   : > { %v2117_v12 = vadd.f32 %v7448_v6, %v7667_v51  ;;  %v2123_v42 = vadd.f32 %v7456_v1, %v2093_v41  ;;  %v2141_v47 = vmul.f32 %v5035_v37, %v2139_v57  ;;  %v1954_v44 = vadd.f32 %v11174_v34, %v1930_v9  ;;  %v11178_v1 = vld [vmem:[#allocation77_spill] sm:$0xff]  ;;  %v11179_v57 = vld [vmem:[#allocation78_spill] sm:$0xff]  ;;  %v11180_v34 = vld [vmem:[#allocation30_spill] sm:$0xff] }
 0x2f6   : > { %v1960_v33 = vadd.f32 %v11175_v14, %v1936_v19  ;;  %v1966_v62 = vadd.f32 %v11176_v56, %v1942_v17  ;;  %v1972_v39 = vadd.f32 %v11177_v40, %v1948_v31  ;;  %v2144_v22 = vmul.f32 %v2143_v30, %v2140_v45  ;;  %v11181_v19 = vld [vmem:[#allocation29_spill] sm:$0xff] }
 0x2f7   : > { %v2150_v15 = vmul.f32 %v2149_v52, %v2140_v45  ;;  %v2156_v6 = vmul.f32 %v2155_v63, %v2140_v45  ;;  %v2145_v51 = vmul.f32 %v2143_v30, %v2141_v47  ;;  %v1978_v41 = vadd.f32 %v11178_v1, %v1954_v44  ;;  %v11182_v30 = vld [vmem:[#allocation101_spill] sm:$0xff]  ;;  %v11185_v1 = vld [vmem:[#allocation108_spill] sm:$0xff]  ;;  %11246 = sst [smem:[#allocation79_spill]] %s8165_s9 }
 0x2f8   : > { %v1984_v25 = vadd.f32 %v11179_v57, %v1960_v33  ;;  %v1990_v9 = vadd.f32 %v11180_v34, %v1966_v62  ;;  %v1996_v17 = vadd.f32 %v11181_v19, %v1972_v39  ;;  %v2162_v14 = vmul.f32 %v2161_v53, %v2140_v45  ;;  %v11184_v44 = vld [vmem:[#allocation105_spill] sm:$0xff]  ;;  %v2409_v57 = vpop.permute.xlu2 %2408  ;;  %11247 = sst [smem:[#allocation80_spill]] %s8167_s23 }
 0x2f9   : > { %v2129_v31 = vadd.f32 %v7460_v24, %v7702_v49  ;;  %v2151_v56 = vmul.f32 %v2149_v52, %v2141_v47  ;;  %v2157_v40 = vmul.f32 %v2155_v63, %v2141_v47  ;;  %v2002_v18 = vadd.f32 %v11182_v30, %v1978_v41  ;;  %v11186_v63 = vld [vmem:[#allocation110_spill] sm:$0xff]  ;;  %v11192_v30 = vld [vmem:[#allocation172_spill] sm:$0xff]  ;;  %11248 = sst [smem:[#allocation84_spill]] %s8169_s0 }
 0x2fa   : > { %v2008_v27 = vadd.f32 %v11183_v46, %v1984_v25  ;;  %v2014_v33 = vadd.f32 %v11184_v44, %v1990_v9  ;;  %v2020_v62 = vadd.f32 %v11185_v1, %v1996_v17  ;;  %v2135_v45 = vadd.f32 %v7490_v2, %v7704_v55  ;;  %v11187_v25 = vld [vmem:[#allocation112_spill] sm:$0xff]  ;;  %v11188_v41 = vld [vmem:[#allocation114_spill] sm:$0xff]  ;;  %v11193_v44 = vld [vmem:[#allocation173_spill] sm:$0xff]  ;;  %v2221_v1 = vpop.permute.xlu1 %2220 }
 0x2fb   : > { %v7822_v24 = vadd.f32 %v2145_v51, %v2117_v12  ;;  %v2163_v49 = vmul.f32 %v2161_v53, %v2141_v47  ;;  %v2413_v52 = vstv %s7783_s30  ;;  %v2026_v46 = vadd.f32 %v11186_v63, %v2002_v18  ;;  %v11189_v9 = vld [vmem:[#allocation116_spill] sm:$0xff]  ;;  %v11190_v53 = vld [vmem:[#allocation170_spill] sm:$0xff]  ;;  %v11191_v51 = vld [vmem:[#allocation171_spill] sm:$0xff]  ;;  %s8173_s30 = sld [smem:[#allocation7 + $0x178]] }
 0x2fc   : > { %v2032_v39 = vadd.f32 %v11187_v25, %v2008_v27  ;;  %v2038_v34 = vadd.f32 %v11188_v41, %v2014_v33  ;;  %v2044_v19 = vadd.f32 %v11189_v9, %v2020_v62  ;;  %v7831_v17 = vadd.f32 %v2151_v56, %v2123_v42  ;;  %v11195_v63 = vld [vmem:[#allocation179_spill] sm:$0xff]  ;;  %v2193_v41 = vpop.permute.xlu0 %2192 }
 0x2fd   : > { %v7833_v2 = vadd.f32 %v2157_v40, %v2129_v31  ;;  %v2419_v55 = vstv %s7789_s19  ;;  %v7837_v12 = vmul.f32 %v5035_v37, %v2409_v57  ;;  %v2056_v47 = vadd.f32 %v11190_v53, %v2026_v46  ;;  %v11194_v40 = vld [vmem:[#allocation178_spill] sm:$0xff]  ;;  %s8175_s19 = sld [smem:[#allocation7 + $0x19c]] }
 0x2fe   : > { %v2062_v18 = vadd.f32 %v11191_v51, %v2032_v39  ;;  %v2068_v27 = vadd.f32 %v11192_v30, %v2038_v34  ;;  %v2074_v33 = vadd.f32 %v11193_v44, %v2044_v19  ;;  %v7843_v62 = vadd.f32 %v2163_v49, %v2135_v45 }
 0x2ff   : > { %v2425_v42 = vstv %s7796_s13  ;;  %v2431_v31 = vstv %s7802_s14  ;;  %v2257_v56 = vstv %s7804_s20  ;;  %v2086_v57 = vadd.f32 %v11194_v40, %v2056_v47  ;;  %s8180_s13 = sld [smem:[#allocation7 + $0x121]] }
 0x300   : > { %v2092_v25 = vadd.f32 %v11195_v63, %v2062_v18  ;;  %v2098_v46 = vadd.f32 %v7395_v3, %v2068_v27  ;;  %v2104_v39 = vadd.f32 %v7399_v4, %v2074_v33  ;;  %v7857_v45 = vmul.f32 %v2413_v52, %v7837_v12  ;;  %s8186_s14 = sld [smem:[#allocation7 + $0x145]] }
 0x301   : > { %v7862_v49 = vmul.f32 %v2419_v55, %v7837_v12  ;;  %v2254_v34 = vmul.f32 %v5032_v36, %v2251_v32  ;;  %v2224_v3 = vmul.f32 %v5032_v36, %v2221_v1  ;;  %v2116_v4 = vadd.f32 %v7726_v28, %v2086_v57  ;;  %11249 = sst [smem:[#allocation57_spill]] %s8173_s30 }
 0x302   : > { %v2122_v9 = vadd.f32 %v7734_v48, %v2092_v25  ;;  %v2128_v19 = vadd.f32 %v7738_v13, %v2098_v46  ;;  %v2134_v53 = vadd.f32 %v7750_v10, %v2104_v39  ;;  %v2263_v47 = vstv %s7812_s29  ;;  %s8190_s20 = sld [smem:[#allocation7 + $0x169]] }
 0x303   : > { %v2269_v51 = vstv %s7818_s18  ;;  %v2275_v18 = vstv %s7825_s12  ;;  %v2258_v32 = vmul.f32 %v2257_v56, %v2254_v34  ;;  %v2146_v30 = vadd.f32 %v2144_v22, %v2116_v4  ;;  %11250 = sst [smem:[#allocation58_spill]] %s8175_s19 }
 0x304   : > { %v2152_v27 = vadd.f32 %v2150_v15, %v2122_v9  ;;  %v2158_v44 = vadd.f32 %v2156_v6, %v2128_v19  ;;  %v2164_v33 = vadd.f32 %v2162_v14, %v2134_v53  ;;  %v2228_v1 = vmul.f32 %v2227_v29, %v2224_v3  ;;  %v2499_v6 = vpop.permute.xlu2 %2498  ;;  %v2283_v4 = vpop.permute.xlu0 %2282  ;;  %s8192_s29 = sld [smem:[#allocation7 + $0x18d]] }
 0x305   : > { %v2234_v40 = vmul.f32 %v2233_v54, %v2224_v3  ;;  %v2240_v28 = vmul.f32 %v2239_v43, %v2224_v3  ;;  %v2246_v48 = vmul.f32 %v2245_v8, %v2224_v3  ;;  %v2200_v13 = vadd.f32 %v7591_v23, %v2146_v30  ;;  %v2253_v3 = vpop.permute.xlu1 %2252  ;;  %11252 = sst [smem:[#allocation62_spill]] %s8180_s13 }
 0x306   : > { %v2206_v10 = vadd.f32 %v7598_v61, %v2152_v27  ;;  %v2212_v22 = vadd.f32 %v7602_v50, %v2158_v44  ;;  %v2218_v15 = vadd.f32 %v7620_v26, %v2164_v33  ;;  %v2264_v14 = vmul.f32 %v2263_v47, %v2254_v34  ;;  %11253 = sst [smem:[#allocation66_spill]] %s8186_s14 }
 0x307   : > { %v2270_v29 = vmul.f32 %v2269_v51, %v2254_v34  ;;  %v2276_v57 = vmul.f32 %v2275_v18, %v2254_v34  ;;  %v2195_v54 = vmul.f32 %v5032_v36, %v2193_v41  ;;  %v2230_v43 = vadd.f32 %v2228_v1, %v2200_v13  ;;  %s8196_s18 = sld [smem:[#allocation7 + $0x12a]] }
 0x308   : > { %v2236_v8 = vadd.f32 %v2234_v40, %v2206_v10  ;;  %v2242_v63 = vadd.f32 %v2240_v28, %v2212_v22  ;;  %v2248_v23 = vadd.f32 %v2246_v48, %v2218_v15  ;;  %v7893_v61 = vmul.f32 %v2425_v42, %v7837_v12  ;;  %11254 = sst [smem:[#allocation93_spill]] %s8190_s20 }
 0x309   : > { %v2503_v50 = vstv %s7852_s16  ;;  %v2509_v26 = vstv %s7866_s10  ;;  %v7898_v25 = vmul.f32 %v5035_v37, %v2499_v6  ;;  %v2260_v46 = vadd.f32 %v2258_v32, %v2230_v43  ;;  %v11201_v6 = vld [vmem:[#allocation128_spill] sm:$0xff]  ;;  %s8198_s12 = sld [smem:[#allocation7 + $0x14e]] }
 0x30a   : > { %v2266_v39 = vadd.f32 %v2264_v14, %v2236_v8  ;;  %v2272_v34 = vadd.f32 %v2270_v29, %v2242_v63  ;;  %v2278_v41 = vadd.f32 %v2276_v57, %v2248_v23  ;;  %v11196_v9 = vstv %s7311_s26  ;;  %s7938_s26 = sld [smem:[#allocation7 + $0xa1]] }
 0x30b   : > { %v2199_v19 = vmul.f32 %v11196_v9, %v2195_v54  ;;  %v11197_v53 = vstv %s7317_s1  ;;  %v11198_v27 = vstv %s7332_s11  ;;  %v11199_v33 = vstv %s7334_s27  ;;  %s7940_s27 = sld [smem:[#allocation7 + $0xc5]] }
 0x30c   : > { %v2205_v30 = vmul.f32 %v11197_v53, %v2195_v54  ;;  %v2211_v44 = vmul.f32 %v11198_v27, %v2195_v54  ;;  %v2217_v1 = vmul.f32 %v11199_v33, %v2195_v54  ;;  %v2290_v40 = vadd.f32 %v7628_v58, %v2260_v46  ;;  %s7946_s1 = sld [smem:[#allocation7 + $0xe9]] }
 0x30d   : > { %v2296_v28 = vadd.f32 %v7638_v11, %v2266_v39  ;;  %v2302_v48 = vadd.f32 %v7642_v35, %v2272_v34  ;;  %v2308_v32 = vadd.f32 %v7646_v0, %v2278_v41  ;;  %v2201_v13 = vadd.f32 %v2199_v19, %v7822_v24  ;;  %v11200_v0 = vld [vmem:[#allocation126_spill] sm:$0xff]  ;;  %v11209_v19 = vld [vmem:[#allocation32_spill] sm:$0xff]  ;;  %s7948_s11 = sld [smem:[#allocation7 + $0x10d]] }
 0x30e   : > { %v2207_v10 = vadd.f32 %v2205_v30, %v7831_v17  ;;  %v2213_v22 = vadd.f32 %v2211_v44, %v7833_v2  ;;  %v2219_v58 = vadd.f32 %v2217_v1, %v7843_v62  ;;  %v2255_v11 = vmul.f32 %v5032_v36, %v2253_v3  ;;  %v2407_v1 = vpop.permute.xlu1 %2406  ;;  %11255 = sst [smem:[#allocation94_spill]] %s8192_s29 }
 0x30f   : > { %v2285_v35 = vmul.f32 %v5032_v36, %v2283_v4  ;;  %v2314_v15 = vadd.f32 %v11200_v0, %v2290_v40  ;;  %v2320_v14 = vadd.f32 %v11201_v6, %v2296_v28  ;;  %v2231_v24 = vadd.f32 %v7708_v60, %v2201_v13  ;;  %v11208_v4 = vld [vmem:[#allocation33_spill] sm:$0xff]  ;;  %v2437_v40 = vpop.permute.xlu0 %2436  ;;  %11256 = sst [smem:[#allocation46_spill]] %s8198_s12 }
 0x310   : > { %v2237_v29 = vadd.f32 %v7714_v20, %v2207_v10  ;;  %v2243_v17 = vadd.f32 %v7718_v21, %v2213_v22  ;;  %v2249_v2 = vadd.f32 %v7722_v38, %v2219_v58  ;;  %v2259_v57 = vmul.f32 %v2257_v56, %v2255_v11  ;;  %v11206_v56 = vld [vmem:[#allocation130_spill] sm:$0xff]  ;;  %v11211_v10 = vld [vmem:[#allocation36_spill] sm:$0xff]  ;;  %s8200_s16 = sld [smem:[#allocation7 + $0x172]] }
 0x311   : > { %v2265_v62 = vmul.f32 %v2263_v47, %v2255_v11  ;;  %v2271_v54 = vmul.f32 %v2269_v51, %v2255_v11  ;;  %v2277_v43 = vmul.f32 %v2275_v18, %v2255_v11  ;;  %v11202_v8 = vstv %s7466_s8  ;;  %v11207_v51 = vld [vmem:[#allocation132_spill] sm:$0xff]  ;;  %v11212_v58 = vld [vmem:[#allocation127_spill] sm:$0xff]  ;;  %s8001_s8 = sld [smem:[#allocation8 + $0x1]] }
 0x312   : > { %v2289_v63 = vmul.f32 %v11202_v8, %v2285_v35  ;;  %v11203_v23 = vstv %s7543_s5  ;;  %v11204_v39 = vstv %s7557_s21  ;;  %v11205_v41 = vstv %s7563_s17  ;;  %s8013_s5 = sld [smem:[#allocation9 + $0x1]]  ;;  %s11241_s17 = smov 1  }
 0x313   : > { %v2295_v46 = vmul.f32 %v11203_v23, %v2285_v35  ;;  %v2301_v34 = vmul.f32 %v11204_v39, %v2285_v35  ;;  %v2307_v3 = vmul.f32 %v11205_v41, %v2285_v35  ;;  %v2261_v60 = vadd.f32 %v2259_v57, %v2231_v24  ;;  %v11213_v35 = vld [vmem:[#allocation129_spill] sm:$0xff]  ;;  %s11236_s21 = sld [smem:[#allocation27_spill]] }
 0x314   : > { %v2267_v20 = vadd.f32 %v2265_v62, %v2237_v29  ;;  %v2273_v21 = vadd.f32 %v2271_v54, %v2243_v17  ;;  %v2279_v38 = vadd.f32 %v2277_v43, %v2249_v2  ;;  %v2326_v47 = vadd.f32 %v11206_v56, %v2302_v48  ;;  %v11216_v29 = vld [vmem:[#allocation138_spill] sm:$0xff]  ;;  %v11217_v2 = vld [vmem:[#allocation139_spill] sm:$0xff]  ;;  %v11218_v62 = vld [vmem:[#allocation140_spill] sm:$0xff]  ;;  %s8208_s10 = sld [smem:[#allocation7 + $0x196]] }
 0x315   : > { %v2332_v18 = vadd.f32 %v11207_v51, %v2308_v32  ;;  %v2338_v9 = vadd.f32 %v11208_v4, %v2314_v15  ;;  %v2344_v53 = vadd.f32 %v11209_v19, %v2320_v14  ;;  %v2291_v30 = vadd.f32 %v2289_v63, %v2261_v60  ;;  %v11210_v32 = vld [vmem:[#allocation34_spill] sm:$0xff]  ;;  %v11214_v15 = vld [vmem:[#allocation131_spill] sm:$0xff]  ;;  %v11224_v4 = vld [vmem:[#allocation142_spill] sm:$0xff] }
 0x316   : > { %v2297_v27 = vadd.f32 %v2295_v46, %v2267_v20  ;;  %v2303_v44 = vadd.f32 %v2301_v34, %v2273_v21  ;;  %v2309_v33 = vadd.f32 %v2307_v3, %v2279_v38  ;;  %v2515_v28 = vstv %s7912_s3  ;;  %v11215_v14 = vld [vmem:[#allocation133_spill] sm:$0xff]  ;;  %v11221_v3 = vld [vmem:[#allocation135_spill] sm:$0xff]  ;;  %v11222_v21 = vld [vmem:[#allocation136_spill] sm:$0xff]  ;;  %11257 = sst [smem:[#allocation47_spill]] %s8200_s16 }
 0x317   : > { %v2521_v48 = vstv %s7914_s25  ;;  %v2350_v13 = vadd.f32 %v11210_v32, %v2326_v47  ;;  %v2356_v22 = vadd.f32 %v11211_v10, %v2332_v18  ;;  %v2315_v11 = vadd.f32 %v11212_v58, %v2291_v30  ;;  %v11219_v43 = vld [vmem:[#allocation141_spill] sm:$0xff]  ;;  %s8210_s3 = sld [smem:[#allocation7 + $0x124]] }
 0x318   : > { %v2321_v0 = vadd.f32 %v11213_v35, %v2297_v27  ;;  %v2327_v6 = vadd.f32 %v11214_v15, %v2303_v44  ;;  %v2333_v24 = vadd.f32 %v11215_v14, %v2309_v33  ;;  %v2362_v17 = vadd.f32 %v11216_v29, %v2338_v9  ;;  %v11223_v56 = vld [vmem:[#allocation137_spill] sm:$0xff]  ;;  %v11228_v35 = vld [vmem:[#allocation146_spill] sm:$0xff]  ;;  %v11229_v15 = vld [vmem:[#allocation147_spill] sm:$0xff]  ;;  %s8216_s25 = sld [smem:[#allocation7 + $0x148]] }
 0x319   : > { %v2368_v57 = vadd.f32 %v11217_v2, %v2344_v53  ;;  %v2374_v54 = vadd.f32 %v11218_v62, %v2350_v13  ;;  %v2380_v8 = vadd.f32 %v11219_v43, %v2356_v22  ;;  %v2433_v63 = vmul.f32 %v2431_v31, %v7837_v12  ;;  %v11220_v12 = vld [vmem:[#allocation134_spill] sm:$0xff]  ;;  %v11226_v53 = vld [vmem:[#allocation144_spill] sm:$0xff]  ;;  %v11227_v27 = vld [vmem:[#allocation145_spill] sm:$0xff] }
 0x31a   : > { %v7968_v23 = vmul.f32 %v2503_v50, %v7898_v25  ;;  %v7973_v46 = vmul.f32 %v2509_v26, %v7898_v25  ;;  %v7978_v39 = vmul.f32 %v2515_v28, %v7898_v25  ;;  %v7983_v34 = vmul.f32 %v2521_v48, %v7898_v25  ;;  %v11225_v25 = vld [vmem:[#allocation143_spill] sm:$0xff]  ;;  %v11230_v14 = vld [vmem:[#allocation148_spill] sm:$0xff]  ;;  %11258 = sst [smem:[#allocation60_spill]] %s8208_s10 }
 0x31b   : > { %v2339_v41 = vadd.f32 %v11220_v12, %v2315_v11  ;;  %v2345_v60 = vadd.f32 %v11221_v3, %v2321_v0  ;;  %v2410_v20 = vmul.f32 %v5035_v37, %v2407_v1  ;;  %v2351_v38 = vadd.f32 %v11222_v21, %v2327_v6  ;;  %v2439_v11 = vpop.permute.xlu1 %2438 }
 0x31c   : > { %v2357_v47 = vadd.f32 %v11223_v56, %v2333_v24  ;;  %v2443_v51 = vstv %s7938_s26  ;;  %v2440_v18 = vmul.f32 %v5035_v37, %v2437_v40  ;;  %v2386_v9 = vadd.f32 %v11224_v4, %v2362_v17  ;;  %v2469_v17 = vpop.permute.xlu0 %2468  ;;  %s8220_s26 = sld [smem:[#allocation7 + $0x16c]] }
 0x31d   : > { %v2392_v19 = vadd.f32 %v11225_v25, %v2368_v57  ;;  %v2398_v30 = vadd.f32 %v11226_v53, %v2374_v54  ;;  %v2404_v44 = vadd.f32 %v11227_v27, %v2380_v8  ;;  %v2414_v33 = vmul.f32 %v2413_v52, %v2410_v20  ;;  %v11231_v52 = vld [vmem:[#allocation149_spill] sm:$0xff]  ;;  %v11234_v8 = vld [vmem:[#allocation152_spill] sm:$0xff] }
 0x31e   : > { %v2449_v32 = vstv %s7940_s27  ;;  %v2455_v1 = vstv %s7946_s1  ;;  %v2461_v13 = vstv %s7948_s11  ;;  %v2420_v10 = vmul.f32 %v2419_v55, %v2410_v20  ;;  %v11232_v55 = vld [vmem:[#allocation150_spill] sm:$0xff]  ;;  %s8222_s27 = sld [smem:[#allocation7 + $0x190]] }
 0x31f   : > { %v2426_v22 = vmul.f32 %v2425_v42, %v2410_v20  ;;  %v2432_v40 = vmul.f32 %v2431_v31, %v2410_v20  ;;  %v2444_v58 = vmul.f32 %v2443_v51, %v2440_v18  ;;  %v2363_v0 = vadd.f32 %v11228_v35, %v2339_v41  ;;  %v11233_v31 = vld [vmem:[#allocation151_spill] sm:$0xff]  ;;  %v11235_v41 = vld [vmem:[#allocation153_spill] sm:$0xff]  ;;  %s8226_s1 = sld [smem:[#allocation7 + $0x12d]] }
 0x320   : > { %v2369_v6 = vadd.f32 %v11229_v15, %v2345_v60  ;;  %v2375_v24 = vadd.f32 %v11230_v14, %v2351_v38  ;;  %v2381_v29 = vadd.f32 %v11231_v52, %v2357_v47  ;;  %v2416_v2 = vadd.f32 %v2414_v33, %v2386_v9  ;;  %s8228_s11 = sld [smem:[#allocation7 + $0x151]] }
 0x321   : > { %v2422_v57 = vadd.f32 %v2420_v10, %v2392_v19  ;;  %v2450_v62 = vmul.f32 %v2449_v32, %v2440_v18  ;;  %v2456_v54 = vmul.f32 %v2455_v1, %v2440_v18  ;;  %v2387_v42 = vadd.f32 %v11232_v55, %v2363_v0 }
 0x322   : > { %v2393_v43 = vadd.f32 %v11233_v31, %v2369_v6  ;;  %v2399_v12 = vadd.f32 %v11234_v8, %v2375_v24  ;;  %v2405_v3 = vadd.f32 %v11235_v41, %v2381_v29  ;;  %v2428_v60 = vadd.f32 %v2426_v22, %v2398_v30  ;;  %v4443_v6 = vld [vmem:[%s11236_s21 + $0x8] sm:$0xff]  ;;  %11259 = sst [smem:[#allocation89_spill]] %s8220_s26 }
 0x323   : > { %v2434_v20 = vadd.f32 %v2432_v40, %v2404_v44  ;;  %v2441_v21 = vmul.f32 %v5035_v37, %v2439_v11  ;;  %v2471_v38 = vmul.f32 %v5035_v37, %v2469_v17  ;;  %v2417_v56 = vadd.f32 %v7857_v45, %v2387_v42  ;;  %v2497_v17 = vpop.permute.xlu1 %2496  ;;  %v4446_v42 = vld [vmem:[%s11236_s21 + $0x38] sm:$0xff]  ;;  %s8257_s26 = sld [smem:[#allocation7 + $0x1ab]] }
 0x324   : > { %v2423_v47 = vadd.f32 %v7862_v49, %v2393_v43  ;;  %v2429_v4 = vadd.f32 %v7893_v61, %v2399_v12  ;;  %v2435_v9 = vadd.f32 %v2433_v63, %v2405_v3  ;;  %v2446_v27 = vadd.f32 %v2444_v58, %v2416_v2  ;;  %v4444_v2 = vld [vmem:[%s11236_s21 + $0x18] sm:$0xff]  ;;  %11260 = sst [smem:[#allocation71_spill]] %s8222_s27 }
 0x325   : > { %v2445_v25 = vmul.f32 %v2443_v51, %v2441_v21  ;;  %v2451_v19 = vmul.f32 %v2449_v32, %v2441_v21  ;;  %v2457_v53 = vmul.f32 %v2455_v1, %v2441_v21  ;;  %v2463_v30 = vmul.f32 %v2461_v13, %v2441_v21  ;;  %11261 = sst [smem:[#allocation63_spill]] %s8226_s1 }
 0x326   : > { %v2452_v44 = vadd.f32 %v2450_v62, %v2422_v57  ;;  %v2462_v33 = vmul.f32 %v2461_v13, %v2440_v18  ;;  %v2528_v10 = vstv %s8001_s8  ;;  %v11237_v11 = vstv %s7665_s28  ;;  %v4445_v62 = vld [vmem:[%s11236_s21 + $0x28] sm:$0xff]  ;;  %s8147_s28 = sld [smem:[#allocation7 + $0x17b]] }
 0x327   : > { %v2447_v45 = vadd.f32 %v2445_v25, %v2417_v56  ;;  %v2453_v22 = vadd.f32 %v2451_v19, %v2423_v47  ;;  %v2459_v40 = vadd.f32 %v2457_v53, %v2429_v4  ;;  %v2465_v49 = vadd.f32 %v2463_v30, %v2435_v9  ;;  %11262 = sst [smem:[#allocation64_spill]] %s8228_s11 }
 0x328   : > { %v2475_v61 = vmul.f32 %v11237_v11, %v2471_v38  ;;  %v11238_v35 = vstv %s7674_s7  ;;  %v11239_v51 = vstv %s7682_s24  ;;  %v11240_v1 = vstv %s7688_s15  ;;  %s8149_s7 = sld [smem:[#allocation7 + $0x19f]] }
 0x329   : > { %v2481_v63 = vmul.f32 %v11238_v35, %v2471_v38  ;;  %v2487_v32 = vmul.f32 %v11239_v51, %v2471_v38  ;;  %v2493_v0 = vmul.f32 %v11240_v1, %v2471_v38  ;;  %v2458_v58 = vadd.f32 %v2456_v54, %v2428_v60  ;;  %s8155_s24 = sld [smem:[#allocation7 + $0x13c]] }
 0x32a   : > { %v2464_v15 = vadd.f32 %v2462_v33, %v2434_v20  ;;  %v2530_v18 = vmul.f32 %v4443_v6, %v2528_v10  ;;  %v2531_v13 = vstv %s8013_s5  ;;  %v2477_v14 = vadd.f32 %v2475_v61, %v2447_v45  ;;  %v4449_v45 = vld [vmem:[%s11236_s21 + $0x20] sm:$0xff]  ;;  %s8159_s15 = sld [smem:[#allocation7 + $0x160]] }
 0x32b   : > { %v2483_v24 = vadd.f32 %v2481_v63, %v2453_v22  ;;  %v2489_v52 = vadd.f32 %v2487_v32, %v2459_v40  ;;  %v2495_v29 = vadd.f32 %v2493_v0, %v2465_v49  ;;  %v2537_v57 = vmul.f32 %v4444_v2, %v2528_v10  ;;  %s8230_s8 = sld [smem:[#allocation7 + $0x175]] }
 0x32c   : > { %v2543_v55 = vmul.f32 %v4445_v62, %v2528_v10  ;;  %v2549_v31 = vmul.f32 %v4446_v42, %v2528_v10  ;;  %v2476_v54 = vadd.f32 %v7761_v7, %v2446_v27  ;;  %v2507_v43 = vadd.f32 %v7968_v23, %v2477_v14  ;;  %v4447_v23 = vld [vmem:[%s11236_s21] sm:$0xff]  ;;  %s8235_s5 = sld [smem:[#allocation7 + $0x199]] }
 0x32d   : > { %v2513_v8 = vadd.f32 %v7973_v46, %v2483_v24  ;;  %v2519_v12 = vadd.f32 %v7978_v39, %v2489_v52  ;;  %v2525_v41 = vadd.f32 %v7983_v34, %v2495_v29  ;;  %v2482_v3 = vadd.f32 %v7772_v5, %v2452_v44  ;;  %s8243_s27 = sld [smem:[#allocation7 + $0x15a]] }
 0x32e   : > { %v2488_v60 = vadd.f32 %v7776_v16, %v2458_v58  ;;  %v2494_v20 = vadd.f32 %v7780_v59, %v2464_v15  ;;  %v2500_v21 = vmul.f32 %v5035_v37, %v2497_v17  ;;  %v2533_v7 = vmul.f32 %v2531_v13, %v2507_v43  ;;  %v4448_v59 = vld [vmem:[%s11236_s21 + $0x10] sm:$0xff]  ;;  %s8247_s11 = sld [smem:[#allocation7 + $0x17e]] }
 0x32f   : > { %v2539_v38 = vmul.f32 %v2531_v13, %v2513_v8  ;;  %v2545_v56 = vmul.f32 %v2531_v13, %v2519_v12  ;;  %v2529_v47 = vmul.f32 %v4447_v23, %v2528_v10  ;;  %v2551_v9 = vmul.f32 %v2531_v13, %v2525_v41  ;;  %11244 = sst [smem:[#allocation69_spill]] %s8155_s24 }
 0x330   : > { %v2504_v46 = vmul.f32 %v2503_v50, %v2500_v21  ;;  %v2510_v39 = vmul.f32 %v2509_v26, %v2500_v21  ;;  %v2516_v34 = vmul.f32 %v2515_v28, %v2500_v21  ;;  %v2522_v5 = vmul.f32 %v2521_v48, %v2500_v21  ;;  %v4450_v48 = vld [vmem:[%s11236_s21 + $0x30] sm:$0xff]  ;;  %11245 = sst [smem:[#allocation70_spill]] %s8159_s15 }
 0x331   : > { %v2535_v4 = vsub.f32 %v2530_v18, %v2533_v7  ;;  %v2541_v16 = vsub.f32 %v2537_v57, %v2539_v38  ;;  %v2536_v25 = vmul.f32 %v4448_v59, %v2528_v10  ;;  %v2547_v44 = vsub.f32 %v2543_v55, %v2545_v56  ;;  %11263 = sst [smem:[#allocation72_spill]] %s8230_s8 }
 0x332   : > { %v2506_v19 = vadd.f32 %v2504_v46, %v2476_v54  ;;  %v2512_v53 = vadd.f32 %v2510_v39, %v2482_v3  ;;  %v2518_v30 = vadd.f32 %v2516_v34, %v2488_v60  ;;  %v2524_v27 = vadd.f32 %v2522_v5, %v2494_v20  ;;  %11264 = sst [smem:[#allocation38_spill]] %s8235_s5 }
 0x333   : > { %v2555_v33 = vmax.f32 %v2535_v4, %v2541_v16  ;;  %v2542_v50 = vmul.f32 %v4449_v45, %v2528_v10  ;;  %v2553_v28 = vsub.f32 %v2549_v31, %v2551_v9  ;;  %v2548_v11 = vmul.f32 %v4450_v48, %v2528_v10  ;;  %s8237_s21 = sld [smem:[#allocation7 + $0x136]] }
 0x334   : > { %v2532_v22 = vmul.f32 %v2531_v13, %v2506_v19  ;;  %v2538_v26 = vmul.f32 %v2531_v13, %v2512_v53  ;;  %v2544_v40 = vmul.f32 %v2531_v13, %v2518_v30  ;;  %v2550_v63 = vmul.f32 %v2531_v13, %v2524_v27  ;;  %11266 = sst [smem:[#allocation86_spill]] %s8243_s27 }
 0x335   : > { %v2557_v49 = vmax.f32 %v2555_v33, %v2547_v44  ;;  %11267 = sst [smem:[#allocation87_spill]] %s8247_s11 }
 0x336   : > { %v2534_v61 = vsub.f32 %v2529_v47, %v2532_v22  ;;  %v2540_v35 = vsub.f32 %v2536_v25, %v2538_v26  ;;  %v2546_v32 = vsub.f32 %v2542_v50, %v2544_v40  ;;  %v2552_v18 = vsub.f32 %v2548_v11, %v2550_v63  ;;  %s8249_s8 = sld [smem:[#allocation7 + $0x1a2]] }
 0x337   : > { %v2559_v51 = vmax.f32 %v2557_v49, %v2553_v28  ;;  %s8251_s1 = sld [smem:[#allocation7 + $0x13f]] }
 0x338   : > { %v2554_v1 = vmax.f32 %v2534_v61, %v2540_v35  ;;  %s8253_s5 = sld [smem:[#allocation7 + $0x163]] }
 0x339   : > { %v2561_v0 = vsub.f32 %v2535_v4, %v2559_v51  ;;  %v2567_v58 = vsub.f32 %v2541_v16, %v2559_v51  ;;  %v2573_v15 = vsub.f32 %v2547_v44, %v2559_v51  ;;  %v2579_v6 = vsub.f32 %v2553_v28, %v2559_v51  ;;  %11265 = sst [smem:[#allocation85_spill]] %s8237_s21 }
 0x33a   : > { %v2556_v14 = vmax.f32 %v2554_v1, %v2546_v32  ;;  %s8255_s21 = sld [smem:[#allocation7 + $0x187]] }
 0x33b   : > { %v2564_v24 = vmul.f32 1.442695, %v2561_v0  ;;  %v2570_v52 = vmul.f32 1.442695, %v2567_v58  ;;  %v2576_v29 = vmul.f32 1.442695, %v2573_v15 }
 0x33c   : > { %v2558_v17 = vmax.f32 %v2556_v14, %v2552_v18  ;;  %v2582_v2 = vmul.f32 1.442695, %v2579_v6  ;;  %11268 = sst [smem:[#allocation91_spill]] %s8249_s8 }
 0x33d   : > { %4415 = vpow2.f32 %v2564_v24  ;;  %11269 = sst [smem:[#allocation92_spill]] %s8251_s1 }
 0x33e   : > { %4417 = vpow2.f32 %v2570_v52  ;;  %v2560_v10 = vsub.f32 %v2534_v61, %v2558_v17  ;;  %v2566_v57 = vsub.f32 %v2540_v35, %v2558_v17  ;;  %v2572_v62 = vsub.f32 %v2546_v32, %v2558_v17  ;;  %11270 = sst [smem:[#allocation40_spill]] %s8253_s5 }
 0x33f   : > { %v2578_v13 = vsub.f32 %v2552_v18, %v2558_v17  ;;  %4419 = vpow2.f32 %v2576_v29  ;;  %v11251_v18 = vld [vmem:[#allocation37_spill] sm:$0xff]  ;;  %11272 = sst [smem:[#allocation68_spill]] %s8257_s26 }
 0x340   : > { %v2562_v55 = vmul.f32 1.442695, %v2560_v10  ;;  %v2568_v42 = vmul.f32 1.442695, %v2566_v57  ;;  %4421 = vpow2.f32 %v2582_v2  ;;  %v2574_v31 = vmul.f32 1.442695, %v2572_v62 }
 0x341   : > { %v2580_v43 = vmul.f32 1.442695, %v2578_v13  ;;  %11271 = sst [smem:[#allocation54_spill]] %s8255_s21  ;;  %v10373_v10 = vstv %s8141_s4  ;;  %v10371_v57 = vstv %s8145_s22  ;;  %v10372_v62 = vstv %s8147_s28 }
 0x342   : > { %4423 = vpow2.f32 %v2562_v55  ;;  %s8265_s11 = sld [smem:[#allocation7 + $0x14b]]  ;;  %v10392_v13 = vstv %s8149_s7  ;;  %v10377_v55 = vstv %s8155_s24 }
 0x343   : > { %v4416_v54 = vpop.eup %4415  ;;  %4425 = vpow2.f32 %v2568_v42  ;;  %s8269_s5 = sld [smem:[#allocation7 + $0x16f]]  ;;  %v10390_v42 = vstv %s8159_s15 }
 0x344   : > { %v4418_v8 = vpop.eup %4417  ;;  %4427 = vpow2.f32 %v2574_v31  ;;  %s8271_s26 = sld [smem:[#allocation7 + $0x193]]  ;;  %v10389_v31 = vstv %s8165_s9 }
 0x345   : > { %v2585_v12 = vadd.f32 %v4418_v8, %v4416_v54  ;;  %v4420_v41 = vpop.eup %4419  ;;  %4429 = vpow2.f32 %v2580_v43  ;;  %s8275_s21 = sld [smem:[#allocation7 + $0x15d]]  ;;  %v10381_v43 = vstv %s8169_s0 }
 0x346   : > { %v4422_v3 = vpop.eup %4421  ;;  %s8277_s1 = sld [smem:[#allocation7 + $0x181]] }
 0x347   : > { %v2587_v60 = vadd.f32 %v4420_v41, %v2585_v12  ;;  %s8281_s8 = sld [smem:[#allocation7 + $0x142]]  ;;  %v10384_v12 = vstv %s8173_s30 }
 0x348   : > { %v4424_v20 = vpop.eup %4423  ;;  %11274 = sst [smem:[#allocation90_spill]] %s8265_s11 }
 0x349   : > { %v4426_v21 = vpop.eup %4425  ;;  %v2589_v7 = vadd.f32 %v4422_v3, %v2587_v60  ;;  %11275 = sst [smem:[#allocation39_spill]] %s8269_s5  ;;  %v2751_v60 = vstv %s8186_s14 }
 0x34a   : > { %v2584_v38 = vadd.f32 %v4426_v21, %v4424_v20  ;;  %v4428_v56 = vpop.eup %4427  ;;  %11276 = sst [smem:[#allocation44_spill]] %s8271_s26 }
 0x34b   : > { %4431 = vrcp.f32 %v2589_v7  ;;  %v4430_v47 = vpop.eup %4429  ;;  %11278 = sst [smem:[#allocation41_spill]] %s8275_s21  ;;  %v2769_v7 = vstv %s8196_s18 }
 0x34c   : > { %v2586_v23 = vadd.f32 %v4428_v56, %v2584_v38  ;;  %11279 = sst [smem:[#allocation42_spill]] %s8277_s1  ;;  %v2775_v38 = vstv %s8198_s12 }
 0x34d   : > { %s8279_s11 = sld [smem:[#allocation7 + $0x1a5]] }
 0x34e   : > { %v2588_v46 = vadd.f32 %v4430_v47, %v2586_v23  ;;  %11281 = sst [smem:[#allocation55_spill]] %s8281_s8  ;;  %v2787_v23 = vstv %s8208_s10 }
 0x34f   : > { %s8291_s1 = sld [smem:[#allocation7 + $0x18a]] }
 0x350   : > { %4433 = vrcp.f32 %v2588_v46  ;;  %s8294_s8 = sld [smem:[#allocation7 + $0x1ae]]  ;;  %v3087_v46 = vstv %s8216_s25 }
 0x351   : > { %v4432_v39 = vpop.eup %4431  ;;  %s8314_s21 = sld [smem:[#allocation7 + $0x18f]] }
 0x352   : > { %v8059_v34 = vmul.f32 %v4432_v39, %v4416_v54  ;;  %v8061_v5 = vmul.f32 %v4432_v39, %v4418_v8  ;;  %v8063_v4 = vmul.f32 %v4432_v39, %v4420_v41  ;;  %v8065_v16 = vmul.f32 %v4432_v39, %v4422_v3  ;;  %s11291_s9 = sld [smem:[#allocation63_spill]] }
 0x353   : > { %11280 = sst [smem:[#allocation106_spill]] %s8279_s11  ;;  %v10385_v54 = vstv %s8167_s23  ;;  %v10383_v8 = vstv %s8171_s6  ;;  %v10388_v41 = vstv %s8175_s19  ;;  %v2745_v3 = vstv %s8180_s13 }
 0x354   : > { %3022 = vrot.lane.b32.xlu0 %v8063_v4, %s11241_s17  ;;  %2992 = vrot.lane.b32.xlu1 %v8061_v5, %s11241_s17  ;;  %v2607_v59 = vrot.slane %v8061_v5, 7  ;;  %v2601_v33 = vrot.slane %v8059_v34, 7  ;;  %v3297_v40 = vrot.slane %v8059_v34, 1  ;;  %v3303_v11 = vrot.slane %v8061_v5, 1  ;;  %s11288_s11 = sld [smem:[#allocation89_spill]] }
 0x355   : > { %2962 = vrot.lane.b32.xlu2 %v8059_v34, %s11241_s17  ;;  %v2613_v1 = vrot.slane %v8063_v4, 7  ;;  %v2619_v15 = vrot.slane %v8065_v16, 7  ;;  %11283 = sst [smem:[#allocation83_spill]] %s8291_s1 }
 0x356   : > { %v4434_v9 = vpop.eup %4433  ;;  %11284 = sst [smem:[#allocation43_spill]] %s8294_s8 }
 0x357   : > { %v8074_v25 = vmul.f32 %v4434_v9, %v4424_v20  ;;  %v8076_v19 = vmul.f32 %v4434_v9, %v4426_v21  ;;  %v8078_v53 = vmul.f32 %v4434_v9, %v4428_v56  ;;  %v8080_v30 = vmul.f32 %v4434_v9, %v4430_v47  ;;  %s8306_s1 = sld [smem:[#allocation7 + $0x147]] }
 0x358   : > { %s8311_s8 = sld [smem:[#allocation7 + $0x16b]]  ;;  %v2757_v20 = vstv %s8190_s20  ;;  %v2763_v21 = vstv %s8192_s29  ;;  %v2781_v56 = vstv %s8200_s16  ;;  %v3081_v47 = vstv %s8210_s3 }
 0x359   : > { %v2606_v27 = vrot.slane %v8076_v19, 7  ;;  %v2600_v44 = vrot.slane %v8074_v25, 7  ;;  %v3296_v26 = vrot.slane %v8074_v25, 1  ;;  %v3302_v48 = vrot.slane %v8076_v19, 1  ;;  %11289 = sst [smem:[#allocation89_spill]] %s8314_s21 }
 0x35a   : > { %v2612_v32 = vrot.slane %v8078_v53, 7  ;;  %v2618_v58 = vrot.slane %v8080_v30, 7  ;;  %s11292_s23 = sld [smem:[#allocation64_spill]]  ;;  %v3093_v39 = vstv %s11288_s11 }
 0x35b   : > { %v8087_v50 = vsel %vm340_vm0, %v2606_v27, %v2607_v59  ;;  %v2609_v22 = vsel %vm340_vm0, %v2607_v59, %v2606_v27  ;;  %v8101_v28 = vsel %vm340_vm0, %v2600_v44, %v2601_v33  ;;  %v2603_v49 = vsel %vm340_vm0, %v2601_v33, %v2600_v44  ;;  %s8320_s0 = sld [smem:[#allocation7 + $0x13e]] }
 0x35c   : > { %2990 = vrot.lane.b32.xlu0 %v8076_v19, %s11241_s17  ;;  %2960 = vrot.lane.b32.xlu1 %v8074_v25, %s11241_s17  ;;  %v8109_v61 = vsel %vm1037_vm2, %v3296_v26, %v3297_v40  ;;  %v8113_v35 = vsel %vm1037_vm2, %v3297_v40, %v3296_v26  ;;  %v8117_v63 = vsel %vm1037_vm2, %v3302_v48, %v3303_v11  ;;  %s11295_s30 = sld [smem:[#allocation38_spill]]  ;;  %v10367_v59 = vstv %s11291_s9 }
 0x35d   : > { %3052 = vrot.lane.b32.xlu2 %v8065_v16, %s11241_s17  ;;  %v8121_v51 = vsel %vm1037_vm2, %v3303_v11, %v3302_v48  ;;  %v8135_v0 = vsel %vm340_vm0, %v2612_v32, %v2613_v1  ;;  %v8153_v6 = vsel %vm340_vm0, %v2618_v58, %v2619_v15  ;;  %v8178_v14 = vmul.f32 %v11251_v18, %v2609_v22  ;;  %11286 = sst [smem:[#allocation81_spill]] %s8306_s1 }
 0x35e   : > { %v2615_v24 = vsel %vm340_vm0, %v2613_v1, %v2612_v32  ;;  %v8203_v52 = vmul.f32 %v11251_v18, %v2603_v49  ;;  %v2621_v17 = vsel %vm340_vm0, %v2619_v15, %v2618_v58  ;;  %11287 = sst [smem:[#allocation82_spill]] %s8311_s8  ;;  %v3308_v40 = vrot.slane %v8078_v53, 1 }
 0x35f   : > { %v8206_v29 = vmul.f32 %v11251_v18, %v2615_v24  ;;  %v8233_v2 = vmul.f32 %v11251_v18, %v2621_v17  ;;  %s11294_s1 = sld [smem:[#allocation72_spill]]  ;;  %v3309_v49 = vrot.slane %v8063_v4, 1  ;;  %v3314_v32 = vrot.slane %v8080_v30, 1 }
 0x360   : > { %s11296_s19 = sld [smem:[#allocation85_spill]]  ;;  %v10366_v27 = vstv %s11292_s23  ;;  %v3315_v1 = vrot.slane %v8065_v16, 1  ;;  %v8370_v11 = vmul.f32 %v3081_v47, %v8059_v34  ;;  %v8375_v58 = vmul.f32 %v3087_v46, %v8059_v34 }
 0x361   : > { %s8330_s21 = sld [smem:[#allocation7 + $0x162]]  ;;  %v8380_v24 = vmul.f32 %v3093_v39, %v8059_v34  ;;  %v8385_v17 = vsel %vm1037_vm2, %v3308_v40, %v3309_v49  ;;  %v8397_v15 = vmul.f32 %v10367_v59, %v8061_v5  ;;  %v8402_v48 = vmul.f32 %v10366_v27, %v8061_v5 }
 0x362   : > { %s11298_s8 = sld [smem:[#allocation87_spill]]  ;;  %v10393_v33 = vstv %s11295_s30  ;;  %11313 = vst [vmem:[#allocation154_spill] sm:$0xff] %v8370_v11  ;;  %v8406_v26 = vsel %vm1037_vm2, %v3314_v32, %v3315_v1  ;;  %v8428_v59 = vmul.f32 %v10373_v10, %v8135_v0  ;;  %v8448_v27 = vmul.f32 %v10392_v13, %v8135_v0 }
 0x363   : > { %s11299_s29 = sld [smem:[#allocation91_spill]]  ;;  %11314 = vst [vmem:[#allocation155_spill] sm:$0xff] %v8375_v58  ;;  %v8422_v22 = vmul.f32 %v10393_v33, %v8061_v5  ;;  %v3311_v10 = vsel %vm1037_vm2, %v3309_v49, %v3308_v40  ;;  %v8479_v45 = vmul.f32 %v10381_v43, %v8117_v63  ;;  %v8488_v49 = vmul.f32 %v10383_v8, %v8117_v63 }
 0x364   : > { %3176 = vrot.lane.b32.xlu0 %v8074_v25, %s11243_s2  ;;  %3050 = vrot.lane.b32.xlu1 %v8080_v30, %s11241_s17  ;;  %s8336_s20 = sld [smem:[#allocation7 + $0x186]]  ;;  %11315 = vst [vmem:[#allocation156_spill] sm:$0xff] %v8380_v24  ;;  %v8581_v13 = vmul.f32 %v2757_v20, %v8203_v52 }
 0x365   : > { %3020 = vrot.lane.b32.xlu2 %v8078_v53, %s11241_s17  ;;  %s11302_s14 = sld [smem:[#allocation92_spill]]  ;;  %v10369_v44 = vstv %s11294_s1  ;;  %11319 = vst [vmem:[#allocation59_spill] sm:$0xff] %v8397_v15 }
 0x366   : > { %s11303_s13 = sld [smem:[#allocation40_spill]]  ;;  %11320 = vst [vmem:[#allocation67_spill] sm:$0xff] %v8402_v48 }
 0x367   : > { %11297 = sst [smem:[#allocation63_spill]] %s8330_s21  ;;  %11325 = vst [vmem:[#allocation96_spill] sm:$0xff] %v8422_v22 }
 0x368   : > { %s8341_s10 = sld [smem:[#allocation7 + $0x1aa]]  ;;  %11333 = vst [vmem:[#allocation97_spill] sm:$0xff] %v8479_v45 }
 0x369   : > { %s11305_s16 = sld [smem:[#allocation54_spill]]  ;;  %11337 = vst [vmem:[#allocation98_spill] sm:$0xff] %v8488_v49 }
 0x36a   : > { %11301 = sst [smem:[#allocation64_spill]] %s8336_s20  ;;  %11352 = vst [vmem:[#allocation49_spill] sm:$0xff] %v8581_v13 }
 0x36b   : > { %s8349_s20 = sld [smem:[#allocation7 + $0x135]] }
 0x36c   : > { %2656 = vrot.lane.b32.xlu0 %v8087_v50, %s11241_s17  ;;  %2626 = vrot.lane.b32.xlu1 %v8101_v28, %s11241_s17  ;;  %s8359_s27 = sld [smem:[#allocation7 + $0x17d]] }
 0x36d   : > { %2686 = vrot.lane.b32.xlu2 %v8135_v0, %s11241_s17  ;;  %s8459_s26 = sld [smem:[#allocation7 + $0x198]] }
 0x36e   : > { %11304 = sst [smem:[#allocation72_spill]] %s8341_s10 }
 0x36f   : > { %s8355_s10 = sld [smem:[#allocation7 + $0x159]] }
 0x370   : > { %s8483_s24 = sld [smem:[#allocation7 + $0x132]] }
 0x371   : > { %11309 = sst [smem:[#allocation38_spill]] %s8349_s20 }
 0x372   : > { %11311 = sst [smem:[#allocation87_spill]] %s8359_s27 }
 0x373   : > { %s8365_s20 = sld [smem:[#allocation7 + $0x1a1]] }
 0x374   : > { %2842 = vrot.lane.b32.xlu0 %v8101_v28, %s11243_s2  ;;  %2716 = vrot.lane.b32.xlu1 %v8153_v6, %s11241_s17  ;;  %11330 = sst [smem:[#allocation180_spill]] %s8459_s26  ;;  %s11418_s26 = smov 127  }
 0x375   : > { %2872 = vrot.lane.b32.xlu2 %v8087_v50, %s11243_s2  ;;  %11310 = sst [smem:[#allocation85_spill]] %s8355_s10 }
 0x376   : > { %11336 = sst [smem:[#allocation46_spill]] %s8483_s24 }
 0x377   : > { %s8504_s24 = sld [smem:[#allocation7 + $0x156]] }
 0x378   : > { %s8516_s21 = sld [smem:[#allocation7 + $0x17a]] }
 0x379   : > { %11312 = sst [smem:[#allocation91_spill]] %s8365_s20 }
 0x37a   : > { %s8387_s20 = sld [smem:[#allocation7 + $0x12c]] }
 0x37b   : > { %s8591_s15 = sld [smem:[#allocation7 + $0x173]] }
 0x37c   : > { %2932 = vrot.lane.b32.xlu0 %v8153_v6, %s11243_s2  ;;  %2902 = vrot.lane.b32.xlu1 %v8135_v0, %s11243_s2  ;;  %s11358_s12 = sld [smem:[#allocation86_spill]] }
 0x37d   : > { %2654 = vrot.lane.b32.xlu2 %v8178_v14, %s11241_s17  ;;  %11344 = sst [smem:[#allocation47_spill]] %s8504_s24 }
 0x37e   : > { %11345 = sst [smem:[#allocation60_spill]] %s8516_s21 }
 0x37f   : > { %s8523_s24 = sld [smem:[#allocation7 + $0x19e]] }
 0x380   : > { %11316 = sst [smem:[#allocation92_spill]] %s8387_s20 }
 0x381   : > { %s8412_s20 = sld [smem:[#allocation7 + $0x150]] }
 0x382   : > { %11354 = sst [smem:[#allocation94_spill]] %s8591_s15 }
 0x383   : > { %s8613_s10 = sld [smem:[#allocation7 + $0x197]] }
 0x384   : > { %2624 = vrot.lane.b32.xlu0 %v8203_v52, %s11241_s17  ;;  %2684 = vrot.lane.b32.xlu1 %v8206_v29, %s11241_s17  ;;  %s8725_s18 = sld [smem:[#allocation7 + $0x129]] }
 0x385   : > { %3206 = vrot.lane.b32.xlu2 %v8076_v19, %s11243_s2  ;;  %11346 = sst [smem:[#allocation62_spill]] %s8523_s24 }
 0x386   : > { %s8545_s24 = sld [smem:[#allocation7 + $0x12b]] }
 0x387   : > { %11321 = sst [smem:[#allocation40_spill]] %s8412_s20 }
 0x388   : > { %s11347_s20 = sld [smem:[#allocation41_spill]] }
 0x389   : > { %11360 = sst [smem:[#allocation41_spill]] %s8613_s10 }
 0x38a   : > { %s11407_s3 = sld [smem:[#allocation70_spill]] }
 0x38b   : > { %s8751_s27 = sld [smem:[#allocation7 + $0x14d]] }
 0x38c   : > { %2714 = vrot.lane.b32.xlu0 %v8233_v2, %s11241_s17  ;;  %3178 = vrot.lane.b32.xlu1 %v8059_v34, %s11243_s2  ;;  %s8259_s17 = sld [smem:[#allocation7 + $0x127]] }
 0x38d   : > { %2840 = vrot.lane.b32.xlu2 %v8203_v52, %s11243_s2  ;;  %11348 = sst [smem:[#allocation66_spill]] %s8545_s24 }
 0x38e   : > { %s8571_s24 = sld [smem:[#allocation7 + $0x14f]] }
 0x38f   : > { %s8771_s11 = sld [smem:[#allocation7 + $0x171]] }
 0x390   : > { %s11450_s5 = sld [smem:[#allocation83_spill]] }
 0x391   : > { %s9031_s10 = sld [smem:[#allocation7 + $0x137]] }
 0x392   : > { %11273 = sst [smem:[#allocation88_spill]] %s8259_s17 }
 0x393   : > { %s8273_s17 = sld [smem:[#allocation7 + $0x139]] }
 0x394   : > { %3208 = vrot.lane.b32.xlu0 %v8061_v5, %s11243_s2  ;;  %2870 = vrot.lane.b32.xlu1 %v8178_v14, %s11243_s2  ;;  %11350 = sst [smem:[#allocation93_spill]] %s8571_s24 }
 0x395   : > { %3238 = vrot.lane.b32.xlu2 %v8063_v4, %s11243_s2  ;;  %s11417_s25 = sld [smem:[#allocation88_spill]] }
 0x396   : > { %11429 = sst [smem:[#allocation70_spill]] %s8771_s11 }
 0x397   : > { %s8963_s11 = sld [smem:[#allocation7 + $0x146]] }
 0x398   : > { %s9019_s24 = sld [smem:[#allocation7 + $0x1a7]] }
 0x399   : > { %11277 = sst [smem:[#allocation45_spill]] %s8273_s17 }
 0x39a   : > { %s8287_s17 = sld [smem:[#allocation7 + $0x166]] }
 0x39b   : > { %s9075_s15 = sld [smem:[#allocation7 + $0x13d]] }
 0x39c   : > { %2900 = vrot.lane.b32.xlu0 %v8206_v29, %s11243_s2  ;;  %3236 = vrot.lane.b32.xlu1 %v8078_v53, %s11243_s2 }
 0x39d   : > { %2930 = vrot.lane.b32.xlu2 %v8233_v2, %s11243_s2  ;;  %11521 = sst [smem:[#allocation83_spill]] %s8963_s11 }
 0x39e   : > { %s8982_s11 = sld [smem:[#allocation7 + $0x13b]] }
 0x3a0   : > { %11282 = sst [smem:[#allocation56_spill]] %s8287_s17 }
 0x3a1   : > { %s8300_s17 = sld [smem:[#allocation7 + $0x123]] }
 0x3a4   : > { %3266 = vrot.lane.b32.xlu0 %v8080_v30, %s11243_s2  ;;  %3268 = vrot.lane.b32.xlu1 %v8065_v16, %s11243_s2  ;;  %s8442_s2 = sld [smem:[#allocation7 + $0x174]] }
 0x3a7   : > { %11285 = sst [smem:[#allocation48_spill]] %s8300_s17 }
 0x3a8   : > { %s11290_s17 = sld [smem:[#allocation71_spill]] }
 0x3a9   : > { %11293 = sst [smem:[#allocation71_spill]] %s8320_s0  ;;  %s11300_s0 = smov 1  }
 0x3aa   : > { %3320 = vrot.lane.b32.xlu2 %v8109_v61, %s11300_s0  ;;  %11329 = sst [smem:[#allocation54_spill]] %s8442_s2 }
 0x3ab   : > { %s8637_s2 = sld [smem:[#allocation7 + $0x125]] }
 0x3ac   : > { %3380 = vrot.lane.b32.xlu0 %v8385_v17, %s11300_s0  ;;  %3350 = vrot.lane.b32.xlu1 %v8117_v63, %s11300_s0 }
 0x3ae   : > { %v10368_v9 = vstv %s11290_s17 }
 0x3af   : > { %v8392_v18 = vmul.f32 %v10368_v9, %v8059_v34  ;;  %v8417_v34 = vmul.f32 %v10369_v44, %v8061_v5  ;;  %v8433_v9 = vmul.f32 %v10371_v57, %v8135_v0  ;;  %v8438_v44 = vmul.f32 %v10372_v62, %v8135_v0  ;;  %v8481_v40 = vpop.permute.xlu2 %2962 }
 0x3b0   : > { %v8453_v57 = vmul.f32 %v10377_v55, %v8153_v6  ;;  %v3317_v62 = vsel %vm1037_vm2, %v3315_v1, %v3314_v32  ;;  %v8464_v5 = vmul.f32 %v10390_v42, %v8153_v6  ;;  %v8469_v0 = vmul.f32 %v10389_v31, %v8153_v6  ;;  %v11342_v1 = vld [vmem:[#allocation50_spill] sm:$0xff] }
 0x3b1   : > { %11318 = vst [vmem:[#allocation157_spill] sm:$0xff] %v8392_v18  ;;  %v8474_v55 = vmul.f32 %v10385_v54, %v8153_v6  ;;  %v8493_v6 = vmul.f32 %v10384_v12, %v8117_v63  ;;  %v8498_v32 = vmul.f32 %v10388_v41, %v8117_v63  ;;  %v8502_v43 = vmul.f32 %v11342_v1, %v8121_v51  ;;  %11366 = sst [smem:[#allocation86_spill]] %s8637_s2 }
 0x3b2   : > { %11323 = vst [vmem:[#allocation95_spill] sm:$0xff] %v8417_v34  ;;  %3410 = vrot.lane.b32.xlu2 %v8406_v26, %s11300_s0  ;;  %v8508_v8 = vmul.f32 %v11342_v1, %v8113_v35  ;;  %v8511_v12 = vmul.f32 %v11342_v1, %v3311_v10  ;;  %v8514_v54 = vmul.f32 %v11342_v1, %v3317_v62  ;;  %s11567_s2 = sld [smem:[#allocation62_spill]] }
 0x3b3   : > { %11339 = vst [vmem:[#allocation99_spill] sm:$0xff] %v8493_v6  ;;  %v8521_v51 = vmul.f32 %v2769_v7, %v8087_v50  ;;  %v8528_v35 = vmul.f32 %v2775_v38, %v8087_v50  ;;  %v8533_v10 = vmul.f32 %v2781_v56, %v8087_v50  ;;  %v8538_v62 = vmul.f32 %v2787_v23, %v8087_v50 }
 0x3b4   : > { %11341 = vst [vmem:[#allocation100_spill] sm:$0xff] %v8498_v32  ;;  %v8543_v1 = vmul.f32 %v2745_v3, %v8101_v28  ;;  %v8550_v41 = vmul.f32 %v2751_v60, %v8101_v28  ;;  %v8555_v31 = vmul.f32 %v2757_v20, %v8101_v28  ;;  %v8560_v50 = vmul.f32 %v2763_v21, %v8101_v28 }
 0x3b5   : > { %v8565_v42 = vmul.f32 %v2745_v3, %v8203_v52  ;;  %3322 = vrot.lane.b32.xlu0 %v8508_v8, %s11300_s0  ;;  %3382 = vrot.lane.b32.xlu1 %v8511_v12, %s11300_s0  ;;  %v8576_v28 = vmul.f32 %v2751_v60, %v8203_v52  ;;  %v8586_v3 = vmul.f32 %v2763_v21, %v8203_v52  ;;  %v11369_v32 = vstv %s11292_s23  ;;  %s8681_s23 = sld [smem:[#allocation7 + $0x16d]] }
 0x3b6   : > { %v8596_v60 = vmul.f32 %v2769_v7, %v8178_v14  ;;  %v8601_v20 = vmul.f32 %v2775_v38, %v8178_v14  ;;  %v8606_v52 = vmul.f32 %v2781_v56, %v8178_v14  ;;  %v8611_v21 = vmul.f32 %v2787_v23, %v8178_v14 }
 0x3b7   : > { %11349 = vst [vmem:[#allocation31_spill] sm:$0xff] %v8565_v42  ;;  %v8618_v7 = vmul.f32 %v3081_v47, %v8074_v25  ;;  %v8623_v38 = vmul.f32 %v3087_v46, %v8074_v25  ;;  %v8628_v56 = vmul.f32 %v3093_v39, %v8074_v25  ;;  %v11364_v14 = vstv %s11290_s17  ;;  %v8635_v33 = vpop.permute.xlu2 %3052  ;;  %s8659_s17 = sld [smem:[#allocation7 + $0x149]] }
 0x3b8   : > { %11351 = vst [vmem:[#allocation35_spill] sm:$0xff] %v8576_v28  ;;  %v8633_v23 = vmul.f32 %v11364_v14, %v8074_v25  ;;  %v11367_v47 = vstv %s11291_s9  ;;  %v8647_v39 = vmul.f32 %v11369_v32, %v8076_v19  ;;  %v11371_v6 = vstv %s11294_s1  ;;  %s11381_s9 = sld [smem:[#allocation68_spill]] }
 0x3b9   : > { %11353 = vst [vmem:[#allocation52_spill] sm:$0xff] %v8586_v3  ;;  %v8642_v46 = vmul.f32 %v11367_v47, %v8076_v19  ;;  %v8652_v25 = vmul.f32 %v11371_v6, %v8076_v19  ;;  %v11373_v14 = vstv %s11295_s30  ;;  %v11376_v47 = vstv %s11296_s19  ;;  %s8703_s30 = sld [smem:[#allocation7 + $0x191]] }
 0x3ba   : > { %3352 = vrot.lane.b32.xlu2 %v8502_v43, %s11300_s0  ;;  %11355 = vst [vmem:[#allocation102_spill] sm:$0xff] %v8596_v60  ;;  %v8657_v49 = vmul.f32 %v11373_v14, %v8076_v19  ;;  %v8664_v45 = vmul.f32 %v11376_v47, %v8078_v53  ;;  %v11378_v32 = vmov %v11376_v47  ;;  %v11380_v6 = vstv %s11358_s12  ;;  %s11396_s19 = sld [smem:[#allocation42_spill]] }
 0x3bb   : > { %11356 = vst [vmem:[#allocation104_spill] sm:$0xff] %v8601_v20  ;;  %v11383_v19 = vmov %v11380_v6  ;;  %11385 = sst [smem:[#allocation68_spill]] %s8681_s23  ;;  %v11386_v47 = vstv %s11298_s8 }
 0x3bc   : > { %11357 = vst [vmem:[#allocation107_spill] sm:$0xff] %v8606_v52  ;;  %v8679_v14 = vmul.f32 %v11383_v19, %v8063_v4  ;;  %11405 = sst [smem:[#allocation42_spill]] %s8725_s18 }
 0x3bd   : > { %11359 = vst [vmem:[#allocation109_spill] sm:$0xff] %v8611_v21  ;;  %11375 = sst [smem:[#allocation181_spill]] %s8659_s17  ;;  %3412 = vrot.lane.b32.xlu0 %v8514_v54, %s11300_s0  ;;  %3536 = vrot.lane.b32.xlu1 %v8109_v61, %s11418_s26 }
 0x3be   : > { %11361 = vst [vmem:[#allocation61_spill] sm:$0xff] %v8618_v7  ;;  %s11427_s0 = sld [smem:[#allocation39_spill]] }
 0x3bf   : > { %11362 = vst [vmem:[#allocation65_spill] sm:$0xff] %v8623_v38  ;;  %11394 = sst [smem:[#allocation182_spill]] %s8703_s30 }
 0x3c0   : > { %11363 = vst [vmem:[#allocation53_spill] sm:$0xff] %v8628_v56  ;;  %s11428_s1 = sld [smem:[#allocation44_spill]] }
 0x3c1   : > { %11365 = vst [vmem:[#allocation51_spill] sm:$0xff] %v8633_v23  ;;  %s8793_s8 = sld [smem:[#allocation7 + $0x195]] }
 0x3c2   : > { %11368 = vst [vmem:[#allocation111_spill] sm:$0xff] %v8642_v46  ;;  %v11390_v46 = vstv %s11299_s29  ;;  %s11404_s29 = sld [smem:[#allocation69_spill]]  ;;  %3596 = vrot.lane.b32.xlu2 %v8385_v17, %s11418_s26 }
 0x3c3   : > { %11370 = vst [vmem:[#allocation113_spill] sm:$0xff] %v8647_v39  ;;  %v8669_v39 = vmul.f32 %v11378_v32, %v8063_v4  ;;  %11420 = sst [smem:[#allocation69_spill]] %s8751_s27 }
 0x3c4   : > { %11372 = vst [vmem:[#allocation115_spill] sm:$0xff] %v8652_v25  ;;  %v8674_v25 = vmul.f32 %v11380_v6, %v8078_v53  ;;  %v8696_v6 = vmul.f32 %v11390_v46, %v8078_v53  ;;  %s11452_s12 = sld [smem:[#allocation43_spill]] }
 0x3c5   : > { %11374 = vst [vmem:[#allocation117_spill] sm:$0xff] %v8657_v49  ;;  %v11388_v49 = vmov %v11386_v47  ;;  %3566 = vrot.lane.b32.xlu0 %v8117_v63, %s11418_s26  ;;  %3568 = vrot.lane.b32.xlu1 %v8502_v43, %s11418_s26  ;;  %v11498_v63 = vstv %s11347_s20  ;;  %s9088_s18 = sld [smem:[#allocation7 + $0x185]] }
 0x3c6   : > { %11377 = vst [vmem:[#allocation118_spill] sm:$0xff] %v8664_v45  ;;  %v8686_v45 = vmul.f32 %v11386_v47, %v8078_v53  ;;  %v8691_v32 = vmul.f32 %v11388_v49, %v8063_v4  ;;  %v11395_v47 = vstv %s11302_s14  ;;  %v11400_v53 = vstv %s11303_s13  ;;  %s11410_s14 = sld [smem:[#allocation79_spill]] }
 0x3c7   : > { %11379 = vst [vmem:[#allocation119_spill] sm:$0xff] %v8669_v39  ;;  %v11398_v49 = vmov %v11395_v47  ;;  %s11415_s13 = sld [smem:[#allocation80_spill]] }
 0x3c8   : > { %11382 = vst [vmem:[#allocation120_spill] sm:$0xff] %v8674_v25  ;;  %v11392_v25 = vmov %v11390_v46  ;;  %v8713_v23 = vmul.f32 %v11398_v49, %v8065_v16  ;;  %v8718_v46 = vmul.f32 %v11400_v53, %v8080_v30  ;;  %11441 = sst [smem:[#allocation79_spill]] %s8793_s8 }
 0x3c9   : > { %11384 = vst [vmem:[#allocation121_spill] sm:$0xff] %v8679_v14  ;;  %v8701_v19 = vmul.f32 %v11392_v25, %v8063_v4  ;;  %v11406_v25 = vstv %s11305_s16  ;;  %s11419_s16 = sld [smem:[#allocation90_spill]] }
 0x3ca   : > { %11387 = vst [vmem:[#allocation122_spill] sm:$0xff] %v8686_v45  ;;  %v8708_v45 = vmul.f32 %v11395_v47, %v8080_v30  ;;  %v8730_v47 = vmul.f32 %v11406_v25, %v8080_v30  ;;  %v11409_v49 = vmov %v11406_v25  ;;  %v11421_v25 = vstv %s8141_s4  ;;  %s11435_s4 = sld [smem:[#allocation106_spill]]  ;;  %3538 = vrot.lane.b32.xlu2 %v8508_v8, %s11418_s26 }
 0x3cb   : > { %11389 = vst [vmem:[#allocation123_spill] sm:$0xff] %v8691_v32  ;;  %s11520_s8 = sld [smem:[#allocation47_spill]] }
 0x3cc   : > { %11391 = vst [vmem:[#allocation124_spill] sm:$0xff] %v8696_v6  ;;  %v11402_v6 = vmov %v11400_v53  ;;  %v11412_v53 = vstv %s11381_s9  ;;  %s8817_s9 = sld [smem:[#allocation7 + $0x12e]] }
 0x3cd   : > { %11393 = vst [vmem:[#allocation125_spill] sm:$0xff] %v8701_v19  ;;  %v8723_v4 = vmul.f32 %v11402_v6, %v8065_v16  ;;  %v11414_v6 = vmov %v11412_v53  ;;  %3598 = vrot.lane.b32.xlu0 %v8511_v12, %s11418_s26  ;;  %3626 = vrot.lane.b32.xlu1 %v8406_v26, %s11418_s26  ;;  %s11583_s17 = sld [smem:[#allocation82_spill]] }
 0x3ce   : > { %11397 = vst [vmem:[#allocation166_spill] sm:$0xff] %v8708_v45  ;;  %v8735_v45 = vmul.f32 %v11409_v49, %v8065_v16  ;;  %v8745_v56 = vmul.f32 %v11414_v6, %v8065_v16  ;;  %v11423_v49 = vstv %s8145_s22  ;;  %v11425_v16 = vstv %s8147_s28  ;;  %s11438_s22 = sld [smem:[#allocation55_spill]] }
 0x3cf   : > { %11399 = vst [vmem:[#allocation167_spill] sm:$0xff] %v8713_v23  ;;  %v8766_v6 = vmul.f32 %v11425_v16, %v8206_v29  ;;  %v11434_v16 = vstv %s11407_s3  ;;  %s11440_s28 = sld [smem:[#allocation56_spill]] }
 0x3d0   : > { %11401 = vst [vmem:[#allocation168_spill] sm:$0xff] %v8718_v46  ;;  %v8740_v46 = vmul.f32 %v11412_v53, %v8080_v30  ;;  %v8756_v30 = vmul.f32 %v11421_v25, %v8206_v29  ;;  %v8761_v53 = vmul.f32 %v11423_v49, %v8206_v29  ;;  %v11430_v25 = vstv %s8149_s7  ;;  %s11445_s7 = sld [smem:[#allocation84_spill]] }
 0x3d1   : > { %11403 = vst [vmem:[#allocation169_spill] sm:$0xff] %v8723_v4  ;;  %v11432_v49 = vstv %s11404_s29  ;;  %v8786_v7 = vmul.f32 %v11434_v16, %v8233_v2  ;;  %s11458_s29 = sld [smem:[#allocation58_spill]]  ;;  %v11582_v60 = vstv %s11520_s8 }
 0x3d2   : > { %11408 = vst [vmem:[#allocation162_spill] sm:$0xff] %v8730_v47  ;;  %v8776_v47 = vmul.f32 %v11430_v25, %v8206_v29  ;;  %v8781_v38 = vmul.f32 %v11432_v49, %v8233_v2  ;;  %v11442_v29 = vstv %s11415_s13  ;;  %v11444_v49 = vstv %s11417_s25  ;;  %11453 = sst [smem:[#allocation80_spill]] %s8817_s9  ;;  %3628 = vrot.lane.b32.xlu2 %v8514_v54, %s11418_s26 }
 0x3d3   : > { %11411 = vst [vmem:[#allocation163_spill] sm:$0xff] %v8735_v45  ;;  %v8798_v25 = vmul.f32 %v11442_v29, %v8233_v2  ;;  %v11447_v16 = vmov %v11444_v49  ;;  %s11461_s3 = sld [smem:[#allocation45_spill]] }
 0x3d4   : > { %11413 = vst [vmem:[#allocation164_spill] sm:$0xff] %v8740_v46  ;;  %v3501_v46 = vstv %s11396_s19  ;;  %s11455_s19 = sld [smem:[#allocation57_spill]] }
 0x3d5   : > { %11416 = vst [vmem:[#allocation165_spill] sm:$0xff] %v8745_v56  ;;  %s8849_s13 = sld [smem:[#allocation7 + $0x176]]  ;;  %v8888_v4 = vmul.f32 %v3501_v46, %v8385_v17 }
 0x3d6   : > { %11422 = vst [vmem:[#allocation158_spill] sm:$0xff] %v8756_v30  ;;  %v3513_v30 = vstv %s11438_s22  ;;  %s8863_s25 = sld [smem:[#allocation7 + $0x19a]] }
 0x3d7   : > { %11424 = vst [vmem:[#allocation159_spill] sm:$0xff] %v8761_v53  ;;  %s11495_s22 = sld [smem:[#allocation89_spill]] }
 0x3d8   : > { %11426 = vst [vmem:[#allocation160_spill] sm:$0xff] %v8766_v6  ;;  %v11437_v6 = vstv %s11410_s14  ;;  %s8839_s14 = sld [smem:[#allocation7 + $0x152]] }
 0x3d9   : > { %11431 = vst [vmem:[#allocation161_spill] sm:$0xff] %v8776_v47  ;;  %v8791_v53 = vmul.f32 %v11437_v6, %v8233_v2  ;;  %v11449_v6 = vstv %s11419_s16  ;;  %v8815_v47 = vpop.permute.xlu2 %3020  ;;  %s11484_s16 = sld [smem:[#allocation48_spill]] }
 0x3da   : > { %11433 = vst [vmem:[#allocation174_spill] sm:$0xff] %v8781_v38  ;;  %v8803_v38 = vmul.f32 %v11444_v49, %v8109_v61  ;;  %v11454_v2 = vmov %v11449_v6  ;;  %v11457_v49 = vstv %s11427_s0  ;;  %s8903_s0 = sld [smem:[#allocation7 + $0x144]] }
 0x3db   : > { %11436 = vst [vmem:[#allocation175_spill] sm:$0xff] %v8786_v7  ;;  %v8808_v7 = vmul.f32 %v11447_v16, %v8508_v8  ;;  %v8822_v29 = vmul.f32 %v11454_v2, %v8508_v8  ;;  %v8827_v16 = vmul.f32 %v11457_v49, %v8109_v61  ;;  %11468 = sst [smem:[#allocation90_spill]] %s8849_s13 }
 0x3dc   : > { %11439 = vst [vmem:[#allocation176_spill] sm:$0xff] %v8791_v53  ;;  %v8813_v53 = vmul.f32 %v11449_v6, %v8109_v61  ;;  %11473 = sst [smem:[#allocation39_spill]] %s8863_s25 }
 0x3dd   : > { %11443 = vst [vmem:[#allocation177_spill] sm:$0xff] %v8798_v25  ;;  %v3507_v25 = vstv %s11435_s4  ;;  %s11493_s4 = sld [smem:[#allocation82_spill]] }
 0x3de   : > { %11446 = vst [vmem:[#allocation74_spill] sm:$0xff] %v8803_v38  ;;  %11465 = sst [smem:[#allocation88_spill]] %s8839_s14 }
 0x3df   : > { %11448 = vst [vmem:[#allocation75_spill] sm:$0xff] %v8808_v7  ;;  %v11460_v7 = vmov %v11457_v49  ;;  %v3519_v49 = vstv %s11440_s28  ;;  %s11496_s28 = sld [smem:[#allocation71_spill]] }
 0x3e0   : > { %11451 = vst [vmem:[#allocation76_spill] sm:$0xff] %v8813_v53  ;;  %v8832_v6 = vmul.f32 %v11460_v7, %v8508_v8  ;;  %v11463_v53 = vstv %s11428_s1  ;;  %11488 = sst [smem:[#allocation106_spill]] %s8903_s0 }
 0x3e1   : > { %11456 = vst [vmem:[#allocation73_spill] sm:$0xff] %v8822_v29  ;;  %v8837_v38 = vmul.f32 %v11463_v53, %v8109_v61  ;;  %v11466_v2 = vmov %v11463_v53  ;;  %v3525_v61 = vstv %s11450_s5  ;;  %v3531_v53 = vstv %s11452_s12  ;;  %s11490_s1 = sld [smem:[#allocation81_spill]] }
 0x3e2   : > { %11459 = vst [vmem:[#allocation77_spill] sm:$0xff] %v8827_v16  ;;  %v8844_v29 = vmul.f32 %v11466_v2, %v8508_v8  ;;  %v11469_v16 = vstv %s11445_s7  ;;  %v11474_v2 = vstv %s11455_s19  ;;  %s8918_s7 = sld [smem:[#allocation7 + $0x168]]  ;;  %v8935_v8 = vpop.permute.xlu0 %3022 }
 0x3e3   : > { %11462 = vst [vmem:[#allocation78_spill] sm:$0xff] %v8832_v6  ;;  %v8854_v7 = vmul.f32 %v11469_v16, %v8502_v43  ;;  %v11471_v6 = vstv %s8171_s6  ;;  %v11478_v16 = vstv %s11461_s3  ;;  %s8885_s6 = sld [smem:[#allocation7 + $0x120]] }
 0x3e4   : > { %11464 = vst [vmem:[#allocation30_spill] sm:$0xff] %v8837_v38  ;;  %v8859_v56 = vmul.f32 %v11471_v6, %v8502_v43  ;;  %v11476_v38 = vstv %s11458_s29  ;;  %v11480_v6 = vstv %s11347_s20  ;;  %s11502_s5 = sld [smem:[#allocation63_spill]] }
 0x3e5   : > { %11467 = vst [vmem:[#allocation29_spill] sm:$0xff] %v8844_v29  ;;  %v8868_v29 = vmul.f32 %v11474_v2, %v8502_v43  ;;  %v8873_v45 = vmul.f32 %v11476_v38, %v8502_v43  ;;  %v8891_v2 = vmul.f32 %v3507_v25, %v8385_v17  ;;  %v8894_v38 = vmul.f32 %v3513_v30, %v8406_v26  ;;  %s11505_s19 = sld [smem:[#allocation72_spill]] }
 0x3e6   : > { %11470 = vst [vmem:[#allocation101_spill] sm:$0xff] %v8854_v7  ;;  %v8878_v7 = vmul.f32 %v11478_v16, %v8385_v17  ;;  %v8906_v16 = vmul.f32 %v3525_v61, %v8406_v26  ;;  %v8923_v43 = vmul.f32 %v11498_v63, %v8511_v12  ;;  %s11506_s20 = sld [smem:[#allocation38_spill]] }
 0x3e7   : > { %11472 = vst [vmem:[#allocation103_spill] sm:$0xff] %v8859_v56  ;;  %v8883_v56 = vmul.f32 %v11480_v6, %v8385_v17  ;;  %v8909_v17 = vmul.f32 %v3531_v53, %v8406_v26  ;;  %v11492_v6 = vstv %s11461_s3  ;;  %s8939_s29 = sld [smem:[#allocation7 + $0x18c]] }
 0x3e8   : > { %11475 = vst [vmem:[#allocation105_spill] sm:$0xff] %v8868_v29  ;;  %v8914_v29 = vmul.f32 %v11492_v6, %v8511_v12  ;;  %11497 = sst [smem:[#allocation55_spill]] %s8918_s7  ;;  %v8932_v6 = vmul.f32 %v3513_v30, %v8514_v54  ;;  %v8948_v30 = vmul.f32 %v3531_v53, %v8514_v54 }
 0x3e9   : > { %11477 = vst [vmem:[#allocation108_spill] sm:$0xff] %v8873_v45  ;;  %11482 = sst [smem:[#allocation44_spill]] %s8885_s6  ;;  %v8897_v45 = vmul.f32 %v3519_v49, %v8406_v26 }
 0x3ea   : > { %11479 = vst [vmem:[#allocation110_spill] sm:$0xff] %v8878_v7  ;;  %s11508_s3 = sld [smem:[#allocation85_spill]]  ;;  %v2991_v26 = vpop.permute.xlu0 %2990 }
 0x3eb   : > { %11481 = vst [vmem:[#allocation112_spill] sm:$0xff] %v8883_v56  ;;  %s11510_s7 = sld [smem:[#allocation87_spill]] }
 0x3ec   : > { %11483 = vst [vmem:[#allocation114_spill] sm:$0xff] %v8888_v4  ;;  %s11512_s0 = sld [smem:[#allocation91_spill]] }
 0x3ed   : > { %11485 = vst [vmem:[#allocation116_spill] sm:$0xff] %v8891_v2  ;;  %11507 = sst [smem:[#allocation56_spill]] %s8939_s29 }
 0x3ee   : > { %11486 = vst [vmem:[#allocation170_spill] sm:$0xff] %v8894_v38  ;;  %s11514_s6 = sld [smem:[#allocation92_spill]] }
 0x3ef   : > { %11487 = vst [vmem:[#allocation171_spill] sm:$0xff] %v8897_v45  ;;  %v8937_v45 = vpop.permute.xlu1 %2992  ;;  %s11515_s25 = sld [smem:[#allocation40_spill]] }
 0x3f0   : > { %11489 = vst [vmem:[#allocation172_spill] sm:$0xff] %v8906_v16  ;;  %v8926_v16 = vmul.f32 %v3501_v46, %v8511_v12  ;;  %v8942_v46 = vmul.f32 %v3519_v49, %v8514_v54  ;;  %s11516_s13 = sld [smem:[#allocation54_spill]]  ;;  %v2965_v49 = vmul.f32 %v5032_v36, %v8481_v40  ;;  %v11528_v40 = vstv %s11490_s1 }
 0x3f1   : > { %11491 = vst [vmem:[#allocation173_spill] sm:$0xff] %v8909_v17  ;;  %v8929_v17 = vmul.f32 %v3507_v25, %v8511_v12  ;;  %v8945_v25 = vmul.f32 %v3525_v61, %v8514_v54  ;;  %s11517_s29 = sld [smem:[#allocation180_spill]]  ;;  %v3024_v12 = vmul.f32 %v5032_v36, %v8815_v47  ;;  %v11560_v56 = vstv %s11510_s7 }
 0x3f2   : > { %11494 = vst [vmem:[#allocation178_spill] sm:$0xff] %v8914_v29  ;;  %s8956_s14 = sld [smem:[#allocation7 + $0x122]]  ;;  %v8990_v61 = vmul.f32 %v11528_v40, %v2965_v49 }
 0x3f3   : > { %11499 = vst [vmem:[#allocation179_spill] sm:$0xff] %v8923_v43  ;;  %s11519_s9 = sld [smem:[#allocation46_spill]]  ;;  %v11540_v43 = vstv %s11496_s28  ;;  %v9067_v4 = vmul.f32 %v11560_v56, %v3024_v12 }
 0x3f4   : > { %11500 = vst [vmem:[#allocation126_spill] sm:$0xff] %v8926_v16  ;;  %v8954_v16 = vpop.permute.xlu2 %2686  ;;  %s8975_s12 = sld [smem:[#allocation7 + $0x18e]]  ;;  %v11571_v23 = vstv %s11514_s6  ;;  %v11592_v3 = vstv %s11514_s6 }
 0x3f5   : > { %11501 = vst [vmem:[#allocation128_spill] sm:$0xff] %v8929_v17  ;;  %11526 = sst [smem:[#allocation58_spill]] %s8982_s11  ;;  %v11558_v17 = vstv %s11508_s3 }
 0x3f6   : > { %11503 = vst [vmem:[#allocation130_spill] sm:$0xff] %v8932_v6  ;;  %v3055_v6 = vmul.f32 %v5032_v36, %v8635_v33  ;;  %v11531_v33 = vstv %s11495_s22  ;;  %s9012_s1 = sld [smem:[#allocation7 + $0x183]]  ;;  %v9063_v38 = vmul.f32 %v11558_v17, %v3024_v12 }
 0x3f7   : > { %11509 = vst [vmem:[#allocation132_spill] sm:$0xff] %v8942_v46  ;;  %v11529_v46 = vstv %s11493_s4  ;;  %s11532_s4 = sld [smem:[#allocation64_spill]]  ;;  %v11598_v28 = vstv %s11517_s29 }
 0x3f8   : > { %11511 = vst [vmem:[#allocation33_spill] sm:$0xff] %v8945_v25  ;;  %11518 = sst [smem:[#allocation84_spill]] %s8956_s14  ;;  %v8994_v25 = vmul.f32 %v11529_v46, %v2965_v49  ;;  %v9023_v40 = vmul.f32 %v11540_v43, %v3055_v6  ;;  %v11542_v46 = vstv %s11502_s5 }
 0x3f9   : > { %11513 = vst [vmem:[#allocation32_spill] sm:$0xff] %v8948_v30  ;;  %s8969_s14 = sld [smem:[#allocation7 + $0x16a]]  ;;  %v11527_v30 = vstv %s11484_s16  ;;  %v9027_v63 = vmul.f32 %v11542_v46, %v3055_v6  ;;  %v2689_v46 = vmul.f32 %v5032_v36, %v8954_v16  ;;  %v11565_v16 = vmov %v11558_v17 }
 0x3fa   : > { %11525 = sst [smem:[#allocation57_spill]] %s8975_s12  ;;  %v8986_v53 = vmul.f32 %v11527_v30, %v2965_v49  ;;  %v9005_v30 = vmul.f32 %v11531_v33, %v2965_v49  ;;  %v2961_v49 = vpop.permute.xlu1 %2960  ;;  %11541 = vst [vmem:[#allocation34_spill] sm:$0xff] %v9023_v40  ;;  %v11548_v33 = vstv %s11505_s19  ;;  %v11566_v17 = vmov %v11560_v56 }
 0x3fb   : > { %s9001_s16 = sld [smem:[#allocation7 + $0x15f]]  ;;  %11543 = vst [vmem:[#allocation36_spill] sm:$0xff] %v9027_v63  ;;  %v9039_v2 = vmul.f32 %v11548_v33, %v3055_v6  ;;  %v11578_v20 = vstv %s11519_s9  ;;  %v9137_v19 = vmul.f32 %v11582_v60, %v2689_v46 }
 0x3fc   : > { %11533 = sst [smem:[#allocation38_spill]] %s9012_s1  ;;  %v2873_v47 = vpop.permute.xlu2 %2872  ;;  %11559 = vst [vmem:[#allocation133_spill] sm:$0xff] %v9063_v38 }
 0x3fd   : > { %s11534_s11 = sld [smem:[#allocation42_spill]]  ;;  %v11546_v29 = vstv %s11532_s4  ;;  %11549 = vst [vmem:[#allocation129_spill] sm:$0xff] %v9039_v2 }
 0x3fe   : > { %v9035_v54 = vmul.f32 %v11546_v29, %v3055_v6  ;;  %s9043_s5 = sld [smem:[#allocation7 + $0x15b]]  ;;  %v11553_v29 = vstv %s11506_s20  ;;  %v3025_v6 = vmul.f32 %v5032_v36, %v8935_v8  ;;  %11561 = vst [vmem:[#allocation138_spill] sm:$0xff] %v9067_v4  ;;  %v2995_v8 = vmul.f32 %v5032_v36, %v8937_v45 }
 0x3ff   : > { %11523 = sst [smem:[#allocation43_spill]] %s8969_s14  ;;  %v9053_v7 = vmul.f32 %v11553_v29, %v3024_v12  ;;  %v11562_v29 = vstv %s11512_s0  ;;  %v11564_v45 = vstv %s11506_s20 }
 0x400   : > { %11547 = vst [vmem:[#allocation127_spill] sm:$0xff] %v9035_v54  ;;  %s9049_s4 = sld [smem:[#allocation7 + $0x17f]]  ;;  %v9071_v43 = vmul.f32 %v11562_v29, %v3024_v12  ;;  %v9092_v4 = vmul.f32 %v11564_v45, %v3025_v6  ;;  %v9096_v33 = vmul.f32 %v11565_v16, %v3025_v6  ;;  %v9100_v38 = vmul.f32 %v11566_v17, %v3025_v6 }
 0x401   : > { %11530 = sst [smem:[#allocation45_spill]] %s9001_s16  ;;  %11555 = vst [vmem:[#allocation131_spill] sm:$0xff] %v9053_v7  ;;  %v3177_v7 = vpop.permute.xlu0 %3176  ;;  %v9111_v45 = vmul.f32 %v11571_v23, %v2995_v8  ;;  %v11573_v16 = vstv %s11515_s25  ;;  %v2994_v17 = vmul.f32 %v5032_v36, %v2991_v26  ;;  %v2964_v26 = vmul.f32 %v5032_v36, %v2961_v49 }
 0x402   : > { %s9059_s22 = sld [smem:[#allocation7 + $0x1a3]]  ;;  %11563 = vst [vmem:[#allocation139_spill] sm:$0xff] %v9071_v43  ;;  %v3051_v12 = vpop.permute.xlu1 %3050  ;;  %v11569_v43 = vmov %v11562_v29  ;;  %v9115_v21 = vmul.f32 %v11573_v16, %v2995_v8  ;;  %v11576_v29 = vstv %s11516_s13  ;;  %v9130_v16 = vmul.f32 %v11578_v20, %v2689_v46 }
 0x403   : > { %s9082_s1 = sld [smem:[#allocation7 + $0x161]]  ;;  %v9107_v56 = vmul.f32 %v11569_v43, %v3025_v6  ;;  %v9122_v43 = vmul.f32 %v11576_v29, %v2995_v8  ;;  %v11577_v6 = vstv %s11517_s29  ;;  %v11584_v29 = vstv %s8516_s21 }
 0x404   : > { %s9103_s14 = sld [smem:[#allocation7 + $0x1a9]]  ;;  %v2655_v52 = vpop.permute.xlu2 %2654  ;;  %v9126_v23 = vmul.f32 %v11577_v6, %v2995_v8  ;;  %v9141_v32 = vmul.f32 %v11584_v29, %v2689_v46  ;;  %v11586_v8 = vstv %s11567_s2  ;;  %v2875_v20 = vmul.f32 %v5035_v37, %v2873_v47 }
 0x405   : > { %11570 = vst [vmem:[#allocation140_spill] sm:$0xff] %v9107_v56  ;;  %s11572_s20 = sld [smem:[#allocation58_spill]]  ;;  %v9145_v6 = vmul.f32 %v11586_v8, %v2689_v46  ;;  %v9156_v13 = vmul.f32 %v11592_v3, %v2994_v17  ;;  %v11594_v29 = vstv %s11515_s25  ;;  %v11596_v8 = vstv %s11516_s13 }
 0x406   : > { %s11574_s3 = sld [smem:[#allocation45_spill]]  ;;  %v9160_v46 = vmul.f32 %v11594_v29, %v2994_v17  ;;  %v9164_v47 = vmul.f32 %v11596_v8, %v2994_v17  ;;  %v9168_v42 = vmul.f32 %v11598_v28, %v2994_v17  ;;  %v11604_v3 = vstv %s11583_s17 }
 0x407   : > { %s11575_s7 = sld [smem:[#allocation38_spill]]  ;;  %11593 = vst [vmem:[#allocation141_spill] sm:$0xff] %v9156_v13  ;;  %v9180_v13 = vmul.f32 %v11604_v3, %v2964_v26  ;;  %v11621_v48 = vstv %s11534_s11 }
 0x408   : > { %s9118_s12 = sld [smem:[#allocation7 + $0x134]]  ;;  %11595 = vst [vmem:[#allocation134_spill] sm:$0xff] %v9160_v46  ;;  %v3180_v46 = vmul.f32 %v5035_v37, %v3177_v7 }
 0x409   : > { %s11579_s0 = sld [smem:[#allocation48_spill]]  ;;  %11597 = vst [vmem:[#allocation135_spill] sm:$0xff] %v9164_v47 }
 0x40a   : > { %11568 = sst [smem:[#allocation85_spill]] %s9103_s14  ;;  %11599 = vst [vmem:[#allocation136_spill] sm:$0xff] %v9168_v42 }
 0x40b   : > { %s11580_s19 = sld [smem:[#allocation81_spill]]  ;;  %11605 = vst [vmem:[#allocation143_spill] sm:$0xff] %v9180_v13  ;;  %v3054_v13 = vmul.f32 %v5032_v36, %v3051_v12 }
 0x40c   : > { %s9133_s26 = sld [smem:[#allocation7 + $0x158]] }
 0x40d   : > { %s11585_s30 = sld [smem:[#allocation89_spill]] }
 0x40e   : > { %s11587_s9 = sld [smem:[#allocation66_spill]] }
 0x40f   : > { %s11588_s23 = sld [smem:[#allocation93_spill]]  ;;  %v11600_v49 = vstv %s11579_s0 }
 0x410   : > { %s9148_s28 = sld [smem:[#allocation7 + $0x17c]]  ;;  %v9172_v14 = vmul.f32 %v11600_v49, %v2964_v26 }
 0x411   : > { %s11590_s27 = sld [smem:[#allocation94_spill]]  ;;  %v11602_v60 = vstv %s11580_s19 }
 0x412   : > { %11581 = sst [smem:[#allocation87_spill]] %s9133_s26  ;;  %11601 = vst [vmem:[#allocation137_spill] sm:$0xff] %v9172_v14  ;;  %v9176_v39 = vmul.f32 %v11602_v60, %v2964_v26 }
 0x413   : > { %s11591_s16 = sld [smem:[#allocation41_spill]]  ;;  %v11606_v22 = vstv %s11585_s30 }
 0x414   : > { %11603 = vst [vmem:[#allocation142_spill] sm:$0xff] %v9176_v39  ;;  %v9184_v29 = vmul.f32 %v11606_v22, %v2964_v26  ;;  %s9186_s13 = sld [smem:[#allocation7 + $0x1a0]]  ;;  %v11608_v8 = vstv %s11587_s9  ;;  %v2657_v22 = vpop.permute.xlu0 %2656  ;;  %v2627_v26 = vpop.permute.xlu1 %2626 }
 0x415   : > { %v9190_v47 = vmul.f32 %v11608_v8, %v2875_v20  ;;  %v11609_v28 = vstv %s11588_s23  ;;  %s11612_s17 = sld [smem:[#allocation69_spill]]  ;;  %v2629_v39 = vmul.f32 %v5032_v36, %v2627_v26 }
 0x416   : > { %11589 = sst [smem:[#allocation91_spill]] %s9148_s28  ;;  %11607 = vst [vmem:[#allocation144_spill] sm:$0xff] %v9184_v29  ;;  %v9194_v17 = vmul.f32 %v11609_v28, %v2875_v20  ;;  %v2659_v28 = vmul.f32 %v5032_v36, %v2657_v22  ;;  %v2658_v22 = vmul.f32 %v5032_v36, %v2655_v52 }
 0x417   : > { %v11610_v49 = vstv %s11590_s27  ;;  %s11613_s30 = sld [smem:[#allocation70_spill]] }
 0x418   : > { %v9198_v60 = vmul.f32 %v11610_v49, %v2875_v20  ;;  %s11614_s25 = sld [smem:[#allocation79_spill]]  ;;  %v3207_v49 = vpop.permute.xlu2 %3206 }
 0x419   : > { %v11611_v3 = vstv %s11591_s16  ;;  %s11615_s6 = sld [smem:[#allocation44_spill]] }
 0x41a   : > { %v9202_v42 = vmul.f32 %v11611_v3, %v2875_v20  ;;  %s11616_s19 = sld [smem:[#allocation106_spill]]  ;;  %v2663_v20 = vmul.f32 %v11621_v48, %v2659_v28 }
 0x41b   : > { %s11617_s29 = sld [smem:[#allocation55_spill]]  ;;  %v11623_v3 = vstv %s11612_s17 }
 0x41c   : > { %s11618_s0 = sld [smem:[#allocation56_spill]]  ;;  %v2669_v15 = vmul.f32 %v11623_v3, %v2659_v28  ;;  %v2717_v54 = vpop.permute.xlu1 %2716 }
 0x41d   : > { %s11619_s16 = sld [smem:[#allocation86_spill]]  ;;  %v11625_v7 = vstv %s11613_s30 }
 0x41e   : > { %s11620_s27 = sld [smem:[#allocation181_spill]]  ;;  %v2675_v29 = vmul.f32 %v11625_v7, %v2659_v28  ;;  %v11627_v14 = vstv %s11614_s25 }
 0x41f   : > { %s11622_s23 = sld [smem:[#allocation68_spill]]  ;;  %v2681_v8 = vmul.f32 %v11627_v14, %v2659_v28  ;;  %v11629_v12 = vstv %s11615_s6  ;;  %v3210_v14 = vmul.f32 %v5035_v37, %v3207_v49 }
 0x420   : > { %s11624_s9 = sld [smem:[#allocation182_spill]]  ;;  %v2633_v18 = vmul.f32 %v11629_v12, %v2629_v39  ;;  %v11630_v52 = vstv %s11616_s19 }
 0x421   : > { %s11626_s2 = sld [smem:[#allocation71_spill]]  ;;  %v2639_v24 = vmul.f32 %v11630_v52, %v2629_v39  ;;  %v11631_v34 = vstv %s11617_s29 }
 0x422   : > { %s11628_s21 = sld [smem:[#allocation63_spill]]  ;;  %v2645_v26 = vmul.f32 %v11631_v34, %v2629_v39  ;;  %v11632_v58 = vstv %s11618_s0  ;;  %v2665_v49 = vadd.f32 %v2663_v20, %v2633_v18  ;;  %v11656_v18 = vstv %s11612_s17 }
 0x423   : > { %s9228_s8 = sld [smem:[#allocation7 + $0x126]]  ;;  %v2651_v11 = vmul.f32 %v11632_v58, %v2629_v39  ;;  %v11633_v48 = vstv %s11619_s16  ;;  %v2671_v28 = vadd.f32 %v2669_v15, %v2639_v24  ;;  %v9284_v15 = vmul.f32 %v11656_v18, %v2658_v22 }
 0x424   : > { %s9238_s14 = sld [smem:[#allocation7 + $0x14a]]  ;;  %v9242_v3 = vmul.f32 %v11633_v48, %v3180_v46  ;;  %v11635_v2 = vstv %s11620_s27  ;;  %v11657_v24 = vstv %s11613_s30 }
 0x425   : > { %s11636_s28 = sld [smem:[#allocation64_spill]]  ;;  %v9246_v7 = vmul.f32 %v11635_v2, %v3180_v46  ;;  %v11639_v34 = vstv %s11622_s23 }
 0x426   : > { %11634 = vst [vmem:[#allocation145_spill] sm:$0xff] %v9242_v3  ;;  %s11638_s26 = sld [smem:[#allocation72_spill]]  ;;  %v9254_v12 = vmul.f32 %v11639_v34, %v3180_v46  ;;  %v11641_v58 = vstv %s11624_s9  ;;  %v2677_v3 = vadd.f32 %v2675_v29, %v2645_v26  ;;  %v2683_v34 = vadd.f32 %v2681_v8, %v2651_v11  ;;  %v2841_v11 = vpop.permute.xlu2 %2840 }
 0x427   : > { %11637 = vst [vmem:[#allocation146_spill] sm:$0xff] %v9246_v7  ;;  %s9250_s19 = sld [smem:[#allocation7 + $0x16e]]  ;;  %v9258_v39 = vmul.f32 %v11641_v58, %v3180_v46  ;;  %v11643_v52 = vstv %s11626_s2  ;;  %v9288_v29 = vmul.f32 %v11657_v24, %v2658_v22  ;;  %v11658_v8 = vstv %s11614_s25 }
 0x428   : > { %11640 = vst [vmem:[#allocation147_spill] sm:$0xff] %v9254_v12  ;;  %v9262_v48 = vmul.f32 %v11643_v52, %v3054_v13  ;;  %v11645_v2 = vstv %s11628_s21  ;;  %s11646_s27 = sld [smem:[#allocation80_spill]]  ;;  %v2843_v12 = vpop.permute.xlu0 %2842  ;;  %v9292_v20 = vmul.f32 %v11658_v8, %v2658_v22  ;;  %v2695_v8 = vadd.f32 %v9130_v16, %v2665_v49 }
 0x429   : > { %11642 = vst [vmem:[#allocation148_spill] sm:$0xff] %v9258_v39  ;;  %v9266_v7 = vmul.f32 %v11645_v2, %v3054_v13  ;;  %s11648_s16 = sld [smem:[#allocation88_spill]]  ;;  %v2844_v16 = vmul.f32 %v5035_v37, %v2841_v11  ;;  %v3327_v49 = vstv %s9228_s8 }
 0x42a   : > { %11644 = vst [vmem:[#allocation149_spill] sm:$0xff] %v9262_v48  ;;  %s11649_s0 = sld [smem:[#allocation90_spill]]  ;;  %v11655_v48 = vstv %s11534_s11 }
 0x42b   : > { %11647 = vst [vmem:[#allocation150_spill] sm:$0xff] %v9266_v7  ;;  %s11650_s23 = sld [smem:[#allocation39_spill]]  ;;  %v11651_v46 = vstv %s11636_s28  ;;  %v9280_v2 = vmul.f32 %v11655_v48, %v2658_v22  ;;  %v2719_v48 = vmul.f32 %v5032_v36, %v2717_v54  ;;  %v2845_v22 = vmul.f32 %v5035_v37, %v2843_v12 }
 0x42c   : > { %s9268_s9 = sld [smem:[#allocation7 + $0x192]]  ;;  %v9272_v58 = vmul.f32 %v11651_v46, %v3054_v13  ;;  %v11653_v52 = vstv %s11638_s26  ;;  %v2707_v54 = vadd.f32 %v9141_v32, %v2677_v3  ;;  %v11672_v7 = vstv %s11575_s7 }
 0x42d   : > { %v9276_v39 = vmul.f32 %v11653_v52, %v3054_v13  ;;  %s11667_s21 = sld [smem:[#allocation84_spill]] }
 0x42e   : > { %11652 = vst [vmem:[#allocation151_spill] sm:$0xff] %v9272_v58  ;;  %v11659_v26 = vstv %s11646_s27  ;;  %s11668_s2 = sld [smem:[#allocation83_spill]] }
 0x42f   : > { %11654 = vst [vmem:[#allocation152_spill] sm:$0xff] %v9276_v39  ;;  %v9296_v13 = vmul.f32 %v11659_v26, %v3210_v14  ;;  %v11661_v46 = vstv %s11648_s16  ;;  %v2701_v26 = vadd.f32 %v9137_v19, %v2671_v28  ;;  %s11669_s11 = sld [smem:[#allocation43_spill]]  ;;  %v10454_v19 = vstv %s9250_s19 }
 0x430   : > { %v9301_v52 = vmul.f32 %v11661_v46, %v3210_v14  ;;  %v11663_v18 = vstv %s11649_s0  ;;  %v2713_v46 = vadd.f32 %v9145_v6, %v2683_v34  ;;  %s11674_s28 = sld [smem:[#allocation57_spill]]  ;;  %v2933_v56 = vpop.permute.xlu0 %2932 }
 0x431   : > { %11660 = vst [vmem:[#allocation153_spill] sm:$0xff] %v9296_v13  ;;  %v9305_v39 = vmul.f32 %v11663_v18, %v3210_v14  ;;  %v11665_v58 = vstv %s11650_s23  ;;  %v11671_v18 = vstv %s11574_s3  ;;  %s9364_s26 = sld [smem:[#allocation7 + $0x141]] }
 0x432   : > { %11662 = vst [vmem:[#allocation28_spill] sm:$0xff] %v9301_v52  ;;  %v9309_v24 = vmul.f32 %v11665_v58, %v3210_v14  ;;  %v11670_v52 = vstv %s11572_s20  ;;  %v2735_v14 = vmul.f32 %v11672_v7, %v2719_v48  ;;  %v11673_v58 = vstv %s9019_s24  ;;  %s11687_s17 = sld [smem:[#allocation87_spill]] }
 0x433   : > { %11664 = vst [vmem:[#allocation37_spill] sm:$0xff] %v9305_v39  ;;  %v2723_v13 = vmul.f32 %v11670_v52, %v2719_v48  ;;  %v2729_v39 = vmul.f32 %v11671_v18, %v2719_v48  ;;  %v2741_v12 = vmul.f32 %v11673_v58, %v2719_v48  ;;  %v11675_v34 = vstv %s11667_s21  ;;  %v2903_v48 = vpop.permute.xlu1 %2902  ;;  %s11688_s30 = sld [smem:[#allocation91_spill]] }
 0x434   : > { %11666 = vst [vmem:[#allocation50_spill] sm:$0xff] %v9309_v24  ;;  %v3333_v24 = vstv %s9238_s14  ;;  %v2737_v6 = vadd.f32 %v2735_v14, %v2707_v54  ;;  %v2849_v52 = vmul.f32 %v11675_v34, %v2845_v22  ;;  %v11676_v18 = vstv %s11668_s2  ;;  %s11693_s25 = sld [smem:[#allocation85_spill]] }
 0x435   : > { %v2725_v28 = vadd.f32 %v2723_v13, %v2695_v8  ;;  %v2731_v32 = vadd.f32 %v2729_v39, %v2701_v26  ;;  %v2743_v3 = vadd.f32 %v2741_v12, %v2713_v46  ;;  %v2855_v63 = vmul.f32 %v11676_v18, %v2845_v22  ;;  %v3239_v26 = vpop.permute.xlu2 %3238  ;;  %s11697_s21 = sld [smem:[#allocation106_spill]] }
 0x436   : > { %v11677_v40 = vstv %s11669_s11  ;;  %v10453_v11 = vstv %s9268_s9  ;;  %v2761_v39 = vadd.f32 %v8555_v31, %v2737_v6  ;;  %v11678_v54 = vmov %v11675_v34  ;;  %s11698_s2 = sld [smem:[#allocation56_spill]] }
 0x437   : > { %v2861_v7 = vmul.f32 %v11677_v40, %v2845_v22  ;;  %v2749_v58 = vadd.f32 %v8543_v1, %v2725_v28  ;;  %v2755_v13 = vadd.f32 %v8550_v41, %v2731_v32  ;;  %v2767_v8 = vadd.f32 %v8560_v50, %v2743_v3  ;;  %s9874_s8 = sld [smem:[#allocation7 + $0x131]] }
 0x438   : > { %v9341_v46 = vmul.f32 %v11678_v54, %v2844_v16  ;;  %v11679_v14 = vmov %v11676_v18  ;;  %v11680_v40 = vstv %s11674_s28  ;;  %v3241_v18 = vmul.f32 %v5035_v37, %v3239_v26  ;;  %s11710_s28 = sld [smem:[#allocation60_spill]] }
 0x439   : > { %v9345_v12 = vmul.f32 %v11679_v14, %v2844_v16  ;;  %v2867_v34 = vmul.f32 %v11680_v40, %v2845_v22  ;;  %v2773_v41 = vadd.f32 %v8521_v51, %v2749_v58  ;;  %v2779_v31 = vadd.f32 %v8528_v35, %v2755_v13  ;;  %s9882_s14 = sld [smem:[#allocation7 + $0x179]] }
 0x43a   : > { %v2785_v1 = vadd.f32 %v8533_v10, %v2761_v39  ;;  %v2791_v50 = vadd.f32 %v8538_v62, %v2767_v8  ;;  %v11681_v28 = vstv %s11669_s11  ;;  %v11682_v6 = vmov %v11680_v40  ;;  %s11709_s11 = sld [smem:[#allocation47_spill]] }
 0x43b   : > { %v9356_v32 = vmul.f32 %v11681_v28, %v2844_v16  ;;  %v9360_v3 = vmul.f32 %v11682_v6, %v2844_v16  ;;  %v2935_v22 = vmul.f32 %v5035_v37, %v2933_v56  ;;  %v2905_v26 = vmul.f32 %v5035_v37, %v2903_v48  ;;  %v2625_v6 = vpop.permute.xlu0 %2624 }
 0x43c   : > { %v2797_v51 = vadd.f32 %v8428_v59, %v2773_v41  ;;  %v2803_v35 = vadd.f32 %v8433_v9, %v2779_v31  ;;  %v2809_v10 = vadd.f32 %v8438_v44, %v2785_v1  ;;  %v2815_v62 = vadd.f32 %v8448_v27, %v2791_v50 }
 0x43d   : > { %v11683_v16 = vstv %s9031_s10  ;;  %v11684_v13 = vstv %s9043_s5  ;;  %v11685_v39 = vstv %s9049_s4  ;;  %v11686_v8 = vstv %s9059_s22 }
 0x43e   : > { %v9372_v58 = vmul.f32 %v11683_v16, %v3241_v18  ;;  %v9376_v56 = vmul.f32 %v11684_v13, %v3241_v18  ;;  %v9380_v48 = vmul.f32 %v11685_v39, %v3241_v18  ;;  %v9384_v54 = vmul.f32 %v11686_v8, %v3241_v18  ;;  %v2685_v13 = vpop.permute.xlu1 %2684 }
 0x43f   : > { %v2821_v59 = vadd.f32 %v8453_v57, %v2797_v51  ;;  %v2827_v9 = vadd.f32 %v8464_v5, %v2803_v35  ;;  %v2833_v27 = vadd.f32 %v8469_v0, %v2809_v10  ;;  %v2839_v44 = vadd.f32 %v8474_v55, %v2815_v62  ;;  %v2931_v35 = vpop.permute.xlu2 %2930 }
 0x440   : > { %v11689_v14 = vstv %s9075_s15  ;;  %v11690_v41 = vstv %s9082_s1  ;;  %v11691_v1 = vstv %s9088_s18  ;;  %v11692_v28 = vstv %s9118_s12 }
 0x441   : > { %v2939_v40 = vmul.f32 %v11689_v14, %v2935_v22  ;;  %v2945_v31 = vmul.f32 %v11690_v41, %v2935_v22  ;;  %v2951_v50 = vmul.f32 %v11691_v1, %v2935_v22  ;;  %v2909_v18 = vmul.f32 %v11692_v28, %v2905_v26 }
 0x442   : > { %v2851_v16 = vadd.f32 %v2849_v52, %v2821_v59  ;;  %v2857_v57 = vadd.f32 %v2855_v63, %v2827_v9  ;;  %v2863_v51 = vadd.f32 %v2861_v7, %v2833_v27  ;;  %v2869_v5 = vadd.f32 %v2867_v34, %v2839_v44 }
 0x443   : > { %v11694_v0 = vstv %s11687_s17  ;;  %v11695_v55 = vstv %s11688_s30  ;;  %v11696_v39 = vstv %s9186_s13  ;;  %v2628_v14 = vmul.f32 %v5032_v36, %v2625_v6 }
 0x444   : > { %v2915_v10 = vmul.f32 %v11694_v0, %v2905_v26  ;;  %v2921_v62 = vmul.f32 %v11695_v55, %v2905_v26  ;;  %v2927_v8 = vmul.f32 %v11696_v39, %v2905_v26  ;;  %v2881_v52 = vadd.f32 %v9190_v47, %v2851_v16 }
 0x445   : > { %v2887_v63 = vadd.f32 %v9194_v17, %v2857_v57  ;;  %v2893_v7 = vadd.f32 %v9198_v60, %v2863_v51  ;;  %v2899_v34 = vadd.f32 %v9202_v42, %v2869_v5  ;;  %v11699_v59 = vstv %s11693_s25 }
 0x446   : > { %v2957_v9 = vmul.f32 %v11699_v59, %v2935_v22  ;;  %v2934_v27 = vmul.f32 %v5035_v37, %v2931_v35  ;;  %v2688_v26 = vmul.f32 %v5032_v36, %v2685_v13  ;;  %v10452_v44 = vstv %s9364_s26 }
 0x447   : > { %v2911_v41 = vadd.f32 %v2909_v18, %v2881_v52  ;;  %v2917_v1 = vadd.f32 %v2915_v10, %v2887_v63  ;;  %v2923_v47 = vadd.f32 %v2921_v62, %v2893_v7  ;;  %v2929_v28 = vadd.f32 %v2927_v8, %v2899_v34 }
 0x448   : > { %v11700_v17 = vstv %s11615_s6  ;;  %v11701_v60 = vstv %s11697_s21  ;;  %v11702_v42 = vstv %s11617_s29  ;;  %v11703_v22 = vstv %s11698_s2  ;;  %s11708_s6 = sld [smem:[#allocation46_spill]] }
 0x449   : > { %v2632_v6 = vmul.f32 %v11700_v17, %v2628_v14  ;;  %v2638_v16 = vmul.f32 %v11701_v60, %v2628_v14  ;;  %v2644_v57 = vmul.f32 %v11702_v42, %v2628_v14  ;;  %v2650_v51 = vmul.f32 %v11703_v22, %v2628_v14  ;;  %s9438_s29 = sld [smem:[#allocation7 + $0x165]]  ;;  %v3179_v60 = vpop.permute.xlu1 %3178 }
 0x44a   : > { %v2941_v5 = vadd.f32 %v2939_v40, %v2911_v41  ;;  %v2947_v35 = vadd.f32 %v2945_v31, %v2917_v1  ;;  %v2953_v0 = vadd.f32 %v2951_v50, %v2923_v47  ;;  %v2959_v55 = vadd.f32 %v2957_v9, %v2929_v28  ;;  %v3321_v1 = vpop.permute.xlu2 %3320  ;;  %s9538_s21 = sld [smem:[#allocation7 + $0x153]] }
 0x44b   : > { %v11704_v13 = vstv %s9075_s15  ;;  %v11705_v59 = vstv %s9082_s1  ;;  %v11706_v10 = vstv %s9088_s18  ;;  %v11707_v8 = vstv %s11693_s25  ;;  %s11711_s15 = sld [smem:[#allocation62_spill]] }
 0x44c   : > { %v9424_v39 = vmul.f32 %v11704_v13, %v2934_v27  ;;  %v9428_v18 = vmul.f32 %v11705_v59, %v2934_v27  ;;  %v9432_v62 = vmul.f32 %v11706_v10, %v2934_v27  ;;  %v9436_v52 = vmul.f32 %v11707_v8, %v2934_v27  ;;  %s9480_s18 = sld [smem:[#allocation7 + $0x189]] }
 0x44d   : > { %v2971_v40 = vadd.f32 %v8986_v53, %v2941_v5  ;;  %v2977_v31 = vadd.f32 %v8990_v61, %v2947_v35  ;;  %v2983_v50 = vadd.f32 %v8994_v25, %v2953_v0  ;;  %v2989_v14 = vadd.f32 %v9005_v30, %v2959_v55  ;;  %v2715_v25 = vpop.permute.xlu0 %2714  ;;  %v11719_v35 = vld [vmem:[#allocation127_spill] sm:$0xff]  ;;  %v11720_v0 = vld [vmem:[#allocation129_spill] sm:$0xff]  ;;  %s9486_s1 = sld [smem:[#allocation7 + $0x1ad]] }
 0x44e   : > { %v2664_v63 = vadd.f32 %v9280_v2, %v2632_v6  ;;  %v2670_v7 = vadd.f32 %v9284_v15, %v2638_v16  ;;  %v2676_v34 = vadd.f32 %v9288_v29, %v2644_v57  ;;  %v2682_v9 = vadd.f32 %v9292_v20, %v2650_v51  ;;  %s9523_s25 = sld [smem:[#allocation7 + $0x12f]] }
 0x44f   : > { %v3001_v27 = vadd.f32 %v9111_v45, %v2971_v40  ;;  %v3007_v53 = vadd.f32 %v9115_v21, %v2977_v31  ;;  %v3013_v41 = vadd.f32 %v9122_v43, %v2983_v50  ;;  %v3019_v61 = vadd.f32 %v9126_v23, %v2989_v14  ;;  %v11716_v43 = vld [vmem:[#allocation140_spill] sm:$0xff]  ;;  %s9540_s2 = sld [smem:[#allocation7 + $0x177]] }
 0x450   : > { %v11712_v47 = vstv %s11708_s6  ;;  %v11713_v28 = vstv %s11709_s11  ;;  %v11714_v17 = vstv %s11710_s28  ;;  %v2718_v22 = vmul.f32 %v5032_v36, %v2715_v25  ;;  %s9558_s6 = sld [smem:[#allocation7 + $0x19b]] }
 0x451   : > { %v2692_v30 = vmul.f32 %v11712_v47, %v2688_v26  ;;  %v2698_v2 = vmul.f32 %v11713_v28, %v2688_v26  ;;  %v2704_v15 = vmul.f32 %v11714_v17, %v2688_v26  ;;  %v11715_v6 = vstv %s11711_s15  ;;  %s11769_s11 = sld [smem:[#allocation66_spill]] }
 0x452   : > { %v2710_v29 = vmul.f32 %v11715_v6, %v2688_v26  ;;  %v3031_v20 = vadd.f32 %v9092_v4, %v3001_v27  ;;  %v3037_v45 = vadd.f32 %v9096_v33, %v3007_v53  ;;  %v3043_v21 = vadd.f32 %v9100_v38, %v3013_v41  ;;  %v11717_v26 = vld [vmem:[#allocation34_spill] sm:$0xff]  ;;  %v11718_v4 = vld [vmem:[#allocation36_spill] sm:$0xff]  ;;  %v11725_v27 = vld [vmem:[#allocation154_spill] sm:$0xff]  ;;  %s11770_s28 = sld [smem:[#allocation93_spill]] }
 0x453   : > { %v3049_v23 = vadd.f32 %v11716_v43, %v3019_v61  ;;  %v2694_v16 = vadd.f32 %v2692_v30, %v2664_v63  ;;  %v2700_v42 = vadd.f32 %v2698_v2, %v2670_v7  ;;  %v2706_v57 = vadd.f32 %v2704_v15, %v2676_v34  ;;  %v11726_v41 = vld [vmem:[#allocation155_spill] sm:$0xff]  ;;  %v11729_v15 = vld [vmem:[#allocation59_spill] sm:$0xff]  ;;  %v11732_v43 = vld [vmem:[#allocation96_spill] sm:$0xff]  ;;  %s9576_s15 = sld [smem:[#allocation7 + $0x13a]] }
 0x454   : > { %v3061_v51 = vadd.f32 %v11717_v26, %v3031_v20  ;;  %v3067_v5 = vadd.f32 %v11718_v4, %v3037_v45  ;;  %v3073_v33 = vadd.f32 %v11719_v35, %v3043_v21  ;;  %v2712_v38 = vadd.f32 %v2710_v29, %v2682_v9  ;;  %v11727_v9 = vld [vmem:[#allocation156_spill] sm:$0xff]  ;;  %v11730_v29 = vld [vmem:[#allocation67_spill] sm:$0xff]  ;;  %v11734_v26 = vld [vmem:[#allocation35_spill] sm:$0xff] }
 0x455   : > { %v3079_v55 = vadd.f32 %v11720_v0, %v3049_v23  ;;  %v3324_v13 = vmul.f32 %v5032_v36, %v3321_v1  ;;  %v3181_v59 = vmul.f32 %v5035_v37, %v3179_v60  ;;  %v10451_v10 = vstv %s9438_s29  ;;  %v11728_v1 = vld [vmem:[#allocation157_spill] sm:$0xff]  ;;  %v11731_v45 = vld [vmem:[#allocation95_spill] sm:$0xff]  ;;  %v11733_v60 = vld [vmem:[#allocation31_spill] sm:$0xff] }
 0x456   : > { %v11721_v8 = vstv %s11572_s20  ;;  %v11722_v31 = vstv %s11574_s3  ;;  %v11723_v14 = vstv %s11575_s7  ;;  %v11724_v7 = vstv %s9019_s24  ;;  %v11735_v4 = vld [vmem:[#allocation49_spill] sm:$0xff]  ;;  %v11736_v35 = vld [vmem:[#allocation52_spill] sm:$0xff]  ;;  %s11738_s24 = sld [smem:[#allocation86_spill]] }
 0x457   : > { %v2722_v40 = vmul.f32 %v11721_v8, %v2718_v22  ;;  %v2728_v50 = vmul.f32 %v11722_v31, %v2718_v22  ;;  %v2734_v63 = vmul.f32 %v11723_v14, %v2718_v22  ;;  %v2740_v34 = vmul.f32 %v11724_v7, %v2718_v22  ;;  %v11739_v0 = vld [vmem:[#allocation121_spill] sm:$0xff]  ;;  %s11740_s20 = sld [smem:[#allocation181_spill]] }
 0x458   : > { %v3085_v53 = vadd.f32 %v11725_v27, %v3061_v51  ;;  %v3091_v61 = vadd.f32 %v11726_v41, %v3067_v5  ;;  %v3097_v25 = vadd.f32 %v11727_v9, %v3073_v33  ;;  %v3103_v47 = vadd.f32 %v11728_v1, %v3079_v55  ;;  %s11742_s3 = sld [smem:[#allocation68_spill]]  ;;  %v11749_v9 = vld [vmem:[#allocation167_spill] sm:$0xff]  ;;  %v11750_v1 = vld [vmem:[#allocation169_spill] sm:$0xff] }
 0x459   : > { %v2724_v30 = vadd.f32 %v2722_v40, %v2694_v16  ;;  %v2730_v28 = vadd.f32 %v2728_v50, %v2700_v42  ;;  %v2736_v2 = vadd.f32 %v2734_v63, %v2706_v57  ;;  %v2742_v17 = vadd.f32 %v2740_v34, %v2712_v38  ;;  %v3411_v16 = vpop.permute.xlu2 %3410  ;;  %v11737_v42 = vld [vmem:[#allocation119_spill] sm:$0xff]  ;;  %v11743_v40 = vld [vmem:[#allocation125_spill] sm:$0xff]  ;;  %s11744_s7 = sld [smem:[#allocation182_spill]] }
 0x45a   : > { %v3109_v6 = vadd.f32 %v11729_v15, %v3085_v53  ;;  %v3115_v20 = vadd.f32 %v11730_v29, %v3091_v61  ;;  %v3121_v21 = vadd.f32 %v11731_v45, %v3097_v25  ;;  %v3127_v23 = vadd.f32 %v11732_v43, %v3103_v47  ;;  %v11741_v38 = vld [vmem:[#allocation123_spill] sm:$0xff]  ;;  %v11746_v63 = vld [vmem:[#allocation104_spill] sm:$0xff]  ;;  %v3209_v61 = vpop.permute.xlu0 %3208  ;;  %v2871_v15 = vpop.permute.xlu1 %2870 }
 0x45b   : > { %v2748_v22 = vadd.f32 %v11733_v60, %v2724_v30  ;;  %v2754_v51 = vadd.f32 %v11734_v26, %v2730_v28  ;;  %v2760_v5 = vadd.f32 %v11735_v4, %v2736_v2  ;;  %v2766_v33 = vadd.f32 %v11736_v35, %v2742_v17  ;;  %v11745_v50 = vld [vmem:[#allocation102_spill] sm:$0xff]  ;;  %v11748_v53 = vld [vmem:[#allocation109_spill] sm:$0xff] }
 0x45c   : > { %v3133_v57 = vadd.f32 %v11737_v42, %v3109_v6  ;;  %v3139_v55 = vadd.f32 %v11739_v0, %v3115_v20  ;;  %v3145_v8 = vadd.f32 %v11741_v38, %v3121_v21  ;;  %v3151_v31 = vadd.f32 %v11743_v40, %v3127_v23  ;;  %v11747_v34 = vld [vmem:[#allocation107_spill] sm:$0xff]  ;;  %v11752_v2 = vld [vmem:[#allocation165_spill] sm:$0xff]  ;;  %v11757_v40 = vld [vmem:[#allocation158_spill] sm:$0xff] }
 0x45d   : > { %v2772_v14 = vadd.f32 %v11745_v50, %v2748_v22  ;;  %v2778_v7 = vadd.f32 %v11746_v63, %v2754_v51  ;;  %v2784_v27 = vadd.f32 %v11747_v34, %v2760_v5  ;;  %v2790_v41 = vadd.f32 %v11748_v53, %v2766_v33  ;;  %v11751_v30 = vld [vmem:[#allocation163_spill] sm:$0xff]  ;;  %v11759_v34 = vld [vmem:[#allocation160_spill] sm:$0xff] }
 0x45e   : > { %v3157_v25 = vadd.f32 %v11749_v9, %v3133_v57  ;;  %v3163_v47 = vadd.f32 %v11750_v1, %v3139_v55  ;;  %v3169_v28 = vadd.f32 %v11751_v30, %v3145_v8  ;;  %v3175_v17 = vadd.f32 %v11752_v2, %v3151_v31  ;;  %v11758_v50 = vld [vmem:[#allocation159_spill] sm:$0xff] }
 0x45f   : > { %v9510_v6 = vmul.f32 %v3327_v49, %v3324_v13  ;;  %v11753_v29 = vstv %s11738_s24  ;;  %v11754_v45 = vstv %s11740_s20  ;;  %v11755_v43 = vstv %s11742_s3  ;;  %s9600_s24 = sld [smem:[#allocation7 + $0x1a6]] }
 0x460   : > { %v3185_v20 = vmul.f32 %v11753_v29, %v3181_v59  ;;  %v3191_v21 = vmul.f32 %v11754_v45, %v3181_v59  ;;  %v3197_v23 = vmul.f32 %v11755_v43, %v3181_v59  ;;  %v11756_v60 = vstv %s11744_s7  ;;  %v11765_v45 = vld [vmem:[#allocation174_spill] sm:$0xff]  ;;  %v11766_v43 = vld [vmem:[#allocation175_spill] sm:$0xff]  ;;  %s9608_s20 = sld [smem:[#allocation7 + $0x140]] }
 0x461   : > { %v3203_v22 = vmul.f32 %v11756_v60, %v3181_v59  ;;  %v10446_v26 = vstv %s9480_s18  ;;  %v10445_v51 = vstv %s9486_s1  ;;  %v3414_v4 = vmul.f32 %v5032_v36, %v3411_v16  ;;  %s9614_s3 = sld [smem:[#allocation7 + $0x164]] }
 0x462   : > { %v9527_v5 = vmul.f32 %v3333_v24, %v3324_v13  ;;  %v9531_v35 = vmul.f32 %v10454_v19, %v3324_v13  ;;  %v9535_v33 = vmul.f32 %v10453_v11, %v3324_v13  ;;  %v3211_v59 = vmul.f32 %v5035_v37, %v3209_v61  ;;  %v11760_v61 = vld [vmem:[#allocation161_spill] sm:$0xff]  ;;  %s9616_s7 = sld [smem:[#allocation7 + $0x188]]  ;;  %v11818_v11 = vld [vmem:[#allocation146_spill] sm:$0xff] }
 0x463   : > { %v3187_v42 = vadd.f32 %v3185_v20, %v3157_v25  ;;  %v3193_v16 = vadd.f32 %v3191_v21, %v3163_v47  ;;  %v3199_v57 = vadd.f32 %v3197_v23, %v3169_v28  ;;  %v3205_v0 = vadd.f32 %v3203_v22, %v3175_v17  ;;  %v3353_v20 = vpop.permute.xlu2 %3352 }
 0x464   : > { %v9544_v55 = vmul.f32 %v10452_v44, %v3414_v4  ;;  %v9548_v13 = vmul.f32 %v10451_v10, %v3414_v4  ;;  %v9552_v38 = vmul.f32 %v10446_v26, %v3414_v4  ;;  %v9556_v8 = vmul.f32 %v10445_v51, %v3414_v4  ;;  %v11791_v51 = vld [vmem:[#allocation135_spill] sm:$0xff]  ;;  %v11792_v26 = vld [vmem:[#allocation136_spill] sm:$0xff] }
 0x465   : > { %v2796_v31 = vadd.f32 %v11757_v40, %v2772_v14  ;;  %v2802_v63 = vadd.f32 %v11758_v50, %v2778_v7  ;;  %v2808_v53 = vadd.f32 %v11759_v34, %v2784_v27  ;;  %v2814_v9 = vadd.f32 %v11760_v61, %v2790_v41  ;;  %v11767_v14 = vld [vmem:[#allocation176_spill] sm:$0xff]  ;;  %v11768_v7 = vld [vmem:[#allocation177_spill] sm:$0xff]  ;;  %v2901_v40 = vpop.permute.xlu0 %2900 }
 0x466   : > { %v11761_v25 = vstv %s11646_s27  ;;  %v11762_v47 = vstv %s11648_s16  ;;  %v11763_v28 = vstv %s11649_s0  ;;  %v11764_v17 = vstv %s11650_s23  ;;  %s11771_s23 = sld [smem:[#allocation94_spill]] }
 0x467   : > { %v3215_v1 = vmul.f32 %v11761_v25, %v3211_v59  ;;  %v3221_v30 = vmul.f32 %v11762_v47, %v3211_v59  ;;  %v3227_v2 = vmul.f32 %v11763_v28, %v3211_v59  ;;  %v3233_v29 = vmul.f32 %v11764_v17, %v3211_v59  ;;  %s11772_s27 = sld [smem:[#allocation41_spill]] }
 0x468   : > { %v2820_v21 = vadd.f32 %v11765_v45, %v2796_v31  ;;  %v2826_v23 = vadd.f32 %v11766_v43, %v2802_v63  ;;  %v2832_v60 = vadd.f32 %v11767_v14, %v2808_v53  ;;  %v2838_v27 = vadd.f32 %v11768_v7, %v2814_v9  ;;  %s9585_s16 = sld [smem:[#allocation7 + $0x15e]]  ;;  %v3237_v63 = vpop.permute.xlu1 %3236 }
 0x469   : > { %v9578_v41 = vadd.f32 %v3215_v1, %v3187_v42  ;;  %v9580_v22 = vadd.f32 %v3221_v30, %v3193_v16  ;;  %v9582_v4 = vadd.f32 %v3227_v2, %v3199_v57  ;;  %v2874_v59 = vmul.f32 %v5035_v37, %v2871_v15  ;;  %s9591_s0 = sld [smem:[#allocation7 + $0x182]] }
 0x46a   : > { %v2850_v31 = vadd.f32 %v9341_v46, %v2820_v21  ;;  %v2856_v50 = vadd.f32 %v9345_v12, %v2826_v23  ;;  %v2862_v42 = vadd.f32 %v9356_v32, %v2832_v60  ;;  %v2868_v16 = vadd.f32 %v9360_v3, %v2838_v27 }
 0x46b   : > { %v9593_v57 = vadd.f32 %v3233_v29, %v3205_v0  ;;  %v11773_v15 = vstv %s11769_s11  ;;  %v11774_v53 = vstv %s11770_s28  ;;  %v3357_v9 = vstv %s9523_s25  ;;  %s9750_s11 = sld [smem:[#allocation7 + $0x1a4]] }
 0x46c   : > { %v2878_v34 = vmul.f32 %v11773_v15, %v2874_v59  ;;  %v2884_v61 = vmul.f32 %v11774_v53, %v2874_v59  ;;  %v11775_v46 = vstv %s11771_s23  ;;  %v3355_v3 = vmul.f32 %v5032_v36, %v3353_v20  ;;  %s9757_s28 = sld [smem:[#allocation7 + $0x143]] }
 0x46d   : > { %v2890_v12 = vmul.f32 %v11775_v46, %v2874_v59  ;;  %v11776_v25 = vstv %s11772_s27  ;;  %v2904_v0 = vmul.f32 %v5035_v37, %v2901_v40  ;;  %v3363_v1 = vstv %s9538_s21  ;;  %s9787_s23 = sld [smem:[#allocation7 + $0x167]] }
 0x46e   : > { %v2896_v32 = vmul.f32 %v11776_v25, %v2874_v59  ;;  %v3369_v47 = vstv %s9540_s2  ;;  %v3375_v30 = vstv %s9558_s6  ;;  %v3240_v28 = vmul.f32 %v5035_v37, %v3237_v63  ;;  %s9793_s27 = sld [smem:[#allocation7 + $0x18b]] }
 0x46f   : > { %v2880_v2 = vadd.f32 %v2878_v34, %v2850_v31  ;;  %v2886_v17 = vadd.f32 %v2884_v61, %v2856_v50  ;;  %v2892_v29 = vadd.f32 %v2890_v12, %v2862_v42  ;;  %v11777_v45 = vstv %s9118_s12  ;;  %v3597_v34 = vpop.permute.xlu2 %3596  ;;  %s9658_s12 = sld [smem:[#allocation7 + $0x1ac]] }
 0x470   : > { %v2898_v20 = vadd.f32 %v2896_v32, %v2868_v16  ;;  %v2908_v21 = vmul.f32 %v11777_v45, %v2904_v0  ;;  %v11778_v43 = vstv %s11687_s17  ;;  %v11779_v14 = vstv %s11688_s30  ;;  %v3267_v45 = vpop.permute.xlu0 %3266  ;;  %s9741_s17 = sld [smem:[#allocation7 + $0x15c]] }
 0x471   : > { %v2914_v23 = vmul.f32 %v11778_v43, %v2904_v0  ;;  %v2920_v60 = vmul.f32 %v11779_v14, %v2904_v0  ;;  %v11780_v7 = vstv %s9186_s13  ;;  %v9628_v59 = vmul.f32 %v3357_v9, %v3355_v3  ;;  %v11785_v14 = vld [vmem:[#allocation137_spill] sm:$0xff]  ;;  %s9735_s13 = sld [smem:[#allocation7 + $0x138]] }
 0x472   : > { %v2926_v27 = vmul.f32 %v11780_v7, %v2904_v0  ;;  %v9632_v40 = vmul.f32 %v3363_v1, %v3355_v3  ;;  %v9636_v31 = vmul.f32 %v3369_v47, %v3355_v3  ;;  %v9640_v50 = vmul.f32 %v3375_v30, %v3355_v3  ;;  %v11786_v7 = vld [vmem:[#allocation142_spill] sm:$0xff]  ;;  %s9744_s30 = sld [smem:[#allocation7 + $0x180]] }
 0x473   : > { %v2910_v42 = vadd.f32 %v2908_v21, %v2880_v2  ;;  %v2916_v16 = vadd.f32 %v2914_v23, %v2886_v17  ;;  %v2922_v63 = vadd.f32 %v2920_v60, %v2892_v29  ;;  %v11781_v53 = vstv %s9031_s10  ;;  %s9693_s10 = sld [smem:[#allocation7 + $0x128]] }
 0x474   : > { %v2928_v15 = vadd.f32 %v2926_v27, %v2898_v20  ;;  %v9644_v61 = vmul.f32 %v11781_v53, %v3240_v28  ;;  %v11782_v46 = vstv %s9043_s5  ;;  %v11783_v25 = vstv %s9049_s4  ;;  %v11787_v27 = vld [vmem:[#allocation143_spill] sm:$0xff]  ;;  %v11789_v53 = vld [vmem:[#allocation141_spill] sm:$0xff]  ;;  %s9699_s4 = sld [smem:[#allocation7 + $0x14c]] }
 0x475   : > { %v9648_v12 = vmul.f32 %v11782_v46, %v3240_v28  ;;  %v9652_v32 = vmul.f32 %v11783_v25, %v3240_v28  ;;  %v11784_v0 = vstv %s9059_s22  ;;  %v2940_v2 = vadd.f32 %v9424_v39, %v2910_v42  ;;  %v11790_v25 = vld [vmem:[#allocation134_spill] sm:$0xff]  ;;  %s9710_s22 = sld [smem:[#allocation7 + $0x170]] }
 0x476   : > { %v9656_v3 = vmul.f32 %v11784_v0, %v3240_v28  ;;  %v2946_v17 = vadd.f32 %v9428_v18, %v2916_v16  ;;  %v2952_v29 = vadd.f32 %v9432_v62, %v2922_v63  ;;  %v2958_v20 = vadd.f32 %v9436_v52, %v2928_v15  ;;  %v11788_v18 = vld [vmem:[#allocation144_spill] sm:$0xff]  ;;  %s9723_s5 = sld [smem:[#allocation7 + $0x194]] }
 0x477   : > { %v10450_v21 = vstv %s9576_s15  ;;  %v10448_v43 = vstv %s9585_s16  ;;  %v10447_v28 = vstv %s9591_s0  ;;  %v3600_v23 = vmul.f32 %v5035_v37, %v3597_v34  ;;  %s11869_s25 = sld [smem:[#allocation26_spill]] }
 0x478   : > { %v2970_v60 = vadd.f32 %v11785_v14, %v2940_v2  ;;  %v2976_v39 = vadd.f32 %v11786_v7, %v2946_v17  ;;  %v2982_v42 = vadd.f32 %v11787_v27, %v2952_v29  ;;  %v2988_v16 = vadd.f32 %v11788_v18, %v2958_v20 }
 0x479   : > { %v10449_v62 = vstv %s9600_s24  ;;  %v3273_v63 = vstv %s9608_s20  ;;  %v3279_v52 = vstv %s9614_s3  ;;  %v3285_v15 = vstv %s9616_s7  ;;  %s9802_s20 = sld [smem:[#allocation7 + $0x1af]] }
 0x47a   : > { %v3000_v46 = vadd.f32 %v11789_v53, %v2970_v60  ;;  %v3006_v0 = vadd.f32 %v11790_v25, %v2976_v39  ;;  %v3012_v34 = vadd.f32 %v11791_v51, %v2982_v42  ;;  %v3018_v2 = vadd.f32 %v11792_v26, %v2988_v16  ;;  %v11793_v60 = vld [vmem:[#allocation131_spill] sm:$0xff]  ;;  %v11794_v39 = vld [vmem:[#allocation133_spill] sm:$0xff]  ;;  %v11795_v51 = vld [vmem:[#allocation138_spill] sm:$0xff]  ;;  %v3269_v16 = vpop.permute.xlu1 %3268 }
 0x47b   : > { %v9682_v17 = vmul.f32 %v10450_v21, %v3600_v23  ;;  %v9686_v29 = vmul.f32 %v10448_v43, %v3600_v23  ;;  %v9690_v20 = vmul.f32 %v10447_v28, %v3600_v23  ;;  %v3270_v14 = vmul.f32 %v5035_v37, %v3267_v45  ;;  %v11796_v26 = vld [vmem:[#allocation139_spill] sm:$0xff] }
 0x47c   : > { %v3030_v7 = vadd.f32 %v11793_v60, %v3000_v46  ;;  %v3036_v27 = vadd.f32 %v11794_v39, %v3006_v0  ;;  %v3042_v42 = vadd.f32 %v11795_v51, %v3012_v34  ;;  %v3048_v18 = vadd.f32 %v11796_v26, %v3018_v2  ;;  %v11797_v46 = vld [vmem:[#allocation149_spill] sm:$0xff]  ;;  %v11798_v34 = vld [vmem:[#allocation150_spill] sm:$0xff]  ;;  %v11799_v2 = vld [vmem:[#allocation151_spill] sm:$0xff] }
 0x47d   : > { %v9703_v53 = vmul.f32 %v10449_v62, %v3600_v23  ;;  %v3291_v25 = vstv %s9658_s12  ;;  %v3247_v45 = vadd.f32 %v9372_v58, %v9578_v41  ;;  %v3253_v28 = vadd.f32 %v9376_v56, %v9580_v22  ;;  %v11800_v51 = vld [vmem:[#allocation152_spill] sm:$0xff]  ;;  %v11801_v56 = vld [vmem:[#allocation61_spill] sm:$0xff] }
 0x47e   : > { %v3060_v0 = vadd.f32 %v11797_v46, %v3030_v7  ;;  %v3066_v60 = vadd.f32 %v11798_v34, %v3036_v27  ;;  %v3072_v39 = vadd.f32 %v11799_v2, %v3042_v42  ;;  %v3078_v26 = vadd.f32 %v11800_v51, %v3048_v18  ;;  %v11802_v22 = vld [vmem:[#allocation65_spill] sm:$0xff]  ;;  %v11803_v46 = vld [vmem:[#allocation53_spill] sm:$0xff]  ;;  %v11804_v34 = vld [vmem:[#allocation51_spill] sm:$0xff]  ;;  %v3381_v18 = vpop.permute.xlu0 %3380 }
 0x47f   : > { %v9716_v43 = vmul.f32 %v3273_v63, %v3270_v14  ;;  %v9718_v23 = vmul.f32 %v3279_v52, %v3270_v14  ;;  %v9720_v62 = vmul.f32 %v3285_v15, %v3270_v14  ;;  %v3271_v58 = vmul.f32 %v5035_v37, %v3269_v16 }
 0x480   : > { %v3084_v41 = vadd.f32 %v11801_v56, %v3060_v0  ;;  %v3090_v7 = vadd.f32 %v11802_v22, %v3066_v60  ;;  %v3096_v27 = vadd.f32 %v11803_v46, %v3072_v39  ;;  %v3102_v42 = vadd.f32 %v11804_v34, %v3078_v26  ;;  %v11805_v0 = vld [vmem:[#allocation111_spill] sm:$0xff]  ;;  %v11806_v60 = vld [vmem:[#allocation113_spill] sm:$0xff]  ;;  %v3539_v34 = vpop.permute.xlu2 %3538 }
 0x481   : > { %v9729_v2 = vmul.f32 %v3291_v25, %v3270_v14  ;;  %v3259_v51 = vadd.f32 %v9380_v48, %v9582_v4  ;;  %v3265_v16 = vadd.f32 %v9384_v54, %v9593_v57  ;;  %v3275_v21 = vmul.f32 %v3273_v63, %v3271_v58  ;;  %v11807_v39 = vld [vmem:[#allocation115_spill] sm:$0xff]  ;;  %v11808_v46 = vld [vmem:[#allocation117_spill] sm:$0xff]  ;;  %v11809_v57 = vld [vmem:[#allocation118_spill] sm:$0xff] }
 0x482   : > { %v3108_v56 = vadd.f32 %v11805_v0, %v3084_v41  ;;  %v3114_v22 = vadd.f32 %v11806_v60, %v3090_v7  ;;  %v3120_v26 = vadd.f32 %v11807_v39, %v3096_v27  ;;  %v3126_v14 = vadd.f32 %v11808_v46, %v3102_v42  ;;  %v11810_v41 = vld [vmem:[#allocation120_spill] sm:$0xff]  ;;  %v11811_v7 = vld [vmem:[#allocation122_spill] sm:$0xff] }
 0x483   : > { %v3281_v48 = vmul.f32 %v3279_v52, %v3271_v58  ;;  %v3287_v4 = vmul.f32 %v3285_v15, %v3271_v58  ;;  %v3293_v10 = vmul.f32 %v3291_v25, %v3271_v58  ;;  %v3543_v54 = vstv %s9693_s10  ;;  %v11812_v27 = vld [vmem:[#allocation124_spill] sm:$0xff]  ;;  %v11813_v25 = vld [vmem:[#allocation166_spill] sm:$0xff] }
 0x484   : > { %v3132_v63 = vadd.f32 %v11809_v57, %v3108_v56  ;;  %v3138_v0 = vadd.f32 %v11810_v41, %v3114_v22  ;;  %v3144_v60 = vadd.f32 %v11811_v7, %v3120_v26  ;;  %v3150_v39 = vadd.f32 %v11812_v27, %v3126_v14  ;;  %v11814_v56 = vld [vmem:[#allocation168_spill] sm:$0xff]  ;;  %v11815_v26 = vld [vmem:[#allocation162_spill] sm:$0xff]  ;;  %v11817_v27 = vld [vmem:[#allocation145_spill] sm:$0xff] }
 0x485   : > { %v9752_v42 = vadd.f32 %v3275_v21, %v3247_v45  ;;  %v3549_v46 = vstv %s9699_s4  ;;  %v3555_v52 = vstv %s9710_s22  ;;  %v3541_v15 = vmul.f32 %v5035_v37, %v3539_v34  ;;  %v11816_v57 = vld [vmem:[#allocation164_spill] sm:$0xff]  ;;  %s3696_s4 = scalar_lea.sflag [#allocation4], %s11869_s25 }
 0x486   : > { %v3156_v58 = vadd.f32 %v11813_v25, %v3132_v63  ;;  %v3162_v22 = vadd.f32 %v11814_v56, %v3138_v0  ;;  %v3168_v14 = vadd.f32 %v11815_v26, %v3144_v60  ;;  %v3174_v41 = vadd.f32 %v11816_v57, %v3150_v39  ;;  %v11819_v63 = vld [vmem:[#allocation147_spill] sm:$0xff]  ;;  %v11820_v0 = vld [vmem:[#allocation148_spill] sm:$0xff]  ;;  %v3351_v60 = vpop.permute.xlu1 %3350  ;;  %v11824_v26 = vld [vmem:[#allocation50_spill] sm:$0xff]  ;;  %v3323_v57 = vpop.permute.xlu0 %3322 }
 0x487   : > { %v9763_v21 = vadd.f32 %v3281_v48, %v3253_v28  ;;  %v9765_v45 = vadd.f32 %v3287_v4, %v3259_v51  ;;  %v9767_v7 = vadd.f32 %v3293_v10, %v3265_v16  ;;  %v3561_v34 = vstv %s9723_s5  ;;  %v11821_v16 = vld [vmem:[#allocation153_spill] sm:$0xff]  ;;  %v11822_v48 = vld [vmem:[#allocation28_spill] sm:$0xff] }
 0x488   : > { %v3186_v44 = vadd.f32 %v11817_v27, %v3156_v58  ;;  %v3192_v19 = vadd.f32 %v11818_v11, %v3162_v22  ;;  %v3198_v25 = vadd.f32 %v11819_v63, %v3168_v14  ;;  %v3204_v56 = vadd.f32 %v11820_v0, %v3174_v41  ;;  %v11823_v58 = vld [vmem:[#allocation37_spill] sm:$0xff] }
 0x489   : > { %v9776_v39 = vmul.f32 %v3543_v54, %v3541_v15  ;;  %v9780_v28 = vmul.f32 %v3549_v46, %v3541_v15  ;;  %v9784_v10 = vmul.f32 %v3555_v52, %v3541_v15  ;;  %v3387_v51 = vstv %s9735_s13 }
 0x48a   : > { %v3216_v11 = vadd.f32 %v11821_v16, %v3186_v44  ;;  %v3222_v4 = vadd.f32 %v11822_v48, %v3192_v19  ;;  %v3228_v22 = vadd.f32 %v11823_v58, %v3198_v25  ;;  %v3234_v14 = vadd.f32 %v11824_v26, %v3204_v56 }
 0x48b   : > { %v9797_v41 = vmul.f32 %v3561_v34, %v3541_v15  ;;  %v3393_v27 = vstv %s9741_s17  ;;  %v3384_v63 = vmul.f32 %v5032_v36, %v3381_v18  ;;  %v3354_v44 = vmul.f32 %v5032_v36, %v3351_v60 }
 0x48c   : > { %v3246_v19 = vadd.f32 %v9644_v61, %v3216_v11  ;;  %v3252_v25 = vadd.f32 %v9648_v12, %v3222_v4  ;;  %v3258_v0 = vadd.f32 %v9652_v32, %v3228_v22  ;;  %v3264_v15 = vadd.f32 %v9656_v3, %v3234_v14 }
 0x48d   : > { %v3399_v56 = vstv %s9744_s30  ;;  %v3405_v16 = vstv %s9750_s11  ;;  %v3388_v18 = vmul.f32 %v3387_v51, %v3384_v63  ;;  %v3633_v48 = vstv %s9757_s28 }
 0x48e   : > { %v3276_v60 = vadd.f32 %v9716_v43, %v3246_v19  ;;  %v3282_v58 = vadd.f32 %v9718_v23, %v3252_v25  ;;  %v3288_v26 = vadd.f32 %v9720_v62, %v3258_v0  ;;  %v3294_v61 = vadd.f32 %v9729_v2, %v3264_v15  ;;  %v3629_v2 = vpop.permute.xlu2 %3628 }
 0x48f   : > { %v3358_v12 = vmul.f32 %v3357_v9, %v3354_v44  ;;  %v3364_v32 = vmul.f32 %v3363_v1, %v3354_v44  ;;  %v3370_v3 = vmul.f32 %v3369_v47, %v3354_v44  ;;  %v3376_v11 = vmul.f32 %v3375_v30, %v3354_v44 }
 0x490   : > { %v3330_v4 = vadd.f32 %v9510_v6, %v3276_v60  ;;  %v3336_v43 = vadd.f32 %v9527_v5, %v3282_v58  ;;  %v3342_v23 = vadd.f32 %v9531_v35, %v3288_v26  ;;  %v3348_v62 = vadd.f32 %v9535_v33, %v3294_v61  ;;  %v3383_v60 = vpop.permute.xlu1 %3382  ;;  %v3413_v58 = vpop.permute.xlu0 %3412 }
 0x491   : > { %v3394_v9 = vmul.f32 %v3393_v27, %v3384_v63  ;;  %v3400_v22 = vmul.f32 %v3399_v56, %v3384_v63  ;;  %v3406_v1 = vmul.f32 %v3405_v16, %v3384_v63  ;;  %v3325_v47 = vmul.f32 %v5032_v36, %v3323_v57 }
 0x492   : > { %v3360_v14 = vadd.f32 %v3358_v12, %v3330_v4  ;;  %v3366_v30 = vadd.f32 %v3364_v32, %v3336_v43  ;;  %v3372_v6 = vadd.f32 %v3370_v3, %v3342_v23  ;;  %v3378_v44 = vadd.f32 %v3376_v11, %v3348_v62 }
 0x493   : > { %v3639_v5 = vstv %s9787_s23  ;;  %v3645_v19 = vstv %s9793_s27  ;;  %v3651_v35 = vstv %s9802_s20  ;;  %v9836_v33 = vmul.f32 %v5035_v37, %v3629_v2  ;;  %v11827_v2 = vld [vmem:[#allocation74_spill] sm:$0xff] }
 0x494   : > { %v3390_v25 = vadd.f32 %v3388_v18, %v3360_v14  ;;  %v3396_v0 = vadd.f32 %v3394_v9, %v3366_v30  ;;  %v3402_v15 = vadd.f32 %v3400_v22, %v3372_v6  ;;  %v3408_v63 = vadd.f32 %v3406_v1, %v3378_v44  ;;  %v11828_v9 = vld [vmem:[#allocation76_spill] sm:$0xff] }
 0x495   : > { %v3329_v57 = vmul.f32 %v3327_v49, %v3325_v47  ;;  %v3335_v26 = vmul.f32 %v3333_v24, %v3325_v47  ;;  %v11825_v61 = vstv %s9250_s19  ;;  %v11826_v32 = vstv %s9268_s9  ;;  %s9876_s9 = sld [smem:[#allocation7 + $0x155]] }
 0x496   : > { %v3341_v12 = vmul.f32 %v11825_v61, %v3325_v47  ;;  %v3347_v3 = vmul.f32 %v11826_v32, %v3325_v47  ;;  %v3420_v11 = vadd.f32 %v9544_v55, %v3390_v25  ;;  %v3426_v4 = vadd.f32 %v9548_v13, %v3396_v0  ;;  %s9884_s19 = sld [smem:[#allocation7 + $0x19d]] }
 0x497   : > { %v3432_v18 = vadd.f32 %v9552_v38, %v3402_v15  ;;  %v3438_v43 = vadd.f32 %v9556_v8, %v3408_v63  ;;  %v3331_v23 = vadd.f32 %v3329_v57, %v9752_v42  ;;  %v3337_v49 = vadd.f32 %v3335_v26, %v9763_v21  ;;  %v11836_v57 = vld [vmem:[#allocation98_spill] sm:$0xff] }
 0x498   : > { %v3343_v24 = vadd.f32 %v3341_v12, %v9765_v45  ;;  %v3349_v62 = vadd.f32 %v3347_v3, %v9767_v7  ;;  %v3385_v55 = vmul.f32 %v5032_v36, %v3383_v60  ;;  %v3415_v13 = vmul.f32 %v5032_v36, %v3413_v58  ;;  %v11835_v60 = vld [vmem:[#allocation97_spill] sm:$0xff] }
 0x499   : > { %v3444_v38 = vadd.f32 %v11827_v2, %v3420_v11  ;;  %v3450_v8 = vadd.f32 %v11828_v9, %v3426_v4  ;;  %v3361_v42 = vadd.f32 %v9628_v59, %v3331_v23  ;;  %v3367_v22 = vadd.f32 %v9632_v40, %v3337_v49  ;;  %v3537_v11 = vpop.permute.xlu1 %3536  ;;  %v3567_v4 = vpop.permute.xlu0 %3566  ;;  %v11838_v23 = vld [vmem:[#allocation100_spill] sm:$0xff]  ;;  %v11841_v2 = vld [vmem:[#allocation75_spill] sm:$0xff]  ;;  %v11842_v9 = vld [vmem:[#allocation73_spill] sm:$0xff] }
 0x49a   : > { %v3373_v21 = vadd.f32 %v9636_v31, %v3343_v24  ;;  %v3379_v45 = vadd.f32 %v9640_v50, %v3349_v62  ;;  %v3389_v1 = vmul.f32 %v3387_v51, %v3385_v55  ;;  %v3395_v7 = vmul.f32 %v3393_v27, %v3385_v55  ;;  %v11833_v51 = vld [vmem:[#allocation77_spill] sm:$0xff] }
 0x49b   : > { %v3401_v47 = vmul.f32 %v3399_v56, %v3385_v55  ;;  %v3407_v14 = vmul.f32 %v3405_v16, %v3385_v55  ;;  %v11829_v30 = vstv %s9364_s26  ;;  %v11830_v6 = vstv %s9438_s29  ;;  %v11834_v56 = vld [vmem:[#allocation30_spill] sm:$0xff]  ;;  %v11839_v24 = vld [vmem:[#allocation110_spill] sm:$0xff]  ;;  %v11840_v55 = vld [vmem:[#allocation112_spill] sm:$0xff]  ;;  %s9932_s26 = sld [smem:[#allocation8 + $0x2]] }
 0x49c   : > { %v3419_v36 = vmul.f32 %v11829_v30, %v3415_v13  ;;  %v3425_v44 = vmul.f32 %v11830_v6, %v3415_v13  ;;  %v11831_v25 = vstv %s9480_s18  ;;  %v11832_v15 = vstv %s9486_s1  ;;  %v11846_v30 = vld [vmem:[#allocation116_spill] sm:$0xff]  ;;  %s9940_s29 = sld [smem:[#allocation9 + $0x2]] }
 0x49d   : > { %v3431_v0 = vmul.f32 %v11831_v25, %v3415_v13  ;;  %v3437_v59 = vmul.f32 %v11832_v15, %v3415_v13  ;;  %v3391_v40 = vadd.f32 %v3389_v1, %v3361_v42  ;;  %v3397_v31 = vadd.f32 %v3395_v7, %v3367_v22  ;;  %v11843_v42 = vld [vmem:[#allocation78_spill] sm:$0xff]  ;;  %v11847_v25 = vld [vmem:[#allocation170_spill] sm:$0xff]  ;;  %s11863_s18 = sld [smem:[#allocation27_spill]] }
 0x49e   : > { %v3403_v63 = vadd.f32 %v3401_v47, %v3373_v21  ;;  %v3409_v50 = vadd.f32 %v3407_v14, %v3379_v45  ;;  %v3456_v27 = vadd.f32 %v11833_v51, %v3432_v18  ;;  %v3462_v16 = vadd.f32 %v11834_v56, %v3438_v43  ;;  %v11837_v18 = vld [vmem:[#allocation99_spill] sm:$0xff]  ;;  %v11845_v47 = vld [vmem:[#allocation114_spill] sm:$0xff]  ;;  %v11848_v15 = vld [vmem:[#allocation171_spill] sm:$0xff]  ;;  %s11868_s1 = sld [smem:[#allocation21_spill]] }
 0x49f   : > { %v3468_v58 = vadd.f32 %v11835_v60, %v3444_v38  ;;  %v3474_v26 = vadd.f32 %v11836_v57, %v3450_v8  ;;  %v3421_v61 = vadd.f32 %v3419_v36, %v3391_v40  ;;  %v3427_v12 = vadd.f32 %v3425_v44, %v3397_v31  ;;  %v11844_v21 = vld [vmem:[#allocation29_spill] sm:$0xff]  ;;  %v11849_v40 = vld [vmem:[#allocation101_spill] sm:$0xff] }
 0x4a0   : > { %v3433_v32 = vadd.f32 %v3431_v0, %v3403_v63  ;;  %v3439_v3 = vadd.f32 %v3437_v59, %v3409_v50  ;;  %v3480_v43 = vadd.f32 %v11837_v18, %v3456_v27  ;;  %v3486_v49 = vadd.f32 %v11838_v23, %v3462_v16  ;;  %v11850_v63 = vld [vmem:[#allocation103_spill] sm:$0xff]  ;;  %v11851_v51 = vld [vmem:[#allocation105_spill] sm:$0xff] }
 0x4a1   : > { %v3492_v62 = vadd.f32 %v11839_v24, %v3468_v58  ;;  %v3498_v13 = vadd.f32 %v11840_v55, %v3474_v26  ;;  %v3445_v38 = vadd.f32 %v11841_v2, %v3421_v61  ;;  %v3451_v8 = vadd.f32 %v11842_v9, %v3427_v12  ;;  %v11852_v16 = vld [vmem:[#allocation108_spill] sm:$0xff]  ;;  %v11854_v12 = vld [vmem:[#allocation173_spill] sm:$0xff]  ;;  %v11855_v2 = vld [vmem:[#allocation178_spill] sm:$0xff] }
 0x4a2   : > { %v3457_v22 = vadd.f32 %v11843_v42, %v3433_v32  ;;  %v3463_v45 = vadd.f32 %v11844_v21, %v3439_v3  ;;  %v9897_v1 = vmul.f32 %v3633_v48, %v9836_v33  ;;  %v9902_v7 = vmul.f32 %v3639_v5, %v9836_v33  ;;  %v11853_v26 = vld [vmem:[#allocation172_spill] sm:$0xff] }
 0x4a3   : > { %v3504_v14 = vadd.f32 %v11845_v47, %v3480_v43  ;;  %v3510_v36 = vadd.f32 %v11846_v30, %v3486_v49  ;;  %v9909_v6 = vmul.f32 %v3645_v19, %v9836_v33  ;;  %v9914_v44 = vmul.f32 %v3651_v35, %v9836_v33  ;;  %v11858_v42 = vld [vmem:[#allocation128_spill] sm:$0xff] }
 0x4a4   : > { %v3516_v0 = vadd.f32 %v11847_v25, %v3492_v62  ;;  %v3522_v59 = vadd.f32 %v11848_v15, %v3498_v13  ;;  %v3469_v31 = vadd.f32 %v11849_v40, %v3445_v38  ;;  %v3475_v50 = vadd.f32 %v11850_v63, %v3451_v8  ;;  %v3569_v13 = vpop.permute.xlu1 %3568  ;;  %s4290_s21 = sshll.u32 %s11868_s1, 6 }
 0x4a5   : > { %v3481_v27 = vadd.f32 %v11851_v51, %v3457_v22  ;;  %v3540_v56 = vmul.f32 %v5035_v37, %v3537_v11  ;;  %v3487_v60 = vadd.f32 %v11852_v16, %v3463_v45  ;;  %v3573_v33 = vstv %s9874_s8 }
 0x4a6   : > { %v3579_v58 = vstv %s9876_s9  ;;  %v3570_v57 = vmul.f32 %v5035_v37, %v3567_v4  ;;  %v3528_v61 = vadd.f32 %v11853_v26, %v3504_v14  ;;  %v3534_v32 = vadd.f32 %v11854_v12, %v3510_v36  ;;  %v11859_v14 = vld [vmem:[#allocation130_spill] sm:$0xff]  ;;  %v11860_v36 = vld [vmem:[#allocation132_spill] sm:$0xff] }
 0x4a7   : > { %v3544_v3 = vmul.f32 %v3543_v54, %v3540_v56  ;;  %v3550_v18 = vmul.f32 %v3549_v46, %v3540_v56  ;;  %v3556_v43 = vmul.f32 %v3555_v52, %v3540_v56  ;;  %v3562_v11 = vmul.f32 %v3561_v34, %v3540_v56  ;;  %v11856_v54 = vld [vmem:[#allocation179_spill] sm:$0xff]  ;;  %v11857_v46 = vld [vmem:[#allocation126_spill] sm:$0xff]  ;;  %v3599_v52 = vpop.permute.xlu0 %3598 }
 0x4a8   : > { %v3585_v23 = vstv %s9882_s14  ;;  %v3591_v49 = vstv %s9884_s19  ;;  %v3574_v62 = vmul.f32 %v3573_v33, %v3570_v57  ;;  %v3580_v55 = vmul.f32 %v3579_v58, %v3570_v57 }
 0x4a9   : > { %v3546_v24 = vadd.f32 %v3544_v3, %v3516_v0  ;;  %v3552_v4 = vadd.f32 %v3550_v18, %v3522_v59  ;;  %v3493_v38 = vadd.f32 %v11855_v2, %v3469_v31  ;;  %v3499_v9 = vadd.f32 %v11856_v54, %v3475_v50  ;;  %v11861_v0 = vld [vmem:[#allocation33_spill] sm:$0xff]  ;;  %v11862_v59 = vld [vmem:[#allocation32_spill] sm:$0xff]  ;;  %v4452_v2 = vld [vmem:[%s11863_s18 + $0x18] sm:$0xff] }
 0x4aa   : > { %v3505_v8 = vadd.f32 %v11857_v46, %v3481_v27  ;;  %v3511_v22 = vadd.f32 %v11858_v42, %v3487_v60  ;;  %v3558_v21 = vadd.f32 %v3556_v43, %v3528_v61  ;;  %v3564_v34 = vadd.f32 %v3562_v11, %v3534_v32  ;;  %v4453_v54 = vld [vmem:[%s11863_s18 + $0x28] sm:$0xff]  ;;  %v4454_v46 = vld [vmem:[%s11863_s18 + $0x38] sm:$0xff] }
 0x4ab   : > { %v3586_v45 = vmul.f32 %v3585_v23, %v3570_v57  ;;  %v3592_v47 = vmul.f32 %v3591_v49, %v3570_v57  ;;  %v3517_v30 = vadd.f32 %v11859_v14, %v3493_v38  ;;  %v3523_v25 = vadd.f32 %v11860_v36, %v3499_v9 }
 0x4ac   : > { %v3529_v15 = vadd.f32 %v11861_v0, %v3505_v8  ;;  %v3535_v40 = vadd.f32 %v11862_v59, %v3511_v22  ;;  %v3576_v31 = vadd.f32 %v3574_v62, %v3546_v24  ;;  %v3582_v63 = vadd.f32 %v3580_v55, %v3552_v4 }
 0x4ad   : > { %v3571_v50 = vmul.f32 %v5035_v37, %v3569_v13  ;;  %v3601_v51 = vmul.f32 %v5035_v37, %v3599_v52  ;;  %v3547_v27 = vadd.f32 %v9776_v39, %v3517_v30  ;;  %v3553_v56 = vadd.f32 %v9780_v28, %v3523_v25 }
 0x4ae   : > { %v3559_v16 = vadd.f32 %v9784_v10, %v3529_v15  ;;  %v3565_v60 = vadd.f32 %v9797_v41, %v3535_v40  ;;  %v3588_v32 = vadd.f32 %v3586_v45, %v3558_v21  ;;  %v3594_v3 = vadd.f32 %v3592_v47, %v3564_v34  ;;  %v3627_v34 = vpop.permute.xlu1 %3626 }
 0x4af   : > { %v3575_v57 = vmul.f32 %v3573_v33, %v3571_v50  ;;  %v3581_v26 = vmul.f32 %v3579_v58, %v3571_v50  ;;  %v3587_v61 = vmul.f32 %v3585_v23, %v3571_v50  ;;  %v3593_v12 = vmul.f32 %v3591_v49, %v3571_v50  ;;  %v4451_v49 = vld [vmem:[%s11863_s18 + $0x8] sm:$0xff] }
 0x4b0   : > { %v3658_v39 = vstv %s9932_s26  ;;  %v9958_v18 = vstv %s9940_s29  ;;  %v11864_v24 = vstv %s9576_s15  ;;  %v11865_v4 = vstv %s9585_s16  ;;  %s11870_s15 = sld [smem:[#allocation187_spill]] }
 0x4b1   : > { %v3577_v28 = vadd.f32 %v3575_v57, %v3547_v27  ;;  %v3583_v43 = vadd.f32 %v3581_v26, %v3553_v56  ;;  %v3589_v10 = vadd.f32 %v3587_v61, %v3559_v16  ;;  %v3595_v11 = vadd.f32 %v3593_v12, %v3565_v60 }
 0x4b2   : > { %v3605_v41 = vmul.f32 %v11864_v24, %v3601_v51  ;;  %v3611_v33 = vmul.f32 %v11865_v4, %v3601_v51  ;;  %v11866_v62 = vstv %s9591_s0  ;;  %v11867_v23 = vstv %s9600_s24  ;;  %s11872_s24 = sshll.u32 %s11869_s25, 6 }
 0x4b3   : > { %v3617_v58 = vmul.f32 %v11866_v62, %v3601_v51  ;;  %v3623_v55 = vmul.f32 %v11867_v23, %v3601_v51  ;;  %v3660_v13 = vmul.f32 %v4451_v49, %v3658_v39  ;;  %v3667_v38 = vmul.f32 %v4452_v2, %v3658_v39  ;;  %s257_s3 = scalar_lea.vmem [#allocation11], %s11872_s24 }
 0x4b4   : > { %v3673_v9 = vmul.f32 %v4453_v54, %v3658_v39  ;;  %v3679_v8 = vmul.f32 %v4454_v46, %v3658_v39  ;;  %v3607_v42 = vadd.f32 %v3605_v41, %v3577_v28  ;;  %v3613_v22 = vadd.f32 %v3611_v33, %v3583_v43  ;;  %s3708_s7 = sshll.u32 %s257_s3, 4  ;;  %s3709_s7 = int_to_ptr.vmem [resolvable:$true] %s3708_s7 }
 0x4b5   : > { %v3619_v52 = vadd.f32 %v3617_v58, %v3589_v10  ;;  %v3625_v21 = vadd.f32 %v3623_v55, %v3595_v11  ;;  %v3606_v45 = vadd.f32 %v9682_v17, %v3576_v31  ;;  %v3612_v47 = vadd.f32 %v9686_v29, %v3582_v63  ;;  %v4455_v17 = vld [vmem:[%s11863_s18] sm:$0xff]  ;;  %v4456_v29 = vld [vmem:[%s11863_s18 + $0x10] sm:$0xff] }
 0x4b6   : > { %v3618_v14 = vadd.f32 %v9690_v20, %v3588_v32  ;;  %v3624_v30 = vadd.f32 %v9703_v53, %v3594_v3  ;;  %v3637_v36 = vadd.f32 %v9897_v1, %v3607_v42  ;;  %v3643_v25 = vadd.f32 %v9902_v7, %v3613_v22  ;;  %v4457_v20 = vld [vmem:[%s11863_s18 + $0x20] sm:$0xff]  ;;  %s11871_s0 = smov %s11870_s15  ;;  %s3707_s16 = scalar_lea.hbm %s11870_s15, %s4290_s21 }
 0x4b7   : > { %v3649_v0 = vadd.f32 %v9909_v6, %v3619_v52  ;;  %v3655_v15 = vadd.f32 %v9914_v44, %v3625_v21  ;;  %v3659_v59 = vmul.f32 %v4455_v17, %v3658_v39  ;;  %v3666_v40 = vmul.f32 %v4456_v29, %v3658_v39  ;;  %s3710_s12 = sshll.u32 %s3707_s16, 4  ;;  %s4554_s30 = scalar_lea.hbm %s11871_s0, 128  ;;  %s3711_s12 = int_to_ptr.hbm [resolvable:$true] %s3710_s12 }
 0x4b8   : > { %v3672_v31 = vmul.f32 %v4457_v20, %v3658_v39  ;;  %v3630_v53 = vmul.f32 %v5035_v37, %v3627_v34  ;;  %v3663_v1 = vmul.f32 %v9958_v18, %v3637_v36  ;;  %v3669_v63 = vmul.f32 %v9958_v18, %v3643_v25  ;;  %s4548_s22 = sshra.s32 %s3711_s12, 4  ;;  %s4549_s22 = int_to_ptr.hbm [resolvable:$true] %s4548_s22 }
 0x4b9   : > { %v3675_v7 = vmul.f32 %v9958_v18, %v3649_v0  ;;  %v3681_v6 = vmul.f32 %v9958_v18, %v3655_v15  ;;  %s4550_s5 = scalar_lea.hbm %s4549_s22, 64  ;;  %p4555_p9 = scmp.lt.s32.totalorder %s4549_s22, %s11871_s0 }
 0x4ba   : > { %v3634_v44 = vmul.f32 %v3633_v48, %v3630_v53  ;;  %v3640_v50 = vmul.f32 %v3639_v5, %v3630_v53  ;;  %v3646_v51 = vmul.f32 %v3645_v19, %v3630_v53  ;;  %v3652_v27 = vmul.f32 %v3651_v35, %v3630_v53  ;;  %v4458_v48 = vld [vmem:[%s11863_s18 + $0x30] sm:$0xff]  ;;  %p4551_p1 = scmp.ne.s32.totalorder %s4549_s22, %s4550_s5  ;;  %p4556_p10 = scmp.lt.s32.totalorder %s4554_s30, %s4550_s5 }
 0x4bb   : > { %v3665_v37 = vsub.f32 %v3660_v13, %v3663_v1  ;;  %v3671_v56 = vsub.f32 %v3667_v38, %v3669_v63  ;;  %v3677_v16 = vsub.f32 %v3673_v9, %v3675_v7  ;;  %v3683_v60 = vsub.f32 %v3679_v8, %v3681_v6 }
 0x4bc   : > { %v3636_v57 = vadd.f32 %v3634_v44, %v3606_v45  ;;  %v3642_v26 = vadd.f32 %v3640_v50, %v3612_v47  ;;  %v3648_v61 = vadd.f32 %v3646_v51, %v3618_v14  ;;  %v3654_v12 = vadd.f32 %v3652_v27, %v3624_v30  ;;  %p4552_p4 = pnand %p4551_p1, %p4722_p7  ;;  %p4557_p2 = por %p4556_p10, %p4555_p9 }
 0x4bd   : > { %3685 = vst [vmem:[%s257_s3 + $0x8] sm:$0xff] %v3665_v37  ;;  %v3678_v5 = vmul.f32 %v4458_v48, %v3658_v39 }
 0x4be   : > { %4279 = vst [vmem:[%s257_s3 + $0x18] sm:$0xff] %v3671_v56  ;;  %v3662_v19 = vmul.f32 %v9958_v18, %v3636_v57  ;;  %v3668_v35 = vmul.f32 %v9958_v18, %v3642_v26  ;;  %v3674_v32 = vmul.f32 %v9958_v18, %v3648_v61  ;;  %v3680_v3 = vmul.f32 %v9958_v18, %v3654_v12  ;;  %p4553_p8 = pneg %p4552_p4 }
 0x4bf   : > { %4281 = vst [vmem:[%s257_s3 + $0x28] sm:$0xff] %v3677_v16 }
 0x4c0   : > { %4283 = vst [vmem:[%s257_s3 + $0x38] sm:$0xff] %v3683_v60  ;;  %v3664_v28 = vsub.f32 %v3659_v59, %v3662_v19  ;;  %v3670_v43 = vsub.f32 %v3666_v40, %v3668_v35  ;;  %v3676_v10 = vsub.f32 %v3672_v31, %v3674_v32  ;;  %v3682_v11 = vsub.f32 %v3678_v5, %v3680_v3  ;;  %p4558_p11 = pnand %p4557_p2, %p4553_p8 }
 0x4c2   : > { %3684 = vst [vmem:[%s257_s3] sm:$0xff] %v3664_v28 }
 0x4c3   : > { %4278 = vst [vmem:[%s257_s3 + $0x10] sm:$0xff] %v3670_v43 }
 0x4c4   : > { %4280 = vst [vmem:[%s257_s3 + $0x20] sm:$0xff] %v3676_v10 }
 0x4c5   : > { %4282 = vst [vmem:[%s257_s3 + $0x30] sm:$0xff] %v3682_v11 }
 0x4c6   : > { %4561 = shalt.err (!%p4558_p11)
}
 0x4c7   : > { %s4622_s23 = smov 128   ;;  %s4623_s27 = smov 8  }
 0x4c8   : > { %4305 = dma.vmem_to_hbm [thread:$0]  (%p4722_p7), %s3709_s7, 1024, %s3711_s12, %s3696_s4, %s4622_s23, %s4622_s23, %s4623_s27  }
 0x4c9 PF: > { %s11874_s20 = sld [smem:[#allocation17_spill]] }
 0x4ca   : > { %s11876_s9 = sld [smem:[#allocation20_spill]] }
 0x4cf   : > { %s3725_s14 = sand.u32 1, %s11874_s20  }
 0x4d0   : > { %p11877_p12 = scmp.ge.s32.totalorder %s11876_s9, 2  ;;  %s3726_s19 = scalar_lea.sflag [#allocation4], %s3725_s14 }
 0x4d2   : > { %p4322_p13 = pnand %p11877_p12, %p4684_p6 }
 0x4d4   : > { %p4323_p0 = pneg %p4322_p13 }
 0x4d6   : > { %4595 = dma.done.wait (%p4323_p0), %s3726_s19, 1024  }
 0x4d7   : > { %4597 = vsyncadd (%p4323_p0), %s3726_s19, 4294966272  ;;  %s11878_s18 = sld [smem:[#allocation23_spill]] }
 0x4d8   : > { %s11879_s15 = sld [smem:[#allocation18_spill]] }
 0x4d9   : > { %s11880_s16 = sld [smem:[#allocation19_spill]] }
 0x4da   : > { %s11881_s17 = sld [smem:[#allocation24_spill]] }
 0x4dd   : > { %p20_p3 = scmp.ge.s32.totalorder %s11878_s18, 4  }
 0x4df   :  { %22 = sbr.rel (!%p20_p3) target bundleno = 14 (0xe), region = 101 }
 0x4e4   :  { %3732 = vsyncpa [#allocation3], 1 }
 0x4e5   :  { %3734 = vsyncpa [#allocation3 + $0x1], 1 }
 0x4e6   :  { %3735 = vsyncpa [#allocation4], 1 }
 0x4e7   :  { %3737 = vsyncpa [#allocation4 + $0x1], 1 }
 0x4e8   :  { %3738 = vsyncpa [#allocation5], 1 }
 0x4e9   :  { %3740 = vsyncpa [#allocation5 + $0x1], 1 }
 0x4ea   :  { %3741 = vsyncpa [#allocation6], 1 }
 0x4eb   :  { %3743 = vsyncpa [#allocation6 + $0x1], 1 }
 0x4ec   :  { %3744 = vsyncpa [#allocation10], 1 }

</bundles_post_ra>
